<compile_context>
chip_gen: v7x
topology: tpu7x:2x2x1
jax: 0.10.0
libtpu: 0.0.40
codegen_flags: <defaults>
</compile_context>

<pallas_src>
import jax
import jax.numpy as jnp
from jax import lax
from jax.experimental import pallas as pl
from jax.experimental.pallas import tpu as pltpu

# ---------------- small synthetic config ----------------
B = 2          # batch
L = 256        # audio samples
ENC_K = 8      # encoder conv kernel == stride (downsample factor)
DIM = 32       # feature / backbone width
INTER = 64     # ConvNeXt intermediate width
NLAYERS = 2    # ConvNeXt blocks
KCODES = 16    # VQ codebook size
N_FFT = 16
HOP = 8
DWK = 7        # depthwise / embed conv kernel size
PAD = DWK // 2
EPS = 1e-6     # LayerNorm eps (Vocos uses 1e-6)
NBINS = N_FFT // 2 + 1

# packed-vector row indices (see `vecs` packing in the wrapper)
_ENC_B, _EMB_B, _NORM_G, _NORM_B, _FIN_G, _FIN_B = range(6)
_PER_LAYER = 5   # per-layer rows: dw_b, ln_g, ln_b, b2, gamma


# ---------------- the fused kernel ----------------
def _make_kernel(bsz, t):
    bt = bsz * t

    def kernel(patches_ref, enc_w_ref, cb_ref, embed_w_ref, dw_w_ref,
               w1_ref, b1_ref, w2_ref, head_w_ref, head_b_ref, basis_ref,
               vecs_ref, frames_ref, loss_ref):
        dim = enc_w_ref.shape[1]
        nlayers = dw_w_ref.shape[0]
        kcodes = cb_ref.shape[0]
        f32, bf16 = jnp.float32, jnp.bfloat16

        def vrow(k):                       # one packed (1, DIM) bias/affine row
            return vecs_ref[k:k + 1, :]

        def layernorm(x, g, b):            # single-pass stats (one traversal)
            mu = jnp.mean(x, axis=-1, keepdims=True)
            ex2 = jnp.mean(x * x, axis=-1, keepdims=True)
            var = ex2 - mu * mu
            return (x - mu) * lax.rsqrt(var + EPS) * g + b

        # per-row time index, used to mask conv taps at batch-element edges
        t_idx = lax.broadcasted_iota(jnp.int32, (bsz, t, dim), 1).reshape(bt, dim)

        def tap(h, o):
            # h[row + o] within each batch element, zero outside [0, T).
            # pltpu.roll runs on the (idle) XLU slot and keeps h in vregs.
            if o == 0:
                return h
            rolled = pltpu.roll(h, shift=(-o) % bt, axis=0)
            valid = (t_idx + o >= 0) & (t_idx + o < t)
            return jnp.where(valid, rolled, 0.0)

        # === EncodecFeatures: strided conv encoder + VQ (fused) ===
        # TODO(synk): the full SEANet encoder stack + residual VQ is reduced to
        # a single strided conv + single VQ codebook (same (B, C, T) feature
        # contract and commitment loss).
        feats = (jnp.dot(patches_ref[...].astype(bf16), enc_w_ref[...],
                         preferred_element_type=f32) + vrow(_ENC_B))
        cb = cb_ref[...]                                   # (K, DIM) bf16
        cbf = cb.astype(f32)
        c2 = jnp.sum(cbf * cbf, axis=-1)[None, :]          # (1, K)
        xc = lax.dot_general(feats.astype(bf16), cb,       # feats @ cb^T
                             dimension_numbers=(((1,), (1,)), ((), ())),
                             preferred_element_type=f32)
        d = c2 - 2.0 * xc                # |x|^2 dropped (constant per row)
        iota = lax.broadcasted_iota(jnp.int32, d.shape, 1)
        dmin = jnp.min(d, axis=-1, keepdims=True)
        cand = jnp.where(d <= dmin, iota, kcodes)          # first argmin index
        idx = jnp.min(cand, axis=-1, keepdims=True)
        onehot = (iota == idx).astype(bf16)
        quant = jnp.dot(onehot, cb, preferred_element_type=f32)
        diff = feats - quant
        loss_ref[0, 0] = jnp.mean(diff * diff)             # scalar -> SMEM

        # === VocosBackbone ===
        # TODO(synk): AdaLayerNorm(bandwidth_id) replaced by plain LayerNorm.
        # embed Conv1d(DIM->DIM, k=7): 7 per-tap bf16 matmuls, f32 accumulate.
        # (On v7x the chained dots map to in-place MRB accumulation; at real
        #  DIM on v5e/v6e unfold the taps to one K=7*DIM matmul per row tile.)
        acc = jnp.zeros((bt, dim), f32)
        for j in range(DWK):
            acc = acc + jnp.dot(tap(quant, j - PAD).astype(bf16),
                                embed_w_ref[j], preferred_element_type=f32)
        h = acc + vrow(_EMB_B)
        h = layernorm(h, vrow(_NORM_G), vrow(_NORM_B))

        # ConvNeXt blocks (NLAYERS tiny -> static unroll; see scaling note)
        for li in range(nlayers):
            base = 6 + _PER_LAYER * li
            acc = jnp.zeros((bt, dim), f32)
            for j in range(DWK):                           # depthwise conv (VPU)
                acc = acc + tap(h, j - PAD) * dw_w_ref[li, j:j + 1, :]
            y = acc + vrow(base + 0)
            y = layernorm(y, vrow(base + 1), vrow(base + 2))
            y = jnp.dot(y.astype(bf16), w1_ref[li],
                        preferred_element_type=f32) + b1_ref[li]
            # TODO(synk): nn.GELU() default is exact erf; tanh approximation
            # used for guaranteed Mosaic lowering.
            y = jax.nn.gelu(y, approximate=True)
            y = jnp.dot(y.astype(bf16), w2_ref[li],
                        preferred_element_type=f32) + vrow(base + 3)
            h = h + vrow(base + 4) * y                     # layer scale + residual

        h = layernorm(h, vrow(_FIN_G), vrow(_FIN_B))

        # === ISTFTHead: fused mag|phase projection -> fused windowed iDFT ===
        proj = (jnp.dot(h.astype(bf16), head_w_ref[...],
                        preferred_element_type=f32) + head_b_ref[...])
        logmag = proj[:, :NBINS]
        phase = proj[:, NBINS:]
        mag = jnp.minimum(jnp.exp(logmag), 1e2)
        real = mag * jnp.cos(phase)
        imag = mag * jnp.sin(phase)
        ri = jnp.concatenate([real, imag], axis=-1)        # (BT, 2*NBINS)
        frames_ref[...] = jnp.dot(ri.astype(bf16), basis_ref[...],
                                  preferred_element_type=f32)

    return kernel


def run_fused(args, b, t):
    kernel = _make_kernel(b, t)
    return pl.pallas_call(
        kernel,
        out_shape=(
            jax.ShapeDtypeStruct((b * t, N_FFT), jnp.float32),   # iDFT frames
            jax.ShapeDtypeStruct((1, 1), jnp.float32),           # commit loss
        ),
        in_specs=[pl.BlockSpec(memory_space=pltpu.MemorySpace.VMEM)] * len(args),
        out_specs=(
            pl.BlockSpec(memory_space=pltpu.MemorySpace.VMEM),
            pl.BlockSpec(memory_space=pltpu.MemorySpace.SMEM),
        ),
    )(*args)


# ---------------- glue helpers ----------------
def istft_bases():
    n = jnp.arange(N_FFT, dtype=jnp.float32)
    k = jnp.arange(NBINS, dtype=jnp.float32)
    window = 0.5 * (1.0 - jnp.cos(2.0 * jnp.pi * n / N_FFT))   # periodic hann
    coef = jnp.where((k == 0) | (k == N_FFT // 2), 1.0, 2.0)
    ang = 2.0 * jnp.pi * k[:, None] * n[None, :] / N_FFT
    br = coef[:, None] * jnp.cos(ang) / N_FFT * window[None, :]
    bi = -coef[:, None] * jnp.sin(ang) / N_FFT * window[None, :]
    return br, bi, window


def init_params(key):
    ks = iter(jax.random.split(key, 32))

    def nrm(shape, scale):
        return scale * jax.random.normal(next(ks), shape, jnp.float32)

    return {
        # EncodecFeatures (simplified): strided conv encoder + one VQ codebook
        "enc_w": nrm((ENC_K, DIM), 1.0 / (ENC_K ** 0.5)),
        "enc_b": nrm((1, DIM), 0.01),
        "codebook": nrm((KCODES, DIM), 1.0),
        # VocosBackbone
        "embed_w": nrm((DWK, DIM, DIM), 1.0 / ((DIM * DWK) ** 0.5)),
        "embed_b": nrm((1, DIM), 0.01),
        "norm_g": jnp.ones((1, DIM), jnp.float32),
        "norm_b": jnp.zeros((1, DIM), jnp.float32),
        "final_g": jnp.ones((1, DIM), jnp.float32),
        "final_b": jnp.zeros((1, DIM), jnp.float32),
        # ConvNeXt blocks, stacked along a leading NLAYERS axis
        "dw_w": nrm((NLAYERS, DWK, DIM), 1.0 / (DWK ** 0.5)),
        "dw_b": nrm((NLAYERS, 1, DIM), 0.01),
        "ln_g": jnp.ones((NLAYERS, 1, DIM), jnp.float32),
        "ln_b": jnp.zeros((NLAYERS, 1, DIM), jnp.float32),
        "w1": nrm((NLAYERS, DIM, INTER), 1.0 / (DIM ** 0.5)),
        "b1": nrm((NLAYERS, 1, INTER), 0.01),
        "w2": nrm((NLAYERS, INTER, DIM), 1.0 / (INTER ** 0.5)),
        "b2": nrm((NLAYERS, 1, DIM), 0.01),
        "gamma": jnp.full((NLAYERS, 1, DIM), 1.0 / NLAYERS, jnp.float32),
        # ISTFTHead (Linear DIM -> N_FFT+2, stored split into mag / phase)
        "head_w_mag": nrm((DIM, NBINS), 1.0 / (DIM ** 0.5)),
        "head_b_mag": nrm((1, NBINS), 0.01),
        "head_w_ph": nrm((DIM, NBINS), 1.0 / (DIM ** 0.5)),
        "head_b_ph": nrm((1, NBINS), 0.01),
    }


# ---------------- forward pass ----------------
def wavtokenizer_forward(params, audio, br, bi, window):
    b, l = audio.shape
    t = l // ENC_K
    bf16 = jnp.bfloat16
    p = params

    # encoder "conv": stride == kernel, no padding -> im2col is a pure reshape
    patches = audio.reshape(b * t, ENC_K)

    # pack the ~15 tiny (1, DIM) bias/affine parameters into one array
    vec_rows = [p["enc_b"], p["embed_b"], p["norm_g"], p["norm_b"],
                p["final_g"], p["final_b"]]
    for li in range(NLAYERS):
        vec_rows += [p["dw_b"][li], p["ln_g"][li], p["ln_b"][li],
                     p["b2"][li], p["gamma"][li]]
    vecs = jnp.concatenate(vec_rows, axis=0)                       # (16, DIM)

    # fused head / iDFT weights (one projection matmul, one iDFT matmul)
    head_w = jnp.concatenate([p["head_w_mag"], p["head_w_ph"]], axis=1).astype(bf16)
    head_b = jnp.concatenate([p["head_b_mag"], p["head_b_ph"]], axis=1)
    basis = jnp.concatenate([br, bi], axis=0).astype(bf16)          # (2*NBINS, N_FFT)

    args = (
        patches,
        p["enc_w"].astype(bf16),
        p["codebook"].astype(bf16),
        p["embed_w"].astype(bf16),
        p["dw_w"],                     # depthwise weights used on VPU -> f32
        p["w1"].astype(bf16),
        p["b1"],
        p["w2"].astype(bf16),
        head_w,
        head_b,
        basis,
        vecs,
    )
    frames, loss = run_fused(args, b, t)
    commit_loss = loss[0, 0]

    # ISTFT overlap-add, shifted-slab form (N_FFT / HOP == 2): two padded adds
    # of contiguous slabs instead of a scatter-add.
    fr = frames.reshape(b, t, N_FFT)
    first = fr[:, :, :HOP].reshape(b, t * HOP)
    second = fr[:, :, HOP:].reshape(b, t * HOP)
    y = jnp.pad(first, ((0, 0), (0, HOP))) + jnp.pad(second, ((0, 0), (HOP, 0)))

    w2 = window ** 2
    env = (jnp.pad(jnp.tile(w2[:HOP], t), (0, HOP))
           + jnp.pad(jnp.tile(w2[HOP:], t), (HOP, 0)))

    pad = (N_FFT - HOP) // 2
    out_len = t * HOP + HOP
    audio_out = y[:, pad:out_len - pad] / env[pad:out_len - pad]
    return audio_out, commit_loss


if __name__ == "__main__":
    key = jax.random.PRNGKey(0)
    pkey, akey = jax.random.split(key)
    params = init_params(pkey)
    audio = jax.random.normal(akey, (B, L), jnp.float32)
    br, bi, window = istft_bases()

    fwd = jax.jit(wavtokenizer_forward)
    audio_out, commit_loss = fwd(params, audio, br, bi, window)
    jax.block_until_ready((audio_out, commit_loss))

    assert audio_out.shape == (B, L), audio_out.shape
    assert bool(jnp.isfinite(audio_out).all())
    assert bool(jnp.isfinite(commit_loss))
    print("KERNEL_OK")
</pallas_src>

<mosaic_0001>
module attributes {stable_mosaic.version = 11 : i64} {
  func.func @kernel(%arg0: memref<64x8xf32, #tpu.memory_space<vmem>>, %arg1: memref<8x32xbf16, #tpu.memory_space<vmem>>, %arg2: memref<16x32xbf16, #tpu.memory_space<vmem>>, %arg3: memref<7x32x32xbf16, #tpu.memory_space<vmem>>, %arg4: memref<2x7x32xf32, #tpu.memory_space<vmem>>, %arg5: memref<2x32x64xbf16, #tpu.memory_space<vmem>>, %arg6: memref<2x1x64xf32, #tpu.memory_space<vmem>>, %arg7: memref<2x64x32xbf16, #tpu.memory_space<vmem>>, %arg8: memref<32x18xbf16, #tpu.memory_space<vmem>>, %arg9: memref<1x18xf32, #tpu.memory_space<vmem>>, %arg10: memref<18x16xbf16, #tpu.memory_space<vmem>>, %arg11: memref<16x32xf32, #tpu.memory_space<vmem>>, %arg12: memref<64x16xf32, #tpu.memory_space<vmem>>, %arg13: memref<1x1xf32, #tpu.memory_space<smem>>) attributes {dimension_semantics = [], scalar_prefetch = 0 : i64, scratch_operands = 0 : i64, tpu.core_type = #tpu.core_type<tc>} {
    %0 = tpu.iota {dimensions = array<i32: 1>} : vector<2x32x32xi32>
    %1 = vector.shape_cast %0 : vector<2x32x32xi32> to vector<64x32xi32>
    %c0 = arith.constant 0 : index
    %c0_0 = arith.constant 0 : index
    %2 = vector.load %arg0[%c0, %c0_0] : memref<64x8xf32, #tpu.memory_space<vmem>>, vector<64x8xf32>
    %3 = arith.truncf %2 : vector<64x8xf32> to vector<64x8xbf16>
    %c0_1 = arith.constant 0 : index
    %c0_2 = arith.constant 0 : index
    %4 = vector.load %arg1[%c0_1, %c0_2] : memref<8x32xbf16, #tpu.memory_space<vmem>>, vector<8x32xbf16>
    %cst = arith.constant dense<0.000000e+00> : vector<64x32xf32>
    %5 = tpu.matmul %3, %4, %cst {dimension_numbers = #tpu.dot_dimension_numbers<[1], [0], [0], [1], [0, 0, 1, 1], [], []>} : vector<64x8xbf16>, vector<8x32xbf16>, vector<64x32xf32> -> vector<64x32xf32>
    %c0_3 = arith.constant 0 : index
    %c0_4 = arith.constant 0 : index
    %6 = vector.load %arg11[%c0_3, %c0_4] : memref<16x32xf32, #tpu.memory_space<vmem>>, vector<1x32xf32>
    %7 = vector.broadcast %6 : vector<1x32xf32> to vector<64x32xf32>
    %8 = arith.addf %5, %7 : vector<64x32xf32>
    %c0_5 = arith.constant 0 : index
    %c0_6 = arith.constant 0 : index
    %9 = vector.load %arg2[%c0_5, %c0_6] : memref<16x32xbf16, #tpu.memory_space<vmem>>, vector<16x32xbf16>
    %10 = arith.extf %9 : vector<16x32xbf16> to vector<16x32xf32>
    %11 = arith.mulf %10, %10 : vector<16x32xf32>
    %cst_7 = arith.constant dense<0.000000e+00> : vector<16xf32>
    %12 = vector.multi_reduction <add>, %11, %cst_7 [1] : vector<16x32xf32> to vector<16xf32>
    %13 = vector.shape_cast %12 : vector<16xf32> to vector<1x16xf32>
    %14 = arith.truncf %8 : vector<64x32xf32> to vector<64x32xbf16>
    %cst_8 = arith.constant dense<0.000000e+00> : vector<64x16xf32>
    %15 = tpu.matmul %14, %9, %cst_8 {dimension_numbers = #tpu.dot_dimension_numbers<[1], [1], [0], [0], [0, 0, 1, 0], [], []>} : vector<64x32xbf16>, vector<16x32xbf16>, vector<64x16xf32> -> vector<64x16xf32>
    %cst_9 = arith.constant 2.000000e+00 : f32
    %16 = vector.broadcast %cst_9 : f32 to vector<64x16xf32>
    %17 = arith.mulf %16, %15 : vector<64x16xf32>
    %18 = vector.broadcast %13 : vector<1x16xf32> to vector<64x16xf32>
    %19 = arith.subf %18, %17 : vector<64x16xf32>
    %20 = tpu.iota {dimensions = array<i32: 1>} : vector<64x16xi32>
    %cst_10 = arith.constant dense<0x7F800000> : vector<64xf32>
    %21 = vector.multi_reduction <minimumf>, %19, %cst_10 [1] : vector<64x16xf32> to vector<64xf32>
    %22 = vector.shape_cast %21 : vector<64xf32> to vector<64x1xf32>
    %23 = vector.broadcast %22 : vector<64x1xf32> to vector<64x16xf32>
    %24 = arith.cmpf ole, %19, %23 : vector<64x16xf32>
    %c16_i32 = arith.constant 16 : i32
    %25 = vector.broadcast %c16_i32 : i32 to vector<64x16xi32>
    %26 = arith.select %24, %20, %25 : vector<64x16xi1>, vector<64x16xi32>
    %cst_11 = arith.constant dense<2147483647> : vector<64xi32>
    %27 = vector.multi_reduction <minsi>, %26, %cst_11 [1] : vector<64x16xi32> to vector<64xi32>
    %28 = vector.shape_cast %27 : vector<64xi32> to vector<64x1xi32>
    %29 = vector.broadcast %28 : vector<64x1xi32> to vector<64x16xi32>
    %30 = arith.cmpi eq, %20, %29 : vector<64x16xi32>
    %31 = arith.extui %30 : vector<64x16xi1> to vector<64x16xi32>
    %32 = arith.sitofp %31 : vector<64x16xi32> to vector<64x16xf32>
    %33 = arith.truncf %32 : vector<64x16xf32> to vector<64x16xbf16>
    %cst_12 = arith.constant dense<0.000000e+00> : vector<64x32xf32>
    %34 = tpu.matmul %33, %9, %cst_12 {dimension_numbers = #tpu.dot_dimension_numbers<[1], [0], [0], [1], [0, 0, 1, 1], [], []>} : vector<64x16xbf16>, vector<16x32xbf16>, vector<64x32xf32> -> vector<64x32xf32>
    %35 = arith.subf %8, %34 : vector<64x32xf32>
    %36 = arith.mulf %35, %35 : vector<64x32xf32>
    %37 = vector.shape_cast %36 : vector<64x32xf32> to vector<1x64x32xf32>
    %cst_13 = arith.constant dense<0.000000e+00> : vector<1xf32>
    %38 = vector.multi_reduction <add>, %37, %cst_13 [1, 2] : vector<1x64x32xf32> to vector<1xf32>
    %39 = vector.shape_cast %38 : vector<1xf32> to vector<1x1x1xf32>
    %40 = vector.extract %39[0, 0, 0] : f32 from vector<1x1x1xf32>
    %cst_14 = arith.constant 2.048000e+03 : f32
    %41 = arith.divf %40, %cst_14 : f32
    %c0_15 = arith.constant 0 : index
    %c0_16 = arith.constant 0 : index
    %42 = memref.load %arg13[%c0_15, %c0_16] : memref<1x1xf32, #tpu.memory_space<smem>>
    memref.store %41, %arg13[%c0_15, %c0_16] : memref<1x1xf32, #tpu.memory_space<smem>>
    %cst_17 = arith.constant 0.000000e+00 : f32
    %43 = vector.broadcast %cst_17 : f32 to vector<64x32xf32>
    %c3_i32 = arith.constant 3 : i32
    %44 = tpu.dynamic_rotate %34 by %c3_i32 dim 0 : vector<64x32xf32>, i32 -> vector<64x32xf32>
    %c-3_i32 = arith.constant -3 : i32
    %45 = vector.broadcast %c-3_i32 : i32 to vector<64x32xi32>
    %46 = arith.addi %1, %45 : vector<64x32xi32>
    %c0_i32 = arith.constant 0 : i32
    %47 = vector.broadcast %c0_i32 : i32 to vector<64x32xi32>
    %48 = arith.cmpi sge, %46, %47 : vector<64x32xi32>
    %c-3_i32_18 = arith.constant -3 : i32
    %49 = vector.broadcast %c-3_i32_18 : i32 to vector<64x32xi32>
    %50 = arith.addi %1, %49 : vector<64x32xi32>
    %c32_i32 = arith.constant 32 : i32
    %51 = vector.broadcast %c32_i32 : i32 to vector<64x32xi32>
    %52 = arith.cmpi slt, %50, %51 : vector<64x32xi32>
    %53 = arith.andi %48, %52 : vector<64x32xi1>
    %cst_19 = arith.constant 0.000000e+00 : f32
    %54 = vector.broadcast %cst_19 : f32 to vector<64x32xf32>
    %55 = arith.select %53, %44, %54 : vector<64x32xi1>, vector<64x32xf32>
    %56 = arith.truncf %55 : vector<64x32xf32> to vector<64x32xbf16>
    %c0_20 = arith.constant 0 : index
    %c0_21 = arith.constant 0 : index
    %c0_22 = arith.constant 0 : index
    %57 = vector.load %arg3[%c0_20, %c0_21, %c0_22] : memref<7x32x32xbf16, #tpu.memory_space<vmem>>, vector<1x32x32xbf16>
    %58 = vector.shape_cast %57 : vector<1x32x32xbf16> to vector<32x32xbf16>
    %cst_23 = arith.constant dense<0.000000e+00> : vector<64x32xf32>
    %59 = tpu.matmul %56, %58, %cst_23 {dimension_numbers = #tpu.dot_dimension_numbers<[1], [0], [0], [1], [0, 0, 1, 1], [], []>} : vector<64x32xbf16>, vector<32x32xbf16>, vector<64x32xf32> -> vector<64x32xf32>
    %60 = arith.addf %43, %59 : vector<64x32xf32>
    %c2_i32 = arith.constant 2 : i32
    %61 = tpu.dynamic_rotate %34 by %c2_i32 dim 0 : vector<64x32xf32>, i32 -> vector<64x32xf32>
    %c-2_i32 = arith.constant -2 : i32
    %62 = vector.broadcast %c-2_i32 : i32 to vector<64x32xi32>
    %63 = arith.addi %1, %62 : vector<64x32xi32>
    %c0_i32_24 = arith.constant 0 : i32
    %64 = vector.broadcast %c0_i32_24 : i32 to vector<64x32xi32>
    %65 = arith.cmpi sge, %63, %64 : vector<64x32xi32>
    %c-2_i32_25 = arith.constant -2 : i32
    %66 = vector.broadcast %c-2_i32_25 : i32 to vector<64x32xi32>
    %67 = arith.addi %1, %66 : vector<64x32xi32>
    %c32_i32_26 = arith.constant 32 : i32
    %68 = vector.broadcast %c32_i32_26 : i32 to vector<64x32xi32>
    %69 = arith.cmpi slt, %67, %68 : vector<64x32xi32>
    %70 = arith.andi %65, %69 : vector<64x32xi1>
    %cst_27 = arith.constant 0.000000e+00 : f32
    %71 = vector.broadcast %cst_27 : f32 to vector<64x32xf32>
    %72 = arith.select %70, %61, %71 : vector<64x32xi1>, vector<64x32xf32>
    %73 = arith.truncf %72 : vector<64x32xf32> to vector<64x32xbf16>
    %c1 = arith.constant 1 : index
    %c0_28 = arith.constant 0 : index
    %c0_29 = arith.constant 0 : index
    %74 = vector.load %arg3[%c1, %c0_28, %c0_29] : memref<7x32x32xbf16, #tpu.memory_space<vmem>>, vector<1x32x32xbf16>
    %75 = vector.shape_cast %74 : vector<1x32x32xbf16> to vector<32x32xbf16>
    %cst_30 = arith.constant dense<0.000000e+00> : vector<64x32xf32>
    %76 = tpu.matmul %73, %75, %cst_30 {dimension_numbers = #tpu.dot_dimension_numbers<[1], [0], [0], [1], [0, 0, 1, 1], [], []>} : vector<64x32xbf16>, vector<32x32xbf16>, vector<64x32xf32> -> vector<64x32xf32>
    %77 = arith.addf %60, %76 : vector<64x32xf32>
    %c1_i32 = arith.constant 1 : i32
    %78 = tpu.dynamic_rotate %34 by %c1_i32 dim 0 : vector<64x32xf32>, i32 -> vector<64x32xf32>
    %c-1_i32 = arith.constant -1 : i32
    %79 = vector.broadcast %c-1_i32 : i32 to vector<64x32xi32>
    %80 = arith.addi %1, %79 : vector<64x32xi32>
    %c0_i32_31 = arith.constant 0 : i32
    %81 = vector.broadcast %c0_i32_31 : i32 to vector<64x32xi32>
    %82 = arith.cmpi sge, %80, %81 : vector<64x32xi32>
    %c-1_i32_32 = arith.constant -1 : i32
    %83 = vector.broadcast %c-1_i32_32 : i32 to vector<64x32xi32>
    %84 = arith.addi %1, %83 : vector<64x32xi32>
    %c32_i32_33 = arith.constant 32 : i32
    %85 = vector.broadcast %c32_i32_33 : i32 to vector<64x32xi32>
    %86 = arith.cmpi slt, %84, %85 : vector<64x32xi32>
    %87 = arith.andi %82, %86 : vector<64x32xi1>
    %cst_34 = arith.constant 0.000000e+00 : f32
    %88 = vector.broadcast %cst_34 : f32 to vector<64x32xf32>
    %89 = arith.select %87, %78, %88 : vector<64x32xi1>, vector<64x32xf32>
    %90 = arith.truncf %89 : vector<64x32xf32> to vector<64x32xbf16>
    %c2 = arith.constant 2 : index
    %c0_35 = arith.constant 0 : index
    %c0_36 = arith.constant 0 : index
    %91 = vector.load %arg3[%c2, %c0_35, %c0_36] : memref<7x32x32xbf16, #tpu.memory_space<vmem>>, vector<1x32x32xbf16>
    %92 = vector.shape_cast %91 : vector<1x32x32xbf16> to vector<32x32xbf16>
    %cst_37 = arith.constant dense<0.000000e+00> : vector<64x32xf32>
    %93 = tpu.matmul %90, %92, %cst_37 {dimension_numbers = #tpu.dot_dimension_numbers<[1], [0], [0], [1], [0, 0, 1, 1], [], []>} : vector<64x32xbf16>, vector<32x32xbf16>, vector<64x32xf32> -> vector<64x32xf32>
    %94 = arith.addf %77, %93 : vector<64x32xf32>
    %95 = arith.truncf %34 : vector<64x32xf32> to vector<64x32xbf16>
    %c3 = arith.constant 3 : index
    %c0_38 = arith.constant 0 : index
    %c0_39 = arith.constant 0 : index
    %96 = vector.load %arg3[%c3, %c0_38, %c0_39] : memref<7x32x32xbf16, #tpu.memory_space<vmem>>, vector<1x32x32xbf16>
    %97 = vector.shape_cast %96 : vector<1x32x32xbf16> to vector<32x32xbf16>
    %cst_40 = arith.constant dense<0.000000e+00> : vector<64x32xf32>
    %98 = tpu.matmul %95, %97, %cst_40 {dimension_numbers = #tpu.dot_dimension_numbers<[1], [0], [0], [1], [0, 0, 1, 1], [], []>} : vector<64x32xbf16>, vector<32x32xbf16>, vector<64x32xf32> -> vector<64x32xf32>
    %99 = arith.addf %94, %98 : vector<64x32xf32>
    %c63_i32 = arith.constant 63 : i32
    %100 = tpu.dynamic_rotate %34 by %c63_i32 dim 0 : vector<64x32xf32>, i32 -> vector<64x32xf32>
    %c1_i32_41 = arith.constant 1 : i32
    %101 = vector.broadcast %c1_i32_41 : i32 to vector<64x32xi32>
    %102 = arith.addi %1, %101 : vector<64x32xi32>
    %c0_i32_42 = arith.constant 0 : i32
    %103 = vector.broadcast %c0_i32_42 : i32 to vector<64x32xi32>
    %104 = arith.cmpi sge, %102, %103 : vector<64x32xi32>
    %c1_i32_43 = arith.constant 1 : i32
    %105 = vector.broadcast %c1_i32_43 : i32 to vector<64x32xi32>
    %106 = arith.addi %1, %105 : vector<64x32xi32>
    %c32_i32_44 = arith.constant 32 : i32
    %107 = vector.broadcast %c32_i32_44 : i32 to vector<64x32xi32>
    %108 = arith.cmpi slt, %106, %107 : vector<64x32xi32>
    %109 = arith.andi %104, %108 : vector<64x32xi1>
    %cst_45 = arith.constant 0.000000e+00 : f32
    %110 = vector.broadcast %cst_45 : f32 to vector<64x32xf32>
    %111 = arith.select %109, %100, %110 : vector<64x32xi1>, vector<64x32xf32>
    %112 = arith.truncf %111 : vector<64x32xf32> to vector<64x32xbf16>
    %c4 = arith.constant 4 : index
    %c0_46 = arith.constant 0 : index
    %c0_47 = arith.constant 0 : index
    %113 = vector.load %arg3[%c4, %c0_46, %c0_47] : memref<7x32x32xbf16, #tpu.memory_space<vmem>>, vector<1x32x32xbf16>
    %114 = vector.shape_cast %113 : vector<1x32x32xbf16> to vector<32x32xbf16>
    %cst_48 = arith.constant dense<0.000000e+00> : vector<64x32xf32>
    %115 = tpu.matmul %112, %114, %cst_48 {dimension_numbers = #tpu.dot_dimension_numbers<[1], [0], [0], [1], [0, 0, 1, 1], [], []>} : vector<64x32xbf16>, vector<32x32xbf16>, vector<64x32xf32> -> vector<64x32xf32>
    %116 = arith.addf %99, %115 : vector<64x32xf32>
    %c62_i32 = arith.constant 62 : i32
    %117 = tpu.dynamic_rotate %34 by %c62_i32 dim 0 : vector<64x32xf32>, i32 -> vector<64x32xf32>
    %c2_i32_49 = arith.constant 2 : i32
    %118 = vector.broadcast %c2_i32_49 : i32 to vector<64x32xi32>
    %119 = arith.addi %1, %118 : vector<64x32xi32>
    %c0_i32_50 = arith.constant 0 : i32
    %120 = vector.broadcast %c0_i32_50 : i32 to vector<64x32xi32>
    %121 = arith.cmpi sge, %119, %120 : vector<64x32xi32>
    %c2_i32_51 = arith.constant 2 : i32
    %122 = vector.broadcast %c2_i32_51 : i32 to vector<64x32xi32>
    %123 = arith.addi %1, %122 : vector<64x32xi32>
    %c32_i32_52 = arith.constant 32 : i32
    %124 = vector.broadcast %c32_i32_52 : i32 to vector<64x32xi32>
    %125 = arith.cmpi slt, %123, %124 : vector<64x32xi32>
    %126 = arith.andi %121, %125 : vector<64x32xi1>
    %cst_53 = arith.constant 0.000000e+00 : f32
    %127 = vector.broadcast %cst_53 : f32 to vector<64x32xf32>
    %128 = arith.select %126, %117, %127 : vector<64x32xi1>, vector<64x32xf32>
    %129 = arith.truncf %128 : vector<64x32xf32> to vector<64x32xbf16>
    %c5 = arith.constant 5 : index
    %c0_54 = arith.constant 0 : index
    %c0_55 = arith.constant 0 : index
    %130 = vector.load %arg3[%c5, %c0_54, %c0_55] : memref<7x32x32xbf16, #tpu.memory_space<vmem>>, vector<1x32x32xbf16>
    %131 = vector.shape_cast %130 : vector<1x32x32xbf16> to vector<32x32xbf16>
    %cst_56 = arith.constant dense<0.000000e+00> : vector<64x32xf32>
    %132 = tpu.matmul %129, %131, %cst_56 {dimension_numbers = #tpu.dot_dimension_numbers<[1], [0], [0], [1], [0, 0, 1, 1], [], []>} : vector<64x32xbf16>, vector<32x32xbf16>, vector<64x32xf32> -> vector<64x32xf32>
    %133 = arith.addf %116, %132 : vector<64x32xf32>
    %c61_i32 = arith.constant 61 : i32
    %134 = tpu.dynamic_rotate %34 by %c61_i32 dim 0 : vector<64x32xf32>, i32 -> vector<64x32xf32>
    %c3_i32_57 = arith.constant 3 : i32
    %135 = vector.broadcast %c3_i32_57 : i32 to vector<64x32xi32>
    %136 = arith.addi %1, %135 : vector<64x32xi32>
    %c0_i32_58 = arith.constant 0 : i32
    %137 = vector.broadcast %c0_i32_58 : i32 to vector<64x32xi32>
    %138 = arith.cmpi sge, %136, %137 : vector<64x32xi32>
    %c3_i32_59 = arith.constant 3 : i32
    %139 = vector.broadcast %c3_i32_59 : i32 to vector<64x32xi32>
    %140 = arith.addi %1, %139 : vector<64x32xi32>
    %c32_i32_60 = arith.constant 32 : i32
    %141 = vector.broadcast %c32_i32_60 : i32 to vector<64x32xi32>
    %142 = arith.cmpi slt, %140, %141 : vector<64x32xi32>
    %143 = arith.andi %138, %142 : vector<64x32xi1>
    %cst_61 = arith.constant 0.000000e+00 : f32
    %144 = vector.broadcast %cst_61 : f32 to vector<64x32xf32>
    %145 = arith.select %143, %134, %144 : vector<64x32xi1>, vector<64x32xf32>
    %146 = arith.truncf %145 : vector<64x32xf32> to vector<64x32xbf16>
    %c6 = arith.constant 6 : index
    %c0_62 = arith.constant 0 : index
    %c0_63 = arith.constant 0 : index
    %147 = vector.load %arg3[%c6, %c0_62, %c0_63] : memref<7x32x32xbf16, #tpu.memory_space<vmem>>, vector<1x32x32xbf16>
    %148 = vector.shape_cast %147 : vector<1x32x32xbf16> to vector<32x32xbf16>
    %cst_64 = arith.constant dense<0.000000e+00> : vector<64x32xf32>
    %149 = tpu.matmul %146, %148, %cst_64 {dimension_numbers = #tpu.dot_dimension_numbers<[1], [0], [0], [1], [0, 0, 1, 1], [], []>} : vector<64x32xbf16>, vector<32x32xbf16>, vector<64x32xf32> -> vector<64x32xf32>
    %150 = arith.addf %133, %149 : vector<64x32xf32>
    %c1_65 = arith.constant 1 : index
    %c0_66 = arith.constant 0 : index
    %151 = vector.load %arg11[%c1_65, %c0_66] : memref<16x32xf32, #tpu.memory_space<vmem>>, vector<1x32xf32>
    %152 = vector.broadcast %151 : vector<1x32xf32> to vector<64x32xf32>
    %153 = arith.addf %150, %152 : vector<64x32xf32>
    %c2_67 = arith.constant 2 : index
    %c0_68 = arith.constant 0 : index
    %154 = vector.load %arg11[%c2_67, %c0_68] : memref<16x32xf32, #tpu.memory_space<vmem>>, vector<1x32xf32>
    %c3_69 = arith.constant 3 : index
    %c0_70 = arith.constant 0 : index
    %155 = vector.load %arg11[%c3_69, %c0_70] : memref<16x32xf32, #tpu.memory_space<vmem>>, vector<1x32xf32>
    %cst_71 = arith.constant dense<0.000000e+00> : vector<64xf32>
    %156 = vector.multi_reduction <add>, %153, %cst_71 [1] : vector<64x32xf32> to vector<64xf32>
    %157 = vector.shape_cast %156 : vector<64xf32> to vector<64x1xf32>
    %cst_72 = arith.constant 3.200000e+01 : f32
    %158 = vector.broadcast %cst_72 : f32 to vector<64x1xf32>
    %159 = arith.divf %157, %158 : vector<64x1xf32>
    %160 = arith.mulf %153, %153 : vector<64x32xf32>
    %cst_73 = arith.constant dense<0.000000e+00> : vector<64xf32>
    %161 = vector.multi_reduction <add>, %160, %cst_73 [1] : vector<64x32xf32> to vector<64xf32>
    %162 = vector.shape_cast %161 : vector<64xf32> to vector<64x1xf32>
    %cst_74 = arith.constant 3.200000e+01 : f32
    %163 = vector.broadcast %cst_74 : f32 to vector<64x1xf32>
    %164 = arith.divf %162, %163 : vector<64x1xf32>
    %165 = arith.mulf %159, %159 : vector<64x1xf32>
    %166 = arith.subf %164, %165 : vector<64x1xf32>
    %167 = vector.broadcast %159 : vector<64x1xf32> to vector<64x32xf32>
    %168 = arith.subf %153, %167 : vector<64x32xf32>
    %cst_75 = arith.constant 9.99999997E-7 : f32
    %169 = vector.broadcast %cst_75 : f32 to vector<64x1xf32>
    %170 = arith.addf %166, %169 : vector<64x1xf32>
    %171 = math.rsqrt %170 : vector<64x1xf32>
    %172 = vector.broadcast %171 : vector<64x1xf32> to vector<64x32xf32>
    %173 = arith.mulf %168, %172 : vector<64x32xf32>
    %174 = vector.broadcast %154 : vector<1x32xf32> to vector<64x32xf32>
    %175 = arith.mulf %173, %174 : vector<64x32xf32>
    %176 = vector.broadcast %155 : vector<1x32xf32> to vector<64x32xf32>
    %177 = arith.addf %175, %176 : vector<64x32xf32>
    %cst_76 = arith.constant 0.000000e+00 : f32
    %178 = vector.broadcast %cst_76 : f32 to vector<64x32xf32>
    %c3_i32_77 = arith.constant 3 : i32
    %179 = tpu.dynamic_rotate %177 by %c3_i32_77 dim 0 : vector<64x32xf32>, i32 -> vector<64x32xf32>
    %c-3_i32_78 = arith.constant -3 : i32
    %180 = vector.broadcast %c-3_i32_78 : i32 to vector<64x32xi32>
    %181 = arith.addi %1, %180 : vector<64x32xi32>
    %c0_i32_79 = arith.constant 0 : i32
    %182 = vector.broadcast %c0_i32_79 : i32 to vector<64x32xi32>
    %183 = arith.cmpi sge, %181, %182 : vector<64x32xi32>
    %c-3_i32_80 = arith.constant -3 : i32
    %184 = vector.broadcast %c-3_i32_80 : i32 to vector<64x32xi32>
    %185 = arith.addi %1, %184 : vector<64x32xi32>
    %c32_i32_81 = arith.constant 32 : i32
    %186 = vector.broadcast %c32_i32_81 : i32 to vector<64x32xi32>
    %187 = arith.cmpi slt, %185, %186 : vector<64x32xi32>
    %188 = arith.andi %183, %187 : vector<64x32xi1>
    %cst_82 = arith.constant 0.000000e+00 : f32
    %189 = vector.broadcast %cst_82 : f32 to vector<64x32xf32>
    %190 = arith.select %188, %179, %189 : vector<64x32xi1>, vector<64x32xf32>
    %c0_83 = arith.constant 0 : index
    %c0_84 = arith.constant 0 : index
    %c0_85 = arith.constant 0 : index
    %191 = vector.load %arg4[%c0_83, %c0_84, %c0_85] : memref<2x7x32xf32, #tpu.memory_space<vmem>>, vector<1x1x32xf32>
    %192 = vector.shape_cast %191 : vector<1x1x32xf32> to vector<1x32xf32>
    %193 = vector.broadcast %192 : vector<1x32xf32> to vector<64x32xf32>
    %194 = arith.mulf %190, %193 : vector<64x32xf32>
    %195 = arith.addf %178, %194 : vector<64x32xf32>
    %c2_i32_86 = arith.constant 2 : i32
    %196 = tpu.dynamic_rotate %177 by %c2_i32_86 dim 0 : vector<64x32xf32>, i32 -> vector<64x32xf32>
    %c-2_i32_87 = arith.constant -2 : i32
    %197 = vector.broadcast %c-2_i32_87 : i32 to vector<64x32xi32>
    %198 = arith.addi %1, %197 : vector<64x32xi32>
    %c0_i32_88 = arith.constant 0 : i32
    %199 = vector.broadcast %c0_i32_88 : i32 to vector<64x32xi32>
    %200 = arith.cmpi sge, %198, %199 : vector<64x32xi32>
    %c-2_i32_89 = arith.constant -2 : i32
    %201 = vector.broadcast %c-2_i32_89 : i32 to vector<64x32xi32>
    %202 = arith.addi %1, %201 : vector<64x32xi32>
    %c32_i32_90 = arith.constant 32 : i32
    %203 = vector.broadcast %c32_i32_90 : i32 to vector<64x32xi32>
    %204 = arith.cmpi slt, %202, %203 : vector<64x32xi32>
    %205 = arith.andi %200, %204 : vector<64x32xi1>
    %cst_91 = arith.constant 0.000000e+00 : f32
    %206 = vector.broadcast %cst_91 : f32 to vector<64x32xf32>
    %207 = arith.select %205, %196, %206 : vector<64x32xi1>, vector<64x32xf32>
    %c0_92 = arith.constant 0 : index
    %c1_93 = arith.constant 1 : index
    %c0_94 = arith.constant 0 : index
    %208 = vector.load %arg4[%c0_92, %c1_93, %c0_94] : memref<2x7x32xf32, #tpu.memory_space<vmem>>, vector<1x1x32xf32>
    %209 = vector.shape_cast %208 : vector<1x1x32xf32> to vector<1x32xf32>
    %210 = vector.broadcast %209 : vector<1x32xf32> to vector<64x32xf32>
    %211 = arith.mulf %207, %210 : vector<64x32xf32>
    %212 = arith.addf %195, %211 : vector<64x32xf32>
    %c1_i32_95 = arith.constant 1 : i32
    %213 = tpu.dynamic_rotate %177 by %c1_i32_95 dim 0 : vector<64x32xf32>, i32 -> vector<64x32xf32>
    %c-1_i32_96 = arith.constant -1 : i32
    %214 = vector.broadcast %c-1_i32_96 : i32 to vector<64x32xi32>
    %215 = arith.addi %1, %214 : vector<64x32xi32>
    %c0_i32_97 = arith.constant 0 : i32
    %216 = vector.broadcast %c0_i32_97 : i32 to vector<64x32xi32>
    %217 = arith.cmpi sge, %215, %216 : vector<64x32xi32>
    %c-1_i32_98 = arith.constant -1 : i32
    %218 = vector.broadcast %c-1_i32_98 : i32 to vector<64x32xi32>
    %219 = arith.addi %1, %218 : vector<64x32xi32>
    %c32_i32_99 = arith.constant 32 : i32
    %220 = vector.broadcast %c32_i32_99 : i32 to vector<64x32xi32>
    %221 = arith.cmpi slt, %219, %220 : vector<64x32xi32>
    %222 = arith.andi %217, %221 : vector<64x32xi1>
    %cst_100 = arith.constant 0.000000e+00 : f32
    %223 = vector.broadcast %cst_100 : f32 to vector<64x32xf32>
    %224 = arith.select %222, %213, %223 : vector<64x32xi1>, vector<64x32xf32>
    %c0_101 = arith.constant 0 : index
    %c2_102 = arith.constant 2 : index
    %c0_103 = arith.constant 0 : index
    %225 = vector.load %arg4[%c0_101, %c2_102, %c0_103] : memref<2x7x32xf32, #tpu.memory_space<vmem>>, vector<1x1x32xf32>
    %226 = vector.shape_cast %225 : vector<1x1x32xf32> to vector<1x32xf32>
    %227 = vector.broadcast %226 : vector<1x32xf32> to vector<64x32xf32>
    %228 = arith.mulf %224, %227 : vector<64x32xf32>
    %229 = arith.addf %212, %228 : vector<64x32xf32>
    %c0_104 = arith.constant 0 : index
    %c3_105 = arith.constant 3 : index
    %c0_106 = arith.constant 0 : index
    %230 = vector.load %arg4[%c0_104, %c3_105, %c0_106] : memref<2x7x32xf32, #tpu.memory_space<vmem>>, vector<1x1x32xf32>
    %231 = vector.shape_cast %230 : vector<1x1x32xf32> to vector<1x32xf32>
    %232 = vector.broadcast %231 : vector<1x32xf32> to vector<64x32xf32>
    %233 = arith.mulf %177, %232 : vector<64x32xf32>
    %234 = arith.addf %229, %233 : vector<64x32xf32>
    %c63_i32_107 = arith.constant 63 : i32
    %235 = tpu.dynamic_rotate %177 by %c63_i32_107 dim 0 : vector<64x32xf32>, i32 -> vector<64x32xf32>
    %c1_i32_108 = arith.constant 1 : i32
    %236 = vector.broadcast %c1_i32_108 : i32 to vector<64x32xi32>
    %237 = arith.addi %1, %236 : vector<64x32xi32>
    %c0_i32_109 = arith.constant 0 : i32
    %238 = vector.broadcast %c0_i32_109 : i32 to vector<64x32xi32>
    %239 = arith.cmpi sge, %237, %238 : vector<64x32xi32>
    %c1_i32_110 = arith.constant 1 : i32
    %240 = vector.broadcast %c1_i32_110 : i32 to vector<64x32xi32>
    %241 = arith.addi %1, %240 : vector<64x32xi32>
    %c32_i32_111 = arith.constant 32 : i32
    %242 = vector.broadcast %c32_i32_111 : i32 to vector<64x32xi32>
    %243 = arith.cmpi slt, %241, %242 : vector<64x32xi32>
    %244 = arith.andi %239, %243 : vector<64x32xi1>
    %cst_112 = arith.constant 0.000000e+00 : f32
    %245 = vector.broadcast %cst_112 : f32 to vector<64x32xf32>
    %246 = arith.select %244, %235, %245 : vector<64x32xi1>, vector<64x32xf32>
    %c0_113 = arith.constant 0 : index
    %c4_114 = arith.constant 4 : index
    %c0_115 = arith.constant 0 : index
    %247 = vector.load %arg4[%c0_113, %c4_114, %c0_115] : memref<2x7x32xf32, #tpu.memory_space<vmem>>, vector<1x1x32xf32>
    %248 = vector.shape_cast %247 : vector<1x1x32xf32> to vector<1x32xf32>
    %249 = vector.broadcast %248 : vector<1x32xf32> to vector<64x32xf32>
    %250 = arith.mulf %246, %249 : vector<64x32xf32>
    %251 = arith.addf %234, %250 : vector<64x32xf32>
    %c62_i32_116 = arith.constant 62 : i32
    %252 = tpu.dynamic_rotate %177 by %c62_i32_116 dim 0 : vector<64x32xf32>, i32 -> vector<64x32xf32>
    %c2_i32_117 = arith.constant 2 : i32
    %253 = vector.broadcast %c2_i32_117 : i32 to vector<64x32xi32>
    %254 = arith.addi %1, %253 : vector<64x32xi32>
    %c0_i32_118 = arith.constant 0 : i32
    %255 = vector.broadcast %c0_i32_118 : i32 to vector<64x32xi32>
    %256 = arith.cmpi sge, %254, %255 : vector<64x32xi32>
    %c2_i32_119 = arith.constant 2 : i32
    %257 = vector.broadcast %c2_i32_119 : i32 to vector<64x32xi32>
    %258 = arith.addi %1, %257 : vector<64x32xi32>
    %c32_i32_120 = arith.constant 32 : i32
    %259 = vector.broadcast %c32_i32_120 : i32 to vector<64x32xi32>
    %260 = arith.cmpi slt, %258, %259 : vector<64x32xi32>
    %261 = arith.andi %256, %260 : vector<64x32xi1>
    %cst_121 = arith.constant 0.000000e+00 : f32
    %262 = vector.broadcast %cst_121 : f32 to vector<64x32xf32>
    %263 = arith.select %261, %252, %262 : vector<64x32xi1>, vector<64x32xf32>
    %c0_122 = arith.constant 0 : index
    %c5_123 = arith.constant 5 : index
    %c0_124 = arith.constant 0 : index
    %264 = vector.load %arg4[%c0_122, %c5_123, %c0_124] : memref<2x7x32xf32, #tpu.memory_space<vmem>>, vector<1x1x32xf32>
    %265 = vector.shape_cast %264 : vector<1x1x32xf32> to vector<1x32xf32>
    %266 = vector.broadcast %265 : vector<1x32xf32> to vector<64x32xf32>
    %267 = arith.mulf %263, %266 : vector<64x32xf32>
    %268 = arith.addf %251, %267 : vector<64x32xf32>
    %c61_i32_125 = arith.constant 61 : i32
    %269 = tpu.dynamic_rotate %177 by %c61_i32_125 dim 0 : vector<64x32xf32>, i32 -> vector<64x32xf32>
    %c3_i32_126 = arith.constant 3 : i32
    %270 = vector.broadcast %c3_i32_126 : i32 to vector<64x32xi32>
    %271 = arith.addi %1, %270 : vector<64x32xi32>
    %c0_i32_127 = arith.constant 0 : i32
    %272 = vector.broadcast %c0_i32_127 : i32 to vector<64x32xi32>
    %273 = arith.cmpi sge, %271, %272 : vector<64x32xi32>
    %c3_i32_128 = arith.constant 3 : i32
    %274 = vector.broadcast %c3_i32_128 : i32 to vector<64x32xi32>
    %275 = arith.addi %1, %274 : vector<64x32xi32>
    %c32_i32_129 = arith.constant 32 : i32
    %276 = vector.broadcast %c32_i32_129 : i32 to vector<64x32xi32>
    %277 = arith.cmpi slt, %275, %276 : vector<64x32xi32>
    %278 = arith.andi %273, %277 : vector<64x32xi1>
    %cst_130 = arith.constant 0.000000e+00 : f32
    %279 = vector.broadcast %cst_130 : f32 to vector<64x32xf32>
    %280 = arith.select %278, %269, %279 : vector<64x32xi1>, vector<64x32xf32>
    %c0_131 = arith.constant 0 : index
    %c6_132 = arith.constant 6 : index
    %c0_133 = arith.constant 0 : index
    %281 = vector.load %arg4[%c0_131, %c6_132, %c0_133] : memref<2x7x32xf32, #tpu.memory_space<vmem>>, vector<1x1x32xf32>
    %282 = vector.shape_cast %281 : vector<1x1x32xf32> to vector<1x32xf32>
    %283 = vector.broadcast %282 : vector<1x32xf32> to vector<64x32xf32>
    %284 = arith.mulf %280, %283 : vector<64x32xf32>
    %285 = arith.addf %268, %284 : vector<64x32xf32>
    %c6_134 = arith.constant 6 : index
    %c0_135 = arith.constant 0 : index
    %286 = vector.load %arg11[%c6_134, %c0_135] : memref<16x32xf32, #tpu.memory_space<vmem>>, vector<1x32xf32>
    %287 = vector.broadcast %286 : vector<1x32xf32> to vector<64x32xf32>
    %288 = arith.addf %285, %287 : vector<64x32xf32>
    %c7 = arith.constant 7 : index
    %c0_136 = arith.constant 0 : index
    %289 = vector.load %arg11[%c7, %c0_136] : memref<16x32xf32, #tpu.memory_space<vmem>>, vector<1x32xf32>
    %c8 = arith.constant 8 : index
    %c0_137 = arith.constant 0 : index
    %290 = vector.load %arg11[%c8, %c0_137] : memref<16x32xf32, #tpu.memory_space<vmem>>, vector<1x32xf32>
    %cst_138 = arith.constant dense<0.000000e+00> : vector<64xf32>
    %291 = vector.multi_reduction <add>, %288, %cst_138 [1] : vector<64x32xf32> to vector<64xf32>
    %292 = vector.shape_cast %291 : vector<64xf32> to vector<64x1xf32>
    %cst_139 = arith.constant 3.200000e+01 : f32
    %293 = vector.broadcast %cst_139 : f32 to vector<64x1xf32>
    %294 = arith.divf %292, %293 : vector<64x1xf32>
    %295 = arith.mulf %288, %288 : vector<64x32xf32>
    %cst_140 = arith.constant dense<0.000000e+00> : vector<64xf32>
    %296 = vector.multi_reduction <add>, %295, %cst_140 [1] : vector<64x32xf32> to vector<64xf32>
    %297 = vector.shape_cast %296 : vector<64xf32> to vector<64x1xf32>
    %cst_141 = arith.constant 3.200000e+01 : f32
    %298 = vector.broadcast %cst_141 : f32 to vector<64x1xf32>
    %299 = arith.divf %297, %298 : vector<64x1xf32>
    %300 = arith.mulf %294, %294 : vector<64x1xf32>
    %301 = arith.subf %299, %300 : vector<64x1xf32>
    %302 = vector.broadcast %294 : vector<64x1xf32> to vector<64x32xf32>
    %303 = arith.subf %288, %302 : vector<64x32xf32>
    %cst_142 = arith.constant 9.99999997E-7 : f32
    %304 = vector.broadcast %cst_142 : f32 to vector<64x1xf32>
    %305 = arith.addf %301, %304 : vector<64x1xf32>
    %306 = math.rsqrt %305 : vector<64x1xf32>
    %307 = vector.broadcast %306 : vector<64x1xf32> to vector<64x32xf32>
    %308 = arith.mulf %303, %307 : vector<64x32xf32>
    %309 = vector.broadcast %289 : vector<1x32xf32> to vector<64x32xf32>
    %310 = arith.mulf %308, %309 : vector<64x32xf32>
    %311 = vector.broadcast %290 : vector<1x32xf32> to vector<64x32xf32>
    %312 = arith.addf %310, %311 : vector<64x32xf32>
    %313 = arith.truncf %312 : vector<64x32xf32> to vector<64x32xbf16>
    %c0_143 = arith.constant 0 : index
    %c0_144 = arith.constant 0 : index
    %c0_145 = arith.constant 0 : index
    %314 = vector.load %arg5[%c0_143, %c0_144, %c0_145] : memref<2x32x64xbf16, #tpu.memory_space<vmem>>, vector<1x32x64xbf16>
    %315 = vector.shape_cast %314 : vector<1x32x64xbf16> to vector<32x64xbf16>
    %cst_146 = arith.constant dense<0.000000e+00> : vector<64x64xf32>
    %316 = tpu.matmul %313, %315, %cst_146 {dimension_numbers = #tpu.dot_dimension_numbers<[1], [0], [0], [1], [0, 0, 1, 1], [], []>} : vector<64x32xbf16>, vector<32x64xbf16>, vector<64x64xf32> -> vector<64x64xf32>
    %c0_147 = arith.constant 0 : index
    %c0_148 = arith.constant 0 : index
    %c0_149 = arith.constant 0 : index
    %317 = vector.load %arg6[%c0_147, %c0_148, %c0_149] : memref<2x1x64xf32, #tpu.memory_space<vmem>>, vector<1x1x64xf32>
    %318 = vector.shape_cast %317 : vector<1x1x64xf32> to vector<1x64xf32>
    %319 = vector.broadcast %318 : vector<1x64xf32> to vector<64x64xf32>
    %320 = arith.addf %316, %319 : vector<64x64xf32>
    %321 = arith.mulf %320, %320 : vector<64x64xf32>
    %322 = arith.mulf %320, %321 : vector<64x64xf32>
    %cst_150 = arith.constant 4.471500e-02 : f32
    %323 = vector.broadcast %cst_150 : f32 to vector<64x64xf32>
    %324 = arith.mulf %323, %322 : vector<64x64xf32>
    %325 = arith.addf %320, %324 : vector<64x64xf32>
    %cst_151 = arith.constant 0.797884583 : f32
    %326 = vector.broadcast %cst_151 : f32 to vector<64x64xf32>
    %327 = arith.mulf %326, %325 : vector<64x64xf32>
    %328 = math.tanh %327 : vector<64x64xf32>
    %cst_152 = arith.constant 1.000000e+00 : f32
    %329 = vector.broadcast %cst_152 : f32 to vector<64x64xf32>
    %330 = arith.addf %329, %328 : vector<64x64xf32>
    %cst_153 = arith.constant 5.000000e-01 : f32
    %331 = vector.broadcast %cst_153 : f32 to vector<64x64xf32>
    %332 = arith.mulf %331, %330 : vector<64x64xf32>
    %333 = arith.mulf %320, %332 : vector<64x64xf32>
    %334 = arith.truncf %333 : vector<64x64xf32> to vector<64x64xbf16>
    %c0_154 = arith.constant 0 : index
    %c0_155 = arith.constant 0 : index
    %c0_156 = arith.constant 0 : index
    %335 = vector.load %arg7[%c0_154, %c0_155, %c0_156] : memref<2x64x32xbf16, #tpu.memory_space<vmem>>, vector<1x64x32xbf16>
    %336 = vector.shape_cast %335 : vector<1x64x32xbf16> to vector<64x32xbf16>
    %cst_157 = arith.constant dense<0.000000e+00> : vector<64x32xf32>
    %337 = tpu.matmul %334, %336, %cst_157 {dimension_numbers = #tpu.dot_dimension_numbers<[1], [0], [0], [1], [0, 0, 1, 1], [], []>} : vector<64x64xbf16>, vector<64x32xbf16>, vector<64x32xf32> -> vector<64x32xf32>
    %c9 = arith.constant 9 : index
    %c0_158 = arith.constant 0 : index
    %338 = vector.load %arg11[%c9, %c0_158] : memref<16x32xf32, #tpu.memory_space<vmem>>, vector<1x32xf32>
    %339 = vector.broadcast %338 : vector<1x32xf32> to vector<64x32xf32>
    %340 = arith.addf %337, %339 : vector<64x32xf32>
    %c10 = arith.constant 10 : index
    %c0_159 = arith.constant 0 : index
    %341 = vector.load %arg11[%c10, %c0_159] : memref<16x32xf32, #tpu.memory_space<vmem>>, vector<1x32xf32>
    %342 = vector.broadcast %341 : vector<1x32xf32> to vector<64x32xf32>
    %343 = arith.mulf %342, %340 : vector<64x32xf32>
    %344 = arith.addf %177, %343 : vector<64x32xf32>
    %cst_160 = arith.constant 0.000000e+00 : f32
    %345 = vector.broadcast %cst_160 : f32 to vector<64x32xf32>
    %c3_i32_161 = arith.constant 3 : i32
    %346 = tpu.dynamic_rotate %344 by %c3_i32_161 dim 0 : vector<64x32xf32>, i32 -> vector<64x32xf32>
    %c-3_i32_162 = arith.constant -3 : i32
    %347 = vector.broadcast %c-3_i32_162 : i32 to vector<64x32xi32>
    %348 = arith.addi %1, %347 : vector<64x32xi32>
    %c0_i32_163 = arith.constant 0 : i32
    %349 = vector.broadcast %c0_i32_163 : i32 to vector<64x32xi32>
    %350 = arith.cmpi sge, %348, %349 : vector<64x32xi32>
    %c-3_i32_164 = arith.constant -3 : i32
    %351 = vector.broadcast %c-3_i32_164 : i32 to vector<64x32xi32>
    %352 = arith.addi %1, %351 : vector<64x32xi32>
    %c32_i32_165 = arith.constant 32 : i32
    %353 = vector.broadcast %c32_i32_165 : i32 to vector<64x32xi32>
    %354 = arith.cmpi slt, %352, %353 : vector<64x32xi32>
    %355 = arith.andi %350, %354 : vector<64x32xi1>
    %cst_166 = arith.constant 0.000000e+00 : f32
    %356 = vector.broadcast %cst_166 : f32 to vector<64x32xf32>
    %357 = arith.select %355, %346, %356 : vector<64x32xi1>, vector<64x32xf32>
    %c1_167 = arith.constant 1 : index
    %c0_168 = arith.constant 0 : index
    %c0_169 = arith.constant 0 : index
    %358 = vector.load %arg4[%c1_167, %c0_168, %c0_169] : memref<2x7x32xf32, #tpu.memory_space<vmem>>, vector<1x1x32xf32>
    %359 = vector.shape_cast %358 : vector<1x1x32xf32> to vector<1x32xf32>
    %360 = vector.broadcast %359 : vector<1x32xf32> to vector<64x32xf32>
    %361 = arith.mulf %357, %360 : vector<64x32xf32>
    %362 = arith.addf %345, %361 : vector<64x32xf32>
    %c2_i32_170 = arith.constant 2 : i32
    %363 = tpu.dynamic_rotate %344 by %c2_i32_170 dim 0 : vector<64x32xf32>, i32 -> vector<64x32xf32>
    %c-2_i32_171 = arith.constant -2 : i32
    %364 = vector.broadcast %c-2_i32_171 : i32 to vector<64x32xi32>
    %365 = arith.addi %1, %364 : vector<64x32xi32>
    %c0_i32_172 = arith.constant 0 : i32
    %366 = vector.broadcast %c0_i32_172 : i32 to vector<64x32xi32>
    %367 = arith.cmpi sge, %365, %366 : vector<64x32xi32>
    %c-2_i32_173 = arith.constant -2 : i32
    %368 = vector.broadcast %c-2_i32_173 : i32 to vector<64x32xi32>
    %369 = arith.addi %1, %368 : vector<64x32xi32>
    %c32_i32_174 = arith.constant 32 : i32
    %370 = vector.broadcast %c32_i32_174 : i32 to vector<64x32xi32>
    %371 = arith.cmpi slt, %369, %370 : vector<64x32xi32>
    %372 = arith.andi %367, %371 : vector<64x32xi1>
    %cst_175 = arith.constant 0.000000e+00 : f32
    %373 = vector.broadcast %cst_175 : f32 to vector<64x32xf32>
    %374 = arith.select %372, %363, %373 : vector<64x32xi1>, vector<64x32xf32>
    %c1_176 = arith.constant 1 : index
    %c1_177 = arith.constant 1 : index
    %c0_178 = arith.constant 0 : index
    %375 = vector.load %arg4[%c1_176, %c1_177, %c0_178] : memref<2x7x32xf32, #tpu.memory_space<vmem>>, vector<1x1x32xf32>
    %376 = vector.shape_cast %375 : vector<1x1x32xf32> to vector<1x32xf32>
    %377 = vector.broadcast %376 : vector<1x32xf32> to vector<64x32xf32>
    %378 = arith.mulf %374, %377 : vector<64x32xf32>
    %379 = arith.addf %362, %378 : vector<64x32xf32>
    %c1_i32_179 = arith.constant 1 : i32
    %380 = tpu.dynamic_rotate %344 by %c1_i32_179 dim 0 : vector<64x32xf32>, i32 -> vector<64x32xf32>
    %c-1_i32_180 = arith.constant -1 : i32
    %381 = vector.broadcast %c-1_i32_180 : i32 to vector<64x32xi32>
    %382 = arith.addi %1, %381 : vector<64x32xi32>
    %c0_i32_181 = arith.constant 0 : i32
    %383 = vector.broadcast %c0_i32_181 : i32 to vector<64x32xi32>
    %384 = arith.cmpi sge, %382, %383 : vector<64x32xi32>
    %c-1_i32_182 = arith.constant -1 : i32
    %385 = vector.broadcast %c-1_i32_182 : i32 to vector<64x32xi32>
    %386 = arith.addi %1, %385 : vector<64x32xi32>
    %c32_i32_183 = arith.constant 32 : i32
    %387 = vector.broadcast %c32_i32_183 : i32 to vector<64x32xi32>
    %388 = arith.cmpi slt, %386, %387 : vector<64x32xi32>
    %389 = arith.andi %384, %388 : vector<64x32xi1>
    %cst_184 = arith.constant 0.000000e+00 : f32
    %390 = vector.broadcast %cst_184 : f32 to vector<64x32xf32>
    %391 = arith.select %389, %380, %390 : vector<64x32xi1>, vector<64x32xf32>
    %c1_185 = arith.constant 1 : index
    %c2_186 = arith.constant 2 : index
    %c0_187 = arith.constant 0 : index
    %392 = vector.load %arg4[%c1_185, %c2_186, %c0_187] : memref<2x7x32xf32, #tpu.memory_space<vmem>>, vector<1x1x32xf32>
    %393 = vector.shape_cast %392 : vector<1x1x32xf32> to vector<1x32xf32>
    %394 = vector.broadcast %393 : vector<1x32xf32> to vector<64x32xf32>
    %395 = arith.mulf %391, %394 : vector<64x32xf32>
    %396 = arith.addf %379, %395 : vector<64x32xf32>
    %c1_188 = arith.constant 1 : index
    %c3_189 = arith.constant 3 : index
    %c0_190 = arith.constant 0 : index
    %397 = vector.load %arg4[%c1_188, %c3_189, %c0_190] : memref<2x7x32xf32, #tpu.memory_space<vmem>>, vector<1x1x32xf32>
    %398 = vector.shape_cast %397 : vector<1x1x32xf32> to vector<1x32xf32>
    %399 = vector.broadcast %398 : vector<1x32xf32> to vector<64x32xf32>
    %400 = arith.mulf %344, %399 : vector<64x32xf32>
    %401 = arith.addf %396, %400 : vector<64x32xf32>
    %c63_i32_191 = arith.constant 63 : i32
    %402 = tpu.dynamic_rotate %344 by %c63_i32_191 dim 0 : vector<64x32xf32>, i32 -> vector<64x32xf32>
    %c1_i32_192 = arith.constant 1 : i32
    %403 = vector.broadcast %c1_i32_192 : i32 to vector<64x32xi32>
    %404 = arith.addi %1, %403 : vector<64x32xi32>
    %c0_i32_193 = arith.constant 0 : i32
    %405 = vector.broadcast %c0_i32_193 : i32 to vector<64x32xi32>
    %406 = arith.cmpi sge, %404, %405 : vector<64x32xi32>
    %c1_i32_194 = arith.constant 1 : i32
    %407 = vector.broadcast %c1_i32_194 : i32 to vector<64x32xi32>
    %408 = arith.addi %1, %407 : vector<64x32xi32>
    %c32_i32_195 = arith.constant 32 : i32
    %409 = vector.broadcast %c32_i32_195 : i32 to vector<64x32xi32>
    %410 = arith.cmpi slt, %408, %409 : vector<64x32xi32>
    %411 = arith.andi %406, %410 : vector<64x32xi1>
    %cst_196 = arith.constant 0.000000e+00 : f32
    %412 = vector.broadcast %cst_196 : f32 to vector<64x32xf32>
    %413 = arith.select %411, %402, %412 : vector<64x32xi1>, vector<64x32xf32>
    %c1_197 = arith.constant 1 : index
    %c4_198 = arith.constant 4 : index
    %c0_199 = arith.constant 0 : index
    %414 = vector.load %arg4[%c1_197, %c4_198, %c0_199] : memref<2x7x32xf32, #tpu.memory_space<vmem>>, vector<1x1x32xf32>
    %415 = vector.shape_cast %414 : vector<1x1x32xf32> to vector<1x32xf32>
    %416 = vector.broadcast %415 : vector<1x32xf32> to vector<64x32xf32>
    %417 = arith.mulf %413, %416 : vector<64x32xf32>
    %418 = arith.addf %401, %417 : vector<64x32xf32>
    %c62_i32_200 = arith.constant 62 : i32
    %419 = tpu.dynamic_rotate %344 by %c62_i32_200 dim 0 : vector<64x32xf32>, i32 -> vector<64x32xf32>
    %c2_i32_201 = arith.constant 2 : i32
    %420 = vector.broadcast %c2_i32_201 : i32 to vector<64x32xi32>
    %421 = arith.addi %1, %420 : vector<64x32xi32>
    %c0_i32_202 = arith.constant 0 : i32
    %422 = vector.broadcast %c0_i32_202 : i32 to vector<64x32xi32>
    %423 = arith.cmpi sge, %421, %422 : vector<64x32xi32>
    %c2_i32_203 = arith.constant 2 : i32
    %424 = vector.broadcast %c2_i32_203 : i32 to vector<64x32xi32>
    %425 = arith.addi %1, %424 : vector<64x32xi32>
    %c32_i32_204 = arith.constant 32 : i32
    %426 = vector.broadcast %c32_i32_204 : i32 to vector<64x32xi32>
    %427 = arith.cmpi slt, %425, %426 : vector<64x32xi32>
    %428 = arith.andi %423, %427 : vector<64x32xi1>
    %cst_205 = arith.constant 0.000000e+00 : f32
    %429 = vector.broadcast %cst_205 : f32 to vector<64x32xf32>
    %430 = arith.select %428, %419, %429 : vector<64x32xi1>, vector<64x32xf32>
    %c1_206 = arith.constant 1 : index
    %c5_207 = arith.constant 5 : index
    %c0_208 = arith.constant 0 : index
    %431 = vector.load %arg4[%c1_206, %c5_207, %c0_208] : memref<2x7x32xf32, #tpu.memory_space<vmem>>, vector<1x1x32xf32>
    %432 = vector.shape_cast %431 : vector<1x1x32xf32> to vector<1x32xf32>
    %433 = vector.broadcast %432 : vector<1x32xf32> to vector<64x32xf32>
    %434 = arith.mulf %430, %433 : vector<64x32xf32>
    %435 = arith.addf %418, %434 : vector<64x32xf32>
    %c61_i32_209 = arith.constant 61 : i32
    %436 = tpu.dynamic_rotate %344 by %c61_i32_209 dim 0 : vector<64x32xf32>, i32 -> vector<64x32xf32>
    %c3_i32_210 = arith.constant 3 : i32
    %437 = vector.broadcast %c3_i32_210 : i32 to vector<64x32xi32>
    %438 = arith.addi %1, %437 : vector<64x32xi32>
    %c0_i32_211 = arith.constant 0 : i32
    %439 = vector.broadcast %c0_i32_211 : i32 to vector<64x32xi32>
    %440 = arith.cmpi sge, %438, %439 : vector<64x32xi32>
    %c3_i32_212 = arith.constant 3 : i32
    %441 = vector.broadcast %c3_i32_212 : i32 to vector<64x32xi32>
    %442 = arith.addi %1, %441 : vector<64x32xi32>
    %c32_i32_213 = arith.constant 32 : i32
    %443 = vector.broadcast %c32_i32_213 : i32 to vector<64x32xi32>
    %444 = arith.cmpi slt, %442, %443 : vector<64x32xi32>
    %445 = arith.andi %440, %444 : vector<64x32xi1>
    %cst_214 = arith.constant 0.000000e+00 : f32
    %446 = vector.broadcast %cst_214 : f32 to vector<64x32xf32>
    %447 = arith.select %445, %436, %446 : vector<64x32xi1>, vector<64x32xf32>
    %c1_215 = arith.constant 1 : index
    %c6_216 = arith.constant 6 : index
    %c0_217 = arith.constant 0 : index
    %448 = vector.load %arg4[%c1_215, %c6_216, %c0_217] : memref<2x7x32xf32, #tpu.memory_space<vmem>>, vector<1x1x32xf32>
    %449 = vector.shape_cast %448 : vector<1x1x32xf32> to vector<1x32xf32>
    %450 = vector.broadcast %449 : vector<1x32xf32> to vector<64x32xf32>
    %451 = arith.mulf %447, %450 : vector<64x32xf32>
    %452 = arith.addf %435, %451 : vector<64x32xf32>
    %c11 = arith.constant 11 : index
    %c0_218 = arith.constant 0 : index
    %453 = vector.load %arg11[%c11, %c0_218] : memref<16x32xf32, #tpu.memory_space<vmem>>, vector<1x32xf32>
    %454 = vector.broadcast %453 : vector<1x32xf32> to vector<64x32xf32>
    %455 = arith.addf %452, %454 : vector<64x32xf32>
    %c12 = arith.constant 12 : index
    %c0_219 = arith.constant 0 : index
    %456 = vector.load %arg11[%c12, %c0_219] : memref<16x32xf32, #tpu.memory_space<vmem>>, vector<1x32xf32>
    %c13 = arith.constant 13 : index
    %c0_220 = arith.constant 0 : index
    %457 = vector.load %arg11[%c13, %c0_220] : memref<16x32xf32, #tpu.memory_space<vmem>>, vector<1x32xf32>
    %cst_221 = arith.constant dense<0.000000e+00> : vector<64xf32>
    %458 = vector.multi_reduction <add>, %455, %cst_221 [1] : vector<64x32xf32> to vector<64xf32>
    %459 = vector.shape_cast %458 : vector<64xf32> to vector<64x1xf32>
    %cst_222 = arith.constant 3.200000e+01 : f32
    %460 = vector.broadcast %cst_222 : f32 to vector<64x1xf32>
    %461 = arith.divf %459, %460 : vector<64x1xf32>
    %462 = arith.mulf %455, %455 : vector<64x32xf32>
    %cst_223 = arith.constant dense<0.000000e+00> : vector<64xf32>
    %463 = vector.multi_reduction <add>, %462, %cst_223 [1] : vector<64x32xf32> to vector<64xf32>
    %464 = vector.shape_cast %463 : vector<64xf32> to vector<64x1xf32>
    %cst_224 = arith.constant 3.200000e+01 : f32
    %465 = vector.broadcast %cst_224 : f32 to vector<64x1xf32>
    %466 = arith.divf %464, %465 : vector<64x1xf32>
    %467 = arith.mulf %461, %461 : vector<64x1xf32>
    %468 = arith.subf %466, %467 : vector<64x1xf32>
    %469 = vector.broadcast %461 : vector<64x1xf32> to vector<64x32xf32>
    %470 = arith.subf %455, %469 : vector<64x32xf32>
    %cst_225 = arith.constant 9.99999997E-7 : f32
    %471 = vector.broadcast %cst_225 : f32 to vector<64x1xf32>
    %472 = arith.addf %468, %471 : vector<64x1xf32>
    %473 = math.rsqrt %472 : vector<64x1xf32>
    %474 = vector.broadcast %473 : vector<64x1xf32> to vector<64x32xf32>
    %475 = arith.mulf %470, %474 : vector<64x32xf32>
    %476 = vector.broadcast %456 : vector<1x32xf32> to vector<64x32xf32>
    %477 = arith.mulf %475, %476 : vector<64x32xf32>
    %478 = vector.broadcast %457 : vector<1x32xf32> to vector<64x32xf32>
    %479 = arith.addf %477, %478 : vector<64x32xf32>
    %480 = arith.truncf %479 : vector<64x32xf32> to vector<64x32xbf16>
    %c1_226 = arith.constant 1 : index
    %c0_227 = arith.constant 0 : index
    %c0_228 = arith.constant 0 : index
    %481 = vector.load %arg5[%c1_226, %c0_227, %c0_228] : memref<2x32x64xbf16, #tpu.memory_space<vmem>>, vector<1x32x64xbf16>
    %482 = vector.shape_cast %481 : vector<1x32x64xbf16> to vector<32x64xbf16>
    %cst_229 = arith.constant dense<0.000000e+00> : vector<64x64xf32>
    %483 = tpu.matmul %480, %482, %cst_229 {dimension_numbers = #tpu.dot_dimension_numbers<[1], [0], [0], [1], [0, 0, 1, 1], [], []>} : vector<64x32xbf16>, vector<32x64xbf16>, vector<64x64xf32> -> vector<64x64xf32>
    %c1_230 = arith.constant 1 : index
    %c0_231 = arith.constant 0 : index
    %c0_232 = arith.constant 0 : index
    %484 = vector.load %arg6[%c1_230, %c0_231, %c0_232] : memref<2x1x64xf32, #tpu.memory_space<vmem>>, vector<1x1x64xf32>
    %485 = vector.shape_cast %484 : vector<1x1x64xf32> to vector<1x64xf32>
    %486 = vector.broadcast %485 : vector<1x64xf32> to vector<64x64xf32>
    %487 = arith.addf %483, %486 : vector<64x64xf32>
    %488 = arith.mulf %487, %487 : vector<64x64xf32>
    %489 = arith.mulf %487, %488 : vector<64x64xf32>
    %cst_233 = arith.constant 4.471500e-02 : f32
    %490 = vector.broadcast %cst_233 : f32 to vector<64x64xf32>
    %491 = arith.mulf %490, %489 : vector<64x64xf32>
    %492 = arith.addf %487, %491 : vector<64x64xf32>
    %cst_234 = arith.constant 0.797884583 : f32
    %493 = vector.broadcast %cst_234 : f32 to vector<64x64xf32>
    %494 = arith.mulf %493, %492 : vector<64x64xf32>
    %495 = math.tanh %494 : vector<64x64xf32>
    %cst_235 = arith.constant 1.000000e+00 : f32
    %496 = vector.broadcast %cst_235 : f32 to vector<64x64xf32>
    %497 = arith.addf %496, %495 : vector<64x64xf32>
    %cst_236 = arith.constant 5.000000e-01 : f32
    %498 = vector.broadcast %cst_236 : f32 to vector<64x64xf32>
    %499 = arith.mulf %498, %497 : vector<64x64xf32>
    %500 = arith.mulf %487, %499 : vector<64x64xf32>
    %501 = arith.truncf %500 : vector<64x64xf32> to vector<64x64xbf16>
    %c1_237 = arith.constant 1 : index
    %c0_238 = arith.constant 0 : index
    %c0_239 = arith.constant 0 : index
    %502 = vector.load %arg7[%c1_237, %c0_238, %c0_239] : memref<2x64x32xbf16, #tpu.memory_space<vmem>>, vector<1x64x32xbf16>
    %503 = vector.shape_cast %502 : vector<1x64x32xbf16> to vector<64x32xbf16>
    %cst_240 = arith.constant dense<0.000000e+00> : vector<64x32xf32>
    %504 = tpu.matmul %501, %503, %cst_240 {dimension_numbers = #tpu.dot_dimension_numbers<[1], [0], [0], [1], [0, 0, 1, 1], [], []>} : vector<64x64xbf16>, vector<64x32xbf16>, vector<64x32xf32> -> vector<64x32xf32>
    %c14 = arith.constant 14 : index
    %c0_241 = arith.constant 0 : index
    %505 = vector.load %arg11[%c14, %c0_241] : memref<16x32xf32, #tpu.memory_space<vmem>>, vector<1x32xf32>
    %506 = vector.broadcast %505 : vector<1x32xf32> to vector<64x32xf32>
    %507 = arith.addf %504, %506 : vector<64x32xf32>
    %c15 = arith.constant 15 : index
    %c0_242 = arith.constant 0 : index
    %508 = vector.load %arg11[%c15, %c0_242] : memref<16x32xf32, #tpu.memory_space<vmem>>, vector<1x32xf32>
    %509 = vector.broadcast %508 : vector<1x32xf32> to vector<64x32xf32>
    %510 = arith.mulf %509, %507 : vector<64x32xf32>
    %511 = arith.addf %344, %510 : vector<64x32xf32>
    %c4_243 = arith.constant 4 : index
    %c0_244 = arith.constant 0 : index
    %512 = vector.load %arg11[%c4_243, %c0_244] : memref<16x32xf32, #tpu.memory_space<vmem>>, vector<1x32xf32>
    %c5_245 = arith.constant 5 : index
    %c0_246 = arith.constant 0 : index
    %513 = vector.load %arg11[%c5_245, %c0_246] : memref<16x32xf32, #tpu.memory_space<vmem>>, vector<1x32xf32>
    %cst_247 = arith.constant dense<0.000000e+00> : vector<64xf32>
    %514 = vector.multi_reduction <add>, %511, %cst_247 [1] : vector<64x32xf32> to vector<64xf32>
    %515 = vector.shape_cast %514 : vector<64xf32> to vector<64x1xf32>
    %cst_248 = arith.constant 3.200000e+01 : f32
    %516 = vector.broadcast %cst_248 : f32 to vector<64x1xf32>
    %517 = arith.divf %515, %516 : vector<64x1xf32>
    %518 = arith.mulf %511, %511 : vector<64x32xf32>
    %cst_249 = arith.constant dense<0.000000e+00> : vector<64xf32>
    %519 = vector.multi_reduction <add>, %518, %cst_249 [1] : vector<64x32xf32> to vector<64xf32>
    %520 = vector.shape_cast %519 : vector<64xf32> to vector<64x1xf32>
    %cst_250 = arith.constant 3.200000e+01 : f32
    %521 = vector.broadcast %cst_250 : f32 to vector<64x1xf32>
    %522 = arith.divf %520, %521 : vector<64x1xf32>
    %523 = arith.mulf %517, %517 : vector<64x1xf32>
    %524 = arith.subf %522, %523 : vector<64x1xf32>
    %525 = vector.broadcast %517 : vector<64x1xf32> to vector<64x32xf32>
    %526 = arith.subf %511, %525 : vector<64x32xf32>
    %cst_251 = arith.constant 9.99999997E-7 : f32
    %527 = vector.broadcast %cst_251 : f32 to vector<64x1xf32>
    %528 = arith.addf %524, %527 : vector<64x1xf32>
    %529 = math.rsqrt %528 : vector<64x1xf32>
    %530 = vector.broadcast %529 : vector<64x1xf32> to vector<64x32xf32>
    %531 = arith.mulf %526, %530 : vector<64x32xf32>
    %532 = vector.broadcast %512 : vector<1x32xf32> to vector<64x32xf32>
    %533 = arith.mulf %531, %532 : vector<64x32xf32>
    %534 = vector.broadcast %513 : vector<1x32xf32> to vector<64x32xf32>
    %535 = arith.addf %533, %534 : vector<64x32xf32>
    %536 = arith.truncf %535 : vector<64x32xf32> to vector<64x32xbf16>
    %c0_252 = arith.constant 0 : index
    %c0_253 = arith.constant 0 : index
    %537 = vector.load %arg8[%c0_252, %c0_253] : memref<32x18xbf16, #tpu.memory_space<vmem>>, vector<32x18xbf16>
    %cst_254 = arith.constant dense<0.000000e+00> : vector<64x18xf32>
    %538 = tpu.matmul %536, %537, %cst_254 {dimension_numbers = #tpu.dot_dimension_numbers<[1], [0], [0], [1], [0, 0, 1, 1], [], []>} : vector<64x32xbf16>, vector<32x18xbf16>, vector<64x18xf32> -> vector<64x18xf32>
    %c0_255 = arith.constant 0 : index
    %c0_256 = arith.constant 0 : index
    %539 = vector.load %arg9[%c0_255, %c0_256] : memref<1x18xf32, #tpu.memory_space<vmem>>, vector<1x18xf32>
    %540 = vector.broadcast %539 : vector<1x18xf32> to vector<64x18xf32>
    %541 = arith.addf %538, %540 : vector<64x18xf32>
    %542 = vector.extract_strided_slice %541 {offsets = [0, 0], sizes = [64, 9], strides = [1, 1]} : vector<64x18xf32> to vector<64x9xf32>
    %543 = vector.extract_strided_slice %541 {offsets = [0, 9], sizes = [64, 9], strides = [1, 1]} : vector<64x18xf32> to vector<64x9xf32>
    %544 = math.exp %542 : vector<64x9xf32>
    %cst_257 = arith.constant 1.000000e+02 : f32
    %545 = vector.broadcast %cst_257 : f32 to vector<64x9xf32>
    %546 = arith.minimumf %544, %545 : vector<64x9xf32>
    %547 = math.cos %543 : vector<64x9xf32>
    %548 = arith.mulf %546, %547 : vector<64x9xf32>
    %549 = math.sin %543 : vector<64x9xf32>
    %550 = arith.mulf %546, %549 : vector<64x9xf32>
    %551 = tpu.concatenate %548, %550 in 1 : vector<64x9xf32>, vector<64x9xf32> -> vector<64x18xf32>
    %552 = arith.truncf %551 : vector<64x18xf32> to vector<64x18xbf16>
    %c0_258 = arith.constant 0 : index
    %c0_259 = arith.constant 0 : index
    %553 = vector.load %arg10[%c0_258, %c0_259] : memref<18x16xbf16, #tpu.memory_space<vmem>>, vector<18x16xbf16>
    %cst_260 = arith.constant dense<0.000000e+00> : vector<64x16xf32>
    %554 = tpu.matmul %552, %553, %cst_260 {dimension_numbers = #tpu.dot_dimension_numbers<[1], [0], [0], [1], [0, 0, 1, 1], [], []>} : vector<64x18xbf16>, vector<18x16xbf16>, vector<64x16xf32> -> vector<64x16xf32>
    %c0_261 = arith.constant 0 : index
    %c0_262 = arith.constant 0 : index
    %555 = vector.load %arg12[%c0_261, %c0_262] : memref<64x16xf32, #tpu.memory_space<vmem>>, vector<64x16xf32>
    tpu.vector_store %arg12[%c0_261, %c0_262], %554 {strides = array<i32>} : memref<64x16xf32, #tpu.memory_space<vmem>>, vector<64x16xf32>,
    return
  }
}

</mosaic_0001>

<bundles_post_ra>
// kernel: integer_pow.1
= control target key start
LH: loop header
LB: loop body
LE: loop exit
PB: predicated region body
PF: predicated region fallthrough
CT: control target
= control target key end

     0   :  { %s34_s0 = inlined_call_operand.vmem [shape: f32[16], index: 0, kind: input, shape index: {}, may-alias: {0,1}]   ;;  %s35_s1 = inlined_call_operand.vmem [shape: f32[16], index: 1, kind: input, shape index: {}, may-alias: {0,1}]   ;;  %s36_s2 = inlined_call_operand.vmem [shape: f32[16], index: 2, kind: output, shape index: {}]  }
   0x1   :  { %v3_v0 = vld [vmem:[%s34_s0] sm:$0x1] }
   0x2   :  { %v4_v1 = vld [vmem:[%s35_s1] sm:$0x1] }
   0x3   :  { %v7_v2 = vmul.f32 %v4_v1, %v3_v0 }
   0x5   :  { %9 = vst [vmem:[%s36_s2] sm:$0x1] %v7_v2 }

// kernel: tile.13
= control target key start
LH: loop header
LB: loop body
LE: loop exit
PB: predicated region body
PF: predicated region fallthrough
CT: control target
= control target key end

     0   :  { %s40_s0 = inlined_call_operand.vmem [shape: f32[8], index: 0, kind: input, shape index: {}]   ;;  %s41_s1 = inlined_call_operand.vmem [shape: f32[32,8], index: 1, kind: output, shape index: {}]  }
   0x1   :  { %v4_v0 = vld [vmem:[%s40_s0] ss:$0 sm:$0xff] }
   0x2   :  { %5 = vst [vmem:[%s41_s1] sm:$0xff] %v4_v0  ;;  %12 = vst [vmem:[%s41_s1 + $0x8] sm:$0xff] %v4_v0 }
   0x3   :  { %13 = vst [vmem:[%s41_s1 + $0x10] sm:$0xff] %v4_v0  ;;  %14 = vst [vmem:[%s41_s1 + $0x18] sm:$0xff] %v4_v0 }

// kernel: tile.14
= control target key start
LH: loop header
LB: loop body
LE: loop exit
PB: predicated region body
PF: predicated region fallthrough
CT: control target
= control target key end

     0   :  { %s7_s6 = smov 3  ;;  %s21_s9 = smov 3  ;;  %vm4_vm0 = vcmask 64512   ;;  %vm11_vm1 = vcmask 1048512   ;;  %vm18_vm2 = vcmask 982912   ;;  %vm25_vm3 = vcmask 917312   ;;  %s223_s0 = inlined_call_operand.vmem [shape: f32[32,8], index: 0, kind: input, shape index: {}]   ;;  %s224_s1 = inlined_call_operand.vmem [shape: f32[256], index: 1, kind: output, shape index: {}]  }
   0x1   :  { %v117_v0 = vld [vmem:[%s223_s0 + $0xf] ss:$16 sm:%s7_s6]   ;;  %s147_s10 = smov 120   ;;  %v119_v1 = vld [vmem:[%s223_s0 + $0xd] ss:$16 sm:%s21_s9]   ;;  %s14_s13 = smov 3 }
   0x2   :  { %9 = vrot.lane.b32.xlu0 %v117_v0, %s147_s10  ;;  %s148_s14 = smov 104   ;;  %v118_v2 = vld [vmem:[%s223_s0 + $0xe] ss:$16 sm:%s14_s13]   ;;  %s28_s17 = smov 3  ;;  %vm32_vm4 = vcmask 851712   ;;  %vm39_vm5 = vcmask 786112  }
   0x3   :  { %23 = vrot.lane.b32.xlu1 %v119_v1, %s148_s14  ;;  %v120_v3 = vld [vmem:[%s223_s0 + $0xc] ss:$16 sm:%s28_s17]   ;;  %s35_s20 = smov 3  ;;  %s42_s21 = smov 3  ;;  %vm46_vm6 = vcmask 720512   ;;  %vm53_vm7 = vcmask 654912  }
   0x4   :  { %s149_s22 = smov 112   ;;  %s150_s23 = smov 96   ;;  %v121_v4 = vld [vmem:[%s223_s0 + $0xb] ss:$16 sm:%s35_s20]   ;;  %v122_v5 = vld [vmem:[%s223_s0 + $0xa] ss:$16 sm:%s42_s21]  }
   0x5   :  { %s49_s28 = smov 3  ;;  %s56_s29 = smov 3  ;;  %vm60_vm8 = vcmask 589312   ;;  %vm67_vm9 = vcmask 523712   ;;  %vm74_vm10 = vcmask 458112   ;;  %vm81_vm11 = vcmask 392512  }
   0x6   :  { %16 = vrot.lane.b32.xlu0 %v118_v2, %s149_s22  ;;  %s151_s30 = smov 88   ;;  %s152_s2 = smov 80   ;;  %v123_v6 = vld [vmem:[%s223_s0 + $0x9] ss:$16 sm:%s49_s28]   ;;  %vm88_vm12 = vcmask 326912   ;;  %vm95_vm13 = vcmask 261312  }
   0x7   :  { %30 = vrot.lane.b32.xlu1 %v120_v3, %s150_s23  ;;  %v124_v7 = vld [vmem:[%s223_s0 + $0x8] ss:$16 sm:%s56_s29]   ;;  %s63_s7 = smov 3  ;;  %s70_s8 = smov 3  ;;  %vm102_vm14 = vcmask 195712   ;;  %vm109_vm15 = vcmask 130112  }
   0x8   :  { %s153_s9 = smov 72   ;;  %s154_s10 = smov 64   ;;  %v125_v8 = vld [vmem:[%s223_s0 + $0x7] ss:$16 sm:%s63_s7]   ;;  %v126_v9 = vld [vmem:[%s223_s0 + $0x6] ss:$16 sm:%s70_s8]  }
   0x9   :  { %s2_s13 = smov 3  ;;  %s77_s16 = smov 3 }
   0xa   :  { %37 = vrot.lane.b32.xlu0 %v121_v4, %s151_s30  ;;  %v3_v10 = vld [vmem:[%s223_s0] ss:$16 sm:%s2_s13]   ;;  %s84_s19 = smov 3  ;;  %s155_s20 = smov 56  }
   0xb   :  { %44 = vrot.lane.b32.xlu1 %v122_v5, %s152_s2  ;;  %5 = vst.msk [vmem:[#allocation0] sm:$0x3] %vm4_vm0, %v3_v10   ;;  %s156_s21 = smov 48   ;;  %v127_v11 = vld [vmem:[%s223_s0 + $0x5] ss:$16 sm:%s77_s16]   ;;  %s91_s26 = smov 3 }
   0xc   :  { %v128_v12 = vld [vmem:[%s223_s0 + $0x4] ss:$16 sm:%s84_s19]   ;;  %s98_s27 = smov 3  ;;  %s157_s28 = smov 40   ;;  %v129_v13 = vld [vmem:[%s223_s0 + $0x3] ss:$16 sm:%s91_s26]  }
   0xd   :  { %s158_s29 = smov 32   ;;  %v130_v14 = vld [vmem:[%s223_s0 + $0x2] ss:$16 sm:%s98_s27]   ;;  %s105_s5 = smov 3 }
   0xe   :  { %51 = vrot.lane.b32.xlu0 %v123_v6, %s153_s9  ;;  %s159_s6 = smov 24   ;;  %s160_s7 = smov 16   ;;  %v131_v15 = vld [vmem:[%s223_s0 + $0x1] ss:$16 sm:%s105_s5]  }
   0xf   :  { %58 = vrot.lane.b32.xlu1 %v124_v7, %s154_s10  ;;  %s161_s0 = smov 8  }
  0x12   :  { %65 = vrot.lane.b32.xlu0 %v125_v8, %s155_s20 }
  0x13   :  { %72 = vrot.lane.b32.xlu1 %v126_v9, %s156_s21 }
  0x16   :  { %79 = vrot.lane.b32.xlu0 %v127_v11, %s157_s28 }
  0x17   :  { %86 = vrot.lane.b32.xlu1 %v128_v12, %s158_s29 }
  0x1a   :  { %93 = vrot.lane.b32.xlu0 %v129_v13, %s159_s6 }
  0x1b   :  { %100 = vrot.lane.b32.xlu1 %v130_v14, %s160_s7 }
  0x1e   :  { %107 = vrot.lane.b32.xlu0 %v131_v15, %s161_s0 }
  0x74   :  { %v10_v16 = vpop.permute.xlu0 %9  }
  0x75   :  { %12 = vst.msk [vmem:[#allocation0] sm:$0x3] %vm11_vm1, %v10_v16   ;;  %v24_v17 = vpop.permute.xlu1 %23  }
  0x78   :  { %v17_v18 = vpop.permute.xlu0 %16  }
  0x79   :  { %19 = vst.msk [vmem:[#allocation0] sm:$0x3] %vm18_vm2, %v17_v18   ;;  %v31_v19 = vpop.permute.xlu1 %30  }
  0x7a   :  { %26 = vst.msk [vmem:[#allocation0] sm:$0x3] %vm25_vm3, %v24_v17  }
  0x7b   :  { %33 = vst.msk [vmem:[#allocation0] sm:$0x3] %vm32_vm4, %v31_v19  }
  0x7c   :  { %v38_v20 = vpop.permute.xlu0 %37  }
  0x7d   :  { %40 = vst.msk [vmem:[#allocation0] sm:$0x3] %vm39_vm5, %v38_v20   ;;  %v45_v21 = vpop.permute.xlu1 %44  }
  0x7e   :  { %47 = vst.msk [vmem:[#allocation0] sm:$0x3] %vm46_vm6, %v45_v21  }
  0x80   :  { %v52_v22 = vpop.permute.xlu0 %51  }
  0x81   :  { %54 = vst.msk [vmem:[#allocation0] sm:$0x3] %vm53_vm7, %v52_v22   ;;  %v59_v23 = vpop.permute.xlu1 %58  }
  0x82   :  { %61 = vst.msk [vmem:[#allocation0] sm:$0x3] %vm60_vm8, %v59_v23  }
  0x84   :  { %v66_v24 = vpop.permute.xlu0 %65  }
  0x85   :  { %68 = vst.msk [vmem:[#allocation0] sm:$0x3] %vm67_vm9, %v66_v24   ;;  %v73_v25 = vpop.permute.xlu1 %72  }
  0x86   :  { %75 = vst.msk [vmem:[#allocation0] sm:$0x3] %vm74_vm10, %v73_v25  }
  0x88   :  { %v80_v26 = vpop.permute.xlu0 %79  }
  0x89   :  { %82 = vst.msk [vmem:[#allocation0] sm:$0x3] %vm81_vm11, %v80_v26   ;;  %v87_v27 = vpop.permute.xlu1 %86  }
  0x8a   :  { %89 = vst.msk [vmem:[#allocation0] sm:$0x3] %vm88_vm12, %v87_v27  }
  0x8c   :  { %v94_v28 = vpop.permute.xlu0 %93  }
  0x8d   :  { %96 = vst.msk [vmem:[#allocation0] sm:$0x3] %vm95_vm13, %v94_v28   ;;  %v101_v29 = vpop.permute.xlu1 %100  }
  0x8e   :  { %103 = vst.msk [vmem:[#allocation0] sm:$0x3] %vm102_vm14, %v101_v29  }
  0x90   :  { %v108_v30 = vpop.permute.xlu0 %107  }
  0x91   :  { %110 = vst.msk [vmem:[#allocation0] sm:$0x3] %vm109_vm15, %v108_v30  }
  0x98   :  { %v114_v31 = vld [vmem:[#allocation0] sm:$0x3] }
  0x99   :  { %116 = vst [vmem:[%s224_s1] sm:$0x3] %v114_v31 }

// kernel: wavtokenizer_forward.1
= control target key start
LH: loop header
LB: loop body
LE: loop exit
PB: predicated region body
PF: predicated region fallthrough
CT: control target
= control target key end

     0   :  { %vm81_vm0 = vcmask 1043456   ;;  %vm68_vm1 = vcmask 64512   ;;  %s15563_s0 = inlined_call_operand.vmem [shape: f32[64,8], index: 0, kind: input, shape index: {}]   ;;  %s15564_s1 = inlined_call_operand.vmem [shape: bf16[8,32], index: 1, kind: input, shape index: {}]   ;;  %s15565_s2 = inlined_call_operand.vmem [shape: bf16[16,32], index: 2, kind: input, shape index: {}]   ;;  %s15566_s3 = inlined_call_operand.vmem [shape: bf16[7,32,32], index: 3, kind: input, shape index: {}]   ;;  %s15567_s4 = inlined_call_operand.vmem [shape: f32[2,7,32], index: 4, kind: input, shape index: {}]   ;;  %s15568_s5 = inlined_call_operand.vmem [shape: bf16[2,32,64], index: 5, kind: input, shape index: {}]   ;;  %s15569_s6 = inlined_call_operand.vmem [shape: f32[2,1,64], index: 6, kind: input, shape index: {}]   ;;  %s15570_s7 = inlined_call_operand.vmem [shape: bf16[2,64,32], index: 7, kind: input, shape index: {}]   ;;  %s15571_s8 = inlined_call_operand.vmem [shape: bf16[32,18], index: 8, kind: input, shape index: {}]   ;;  %s15572_s9 = inlined_call_operand.vmem [shape: f32[1,18], index: 9, kind: input, shape index: {}]   ;;  %s15573_s10 = inlined_call_operand.vmem [shape: bf16[18,16], index: 10, kind: input, shape index: {}]   ;;  %s15574_s11 = inlined_call_operand.vmem [shape: f32[16,32], index: 11, kind: input, shape index: {}]   ;;  %s15575_s12 = inlined_call_operand.vmem [shape: f32[64,16], index: 12, kind: output, shape index: {0}]   ;;  %s15576_s13 = inlined_call_operand.hbm [shape: f32[1,1], index: 13, kind: output, shape index: {1}]  }
   0x1   :  { %v62_v0 = vld [vmem:[%s15564_s1] sm:$0xf]  ;;  %v51_v2 = vld [vmem:[%s15563_s0 + $0x8] sm:$0xff]  ;;  %v52_v5 = vld [vmem:[%s15563_s0 + $0x10] sm:$0xff] }
   0x2   :  { %v50_v1 = vld [vmem:[%s15563_s0] sm:$0xff]  ;;  %9717 = vmatprep.subr.msk.bf16.mxu0 %vm81_vm0, %v62_v0  ;;  %v83_v3 = vsel %vm81_vm0, %v62_v0, 0  ;;  %v53_v6 = vld [vmem:[%s15563_s0 + $0x18] sm:$0xff]  ;;  %v55_v9 = vld [vmem:[%s15563_s0 + $0x28] sm:$0xff] }
   0x3   :  { %v58_v4 = vpack.c.bf16 %v51_v2, %v50_v1  ;;  %v54_v7 = vld [vmem:[%s15563_s0 + $0x20] sm:$0xff]  ;;  %9476 = vmatpush3.bf16.msra.mxu0 %v83_v3  ;;  %v59_v8 = vpack.c.bf16 %v53_v6, %v52_v5  ;;  %v56_v11 = vld [vmem:[%s15563_s0 + $0x30] sm:$0xff]  ;;  %v57_v12 = vld [vmem:[%s15563_s0 + $0x38] sm:$0xff] }
   0x4   :  { %v60_v10 = vpack.c.bf16 %v55_v9, %v54_v7  ;;  %v61_v13 = vpack.c.bf16 %v57_v12, %v56_v11 }
   0x5   :  { %9477 = vmatprep.mubr.msk.bf16.mxu0 %vm68_vm1, %v58_v4 }
   0x6   :  { %9478 = vmatmul.mubr.msk.bf16.vlgmr.msra.gmra.mrb[0].mxu0 %vm68_vm1, %v59_v8 }
   0x7   :  { %9481 = vmatprep.mubr.msk.bf16.mxu0 %vm68_vm1, %v60_v10 }
   0xe   :  { %9482 = vmatmul.mubr.msk.bf16.gmra.mrb[4].mxu0 %vm68_vm1, %v61_v13 }
   0xf   :  { %19 = vsyncpa [#allocation3], 0  ;;  %v150_v14 = vld [vmem:[%s15565_s2] sm:$0xff]   ;;  %vm156_vm2 = vcmask 261120   ;;  %v45_v43 = vlaneseq  ;;  %vm1751_vm3 = vcmask 130112   ;;  %vm2320_vm4 = vcmask 1041409  }
  0x10   :  { %9718 = vmatprep.subr.msk.bf16.mxu1 %vm156_vm2, %v150_v14  ;;  %v185_v15 = vsel %vm156_vm2, %v150_v14, 0  ;;  %9495 = vmatprep.subr.bf16.mxu0 %v150_v14  ;;  %v152_v16 = vunpack.c.l.bf16 %v150_v14  ;;  %v153_v17 = vunpack.c.h.bf16 %v150_v14  ;;  %v9134_v23 = vld [vmem:[%s15574_s11] ss:$0 sm:$0xff]  ;;  %vm2322_vm5 = vcmask 1042434   ;;  %s9963_s24 = scalar_lea.hbm %s15576_s13, 16 }
  0x11   :  { %9486 = vmatpush3.bf16.xpose.msra.mxu1 %v185_v15  ;;  %9496 = vmatpush3.bf16.msra.mxu0 %v150_v14  ;;  %v10125_v44 = vand.u32 127, %v45_v43  ;;  %v10129_v45 = vshrl.u32 %v45_v43, 7  ;;  %vm2324_vm6 = vcmask 1043459   ;;  %vm2326_vm7 = vcmask 1044484   ;;  %p9964_p0 = scmp.ne.s32.totalorder %s15576_s13, %s9963_s24  ;;  %p9967_p1 = scmp.lt.u32.totalorder %s9963_s24, %s15576_s13 }
  0x12   :  { %v154_v18 = vmul.f32 %v152_v16, %v152_v16  ;;  %v155_v19 = vmul.f32 %v153_v17, %v153_v17  ;;  %vm2328_vm8 = vcmask 1045509   ;;  %vm2330_vm9 = vcmask 1046534  }
  0x13   :  { %15760 = vst [vmem:[#allocation13_spill] sm:$0xff] %v10125_v44  ;;  %2873 = vbcast.lane.b32.xlu1 %v10125_v44, 256  ;;  %15761 = vst [vmem:[#allocation14_spill] sm:$0xff] %v10129_v45  ;;  %v10132_v46 = vsub.s32 0, %v10129_v45  ;;  %v10138_v53 = vsub.s32 1, %v10129_v45  ;;  %v10142_v55 = vsub.s32 2, %v10129_v45  ;;  %p9969_p2 = pnand %p9967_p1, %p9964_p0 }
  0x14   :  { %v157_v20 = vsel %vm156_vm2, %v154_v18, 0.0  ;;  %v160_v21 = vsel %vm156_vm2, %v155_v19, 0.0  ;;  %v10152_v60 = vsub.s32 3, %v10129_v45  ;;  %v10158_v63 = vsub.s32 4, %v10129_v45 }
  0x15   :  { %158 = vadd.xlane.f32.xlu0 %v157_v20  ;;  %15762 = vst [vmem:[#allocation15_spill] sm:$0xff] %v10132_v46  ;;  %15763 = vst [vmem:[#allocation16_spill] sm:$0xff] %v10138_v53  ;;  %v10162_v1 = vsub.s32 5, %v10129_v45  ;;  %v10166_v3 = vsub.s32 6, %v10129_v45  ;;  %v10170_v5 = vsub.s32 7, %v10129_v45  ;;  %vm2332_vm10 = vcmask 1047559  }
  0x16   :  { %15764 = vst [vmem:[#allocation17_spill] sm:$0xff] %v10142_v55  ;;  %15765 = vst [vmem:[#allocation18_spill] sm:$0xff] %v10152_v60  ;;  %vm2391_vm11 = vcmask 130048  }
  0x17   :  { %15766 = vst [vmem:[#allocation19_spill] sm:$0xff] %v10158_v63  ;;  %15767 = vst [vmem:[#allocation20_spill] sm:$0xff] %v10162_v1 }
  0x18   :  { %15768 = vst [vmem:[#allocation21_spill] sm:$0xff] %v10166_v3  ;;  %15769 = vst [vmem:[#allocation22_spill] sm:$0xff] %v10170_v5 }
  0x19   :  { %161 = vadd.xlane.f32.xlu0 %v160_v21 }
  0x2f   :  { %2877 = vbcast.lane.b32.xlu0 %v10125_v44, 264 }
  0xd9   :  { %v9479_v22 = vpop.f32.mrb[0].mxu0 }
  0xda   :  { %v119_v24 = vpop.f32.mrb[1].mxu0  ;;  %v10103_v30 = vadd.f32 %v9479_v22, %v9134_v23 }
  0xdb   :  { %v9480_v25 = vpop.f32.mrb[2].mxu0  ;;  %v10099_v28 = vadd.f32 %v9134_v23, %v119_v24 }
  0xdc   :  { %v10097_v26 = vadd.f32 %v9480_v25, %v9134_v23  ;;  %v122_v27 = vpop.f32.mrb[3].mxu0  ;;  %15755 = vst [vmem:[#allocation8_spill] sm:$0xff] %v10103_v30 }
  0xdd   :  { %15753 = vst [vmem:[#allocation6_spill] sm:$0xff] %v10099_v28  ;;  %v10101_v29 = vadd.f32 %v9134_v23, %v122_v27 }
  0xde   :  { %15752 = vst [vmem:[#allocation5_spill] sm:$0xff] %v10097_v26  ;;  %v164_v32 = vpack.c.bf16 %v10097_v26, %v10103_v30 }
  0xdf   :  { %15754 = vst [vmem:[#allocation7_spill] sm:$0xff] %v10101_v29  ;;  %v163_v31 = vpack.c.bf16 %v10101_v29, %v10099_v28 }
  0xe1   :  { %9487 = vmatprep.mubr.msk.bf16.mxu1 %vm156_vm2, %v163_v31  ;;  %v9483_v33 = vpop.f32.mrb[4].mxu0 }
  0xe2   :  { %9488 = vmatmul.mubr.msk.bf16.vlgmr.msra.gmra.mrb[0].mxu1 %vm156_vm2, %v164_v32  ;;  %v10111_v34 = vadd.f32 %v9483_v33, %v9134_v23  ;;  %v135_v35 = vpop.f32.mrb[5].mxu0  ;;  %v10192_v32 = vpop.xlane.xlu0 %158 }
  0xe3   :  { %v10113_v36 = vadd.f32 %v9134_v23, %v135_v35  ;;  %v9484_v37 = vpop.f32.mrb[6].mxu0 }
  0xe4   :  { %15756 = vst [vmem:[#allocation9_spill] sm:$0xff] %v10111_v34  ;;  %v10115_v38 = vadd.f32 %v9484_v37, %v9134_v23  ;;  %v138_v39 = vpop.f32.mrb[7].mxu0 }
  0xe5   :  { %15757 = vst [vmem:[#allocation10_spill] sm:$0xff] %v10113_v36  ;;  %v10117_v40 = vadd.f32 %v9134_v23, %v138_v39 }
  0xe6   :  { %15758 = vst [vmem:[#allocation11_spill] sm:$0xff] %v10115_v38  ;;  %v166_v41 = vpack.c.bf16 %v10115_v38, %v10111_v34  ;;  %v10197_v39 = vpop.xlane.xlu0 %161 }
  0xe7   :  { %15759 = vst [vmem:[#allocation12_spill] sm:$0xff] %v10117_v40  ;;  %v165_v42 = vpack.c.bf16 %v10117_v40, %v10113_v36 }
  0xe9   :  { %9491 = vmatprep.mubr.msk.bf16.mxu1 %vm156_vm2, %v165_v42 }
  0xea   :  { %9492 = vmatmul.mubr.msk.bf16.gmra.mrb[4].mxu1 %vm156_vm2, %v166_v41  ;;  %v10201_v43 = vpop.permute.xlu0 %2877 }
  0xeb   :  { %15770 = vst [vmem:[#allocation23_spill] sm:$0xff] %v10201_v43 }
 0x1b5   :  { %v9489_v47 = vpop.f32.mrb[0].mxu1 }
 0x1b6   :  { %v254_v48 = vmul.f32 2.0, %v9489_v47  ;;  %v221_v49 = vpop.f32.mrb[1].mxu1  ;;  %v10203_v47 = vpop.permute.xlu1 %2873 }
 0x1b7   :  { %v9490_v50 = vpop.f32.mrb[2].mxu1  ;;  %v252_v6 = vmul.f32 2.0, %v221_v49  ;;  %15771 = vst [vmem:[#allocation24_spill] sm:$0xff] %v10203_v47 }
 0x1b8   :  { %v10134_v51 = vpop.f32.mrb[3].mxu1  ;;  %v447_v52 = vrot.slane %v254_v48, %v10132_v46  ;;  %v458_v54 = vrot.slane %v254_v48, %v10138_v53  ;;  %v469_v59 = vrot.slane %v254_v48, %v10142_v55  ;;  %v480_v62 = vrot.slane %v254_v48, %v10152_v60 }
 0x1b9   :  { %v491_v0 = vrot.slane %v254_v48, %v10158_v63  ;;  %v502_v2 = vrot.slane %v254_v48, %v10162_v1  ;;  %v513_v4 = vrot.slane %v254_v48, %v10166_v3  ;;  %v524_v7 = vrot.slane %v254_v48, %v10170_v5 }
 0x1ba   :  { %453 = vbcast.lane.b32.xlu0 %v447_v52, 264  ;;  %449 = vbcast.lane.b32.xlu1 %v447_v52, 256  ;;  %v282_v8 = vrot.slane %v252_v6, %v10138_v53  ;;  %v271_v9 = vrot.slane %v252_v6, %v10132_v46  ;;  %v293_v10 = vrot.slane %v252_v6, %v10142_v55  ;;  %v255_v15 = vmul.f32 2.0, %v9490_v50 }
 0x1bb   :  { %v304_v11 = vrot.slane %v252_v6, %v10152_v60  ;;  %v315_v12 = vrot.slane %v252_v6, %v10158_v63  ;;  %v326_v13 = vrot.slane %v252_v6, %v10162_v1  ;;  %v337_v14 = vrot.slane %v252_v6, %v10166_v3 }
 0x1bc   :  { %v348_v16 = vrot.slane %v252_v6, %v10170_v5  ;;  %v535_v17 = vrot.slane %v255_v15, %v10132_v46  ;;  %v546_v18 = vrot.slane %v255_v15, %v10138_v53  ;;  %v557_v19 = vrot.slane %v255_v15, %v10142_v55 }
 0x1bd   :  { %v10144_v56 = vpop.f32.mrb[4].mxu1  ;;  %v568_v20 = vrot.slane %v255_v15, %v10152_v60  ;;  %v579_v21 = vrot.slane %v255_v15, %v10158_v63  ;;  %v590_v22 = vrot.slane %v255_v15, %v10162_v1  ;;  %v601_v23 = vrot.slane %v255_v15, %v10166_v3 }
 0x1be   :  { %464 = vbcast.lane.b32.xlu0 %v458_v54, 264  ;;  %460 = vbcast.lane.b32.xlu1 %v458_v54, 256  ;;  %v10146_v57 = vpop.f32.mrb[5].mxu1  ;;  %v253_v24 = vmul.f32 2.0, %v10134_v51  ;;  %v612_v25 = vrot.slane %v255_v15, %v10170_v5  ;;  %v258_v48 = vmul.f32 2.0, %v10144_v56  ;;  %v9975_v54 = vmov 0  }
 0x1bf   :  { %v10148_v58 = vpop.f32.mrb[6].mxu1  ;;  %9765 = vset.pattern.permute.xlu0 %v9975_v54  ;;  %9766 = vset.pattern.permute.xlu1 %v9975_v54 }
 0x1c0   :  { %v10154_v61 = vpop.f32.mrb[7].mxu1  ;;  %v381_v27 = vrot.slane %v253_v24, %v10142_v55  ;;  %v392_v31 = vrot.slane %v253_v24, %v10152_v60  ;;  %v403_v33 = vrot.slane %v253_v24, %v10158_v63  ;;  %v359_v35 = vrot.slane %v253_v24, %v10132_v46 }
 0x1c1   :  { %v414_v37 = vrot.slane %v253_v24, %v10162_v1  ;;  %v425_v41 = vrot.slane %v253_v24, %v10166_v3  ;;  %v370_v42 = vrot.slane %v253_v24, %v10138_v53  ;;  %v436_v49 = vrot.slane %v253_v24, %v10170_v5 }
 0x1c2   :  { %475 = vbcast.lane.b32.xlu0 %v469_v59, 264  ;;  %471 = vbcast.lane.b32.xlu1 %v469_v59, 256  ;;  %v799_v52 = vrot.slane %v258_v48, %v10132_v46  ;;  %v810_v56 = vrot.slane %v258_v48, %v10138_v53  ;;  %v259_v38 = vmul.f32 2.0, %v10148_v58 }
 0x1c4   :  { %v887_v26 = vrot.slane %v259_v38, %v10132_v46  ;;  %v898_v58 = vrot.slane %v259_v38, %v10138_v53 }
 0x1c6   :  { %486 = vbcast.lane.b32.xlu0 %v480_v62, 264  ;;  %482 = vbcast.lane.b32.xlu1 %v480_v62, 256 }
 0x1ca   :  { %497 = vbcast.lane.b32.xlu0 %v491_v0, 264  ;;  %493 = vbcast.lane.b32.xlu1 %v491_v0, 256 }
 0x1ce   :  { %508 = vbcast.lane.b32.xlu0 %v502_v2, 264  ;;  %504 = vbcast.lane.b32.xlu1 %v502_v2, 256 }
 0x1d2   :  { %519 = vbcast.lane.b32.xlu0 %v513_v4, 264  ;;  %515 = vbcast.lane.b32.xlu1 %v513_v4, 256  ;;  %v821_v4 = vrot.slane %v258_v48, %v10142_v55 }
 0x1d6   :  { %530 = vbcast.lane.b32.xlu0 %v524_v7, 264  ;;  %526 = vbcast.lane.b32.xlu1 %v524_v7, 256 }
 0x1da   :  { %284 = vbcast.lane.b32.xlu0 %v282_v8, 256  ;;  %273 = vbcast.lane.b32.xlu1 %v271_v9, 256 }
 0x1de   :  { %299 = vbcast.lane.b32.xlu0 %v293_v10, 264  ;;  %277 = vbcast.lane.b32.xlu1 %v271_v9, 264 }
 0x1e2   :  { %310 = vbcast.lane.b32.xlu0 %v304_v11, 264  ;;  %288 = vbcast.lane.b32.xlu1 %v282_v8, 264  ;;  %v832_v8 = vrot.slane %v258_v48, %v10152_v60 }
 0x1e6   :  { %321 = vbcast.lane.b32.xlu0 %v315_v12, 264  ;;  %295 = vbcast.lane.b32.xlu1 %v293_v10, 256 }
 0x1ea   :  { %332 = vbcast.lane.b32.xlu0 %v326_v13, 264  ;;  %306 = vbcast.lane.b32.xlu1 %v304_v11, 256  ;;  %v843_v11 = vrot.slane %v258_v48, %v10158_v63 }
 0x1ee   :  { %343 = vbcast.lane.b32.xlu0 %v337_v14, 264  ;;  %317 = vbcast.lane.b32.xlu1 %v315_v12, 256 }
 0x1f2   :  { %354 = vbcast.lane.b32.xlu0 %v348_v16, 264  ;;  %328 = vbcast.lane.b32.xlu1 %v326_v13, 256 }
 0x1f6   :  { %541 = vbcast.lane.b32.xlu0 %v535_v17, 264  ;;  %339 = vbcast.lane.b32.xlu1 %v337_v14, 256  ;;  %v854_v14 = vrot.slane %v258_v48, %v10162_v1 }
 0x1fa   :  { %552 = vbcast.lane.b32.xlu0 %v546_v18, 264  ;;  %350 = vbcast.lane.b32.xlu1 %v348_v16, 256 }
 0x1fe   :  { %563 = vbcast.lane.b32.xlu0 %v557_v19, 264  ;;  %537 = vbcast.lane.b32.xlu1 %v535_v17, 256  ;;  %v865_v17 = vrot.slane %v258_v48, %v10166_v3 }
 0x202   :  { %574 = vbcast.lane.b32.xlu0 %v568_v20, 264  ;;  %548 = vbcast.lane.b32.xlu1 %v546_v18, 256  ;;  %v256_v18 = vmul.f32 2.0, %v10146_v57 }
 0x204   :  { %v623_v24 = vrot.slane %v256_v18, %v10132_v46  ;;  %v634_v57 = vrot.slane %v256_v18, %v10138_v53  ;;  %v700_v34 = vrot.slane %v256_v18, %v10170_v5 }
 0x206   :  { %585 = vbcast.lane.b32.xlu0 %v579_v21, 264  ;;  %559 = vbcast.lane.b32.xlu1 %v557_v19, 256 }
 0x20a   :  { %596 = vbcast.lane.b32.xlu0 %v590_v22, 264  ;;  %570 = vbcast.lane.b32.xlu1 %v568_v20, 256 }
 0x20e   :  { %607 = vbcast.lane.b32.xlu0 %v601_v23, 264  ;;  %581 = vbcast.lane.b32.xlu1 %v579_v21, 256  ;;  %v876_v21 = vrot.slane %v258_v48, %v10170_v5 }
 0x212   :  { %618 = vbcast.lane.b32.xlu0 %v612_v25, 264  ;;  %592 = vbcast.lane.b32.xlu1 %v590_v22, 256 }
 0x216   :  { %387 = vbcast.lane.b32.xlu0 %v381_v27, 264  ;;  %603 = vbcast.lane.b32.xlu1 %v601_v23, 256 }
 0x21a   :  { %398 = vbcast.lane.b32.xlu0 %v392_v31, 264  ;;  %614 = vbcast.lane.b32.xlu1 %v612_v25, 256 }
 0x21e   :  { %409 = vbcast.lane.b32.xlu0 %v403_v33, 264  ;;  %361 = vbcast.lane.b32.xlu1 %v359_v35, 256 }
 0x222   :  { %420 = vbcast.lane.b32.xlu0 %v414_v37, 264  ;;  %365 = vbcast.lane.b32.xlu1 %v359_v35, 264  ;;  %v645_v35 = vrot.slane %v256_v18, %v10142_v55 }
 0x226   :  { %431 = vbcast.lane.b32.xlu0 %v425_v41, 264  ;;  %372 = vbcast.lane.b32.xlu1 %v370_v42, 256 }
 0x22a   :  { %442 = vbcast.lane.b32.xlu0 %v436_v49, 264  ;;  %376 = vbcast.lane.b32.xlu1 %v370_v42, 264  ;;  %v656_v42 = vrot.slane %v256_v18, %v10152_v60 }
 0x22c   :  { %v10207_v50 = vpop.permute.xlu0 %453  ;;  %v10209_v51 = vpop.permute.xlu1 %449 }
 0x22e   :  { %805 = vbcast.lane.b32.xlu0 %v799_v52, 264  ;;  %383 = vbcast.lane.b32.xlu1 %v381_v27, 256 }
 0x230   :  { %v10212_v59 = vpop.permute.xlu0 %464  ;;  %v10214_v62 = vpop.permute.xlu1 %460 }
 0x232   :  { %816 = vbcast.lane.b32.xlu0 %v810_v56, 264  ;;  %394 = vbcast.lane.b32.xlu1 %v392_v31, 256 }
 0x234   :  { %v10217_v0 = vpop.permute.xlu0 %475  ;;  %v10219_v2 = vpop.permute.xlu1 %471 }
 0x236   :  { %827 = vbcast.lane.b32.xlu0 %v821_v4, 264  ;;  %405 = vbcast.lane.b32.xlu1 %v403_v33, 256 }
 0x238   :  { %v10222_v6 = vpop.permute.xlu0 %486  ;;  %v10224_v7 = vpop.permute.xlu1 %482 }
 0x23a   :  { %838 = vbcast.lane.b32.xlu0 %v832_v8, 264  ;;  %416 = vbcast.lane.b32.xlu1 %v414_v37, 256 }
 0x23c   :  { %v10227_v9 = vpop.permute.xlu0 %497  ;;  %v10229_v10 = vpop.permute.xlu1 %493 }
 0x23e   :  { %849 = vbcast.lane.b32.xlu0 %v843_v11, 264  ;;  %427 = vbcast.lane.b32.xlu1 %v425_v41, 256 }
 0x240   :  { %v10232_v12 = vpop.permute.xlu0 %508  ;;  %v10234_v13 = vpop.permute.xlu1 %504 }
 0x242   :  { %860 = vbcast.lane.b32.xlu0 %v854_v14, 264  ;;  %438 = vbcast.lane.b32.xlu1 %v436_v49, 256 }
 0x244   :  { %v10237_v15 = vpop.permute.xlu0 %519  ;;  %v10239_v16 = vpop.permute.xlu1 %515 }
 0x246   :  { %871 = vbcast.lane.b32.xlu0 %v865_v17, 264  ;;  %801 = vbcast.lane.b32.xlu1 %v799_v52, 256  ;;  %v667_v52 = vrot.slane %v256_v18, %v10158_v63 }
 0x248   :  { %v10243_v19 = vpop.permute.xlu0 %530  ;;  %v10245_v20 = vpop.permute.xlu1 %526 }
 0x24a   :  { %882 = vbcast.lane.b32.xlu0 %v876_v21, 264  ;;  %812 = vbcast.lane.b32.xlu1 %v810_v56, 256 }
 0x24c   :  { %v10248_v22 = vpop.permute.xlu0 %284  ;;  %v10250_v23 = vpop.permute.xlu1 %273 }
 0x24e   :  { %629 = vbcast.lane.b32.xlu0 %v623_v24, 264  ;;  %823 = vbcast.lane.b32.xlu1 %v821_v4, 256  ;;  %v678_v4 = vrot.slane %v256_v18, %v10162_v1 }
 0x250   :  { %v10253_v25 = vpop.permute.xlu0 %299  ;;  %v10255_v27 = vpop.permute.xlu1 %277 }
 0x252   :  { %640 = vbcast.lane.b32.xlu0 %v634_v57, 264  ;;  %834 = vbcast.lane.b32.xlu1 %v832_v8, 256 }
 0x254   :  { %v10258_v31 = vpop.permute.xlu0 %310  ;;  %v10260_v33 = vpop.permute.xlu1 %288 }
 0x256   :  { %651 = vbcast.lane.b32.xlu0 %v645_v35, 264  ;;  %845 = vbcast.lane.b32.xlu1 %v843_v11, 256 }
 0x258   :  { %v10263_v37 = vpop.permute.xlu0 %321  ;;  %v10265_v41 = vpop.permute.xlu1 %295 }
 0x25a   :  { %662 = vbcast.lane.b32.xlu0 %v656_v42, 264  ;;  %856 = vbcast.lane.b32.xlu1 %v854_v14, 256  ;;  %v689_v14 = vrot.slane %v256_v18, %v10166_v3 }
 0x25c   :  { %v10268_v48 = vpop.permute.xlu0 %332  ;;  %v10270_v49 = vpop.permute.xlu1 %306 }
 0x25e   :  { %673 = vbcast.lane.b32.xlu0 %v667_v52, 264  ;;  %867 = vbcast.lane.b32.xlu1 %v865_v17, 256 }
 0x260   :  { %v10273_v54 = vpop.permute.xlu0 %343  ;;  %v10275_v56 = vpop.permute.xlu1 %317 }
 0x262   :  { %684 = vbcast.lane.b32.xlu0 %v678_v4, 264  ;;  %878 = vbcast.lane.b32.xlu1 %v876_v21, 256 }
 0x264   :  { %v10278_v8 = vpop.permute.xlu0 %354  ;;  %v10280_v11 = vpop.permute.xlu1 %328 }
 0x265   :  { %15772 = vst [vmem:[#allocation25_spill] sm:$0xff] %v10278_v8 }
 0x266   :  { %695 = vbcast.lane.b32.xlu0 %v689_v14, 264  ;;  %625 = vbcast.lane.b32.xlu1 %v623_v24, 256 }
 0x268   :  { %v10284_v40 = vpop.permute.xlu0 %541  ;;  %v10286_v17 = vpop.permute.xlu1 %339 }
 0x269   :  { %15773 = vst [vmem:[#allocation26_spill] sm:$0xff] %v10284_v40 }
 0x26a   :  { %706 = vbcast.lane.b32.xlu0 %v700_v34, 264  ;;  %636 = vbcast.lane.b32.xlu1 %v634_v57, 256  ;;  %v909_v57 = vrot.slane %v259_v38, %v10142_v55 }
 0x26c   :  { %v10289_v36 = vpop.permute.xlu0 %552  ;;  %v10291_v21 = vpop.permute.xlu1 %350 }
 0x26d   :  { %15774 = vst [vmem:[#allocation27_spill] sm:$0xff] %v10289_v36 }
 0x26e   :  { %893 = vbcast.lane.b32.xlu0 %v887_v26, 264  ;;  %647 = vbcast.lane.b32.xlu1 %v645_v35, 256  ;;  %v920_v35 = vrot.slane %v259_v38, %v10152_v60 }
 0x270   :  { %v10294_v30 = vpop.permute.xlu0 %563  ;;  %v10296_v24 = vpop.permute.xlu1 %537 }
 0x271   :  { %15775 = vst [vmem:[#allocation28_spill] sm:$0xff] %v10294_v30 }
 0x272   :  { %904 = vbcast.lane.b32.xlu0 %v898_v58, 264  ;;  %658 = vbcast.lane.b32.xlu1 %v656_v42, 256  ;;  %v931_v42 = vrot.slane %v259_v38, %v10158_v63 }
 0x274   :  { %v10299_v29 = vpop.permute.xlu0 %574  ;;  %v10301_v18 = vpop.permute.xlu1 %548 }
 0x275   :  { %15776 = vst [vmem:[#allocation29_spill] sm:$0xff] %v10299_v29 }
 0x276   :  { %915 = vbcast.lane.b32.xlu0 %v909_v57, 264  ;;  %669 = vbcast.lane.b32.xlu1 %v667_v52, 256  ;;  %v942_v52 = vrot.slane %v259_v38, %v10162_v1 }
 0x278   :  { %v10304_v28 = vpop.permute.xlu0 %585  ;;  %v10306_v47 = vpop.permute.xlu1 %559 }
 0x279   :  { %15777 = vst [vmem:[#allocation30_spill] sm:$0xff] %v10304_v28 }
 0x27a   :  { %926 = vbcast.lane.b32.xlu0 %v920_v35, 264  ;;  %680 = vbcast.lane.b32.xlu1 %v678_v4, 256  ;;  %v953_v4 = vrot.slane %v259_v38, %v10166_v3 }
 0x27c   :  { %v10309_v43 = vpop.permute.xlu0 %596  ;;  %v10311_v45 = vpop.permute.xlu1 %570 }
 0x27d   :  { %15778 = vst [vmem:[#allocation31_spill] sm:$0xff] %v10309_v43  ;;  %v257_v43 = vmul.f32 2.0, %v10154_v61 }
 0x27e   :  { %937 = vbcast.lane.b32.xlu0 %v931_v42, 264  ;;  %691 = vbcast.lane.b32.xlu1 %v689_v14, 256 }
 0x27f   :  { %v722_v61 = vrot.slane %v257_v43, %v10138_v53 }
 0x280   :  { %v10314_v44 = vpop.permute.xlu0 %607  ;;  %v10316_v29 = vpop.permute.xlu1 %581 }
 0x281   :  { %15779 = vst [vmem:[#allocation32_spill] sm:$0xff] %v10314_v44  ;;  %v964_v44 = vrot.slane %v259_v38, %v10170_v5 }
 0x282   :  { %948 = vbcast.lane.b32.xlu0 %v942_v52, 264  ;;  %702 = vbcast.lane.b32.xlu1 %v700_v34, 256 }
 0x284   :  { %v10319_v28 = vpop.permute.xlu0 %618  ;;  %v10321_v30 = vpop.permute.xlu1 %592 }
 0x285   :  { %15780 = vst [vmem:[#allocation33_spill] sm:$0xff] %v10319_v28  ;;  %v711_v28 = vrot.slane %v257_v43, %v10132_v46 }
 0x286   :  { %959 = vbcast.lane.b32.xlu0 %v953_v4, 264  ;;  %889 = vbcast.lane.b32.xlu1 %v887_v26, 256 }
 0x288   :  { %v10325_v36 = vpop.permute.xlu0 %387  ;;  %v10327_v14 = vpop.permute.xlu1 %603 }
 0x289   :  { %15781 = vst [vmem:[#allocation34_spill] sm:$0xff] %v10325_v36 }
 0x28a   :  { %970 = vbcast.lane.b32.xlu0 %v964_v44, 264  ;;  %900 = vbcast.lane.b32.xlu1 %v898_v58, 256  ;;  %v733_v58 = vrot.slane %v257_v43, %v10142_v55 }
 0x28c   :  { %v10330_v40 = vpop.permute.xlu0 %398  ;;  %v10332_v34 = vpop.permute.xlu1 %614 }
 0x28d   :  { %15782 = vst [vmem:[#allocation35_spill] sm:$0xff] %v10330_v40 }
 0x28e   :  { %717 = vbcast.lane.b32.xlu0 %v711_v28, 264  ;;  %911 = vbcast.lane.b32.xlu1 %v909_v57, 256  ;;  %v744_v57 = vrot.slane %v257_v43, %v10152_v60 }
 0x290   :  { %v10335_v8 = vpop.permute.xlu0 %409  ;;  %v10337_v26 = vpop.permute.xlu1 %361 }
 0x291   :  { %15783 = vst [vmem:[#allocation36_spill] sm:$0xff] %v10335_v8 }
 0x292   :  { %728 = vbcast.lane.b32.xlu0 %v722_v61, 264  ;;  %922 = vbcast.lane.b32.xlu1 %v920_v35, 256  ;;  %v755_v35 = vrot.slane %v257_v43, %v10158_v63 }
 0x294   :  { %v10340_v36 = vpop.permute.xlu0 %420  ;;  %v10342_v38 = vpop.permute.xlu1 %365 }
 0x295   :  { %15784 = vst [vmem:[#allocation37_spill] sm:$0xff] %v10340_v36 }
 0x296   :  { %739 = vbcast.lane.b32.xlu0 %v733_v58, 264  ;;  %933 = vbcast.lane.b32.xlu1 %v931_v42, 256  ;;  %v766_v42 = vrot.slane %v257_v43, %v10162_v1  ;;  %v10372_v1 = vsub.f32 %v10192_v32, %v10209_v51  ;;  %v10390_v51 = vsub.f32 %v10192_v32, %v10219_v2 }
 0x297   :  { %v10408_v2 = vsub.f32 %v10192_v32, %v10229_v10  ;;  %v10426_v10 = vsub.f32 %v10197_v39, %v10207_v50  ;;  %v10444_v50 = vsub.f32 %v10192_v32, %v10245_v20 }
 0x298   :  { %v10345_v40 = vpop.permute.xlu0 %431  ;;  %v10347_v46 = vpop.permute.xlu1 %372  ;;  %15788 = vst [vmem:[#allocation41_spill] sm:$0xff] %v10372_v1  ;;  %15790 = vst [vmem:[#allocation43_spill] sm:$0xff] %v10390_v51 }
 0x299   :  { %15785 = vst [vmem:[#allocation38_spill] sm:$0xff] %v10345_v40  ;;  %15792 = vst [vmem:[#allocation45_spill] sm:$0xff] %v10408_v2 }
 0x29a   :  { %750 = vbcast.lane.b32.xlu0 %v744_v57, 264  ;;  %944 = vbcast.lane.b32.xlu1 %v942_v52, 256  ;;  %v777_v52 = vrot.slane %v257_v43, %v10166_v3  ;;  %15794 = vst [vmem:[#allocation47_spill] sm:$0xff] %v10426_v10  ;;  %15797 = vst [vmem:[#allocation50_spill] sm:$0xff] %v10444_v50 }
 0x29c   :  { %v10350_v8 = vpop.permute.xlu0 %442  ;;  %v10352_v53 = vpop.permute.xlu1 %376 }
 0x29d   :  { %15786 = vst [vmem:[#allocation39_spill] sm:$0xff] %v10350_v8 }
 0x29e   :  { %761 = vbcast.lane.b32.xlu0 %v755_v35, 264  ;;  %955 = vbcast.lane.b32.xlu1 %v953_v4, 256  ;;  %v788_v4 = vrot.slane %v257_v43, %v10170_v5 }
 0x2a0   :  { %v10355_v36 = vpop.permute.xlu0 %805  ;;  %v10357_v55 = vpop.permute.xlu1 %383 }
 0x2a2   :  { %772 = vbcast.lane.b32.xlu0 %v766_v42, 264  ;;  %966 = vbcast.lane.b32.xlu1 %v964_v44, 256 }
 0x2a4   :  { %v10360_v40 = vpop.permute.xlu0 %816  ;;  %v10362_v60 = vpop.permute.xlu1 %394 }
 0x2a5   :  { %15787 = vst [vmem:[#allocation40_spill] sm:$0xff] %v10360_v40 }
 0x2a6   :  { %783 = vbcast.lane.b32.xlu0 %v777_v52, 264  ;;  %713 = vbcast.lane.b32.xlu1 %v711_v28, 256  ;;  %v10381_v28 = vsub.f32 %v10192_v32, %v10214_v62  ;;  %v10399_v62 = vsub.f32 %v10192_v32, %v10224_v7  ;;  %v10417_v7 = vsub.f32 %v10192_v32, %v10234_v13 }
 0x2a7   :  { %v10440_v13 = vsub.f32 %v10197_v39, %v10212_v59  ;;  %v10458_v59 = vsub.f32 %v10197_v39, %v10255_v27 }
 0x2a8   :  { %v10365_v8 = vpop.permute.xlu0 %827  ;;  %v10367_v63 = vpop.permute.xlu1 %405  ;;  %15789 = vst [vmem:[#allocation42_spill] sm:$0xff] %v10381_v28  ;;  %15791 = vst [vmem:[#allocation44_spill] sm:$0xff] %v10399_v62 }
 0x2a9   :  { %15793 = vst [vmem:[#allocation46_spill] sm:$0xff] %v10417_v7  ;;  %15796 = vst [vmem:[#allocation49_spill] sm:$0xff] %v10440_v13 }
 0x2aa   :  { %794 = vbcast.lane.b32.xlu0 %v788_v4, 264  ;;  %724 = vbcast.lane.b32.xlu1 %v722_v61, 256  ;;  %15799 = vst [vmem:[#allocation52_spill] sm:$0xff] %v10458_v59 }
 0x2ac   :  { %v10374_v44 = vpop.permute.xlu0 %838  ;;  %v10376_v40 = vpop.permute.xlu1 %416 }
 0x2ae   :  { %1455 = vperm.xlu0 %9765, %v10372_v1   ;;  %735 = vbcast.lane.b32.xlu1 %v733_v58, 256 }
 0x2b0   :  { %v10383_v3 = vpop.permute.xlu0 %849  ;;  %v10385_v43 = vpop.permute.xlu1 %427 }
 0x2b2   :  { %1461 = vperm.xlu0 %9765, %v10381_v28   ;;  %746 = vbcast.lane.b32.xlu1 %v744_v57, 256 }
 0x2b4   :  { %v10392_v61 = vpop.permute.xlu0 %860  ;;  %v10394_v5 = vpop.permute.xlu1 %438 }
 0x2b6   :  { %1467 = vperm.xlu0 %9765, %v10390_v51   ;;  %757 = vbcast.lane.b32.xlu1 %v755_v35, 256 }
 0x2b8   :  { %v10401_v58 = vpop.permute.xlu0 %871  ;;  %v10403_v1 = vpop.permute.xlu1 %801 }
 0x2ba   :  { %1473 = vperm.xlu0 %9765, %v10399_v62   ;;  %768 = vbcast.lane.b32.xlu1 %v766_v42, 256  ;;  %v10430_v42 = vsub.f32 %v10192_v32, %v10239_v16 }
 0x2bc   :  { %v10410_v57 = vpop.permute.xlu0 %882  ;;  %v10412_v28 = vpop.permute.xlu1 %812  ;;  %15795 = vst [vmem:[#allocation48_spill] sm:$0xff] %v10430_v42 }
 0x2be   :  { %1479 = vperm.xlu0 %9765, %v10408_v2   ;;  %779 = vbcast.lane.b32.xlu1 %v777_v52, 256 }
 0x2c0   :  { %v10419_v35 = vpop.permute.xlu0 %629  ;;  %v10421_v51 = vpop.permute.xlu1 %823 }
 0x2c2   :  { %1485 = vperm.xlu0 %9765, %v10417_v7   ;;  %790 = vbcast.lane.b32.xlu1 %v788_v4, 256 }
 0x2c4   :  { %v10432_v52 = vpop.permute.xlu0 %640  ;;  %v10434_v2 = vpop.permute.xlu1 %834 }
 0x2c6   :  { %1491 = vperm.xlu0 %9765, %v10430_v42   ;;  %1458 = vperm.xlu1 %9766, %v10426_v10   ;;  %v10454_v42 = vsub.f32 %v10197_v39, %v10217_v0  ;;  %v10472_v0 = vsub.f32 %v10192_v32, %v10265_v41  ;;  %v15830_v10 = vld [vmem:[#allocation26_spill] sm:$0xff] }
 0x2c8   :  { %v10446_v4 = vpop.permute.xlu0 %651  ;;  %v10448_v16 = vpop.permute.xlu1 %845  ;;  %15798 = vst [vmem:[#allocation51_spill] sm:$0xff] %v10454_v42  ;;  %15801 = vst [vmem:[#allocation54_spill] sm:$0xff] %v10472_v0 }
 0x2ca   :  { %1497 = vperm.xlu0 %9765, %v10444_v50   ;;  %1464 = vperm.xlu1 %9766, %v10440_v13   ;;  %v10468_v50 = vsub.f32 %v10197_v39, %v10222_v6  ;;  %v10486_v6 = vsub.f32 %v10192_v32, %v10270_v49  ;;  %v15826_v13 = vld [vmem:[#allocation25_spill] sm:$0xff] }
 0x2cc   :  { %v10460_v7 = vpop.permute.xlu0 %662  ;;  %v10462_v20 = vpop.permute.xlu1 %856  ;;  %15800 = vst [vmem:[#allocation53_spill] sm:$0xff] %v10468_v50  ;;  %15803 = vst [vmem:[#allocation56_spill] sm:$0xff] %v10486_v6 }
 0x2ce   :  { %1362 = vperm.xlu0 %9765, %v10458_v59   ;;  %1470 = vperm.xlu1 %9766, %v10454_v42   ;;  %v10482_v59 = vsub.f32 %v10197_v39, %v10227_v9  ;;  %v10500_v9 = vsub.f32 %v10192_v32, %v10275_v56 }
 0x2d0   :  { %v10474_v62 = vpop.permute.xlu0 %673  ;;  %v10476_v27 = vpop.permute.xlu1 %867  ;;  %15802 = vst [vmem:[#allocation55_spill] sm:$0xff] %v10482_v59  ;;  %15805 = vst [vmem:[#allocation58_spill] sm:$0xff] %v10500_v9 }
 0x2d2   :  { %1371 = vperm.xlu0 %9765, %v10472_v0   ;;  %1476 = vperm.xlu1 %9766, %v10468_v50   ;;  %v10496_v0 = vsub.f32 %v10197_v39, %v10232_v12  ;;  %v10514_v12 = vsub.f32 %v10192_v32, %v10280_v11 }
 0x2d4   :  { %v10488_v42 = vpop.permute.xlu0 %684  ;;  %v10490_v41 = vpop.permute.xlu1 %878  ;;  %15804 = vst [vmem:[#allocation57_spill] sm:$0xff] %v10496_v0  ;;  %15807 = vst [vmem:[#allocation60_spill] sm:$0xff] %v10514_v12 }
 0x2d6   :  { %1377 = vperm.xlu0 %9765, %v10486_v6   ;;  %1482 = vperm.xlu1 %9766, %v10482_v59   ;;  %v10510_v6 = vsub.f32 %v10197_v39, %v10237_v15  ;;  %v10528_v15 = vsub.f32 %v10192_v32, %v10286_v17 }
 0x2d8   :  { %v10502_v50 = vpop.permute.xlu0 %695  ;;  %v10504_v49 = vpop.permute.xlu1 %625  ;;  %15806 = vst [vmem:[#allocation59_spill] sm:$0xff] %v10510_v6  ;;  %15809 = vst [vmem:[#allocation62_spill] sm:$0xff] %v10528_v15 }
 0x2da   :  { %1383 = vperm.xlu0 %9765, %v10500_v9   ;;  %1488 = vperm.xlu1 %9766, %v10496_v0   ;;  %v10524_v9 = vsub.f32 %v10197_v39, %v10243_v19  ;;  %v10542_v19 = vsub.f32 %v10192_v32, %v10291_v21 }
 0x2dc   :  { %v10516_v59 = vpop.permute.xlu0 %706  ;;  %v10518_v56 = vpop.permute.xlu1 %636  ;;  %15808 = vst [vmem:[#allocation61_spill] sm:$0xff] %v10524_v9  ;;  %15811 = vst [vmem:[#allocation64_spill] sm:$0xff] %v10542_v19 }
 0x2de   :  { %1389 = vperm.xlu0 %9765, %v10514_v12   ;;  %1494 = vperm.xlu1 %9766, %v10510_v6   ;;  %v10538_v12 = vsub.f32 %v10192_v32, %v10250_v23  ;;  %v10556_v23 = vsub.f32 %v10192_v32, %v10296_v24 }
 0x2e0   :  { %v10530_v0 = vpop.permute.xlu0 %893  ;;  %v10532_v11 = vpop.permute.xlu1 %647  ;;  %15810 = vst [vmem:[#allocation63_spill] sm:$0xff] %v10538_v12  ;;  %15813 = vst [vmem:[#allocation66_spill] sm:$0xff] %v10556_v23 }
 0x2e2   :  { %1395 = vperm.xlu0 %9765, %v10528_v15   ;;  %1500 = vperm.xlu1 %9766, %v10524_v9   ;;  %v10552_v15 = vsub.f32 %v10192_v32, %v10248_v22  ;;  %v10570_v22 = vsub.f32 %v10192_v32, %v10301_v18 }
 0x2e4   :  { %v10544_v6 = vpop.permute.xlu0 %904  ;;  %v10546_v17 = vpop.permute.xlu1 %658  ;;  %15812 = vst [vmem:[#allocation65_spill] sm:$0xff] %v10552_v15  ;;  %15815 = vst [vmem:[#allocation68_spill] sm:$0xff] %v10570_v22 }
 0x2e6   :  { %1401 = vperm.xlu0 %9765, %v10542_v19   ;;  %1359 = vperm.xlu1 %9766, %v10538_v12   ;;  %v10566_v19 = vsub.f32 %v10197_v39, %v10260_v33  ;;  %v10584_v33 = vsub.f32 %v10192_v32, %v10306_v47 }
 0x2e8   :  { %v10558_v9 = vpop.permute.xlu0 %915  ;;  %v10560_v21 = vpop.permute.xlu1 %669  ;;  %15814 = vst [vmem:[#allocation67_spill] sm:$0xff] %v10566_v19  ;;  %15817 = vst [vmem:[#allocation70_spill] sm:$0xff] %v10584_v33 }
 0x2ea   :  { %1503 = vperm.xlu0 %9765, %v10556_v23   ;;  %1365 = vperm.xlu1 %9766, %v10552_v15   ;;  %v10580_v23 = vsub.f32 %v10197_v39, %v10253_v25  ;;  %v10598_v25 = vsub.f32 %v10192_v32, %v10311_v45 }
 0x2ec   :  { %v10572_v12 = vpop.permute.xlu0 %926  ;;  %v10574_v24 = vpop.permute.xlu1 %680  ;;  %15816 = vst [vmem:[#allocation69_spill] sm:$0xff] %v10580_v23  ;;  %15819 = vst [vmem:[#allocation72_spill] sm:$0xff] %v10598_v25 }
 0x2ee   :  { %1509 = vperm.xlu0 %9765, %v10570_v22   ;;  %1368 = vperm.xlu1 %9766, %v10566_v19   ;;  %v10594_v22 = vsub.f32 %v10197_v39, %v10258_v31  ;;  %v10612_v31 = vsub.f32 %v10192_v32, %v10316_v29 }
 0x2f0   :  { %v10586_v15 = vpop.permute.xlu0 %937  ;;  %v10588_v18 = vpop.permute.xlu1 %691  ;;  %15818 = vst [vmem:[#allocation71_spill] sm:$0xff] %v10594_v22  ;;  %15821 = vst [vmem:[#allocation74_spill] sm:$0xff] %v10612_v31 }
 0x2f2   :  { %1515 = vperm.xlu0 %9765, %v10584_v33   ;;  %1374 = vperm.xlu1 %9766, %v10580_v23   ;;  %v10608_v33 = vsub.f32 %v10197_v39, %v10263_v37  ;;  %v10626_v37 = vsub.f32 %v10192_v32, %v10321_v30 }
 0x2f4   :  { %v10600_v19 = vpop.permute.xlu0 %948  ;;  %v10602_v47 = vpop.permute.xlu1 %702  ;;  %15820 = vst [vmem:[#allocation73_spill] sm:$0xff] %v10608_v33  ;;  %15823 = vst [vmem:[#allocation76_spill] sm:$0xff] %v10626_v37 }
 0x2f6   :  { %1521 = vperm.xlu0 %9765, %v10598_v25   ;;  %1380 = vperm.xlu1 %9766, %v10594_v22   ;;  %v10622_v25 = vsub.f32 %v10197_v39, %v10268_v48  ;;  %v10640_v48 = vsub.f32 %v10192_v32, %v10327_v14 }
 0x2f8   :  { %v10614_v23 = vpop.permute.xlu0 %959  ;;  %v10616_v45 = vpop.permute.xlu1 %889  ;;  %15822 = vst [vmem:[#allocation75_spill] sm:$0xff] %v10622_v25  ;;  %15825 = vst [vmem:[#allocation78_spill] sm:$0xff] %v10640_v48 }
 0x2fa   :  { %1527 = vperm.xlu0 %9765, %v10612_v31   ;;  %1386 = vperm.xlu1 %9766, %v10608_v33   ;;  %v10636_v31 = vsub.f32 %v10197_v39, %v10273_v54  ;;  %v10654_v54 = vsub.f32 %v10192_v32, %v10332_v34 }
 0x2fc   :  { %v10628_v22 = vpop.permute.xlu0 %970  ;;  %v10630_v29 = vpop.permute.xlu1 %900  ;;  %15824 = vst [vmem:[#allocation77_spill] sm:$0xff] %v10636_v31  ;;  %15828 = vst [vmem:[#allocation79_spill] sm:$0xff] %v10654_v54 }
 0x2fe   :  { %1533 = vperm.xlu0 %9765, %v10626_v37   ;;  %1392 = vperm.xlu1 %9766, %v10622_v25   ;;  %v10650_v37 = vsub.f32 %v10197_v39, %v15826_v13  ;;  %v10668_v13 = vsub.f32 %v10192_v32, %v10337_v26  ;;  %v15837_v26 = vld [vmem:[#allocation28_spill] sm:$0xff] }
 0x300   :  { %v10642_v33 = vpop.permute.xlu0 %717  ;;  %v10644_v30 = vpop.permute.xlu1 %911  ;;  %15827 = vst [vmem:[#allocation25_spill] sm:$0xff] %v10650_v37  ;;  %15832 = vst [vmem:[#allocation81_spill] sm:$0xff] %v10668_v13 }
 0x302   :  { %1539 = vperm.xlu0 %9765, %v10640_v48   ;;  %1398 = vperm.xlu1 %9766, %v10636_v31   ;;  %v10664_v48 = vsub.f32 %v10197_v39, %v15830_v10  ;;  %v10682_v10 = vsub.f32 %v10192_v32, %v10347_v46  ;;  %v15841_v46 = vld [vmem:[#allocation29_spill] sm:$0xff] }
 0x304   :  { %v10656_v25 = vpop.permute.xlu1 %922  ;;  %v10658_v14 = vpop.permute.xlu0 %728  ;;  %15831 = vst [vmem:[#allocation26_spill] sm:$0xff] %v10664_v48  ;;  %15836 = vst [vmem:[#allocation83_spill] sm:$0xff] %v10682_v10 }
 0x305   :  { %15829 = vst [vmem:[#allocation80_spill] sm:$0xff] %v10658_v14  ;;  %v15834_v14 = vld [vmem:[#allocation27_spill] sm:$0xff] }
 0x306   :  { %1545 = vperm.xlu0 %9765, %v10654_v54   ;;  %1404 = vperm.xlu1 %9766, %v10650_v37   ;;  %v10678_v54 = vsub.f32 %v10197_v39, %v15834_v14 }
 0x308   :  { %v10670_v31 = vpop.permute.xlu1 %933  ;;  %v10674_v34 = vpop.permute.xlu0 %739  ;;  %15835 = vst [vmem:[#allocation27_spill] sm:$0xff] %v10678_v54 }
 0x309   :  { %15833 = vst [vmem:[#allocation82_spill] sm:$0xff] %v10674_v34 }
 0x30a   :  { %1407 = vperm.xlu0 %9765, %v10668_v13   ;;  %1506 = vperm.xlu1 %9766, %v10664_v48   ;;  %v10690_v13 = vsub.f32 %v10197_v39, %v15837_v26  ;;  %v10694_v48 = vsub.f32 %v10192_v32, %v10357_v55  ;;  %v10708_v26 = vsub.f32 %v10192_v32, %v10362_v60  ;;  %v15848_v60 = vld [vmem:[#allocation31_spill] sm:$0xff] }
 0x30c   :  { %v10684_v37 = vpop.permute.xlu1 %944  ;;  %15838 = vst [vmem:[#allocation28_spill] sm:$0xff] %v10690_v13  ;;  %15839 = vst [vmem:[#allocation84_spill] sm:$0xff] %v10694_v48  ;;  %v10698_v34 = vpop.permute.xlu0 %750 }
 0x30d   :  { %15840 = vst [vmem:[#allocation85_spill] sm:$0xff] %v10698_v34  ;;  %15843 = vst [vmem:[#allocation86_spill] sm:$0xff] %v10708_v26  ;;  %v15845_v34 = vld [vmem:[#allocation30_spill] sm:$0xff] }
 0x30e   :  { %1413 = vperm.xlu0 %9765, %v10682_v10   ;;  %1512 = vperm.xlu1 %9766, %v10678_v54   ;;  %v10704_v10 = vsub.f32 %v10197_v39, %v15841_v46  ;;  %v10722_v46 = vsub.f32 %v10192_v32, %v10367_v63  ;;  %v15852_v63 = vld [vmem:[#allocation32_spill] sm:$0xff] }
 0x310   :  { %v10696_v14 = vpop.permute.xlu1 %955  ;;  %15842 = vst [vmem:[#allocation29_spill] sm:$0xff] %v10704_v10  ;;  %v10714_v55 = vpop.permute.xlu0 %761  ;;  %15847 = vst [vmem:[#allocation88_spill] sm:$0xff] %v10722_v46 }
 0x311   :  { %15844 = vst [vmem:[#allocation87_spill] sm:$0xff] %v10714_v55 }
 0x312   :  { %1419 = vperm.xlu0 %9765, %v10694_v48   ;;  %1518 = vperm.xlu1 %9766, %v10690_v13   ;;  %v10718_v48 = vsub.f32 %v10197_v39, %v15845_v34 }
 0x314   :  { %v10710_v54 = vpop.permute.xlu1 %966  ;;  %15846 = vst [vmem:[#allocation30_spill] sm:$0xff] %v10718_v48  ;;  %v10736_v34 = vpop.permute.xlu0 %772 }
 0x315   :  { %15851 = vst [vmem:[#allocation90_spill] sm:$0xff] %v10736_v34  ;;  %v15856_v34 = vld [vmem:[#allocation33_spill] sm:$0xff] }
 0x316   :  { %1425 = vperm.xlu0 %9765, %v10708_v26   ;;  %1524 = vperm.xlu1 %9766, %v10704_v10   ;;  %v10730_v26 = vsub.f32 %v10197_v39, %v15848_v60  ;;  %v10734_v10 = vsub.f32 %v10192_v32, %v10376_v40  ;;  %v10748_v60 = vsub.f32 %v10192_v32, %v10385_v43 }
 0x317   :  { %v10768_v43 = vsub.f32 %v10197_v39, %v10342_v38  ;;  %v10786_v38 = vsub.f32 %v10192_v32, %v10412_v28  ;;  %v15867_v28 = vld [vmem:[#allocation35_spill] sm:$0xff] }
 0x318   :  { %v10724_v13 = vpop.permute.xlu1 %713  ;;  %15849 = vst [vmem:[#allocation31_spill] sm:$0xff] %v10730_v26  ;;  %15850 = vst [vmem:[#allocation89_spill] sm:$0xff] %v10734_v10  ;;  %v10752_v40 = vpop.permute.xlu0 %783 }
 0x319   :  { %15854 = vst [vmem:[#allocation91_spill] sm:$0xff] %v10748_v60  ;;  %15855 = vst [vmem:[#allocation92_spill] sm:$0xff] %v10752_v40 }
 0x31a   :  { %1431 = vperm.xlu0 %9765, %v10722_v46   ;;  %1530 = vperm.xlu1 %9766, %v10718_v48   ;;  %v10744_v46 = vsub.f32 %v10197_v39, %v15852_v63  ;;  %v10762_v63 = vsub.f32 %v10192_v32, %v10394_v5  ;;  %15859 = vst [vmem:[#allocation94_spill] sm:$0xff] %v10768_v43  ;;  %15863 = vst [vmem:[#allocation98_spill] sm:$0xff] %v10786_v38 }
 0x31b   :  { %v10782_v5 = vsub.f32 %v10197_v39, %v10352_v53  ;;  %v10800_v53 = vsub.f32 %v10192_v32, %v10421_v51  ;;  %v15870_v51 = vld [vmem:[#allocation36_spill] sm:$0xff] }
 0x31c   :  { %v10738_v55 = vpop.permute.xlu1 %724  ;;  %15853 = vst [vmem:[#allocation32_spill] sm:$0xff] %v10744_v46  ;;  %15858 = vst [vmem:[#allocation93_spill] sm:$0xff] %v10762_v63 }
 0x31d   :  { %15862 = vst [vmem:[#allocation97_spill] sm:$0xff] %v10782_v5  ;;  %15866 = vst [vmem:[#allocation99_spill] sm:$0xff] %v10800_v53 }
 0x31e   :  { %1437 = vperm.xlu0 %9765, %v10734_v10   ;;  %1536 = vperm.xlu1 %9766, %v10730_v26   ;;  %v10758_v10 = vsub.f32 %v10197_v39, %v15856_v34 }
 0x320   :  { %v10754_v48 = vpop.permute.xlu1 %735  ;;  %15857 = vst [vmem:[#allocation33_spill] sm:$0xff] %v10758_v10 }
 0x322   :  { %1443 = vperm.xlu0 %9765, %v10748_v60   ;;  %1542 = vperm.xlu1 %9766, %v10744_v46   ;;  %v10772_v60 = vsub.f32 %v10192_v32, %v10403_v1  ;;  %v10774_v46 = vpop.permute.xlu0 %794 }
 0x323   :  { %15861 = vst [vmem:[#allocation96_spill] sm:$0xff] %v10774_v46  ;;  %v15873_v46 = vld [vmem:[#allocation37_spill] sm:$0xff] }
 0x324   :  { %15860 = vst [vmem:[#allocation95_spill] sm:$0xff] %v10772_v60  ;;  %v10776_v34 = vpop.permute.xlu1 %746 }
 0x326   :  { %1449 = vperm.xlu0 %9765, %v10762_v63   ;;  %1548 = vperm.xlu1 %9766, %v10758_v10   ;;  %v15864_v10 = vld [vmem:[#allocation34_spill] sm:$0xff] }
 0x328   :  { %v10792_v1 = vpop.permute.xlu1 %757 }
 0x32a   :  { %1647 = vperm.xlu0 %9765, %v10772_v60   ;;  %1410 = vperm.xlu1 %9766, %v10768_v43   ;;  %v10796_v60 = vsub.f32 %v10197_v39, %v15864_v10 }
 0x32c   :  { %15865 = vst [vmem:[#allocation34_spill] sm:$0xff] %v10796_v60  ;;  %v10814_v10 = vpop.permute.xlu1 %768 }
 0x32d   :  { %v10788_v63 = vpop.permute.xlu0 %1455 }
 0x32e   :  { %1653 = vperm.xlu0 %9765, %v10786_v38   ;;  %1416 = vperm.xlu1 %9766, %v10782_v5   ;;  %v10808_v38 = vsub.f32 %v10197_v39, %v15867_v28  ;;  %v10812_v5 = vsub.f32 %v10192_v32, %v10434_v2  ;;  %v10826_v28 = vsub.f32 %v10192_v32, %v10448_v16  ;;  %v15876_v16 = vld [vmem:[#allocation38_spill] sm:$0xff] }
 0x330   :  { %15868 = vst [vmem:[#allocation35_spill] sm:$0xff] %v10808_v38  ;;  %15869 = vst [vmem:[#allocation100_spill] sm:$0xff] %v10812_v5  ;;  %v10832_v2 = vpop.permute.xlu1 %779 }
 0x331   :  { %v10802_v43 = vpop.permute.xlu0 %1461  ;;  %15872 = vst [vmem:[#allocation101_spill] sm:$0xff] %v10826_v28 }
 0x332   :  { %1659 = vperm.xlu0 %9765, %v10800_v53   ;;  %1422 = vperm.xlu1 %9766, %v10796_v60   ;;  %v10822_v53 = vsub.f32 %v10197_v39, %v15870_v51  ;;  %v10840_v51 = vsub.f32 %v10192_v32, %v10462_v20  ;;  %v15879_v20 = vld [vmem:[#allocation39_spill] sm:$0xff] }
 0x334   :  { %15871 = vst [vmem:[#allocation36_spill] sm:$0xff] %v10822_v53  ;;  %15875 = vst [vmem:[#allocation102_spill] sm:$0xff] %v10840_v51 }
 0x335   :  { %v10816_v26 = vpop.permute.xlu0 %1467 }
 0x336   :  { %1665 = vperm.xlu0 %9765, %v10812_v5   ;;  %1428 = vperm.xlu1 %9766, %v10808_v38   ;;  %v10836_v5 = vsub.f32 %v10197_v39, %v15873_v46  ;;  %v10854_v46 = vpop.permute.xlu1 %790 }
 0x338   :  { %15874 = vst [vmem:[#allocation37_spill] sm:$0xff] %v10836_v5 }
 0x339   :  { %v10828_v60 = vpop.permute.xlu0 %1473 }
 0x33a   :  { %1671 = vperm.xlu0 %9765, %v10826_v28   ;;  %1434 = vperm.xlu1 %9766, %v10822_v53   ;;  %v10848_v28 = vsub.f32 %v10197_v39, %v15876_v16  ;;  %v10852_v53 = vsub.f32 %v10192_v32, %v10476_v27  ;;  %v10866_v16 = vsub.f32 %v10192_v32, %v10490_v41 }
 0x33c   :  { %15877 = vst [vmem:[#allocation38_spill] sm:$0xff] %v10848_v28  ;;  %15878 = vst [vmem:[#allocation103_spill] sm:$0xff] %v10852_v53 }
 0x33d   :  { %v10842_v38 = vpop.permute.xlu0 %1479  ;;  %15881 = vst [vmem:[#allocation104_spill] sm:$0xff] %v10866_v16 }
 0x33e   :  { %1677 = vperm.xlu0 %9765, %v10840_v51   ;;  %1440 = vperm.xlu1 %9766, %v10836_v5   ;;  %v10862_v51 = vsub.f32 %v10197_v39, %v15879_v20  ;;  %v10880_v20 = vsub.f32 %v10192_v32, %v10504_v49 }
 0x340   :  { %15880 = vst [vmem:[#allocation39_spill] sm:$0xff] %v10862_v51  ;;  %15884 = vst [vmem:[#allocation107_spill] sm:$0xff] %v10880_v20 }
 0x341   :  { %v10856_v40 = vpop.permute.xlu0 %1485 }
 0x342   :  { %1683 = vperm.xlu0 %9765, %v10852_v53   ;;  %1446 = vperm.xlu1 %9766, %v10848_v28   ;;  %v10876_v53 = vsub.f32 %v10197_v39, %v10355_v36  ;;  %v10894_v36 = vsub.f32 %v10192_v32, %v10518_v56 }
 0x344   :  { %15883 = vst [vmem:[#allocation106_spill] sm:$0xff] %v10876_v53  ;;  %15887 = vst [vmem:[#allocation108_spill] sm:$0xff] %v10894_v36 }
 0x345   :  { %v10868_v5 = vpop.permute.xlu0 %1491  ;;  %v10870_v27 = vpop.permute.xlu1 %1458 }
 0x346   :  { %15882 = vst [vmem:[#allocation105_spill] sm:$0xff] %v10868_v5  ;;  %1689 = vperm.xlu0 %9765, %v10866_v16   ;;  %1452 = vperm.xlu1 %9766, %v10862_v51   ;;  %v15885_v5 = vld [vmem:[#allocation40_spill] sm:$0xff] }
 0x347   :  { %v10890_v16 = vsub.f32 %v10197_v39, %v15885_v5  ;;  %v10908_v5 = vsub.f32 %v10192_v32, %v10532_v11 }
 0x349   :  { %v10882_v28 = vpop.permute.xlu0 %1497  ;;  %v10884_v41 = vpop.permute.xlu1 %1464  ;;  %15886 = vst [vmem:[#allocation40_spill] sm:$0xff] %v10890_v16  ;;  %15889 = vst [vmem:[#allocation110_spill] sm:$0xff] %v10908_v5 }
 0x34a   :  { %1551 = vperm.xlu0 %9765, %v10880_v20   ;;  %1650 = vperm.xlu1 %9766, %v10876_v53   ;;  %v10904_v20 = vsub.f32 %v10197_v39, %v10365_v8  ;;  %v10922_v8 = vsub.f32 %v10192_v32, %v10546_v17 }
 0x34c   :  { %15888 = vst [vmem:[#allocation109_spill] sm:$0xff] %v10904_v20  ;;  %15891 = vst [vmem:[#allocation112_spill] sm:$0xff] %v10922_v8 }
 0x34d   :  { %v10896_v51 = vpop.permute.xlu0 %1362  ;;  %v10898_v49 = vpop.permute.xlu1 %1470 }
 0x34e   :  { %1557 = vperm.xlu0 %9765, %v10894_v36   ;;  %1656 = vperm.xlu1 %9766, %v10890_v16   ;;  %v10918_v36 = vsub.f32 %v10197_v39, %v10374_v44  ;;  %v10936_v44 = vsub.f32 %v10192_v32, %v10560_v21 }
 0x350   :  { %15890 = vst [vmem:[#allocation111_spill] sm:$0xff] %v10918_v36  ;;  %15893 = vst [vmem:[#allocation114_spill] sm:$0xff] %v10936_v44 }
 0x351   :  { %v10910_v53 = vpop.permute.xlu0 %1371  ;;  %v10912_v56 = vpop.permute.xlu1 %1476 }
 0x352   :  { %1563 = vperm.xlu0 %9765, %v10908_v5   ;;  %1662 = vperm.xlu1 %9766, %v10904_v20   ;;  %v10932_v5 = vsub.f32 %v10197_v39, %v10383_v3  ;;  %v10950_v3 = vsub.f32 %v10192_v32, %v10574_v24 }
 0x354   :  { %15892 = vst [vmem:[#allocation113_spill] sm:$0xff] %v10932_v5  ;;  %15895 = vst [vmem:[#allocation116_spill] sm:$0xff] %v10950_v3 }
 0x355   :  { %v10924_v16 = vpop.permute.xlu0 %1377  ;;  %v10926_v11 = vpop.permute.xlu1 %1482 }
 0x356   :  { %1569 = vperm.xlu0 %9765, %v10922_v8   ;;  %1668 = vperm.xlu1 %9766, %v10918_v36   ;;  %v10946_v8 = vsub.f32 %v10197_v39, %v10392_v61  ;;  %v10964_v61 = vsub.f32 %v10192_v32, %v10588_v18 }
 0x358   :  { %15894 = vst [vmem:[#allocation115_spill] sm:$0xff] %v10946_v8  ;;  %15897 = vst [vmem:[#allocation118_spill] sm:$0xff] %v10964_v61 }
 0x359   :  { %v10938_v20 = vpop.permute.xlu0 %1383  ;;  %v10940_v17 = vpop.permute.xlu1 %1488 }
 0x35a   :  { %1575 = vperm.xlu0 %9765, %v10936_v44   ;;  %1674 = vperm.xlu1 %9766, %v10932_v5   ;;  %v10960_v44 = vsub.f32 %v10197_v39, %v10401_v58  ;;  %v10978_v58 = vsub.f32 %v10192_v32, %v10602_v47 }
 0x35c   :  { %15896 = vst [vmem:[#allocation117_spill] sm:$0xff] %v10960_v44  ;;  %15899 = vst [vmem:[#allocation120_spill] sm:$0xff] %v10978_v58 }
 0x35d   :  { %v10952_v36 = vpop.permute.xlu0 %1389  ;;  %v10954_v21 = vpop.permute.xlu1 %1494 }
 0x35e   :  { %1581 = vperm.xlu0 %9765, %v10950_v3   ;;  %1680 = vperm.xlu1 %9766, %v10946_v8   ;;  %v10974_v3 = vsub.f32 %v10197_v39, %v10410_v57  ;;  %v10992_v57 = vsub.f32 %v10192_v32, %v10616_v45 }
 0x360   :  { %15898 = vst [vmem:[#allocation119_spill] sm:$0xff] %v10974_v3  ;;  %15901 = vst [vmem:[#allocation122_spill] sm:$0xff] %v10992_v57 }
 0x361   :  { %v10966_v5 = vpop.permute.xlu0 %1395  ;;  %v10968_v24 = vpop.permute.xlu1 %1500 }
 0x362   :  { %1587 = vperm.xlu0 %9765, %v10964_v61   ;;  %1686 = vperm.xlu1 %9766, %v10960_v44   ;;  %v10988_v61 = vsub.f32 %v10197_v39, %v10419_v35  ;;  %v11006_v35 = vsub.f32 %v10192_v32, %v10630_v29 }
 0x364   :  { %15900 = vst [vmem:[#allocation121_spill] sm:$0xff] %v10988_v61  ;;  %15903 = vst [vmem:[#allocation124_spill] sm:$0xff] %v11006_v35 }
 0x365   :  { %v10980_v8 = vpop.permute.xlu0 %1401  ;;  %v10982_v18 = vpop.permute.xlu1 %1359 }
 0x366   :  { %1593 = vperm.xlu0 %9765, %v10978_v58   ;;  %1692 = vperm.xlu1 %9766, %v10974_v3   ;;  %v11002_v58 = vsub.f32 %v10197_v39, %v10432_v52  ;;  %v11020_v52 = vsub.f32 %v10192_v32, %v10644_v30 }
 0x368   :  { %15902 = vst [vmem:[#allocation123_spill] sm:$0xff] %v11002_v58  ;;  %15905 = vst [vmem:[#allocation126_spill] sm:$0xff] %v11020_v52 }
 0x369   :  { %v10994_v44 = vpop.permute.xlu0 %1503  ;;  %v10996_v47 = vpop.permute.xlu1 %1365 }
 0x36a   :  { %1695 = vperm.xlu0 %9765, %v10992_v57   ;;  %1554 = vperm.xlu1 %9766, %v10988_v61   ;;  %v11016_v57 = vsub.f32 %v10197_v39, %v10446_v4  ;;  %v11034_v4 = vsub.f32 %v10192_v32, %v10656_v25 }
 0x36c   :  { %15904 = vst [vmem:[#allocation125_spill] sm:$0xff] %v11016_v57  ;;  %15907 = vst [vmem:[#allocation128_spill] sm:$0xff] %v11034_v4 }
 0x36d   :  { %v11008_v3 = vpop.permute.xlu0 %1509  ;;  %v11010_v45 = vpop.permute.xlu1 %1368 }
 0x36e   :  { %1701 = vperm.xlu0 %9765, %v11006_v35   ;;  %1560 = vperm.xlu1 %9766, %v11002_v58   ;;  %v11030_v35 = vsub.f32 %v10197_v39, %v10460_v7  ;;  %v11048_v7 = vsub.f32 %v10192_v32, %v10670_v31 }
 0x370   :  { %15906 = vst [vmem:[#allocation127_spill] sm:$0xff] %v11030_v35  ;;  %15909 = vst [vmem:[#allocation130_spill] sm:$0xff] %v11048_v7 }
 0x371   :  { %v11022_v61 = vpop.permute.xlu0 %1515  ;;  %v11024_v29 = vpop.permute.xlu1 %1374 }
 0x372   :  { %1707 = vperm.xlu0 %9765, %v11020_v52   ;;  %1566 = vperm.xlu1 %9766, %v11016_v57   ;;  %v11044_v52 = vsub.f32 %v10197_v39, %v10474_v62  ;;  %v11062_v62 = vsub.f32 %v10192_v32, %v10684_v37 }
 0x374   :  { %15908 = vst [vmem:[#allocation129_spill] sm:$0xff] %v11044_v52  ;;  %15911 = vst [vmem:[#allocation132_spill] sm:$0xff] %v11062_v62 }
 0x375   :  { %v11036_v58 = vpop.permute.xlu0 %1521  ;;  %v11038_v30 = vpop.permute.xlu1 %1380 }
 0x376   :  { %1713 = vperm.xlu0 %9765, %v11034_v4   ;;  %1572 = vperm.xlu1 %9766, %v11030_v35   ;;  %v11058_v4 = vsub.f32 %v10197_v39, %v10488_v42  ;;  %v11076_v42 = vsub.f32 %v10192_v32, %v10696_v14 }
 0x378   :  { %15910 = vst [vmem:[#allocation131_spill] sm:$0xff] %v11058_v4  ;;  %15913 = vst [vmem:[#allocation134_spill] sm:$0xff] %v11076_v42 }
 0x379   :  { %v11050_v57 = vpop.permute.xlu0 %1527  ;;  %v11052_v25 = vpop.permute.xlu1 %1386 }
 0x37a   :  { %1719 = vperm.xlu0 %9765, %v11048_v7   ;;  %1578 = vperm.xlu1 %9766, %v11044_v52   ;;  %v11072_v7 = vsub.f32 %v10197_v39, %v10502_v50  ;;  %v11090_v50 = vsub.f32 %v10192_v32, %v10710_v54 }
 0x37c   :  { %15912 = vst [vmem:[#allocation133_spill] sm:$0xff] %v11072_v7  ;;  %15915 = vst [vmem:[#allocation136_spill] sm:$0xff] %v11090_v50 }
 0x37d   :  { %v11064_v35 = vpop.permute.xlu0 %1533  ;;  %v11066_v31 = vpop.permute.xlu1 %1392 }
 0x37e   :  { %1725 = vperm.xlu0 %9765, %v11062_v62   ;;  %1584 = vperm.xlu1 %9766, %v11058_v4   ;;  %v11086_v62 = vsub.f32 %v10197_v39, %v10516_v59  ;;  %v11104_v59 = vsub.f32 %v10192_v32, %v10724_v13 }
 0x380   :  { %15914 = vst [vmem:[#allocation135_spill] sm:$0xff] %v11086_v62  ;;  %15917 = vst [vmem:[#allocation138_spill] sm:$0xff] %v11104_v59 }
 0x381   :  { %v11078_v52 = vpop.permute.xlu0 %1539  ;;  %v11080_v37 = vpop.permute.xlu1 %1398 }
 0x382   :  { %1731 = vperm.xlu0 %9765, %v11076_v42   ;;  %1590 = vperm.xlu1 %9766, %v11072_v7   ;;  %v11100_v42 = vsub.f32 %v10197_v39, %v10530_v0  ;;  %v11118_v0 = vsub.f32 %v10192_v32, %v10738_v55 }
 0x384   :  { %15916 = vst [vmem:[#allocation137_spill] sm:$0xff] %v11100_v42  ;;  %15919 = vst [vmem:[#allocation140_spill] sm:$0xff] %v11118_v0 }
 0x385   :  { %v11092_v4 = vpop.permute.xlu0 %1545  ;;  %v11094_v14 = vpop.permute.xlu1 %1404 }
 0x386   :  { %1737 = vperm.xlu0 %9765, %v11090_v50   ;;  %1596 = vperm.xlu1 %9766, %v11086_v62   ;;  %v11114_v50 = vsub.f32 %v10197_v39, %v10544_v6  ;;  %v11132_v6 = vsub.f32 %v10192_v32, %v10754_v48 }
 0x388   :  { %15918 = vst [vmem:[#allocation139_spill] sm:$0xff] %v11114_v50  ;;  %15921 = vst [vmem:[#allocation142_spill] sm:$0xff] %v11132_v6 }
 0x389   :  { %v11106_v7 = vpop.permute.xlu0 %1407  ;;  %v11108_v54 = vpop.permute.xlu1 %1506 }
 0x38a   :  { %1599 = vperm.xlu0 %9765, %v11104_v59   ;;  %1698 = vperm.xlu1 %9766, %v11100_v42   ;;  %v11128_v59 = vsub.f32 %v10197_v39, %v10558_v9  ;;  %v11146_v9 = vsub.f32 %v10192_v32, %v10776_v34 }
 0x38c   :  { %15920 = vst [vmem:[#allocation141_spill] sm:$0xff] %v11128_v59  ;;  %15923 = vst [vmem:[#allocation144_spill] sm:$0xff] %v11146_v9 }
 0x38d   :  { %v11120_v62 = vpop.permute.xlu0 %1413  ;;  %v11122_v13 = vpop.permute.xlu1 %1512 }
 0x38e   :  { %1605 = vperm.xlu0 %9765, %v11118_v0   ;;  %1704 = vperm.xlu1 %9766, %v11114_v50   ;;  %v11142_v0 = vsub.f32 %v10197_v39, %v10572_v12  ;;  %v11160_v12 = vsub.f32 %v10192_v32, %v10792_v1 }
 0x390   :  { %15922 = vst [vmem:[#allocation143_spill] sm:$0xff] %v11142_v0  ;;  %15926 = vst [vmem:[#allocation147_spill] sm:$0xff] %v11160_v12 }
 0x391   :  { %v11134_v42 = vpop.permute.xlu0 %1419  ;;  %v11136_v55 = vpop.permute.xlu1 %1518 }
 0x392   :  { %1611 = vperm.xlu0 %9765, %v11132_v6   ;;  %1710 = vperm.xlu1 %9766, %v11128_v59   ;;  %v11156_v6 = vsub.f32 %v10197_v39, %v10586_v15  ;;  %v11174_v15 = vsub.f32 %v10192_v32, %v10814_v10 }
 0x394   :  { %15925 = vst [vmem:[#allocation146_spill] sm:$0xff] %v11156_v6  ;;  %15929 = vst [vmem:[#allocation150_spill] sm:$0xff] %v11174_v15 }
 0x395   :  { %v11148_v50 = vpop.permute.xlu0 %1425  ;;  %v11150_v48 = vpop.permute.xlu1 %1524 }
 0x396   :  { %15924 = vst [vmem:[#allocation145_spill] sm:$0xff] %v11148_v50  ;;  %1617 = vperm.xlu0 %9765, %v11146_v9   ;;  %1716 = vperm.xlu1 %9766, %v11142_v0   ;;  %v11170_v9 = vsub.f32 %v10197_v39, %v10600_v19  ;;  %v11188_v19 = vsub.f32 %v10192_v32, %v10832_v2 }
 0x398   :  { %15928 = vst [vmem:[#allocation149_spill] sm:$0xff] %v11170_v9  ;;  %15932 = vst [vmem:[#allocation153_spill] sm:$0xff] %v11188_v19 }
 0x399   :  { %v11162_v59 = vpop.permute.xlu0 %1431  ;;  %v11164_v34 = vpop.permute.xlu1 %1530 }
 0x39a   :  { %15927 = vst [vmem:[#allocation148_spill] sm:$0xff] %v11162_v59  ;;  %1623 = vperm.xlu0 %9765, %v11160_v12   ;;  %1722 = vperm.xlu1 %9766, %v11156_v6   ;;  %v11184_v12 = vsub.f32 %v10197_v39, %v10614_v23  ;;  %v11203_v23 = vsub.f32 %v10192_v32, %v10854_v46 }
 0x39c   :  { %15931 = vst [vmem:[#allocation152_spill] sm:$0xff] %v11184_v12  ;;  %15936 = vst [vmem:[#allocation156_spill] sm:$0xff] %v11203_v23 }
 0x39d   :  { %v11176_v0 = vpop.permute.xlu0 %1437  ;;  %v11178_v1 = vpop.permute.xlu1 %1536 }
 0x39e   :  { %15930 = vst [vmem:[#allocation151_spill] sm:$0xff] %v11176_v0  ;;  %1629 = vperm.xlu0 %9765, %v11174_v15   ;;  %1728 = vperm.xlu1 %9766, %v11170_v9   ;;  %v15934_v0 = vld [vmem:[#allocation13_spill] sm:$0xff]  ;;  %v11199_v9 = vsub.f32 %v10197_v39, %v10628_v22 }
 0x39f   :  { %v1746_v15 = vadd.s32 4294967288, %v15934_v0 }
 0x3a0   :  { %15935 = vst [vmem:[#allocation155_spill] sm:$0xff] %v11199_v9 }
 0x3a1   :  { %v11190_v6 = vpop.permute.xlu0 %1443  ;;  %v11192_v10 = vpop.permute.xlu1 %1542 }
 0x3a2   :  { %15933 = vst [vmem:[#allocation154_spill] sm:$0xff] %v11190_v6  ;;  %1635 = vperm.xlu0 %9765, %v11188_v19   ;;  %1734 = vperm.xlu1 %9766, %v11184_v12   ;;  %v15938_v19 = vld [vmem:[#allocation14_spill] sm:$0xff]  ;;  %v11216_v6 = vsub.f32 %v10197_v39, %v10642_v33  ;;  %v15941_v33 = vld [vmem:[#allocation80_spill] sm:$0xff] }
 0x3a3   :  { %v11212_v12 = vsub.s32 %v1746_v15, %v15938_v19  ;;  %v11224_v32 = vsub.s32 %v15934_v0, %v15938_v19 }
 0x3a4   :  { %15939 = vst [vmem:[#allocation158_spill] sm:$0xff] %v11216_v6 }
 0x3a5   :  { %v11205_v2 = vpop.permute.xlu0 %1449  ;;  %v11207_v59 = vpop.permute.xlu1 %1548  ;;  %v1904_v46 = vrot.slane %v10884_v41, %v11212_v12  ;;  %v1913_v15 = vrot.slane %v10898_v49, %v11212_v12  ;;  %v1895_v19 = vrot.slane %v10870_v27, %v11212_v12  ;;  %v1922_v41 = vrot.slane %v10912_v56, %v11212_v12 }
 0x3a6   :  { %15937 = vst [vmem:[#allocation157_spill] sm:$0xff] %v11205_v2  ;;  %1641 = vperm.xlu0 %9765, %v11203_v23   ;;  %1740 = vperm.xlu1 %9766, %v11199_v9   ;;  %v11233_v23 = vsub.f32 %v10197_v39, %v15941_v33  ;;  %v1900_v9 = vrot.slane %v10802_v43, %v11224_v32 }
 0x3a7   :  { %v1909_v0 = vrot.slane %v10816_v26, %v11224_v32  ;;  %v1931_v49 = vrot.slane %v10926_v11, %v11212_v12  ;;  %v1891_v43 = vrot.slane %v10788_v63, %v11224_v32  ;;  %v1918_v27 = vrot.slane %v10828_v60, %v11224_v32 }
 0x3a8   :  { %15942 = vst [vmem:[#allocation80_spill] sm:$0xff] %v11233_v23  ;;  %v1905_v56 = vsel %vm1751_vm3, %v1904_v46, %v1900_v9  ;;  %v1940_v26 = vrot.slane %v10940_v17, %v11212_v12  ;;  %v1949_v63 = vrot.slane %v10954_v21, %v11212_v12  ;;  %v1936_v60 = vrot.slane %v10856_v40, %v11224_v32 }
 0x3a9   :  { %v11218_v22 = vpop.permute.xlu0 %1647  ;;  %v11220_v50 = vpop.permute.xlu1 %1410  ;;  %v1914_v2 = vsel %vm1751_vm3, %v1913_v15, %v1909_v0  ;;  %v1896_v9 = vsel %vm1751_vm3, %v1895_v19, %v1891_v43  ;;  %v1923_v17 = vsel %vm1751_vm3, %v1922_v41, %v1918_v27  ;;  %v1958_v46 = vrot.slane %v10968_v24, %v11212_v12 }
 0x3aa   :  { %15940 = vst [vmem:[#allocation159_spill] sm:$0xff] %v11218_v22  ;;  %1602 = vperm.xlu1 %9766, %v11216_v6   ;;  %v15944_v22 = vld [vmem:[#allocation82_spill] sm:$0xff]  ;;  %v1954_v40 = vrot.slane %v10882_v28, %v11224_v32  ;;  %v1941_v41 = vsel %vm1751_vm3, %v1940_v26, %v1936_v60 }
 0x3ab   :  { %v11259_v11 = vsub.f32 %v10197_v39, %v15944_v22  ;;  %v15945_v22 = vld [vmem:[#allocation105_spill] sm:$0xff] }
 0x3ac   :  { %v1959_v28 = vsel %vm1751_vm3, %v1958_v46, %v1954_v40  ;;  %v15949_v46 = vld [vmem:[#allocation92_spill] sm:$0xff]  ;;  %v1769_v40 = vrot.slane %v11024_v29, %v11212_v12  ;;  %v1783_v29 = vrot.slane %v10938_v20, %v11224_v32 }
 0x3ad   :  { %v11245_v6 = vpop.permute.xlu0 %1653  ;;  %v11247_v33 = vpop.permute.xlu1 %1416 }
 0x3ae   :  { %15943 = vst [vmem:[#allocation160_spill] sm:$0xff] %v11245_v6  ;;  %1608 = vperm.xlu1 %9766, %v11233_v23   ;;  %v1927_v6 = vrot.slane %v10842_v38, %v11224_v32  ;;  %v1945_v23 = vrot.slane %v15945_v22, %v11224_v32  ;;  %v2341_v38 = vsel %vm2320_vm4, %v1905_v56, %v1896_v9  ;;  %v15948_v9 = vld [vmem:[#allocation90_spill] sm:$0xff] }
 0x3af   :  { %v2342_v19 = vsel %vm2322_vm5, %v1914_v2, %v2341_v38  ;;  %v1760_v2 = vrot.slane %v11010_v45, %v11212_v12  ;;  %v11310_v22 = vsub.f32 %v10197_v39, %v15949_v46  ;;  %v1745_v38 = vrot.slane %v10982_v18, %v11224_v32 }
 0x3b0   :  { %v1932_v0 = vsel %vm1751_vm3, %v1931_v49, %v1927_v6  ;;  %v2343_v24 = vsel %vm2324_vm6, %v1923_v17, %v2342_v19  ;;  %v1950_v43 = vsel %vm1751_vm3, %v1949_v63, %v1945_v23  ;;  %v15946_v6 = vld [vmem:[#allocation85_spill] sm:$0xff]  ;;  %v15947_v23 = vld [vmem:[#allocation87_spill] sm:$0xff]  ;;  %v11306_v17 = vsub.f32 %v10197_v39, %v15948_v9 }
 0x3b1   :  { %v11276_v15 = vpop.permute.xlu0 %1659  ;;  %v11278_v21 = vpop.permute.xlu1 %1422  ;;  %v11289_v49 = vsub.f32 %v10197_v39, %v15946_v6  ;;  %v2344_v27 = vsel %vm2326_vm7, %v1932_v0, %v2343_v24  ;;  %v11302_v63 = vsub.f32 %v10197_v39, %v15947_v23  ;;  %v1756_v0 = vrot.slane %v10996_v47, %v11224_v32 }
 0x3b2   :  { %1614 = vperm.xlu1 %9766, %v11259_v11   ;;  %v2345_v60 = vsel %vm2328_vm8, %v1941_v41, %v2344_v27  ;;  %v15950_v41 = vld [vmem:[#allocation96_spill] sm:$0xff]  ;;  %v1750_v6 = vrot.slane %v10896_v51, %v11212_v12  ;;  %v1778_v18 = vrot.slane %v11038_v30, %v11212_v12  ;;  %v1774_v47 = vrot.slane %v10924_v16, %v11224_v32 }
 0x3b3   :  { %v2346_v45 = vsel %vm2330_vm9, %v1950_v43, %v2345_v60  ;;  %v11323_v24 = vsub.f32 %v10197_v39, %v15950_v41  ;;  %v1765_v43 = vrot.slane %v10910_v53, %v11224_v32  ;;  %v1761_v27 = vsel %vm1751_vm3, %v1760_v2, %v1756_v0 }
 0x3b4   :  { %v2347_v19 = vsel %vm2332_vm10, %v1959_v28, %v2346_v45  ;;  %v1787_v39 = vrot.slane %v11052_v25, %v11212_v12  ;;  %v1792_v53 = vrot.slane %v10952_v36, %v11224_v32  ;;  %v1801_v30 = vrot.slane %v10966_v5, %v11224_v32 }
 0x3b5   :  { %v11295_v56 = vpop.permute.xlu0 %1665  ;;  %v11297_v26 = vpop.permute.xlu1 %1428  ;;  %v1810_v16 = vrot.slane %v10980_v8, %v11224_v32  ;;  %v2398_v20 = vsel %vm2391_vm11, %v2347_v19, inf  ;;  %v1752_v2 = vsel %vm1751_vm3, %v1750_v6, %v1745_v38  ;;  %v1963_v25 = vrot.slane %v10994_v44, %v11224_v32 }
 0x3b6   :  { %1620 = vperm.xlu1 %9766, %v11289_v49   ;;  %v1972_v60 = vrot.slane %v11008_v3, %v11224_v32  ;;  %v1770_v36 = vsel %vm1751_vm3, %v1769_v40, %v1765_v43  ;;  %v2321_v23 = vsel %vm2320_vm4, %v1761_v27, %v1752_v2  ;;  %v1779_v5 = vsel %vm1751_vm3, %v1778_v18, %v1774_v47 }
 0x3b7   :  { %v1796_v8 = vrot.slane %v11066_v31, %v11212_v12  ;;  %v1976_v9 = vrot.slane %v11122_v13, %v11212_v12  ;;  %v1981_v46 = vrot.slane %v11022_v61, %v11224_v32  ;;  %v1788_v44 = vsel %vm1751_vm3, %v1787_v39, %v1783_v29 }
 0x3b8   :  { %v1805_v3 = vrot.slane %v11080_v37, %v11212_v12  ;;  %v1985_v45 = vrot.slane %v11136_v55, %v11212_v12  ;;  %v2323_v31 = vsel %vm2322_vm5, %v1770_v36, %v2321_v23  ;;  %v1814_v13 = vrot.slane %v11094_v14, %v11212_v12 }
 0x3b9   :  { %v11338_v28 = vpop.permute.xlu0 %1671  ;;  %v11340_v51 = vpop.permute.xlu1 %1434  ;;  %v1967_v61 = vrot.slane %v11108_v54, %v11212_v12  ;;  %v1994_v40 = vrot.slane %v11150_v48, %v11212_v12  ;;  %v1990_v37 = vrot.slane %v11036_v58, %v11224_v32  ;;  %v2325_v55 = vsel %vm2324_vm6, %v1779_v5, %v2323_v31 }
 0x3ba   :  { %1626 = vperm.xlu1 %9766, %v11302_v63   ;;  %v1999_v19 = vrot.slane %v11050_v57, %v11224_v32  ;;  %v2003_v41 = vrot.slane %v11164_v34, %v11212_v12  ;;  %v2327_v14 = vsel %vm2326_vm7, %v1788_v44, %v2325_v55  ;;  %v1797_v54 = vsel %vm1751_vm3, %v1796_v8, %v1792_v53 }
 0x3bb   :  { %v1977_v6 = vsel %vm1751_vm3, %v1976_v9, %v1972_v60  ;;  %v2012_v48 = vrot.slane %v11178_v1, %v11212_v12  ;;  %v2008_v58 = vrot.slane %v11064_v35, %v11224_v32  ;;  %v1806_v43 = vsel %vm1751_vm3, %v1805_v3, %v1801_v30 }
 0x3bc   :  { %v1986_v18 = vsel %vm1751_vm3, %v1985_v45, %v1981_v46  ;;  %v2021_v57 = vrot.slane %v11192_v10, %v11212_v12  ;;  %v1968_v29 = vsel %vm1751_vm3, %v1967_v61, %v1963_v25  ;;  %v1995_v27 = vsel %vm1751_vm3, %v1994_v40, %v1990_v37 }
 0x3bd   :  { %v11369_v38 = vpop.permute.xlu0 %1677  ;;  %v11371_v0 = vpop.permute.xlu1 %1440  ;;  %v2030_v1 = vrot.slane %v11207_v59, %v11212_v12  ;;  %v1815_v35 = vsel %vm1751_vm3, %v1814_v13, %v1810_v16  ;;  %v2017_v39 = vrot.slane %v11078_v52, %v11224_v32  ;;  %v2348_v10 = vsel %vm2320_vm4, %v1977_v6, %v1968_v29  ;;  %v15952_v29 = vld [vmem:[#allocation148_spill] sm:$0xff] }
 0x3be   :  { %1632 = vperm.xlu1 %9766, %v11306_v17   ;;  %v2004_v53 = vsel %vm1751_vm3, %v2003_v41, %v1999_v19  ;;  %v2329_v30 = vsel %vm2328_vm8, %v1797_v54, %v2327_v14  ;;  %v2026_v2 = vrot.slane %v11092_v4, %v11224_v32  ;;  %v2349_v25 = vsel %vm2322_vm5, %v1986_v18, %v2348_v10 }
 0x3bf   :  { %v2013_v59 = vsel %vm1751_vm3, %v2012_v48, %v2008_v58  ;;  %v2331_v60 = vsel %vm2330_vm9, %v1806_v43, %v2329_v30  ;;  %v2350_v16 = vsel %vm2324_vm6, %v1995_v27, %v2349_v25  ;;  %v2022_v36 = vsel %vm1751_vm3, %v2021_v57, %v2017_v39  ;;  %v15953_v27 = vld [vmem:[#allocation151_spill] sm:$0xff] }
 0x3c0   :  { %v2333_v5 = vsel %vm2332_vm10, %v1815_v35, %v2331_v60  ;;  %v2351_v8 = vsel %vm2326_vm7, %v2004_v53, %v2350_v16  ;;  %v2031_v4 = vsel %vm1751_vm3, %v2030_v1, %v2026_v2  ;;  %v1832_v41 = vrot.slane %v11247_v33, %v11212_v12  ;;  %v15954_v35 = vld [vmem:[#allocation154_spill] sm:$0xff]  ;;  %v15956_v53 = vld [vmem:[#allocation159_spill] sm:$0xff] }
 0x3c1   :  { %v11399_v34 = vpop.permute.xlu0 %1683  ;;  %v11401_v47 = vpop.permute.xlu1 %1446  ;;  %v2352_v9 = vsel %vm2328_vm8, %v2013_v59, %v2351_v8  ;;  %v2392_v46 = vsel %vm2391_vm11, %v2333_v5, inf  ;;  %v1841_v14 = vrot.slane %v11278_v21, %v11212_v12  ;;  %v1828_v54 = vrot.slane %v11120_v62, %v11224_v32  ;;  %v15951_v21 = vld [vmem:[#allocation145_spill] sm:$0xff]  ;;  %v15957_v5 = vld [vmem:[#allocation160_spill] sm:$0xff] }
 0x3c2   :  { %1638 = vperm.xlu1 %9766, %v11310_v22   ;;  %v2353_v44 = vsel %vm2330_vm9, %v2022_v36, %v2352_v9  ;;  %v1823_v6 = vrot.slane %v11220_v50, %v11212_v12  ;;  %v1837_v48 = vrot.slane %v11134_v42, %v11224_v32  ;;  %v1850_v58 = vrot.slane %v11297_v26, %v11212_v12 }
 0x3c3   :  { %v2354_v45 = vsel %vm2332_vm10, %v2031_v4, %v2353_v44  ;;  %v1819_v33 = vrot.slane %v11106_v7, %v11224_v32  ;;  %v1846_v57 = vrot.slane %v15951_v21, %v11224_v32  ;;  %v1833_v62 = vsel %vm1751_vm3, %v1832_v41, %v1828_v54  ;;  %v15955_v7 = vld [vmem:[#allocation157_spill] sm:$0xff] }
 0x3c4   :  { %v2401_v31 = vsel %vm2391_vm11, %v2354_v45, inf  ;;  %v1855_v50 = vrot.slane %v15952_v29, %v11224_v32  ;;  %v1864_v42 = vrot.slane %v15953_v27, %v11224_v32  ;;  %v1842_v1 = vsel %vm1751_vm3, %v1841_v14, %v1837_v48 }
 0x3c5   :  { %v11421_v52 = vpop.permute.xlu0 %1689  ;;  %2399 = vmin.xlane.f32.xlu0 %v2398_v20  ;;  %v11423_v23 = vpop.permute.xlu1 %1452  ;;  %v1859_v26 = vrot.slane %v11340_v51, %v11212_v12  ;;  %v1873_v39 = vrot.slane %v15954_v35, %v11224_v32  ;;  %v1882_v10 = vrot.slane %v15955_v7, %v11224_v32  ;;  %v2179_v30 = vrot.slane %v15956_v53, %v11224_v32 }
 0x3c6   :  { %1644 = vperm.xlu1 %9766, %v11323_v24   ;;  %v1824_v2 = vsel %vm1751_vm3, %v1823_v6, %v1819_v33  ;;  %v1851_v59 = vsel %vm1751_vm3, %v1850_v58, %v1846_v57  ;;  %v1868_v60 = vrot.slane %v11371_v0, %v11212_v12  ;;  %v2188_v8 = vrot.slane %v15957_v5, %v11224_v32 }
 0x3c7   :  { %v2334_v25 = vsel %vm2320_vm4, %v1833_v62, %v1824_v2  ;;  %v1877_v9 = vrot.slane %v11401_v47, %v11212_v12  ;;  %v1860_v44 = vsel %vm1751_vm3, %v1859_v26, %v1855_v50  ;;  %v1886_v0 = vrot.slane %v11423_v23, %v11212_v12 }
 0x3c8   :  { %v2335_v4 = vsel %vm2322_vm5, %v1842_v1, %v2334_v25  ;;  %v2206_v41 = vrot.slane %v11295_v56, %v11224_v32  ;;  %v1869_v54 = vsel %vm1751_vm3, %v1868_v60, %v1864_v42  ;;  %v2233_v57 = vrot.slane %v11399_v34, %v11224_v32 }
 0x3c9   :  { %v11432_v3 = vpop.permute.xlu0 %1551  ;;  %2393 = vmin.xlane.f32.xlu0 %v2392_v46  ;;  %v1651_v20 = vpop.permute.xlu1 %1650  ;;  %v2336_v14 = vsel %vm2324_vm6, %v1851_v59, %v2335_v4  ;;  %v1878_v56 = vsel %vm1751_vm3, %v1877_v9, %v1873_v39  ;;  %v1887_v21 = vsel %vm1751_vm3, %v1886_v0, %v1882_v10  ;;  %v2242_v27 = vrot.slane %v11421_v52, %v11224_v32 }
 0x3ca   :  { %v2183_v45 = vrot.slane %v1651_v20, %v11212_v12 }
 0x3cd   :  { %v11436_v13 = vpop.permute.xlu0 %1557  ;;  %2402 = vmin.xlane.f32.xlu0 %v2401_v31  ;;  %v1657_v61 = vpop.permute.xlu1 %1656 }
 0x3ce   :  { %v2192_v51 = vrot.slane %v1657_v61, %v11212_v12  ;;  %v2197_v61 = vrot.slane %v11276_v15, %v11224_v32  ;;  %v2337_v15 = vsel %vm2326_vm7, %v1860_v44, %v2336_v14 }
 0x3cf   :  { %v2338_v50 = vsel %vm2328_vm8, %v1869_v54, %v2337_v15 }
 0x3d0   :  { %v2193_v23 = vsel %vm1751_vm3, %v2192_v51, %v2188_v8  ;;  %v2339_v35 = vsel %vm2330_vm9, %v1878_v56, %v2338_v50 }
 0x3d1   :  { %v11438_v40 = vpop.permute.xlu0 %1563  ;;  %v1663_v37 = vpop.permute.xlu1 %1662  ;;  %v2340_v10 = vsel %vm2332_vm10, %v1887_v21, %v2339_v35 }
 0x3d2   :  { %v2201_v46 = vrot.slane %v1663_v37, %v11212_v12  ;;  %v2215_v37 = vrot.slane %v11338_v28, %v11224_v32  ;;  %v2224_v28 = vrot.slane %v11369_v38, %v11224_v32  ;;  %v2395_v59 = vsel %vm2391_vm11, %v2340_v10, inf }
 0x3d4   :  { %v2202_v48 = vsel %vm1751_vm3, %v2201_v46, %v2197_v61 }
 0x3d5   :  { %v11440_v55 = vpop.permute.xlu0 %1569  ;;  %v1669_v19 = vpop.permute.xlu1 %1668 }
 0x3d6   :  { %v2210_v31 = vrot.slane %v1669_v19, %v11212_v12 }
 0x3d8   :  { %v2211_v33 = vsel %vm1751_vm3, %v2210_v31, %v2206_v41  ;;  %v2044_v41 = vrot.slane %v11436_v13, %v11224_v32 }
 0x3d9   :  { %v11454_v43 = vpop.permute.xlu0 %1575  ;;  %v1675_v18 = vpop.permute.xlu1 %1674 }
 0x3da   :  { %v2219_v47 = vrot.slane %v1675_v18, %v11212_v12  ;;  %v2184_v18 = vsel %vm1751_vm3, %v2183_v45, %v2179_v30  ;;  %v2071_v13 = vrot.slane %v11454_v43, %v11224_v32 }
 0x3db   :  { %v2369_v62 = vsel %vm2320_vm4, %v2193_v23, %v2184_v18  ;;  %v2035_v23 = vrot.slane %v11432_v3, %v11224_v32 }
 0x3dc   :  { %v2220_v29 = vsel %vm1751_vm3, %v2219_v47, %v2215_v37  ;;  %v2370_v38 = vsel %vm2322_vm5, %v2202_v48, %v2369_v62  ;;  %v2053_v37 = vrot.slane %v11438_v40, %v11224_v32 }
 0x3dd   :  { %v11480_v16 = vpop.permute.xlu0 %1581  ;;  %v1681_v36 = vpop.permute.xlu1 %1680  ;;  %v2371_v39 = vsel %vm2324_vm6, %v2211_v33, %v2370_v38 }
 0x3de   :  { %v2228_v20 = vrot.slane %v1681_v36, %v11212_v12  ;;  %v2372_v53 = vsel %vm2326_vm7, %v2220_v29, %v2371_v39  ;;  %v2080_v40 = vrot.slane %v11480_v16, %v11224_v32 }
 0x3e0   :  { %v2229_v42 = vsel %vm1751_vm3, %v2228_v20, %v2224_v28  ;;  %v2062_v20 = vrot.slane %v11440_v55, %v11224_v32 }
 0x3e1   :  { %v11504_v19 = vpop.permute.xlu0 %1587  ;;  %v1687_v6 = vpop.permute.xlu1 %1686  ;;  %v2373_v30 = vsel %vm2328_vm8, %v2229_v42, %v2372_v53 }
 0x3e2   :  { %v2237_v58 = vrot.slane %v1687_v6, %v11212_v12  ;;  %v2089_v18 = vrot.slane %v11504_v19, %v11224_v32 }
 0x3e4   :  { %v2238_v34 = vsel %vm1751_vm3, %v2237_v58, %v2233_v57 }
 0x3e5   :  { %v1594_v1 = vpop.permute.xlu0 %1593  ;;  %v1693_v26 = vpop.permute.xlu1 %1692  ;;  %v2374_v60 = vsel %vm2330_vm9, %v2238_v34, %v2373_v30 }
 0x3e6   :  { %v2246_v7 = vrot.slane %v1693_v26, %v11212_v12  ;;  %v2098_v50 = vrot.slane %v1594_v1, %v11224_v32 }
 0x3e8   :  { %v2247_v52 = vsel %vm1751_vm3, %v2246_v7, %v2242_v27 }
 0x3e9   :  { %v11532_v2 = vpop.permute.xlu0 %1695  ;;  %v1555_v25 = vpop.permute.xlu1 %1554  ;;  %v2375_v51 = vsel %vm2332_vm10, %v2247_v52, %v2374_v60 }
 0x3ea   :  { %2396 = vmin.xlane.f32.xlu1 %v2395_v59  ;;  %v2410_v5 = vsel %vm2391_vm11, %v2375_v51, inf  ;;  %v2039_v14 = vrot.slane %v1555_v25, %v11212_v12 }
 0x3ec   :  { %v2040_v28 = vsel %vm1751_vm3, %v2039_v14, %v2035_v23 }
 0x3ed   :  { %v1561_v36 = vpop.permute.xlu1 %1560  ;;  %v11538_v8 = vpop.permute.xlu0 %1701 }
 0x3ee   :  { %2411 = vmin.xlane.f32.xlu1 %v2410_v5  ;;  %v2048_v45 = vrot.slane %v1561_v36, %v11212_v12  ;;  %v2260_v5 = vrot.slane %v11538_v8, %v11224_v32 }
 0x3f0   :  { %v2049_v6 = vsel %vm1751_vm3, %v2048_v45, %v2044_v41 }
 0x3f1   :  { %v1567_v4 = vpop.permute.xlu1 %1566  ;;  %v11540_v9 = vpop.permute.xlu0 %1707  ;;  %v2355_v33 = vsel %vm2320_vm4, %v2049_v6, %v2040_v28 }
 0x3f2   :  { %v2057_v31 = vrot.slane %v1567_v4, %v11212_v12 }
 0x3f4   :  { %v2058_v56 = vsel %vm1751_vm3, %v2057_v31, %v2053_v37 }
 0x3f5   :  { %v1573_v46 = vpop.permute.xlu1 %1572  ;;  %v11542_v0 = vpop.permute.xlu0 %1713  ;;  %v2356_v21 = vsel %vm2322_vm5, %v2058_v56, %v2355_v33 }
 0x3f6   :  { %v2066_v47 = vrot.slane %v1573_v46, %v11212_v12  ;;  %v2278_v41 = vrot.slane %v11542_v0, %v11224_v32 }
 0x3f8   :  { %v2067_v3 = vsel %vm1751_vm3, %v2066_v47, %v2062_v20 }
 0x3f9   :  { %v1579_v44 = vpop.permute.xlu1 %1578  ;;  %v1720_v48 = vpop.permute.xlu0 %1719  ;;  %v2357_v62 = vsel %vm2324_vm6, %v2067_v3, %v2356_v21 }
 0x3fa   :  { %v2075_v54 = vrot.slane %v1579_v44, %v11212_v12  ;;  %v2269_v44 = vrot.slane %v11540_v9, %v11224_v32  ;;  %v2287_v47 = vrot.slane %v1720_v48, %v11224_v32 }
 0x3fc   :  { %v2076_v43 = vsel %vm1751_vm3, %v2075_v54, %v2071_v13 }
 0x3fd   :  { %v1585_v61 = vpop.permute.xlu1 %1584  ;;  %v2358_v27 = vsel %vm2326_vm7, %v2076_v43, %v2357_v62  ;;  %v1726_v19 = vpop.permute.xlu0 %1725 }
 0x3fe   :  { %v2084_v15 = vrot.slane %v1585_v61, %v11212_v12  ;;  %v2251_v61 = vrot.slane %v11532_v2, %v11224_v32  ;;  %v2296_v9 = vrot.slane %v1726_v19, %v11224_v32 }
 0x400   :  { %v2085_v57 = vsel %vm1751_vm3, %v2084_v15, %v2080_v40 }
 0x401   :  { %v1591_v58 = vpop.permute.xlu1 %1590  ;;  %v2359_v42 = vsel %vm2328_vm8, %v2085_v57, %v2358_v27  ;;  %v1732_v10 = vpop.permute.xlu0 %1731 }
 0x402   :  { %v2093_v55 = vrot.slane %v1591_v58, %v11212_v12  ;;  %v2305_v6 = vrot.slane %v1732_v10, %v11224_v32 }
 0x404   :  { %v2094_v16 = vsel %vm1751_vm3, %v2093_v55, %v2089_v18 }
 0x405   :  { %v1597_v29 = vpop.permute.xlu1 %1596  ;;  %v2360_v35 = vsel %vm2330_vm9, %v2094_v16, %v2359_v42  ;;  %v1738_v52 = vpop.permute.xlu0 %1737 }
 0x406   :  { %v2102_v38 = vrot.slane %v1597_v29, %v11212_v12  ;;  %v2314_v3 = vrot.slane %v1738_v52, %v11224_v32 }
 0x408   :  { %v2103_v26 = vsel %vm1751_vm3, %v2102_v38, %v2098_v50 }
 0x409   :  { %v1699_v39 = vpop.permute.xlu1 %1698  ;;  %v2361_v34 = vsel %vm2332_vm10, %v2103_v26, %v2360_v35  ;;  %v11583_v25 = vpop.permute.xlu0 %1599 }
 0x40a   :  { %v2404_v7 = vsel %vm2391_vm11, %v2361_v34, inf  ;;  %v2255_v4 = vrot.slane %v1699_v39, %v11212_v12 }
 0x40b   :  { %2405 = vmin.xlane.f32.xlu1 %v2404_v7 }
 0x40c   :  { %v2256_v23 = vsel %vm1751_vm3, %v2255_v4, %v2251_v61 }
 0x40d   :  { %v1705_v53 = vpop.permute.xlu1 %1704  ;;  %v1606_v45 = vpop.permute.xlu0 %1605 }
 0x40e   :  { %v2264_v60 = vrot.slane %v1705_v53, %v11212_v12  ;;  %v2116_v10 = vrot.slane %v1606_v45, %v11224_v32 }
 0x410   :  { %v2265_v14 = vsel %vm1751_vm3, %v2264_v60, %v2260_v5 }
 0x411   :  { %v1711_v1 = vpop.permute.xlu1 %1710  ;;  %v2376_v0 = vsel %vm2320_vm4, %v2265_v14, %v2256_v23  ;;  %v1612_v48 = vpop.permute.xlu0 %1611 }
 0x412   :  { %v2273_v51 = vrot.slane %v1711_v1, %v11212_v12  ;;  %v2125_v52 = vrot.slane %v1612_v48, %v11224_v32 }
 0x414   :  { %v2274_v37 = vsel %vm1751_vm3, %v2273_v51, %v2269_v44 }
 0x415   :  { %v1717_v30 = vpop.permute.xlu1 %1716  ;;  %v2377_v13 = vsel %vm2322_vm5, %v2274_v37, %v2376_v0  ;;  %v1618_v29 = vpop.permute.xlu0 %1617 }
 0x416   :  { %v2282_v46 = vrot.slane %v1717_v30, %v11212_v12  ;;  %v2134_v60 = vrot.slane %v1618_v29, %v11224_v32  ;;  %v15964_v29 = vld [vmem:[#allocation51_spill] sm:$0xff] }
 0x418   :  { %v2283_v20 = vsel %vm1751_vm3, %v2282_v46, %v2278_v41 }
 0x419   :  { %v1723_v59 = vpop.permute.xlu1 %1722  ;;  %v2378_v58 = vsel %vm2324_vm6, %v2283_v20, %v2377_v13  ;;  %v1624_v27 = vpop.permute.xlu0 %1623 }
 0x41a   :  { %v2291_v31 = vrot.slane %v1723_v59, %v11212_v12  ;;  %v2107_v59 = vrot.slane %v11583_v25, %v11224_v32  ;;  %v2143_v5 = vrot.slane %v1624_v27, %v11224_v32 }
 0x41c   :  { %v2292_v15 = vsel %vm1751_vm3, %v2291_v31, %v2287_v47 }
 0x41d   :  { %v1729_v36 = vpop.permute.xlu1 %1728  ;;  %v2379_v55 = vsel %vm2326_vm7, %v2292_v15, %v2378_v58  ;;  %v1630_v42 = vpop.permute.xlu0 %1629 }
 0x41e   :  { %v2300_v8 = vrot.slane %v1729_v36, %v11212_v12  ;;  %v2152_v44 = vrot.slane %v1630_v42, %v11224_v32  ;;  %v15967_v42 = vld [vmem:[#allocation53_spill] sm:$0xff] }
 0x420   :  { %v2301_v56 = vsel %vm1751_vm3, %v2300_v8, %v2296_v9 }
 0x421   :  { %v1735_v54 = vpop.permute.xlu1 %1734  ;;  %v2380_v33 = vsel %vm2328_vm8, %v2301_v56, %v2379_v55  ;;  %v1636_v39 = vpop.permute.xlu0 %1635 }
 0x422   :  { %v2309_v2 = vrot.slane %v1735_v54, %v11212_v12  ;;  %v2161_v25 = vrot.slane %v1636_v39, %v11224_v32  ;;  %v15969_v39 = vld [vmem:[#allocation24_spill] sm:$0xff] }
 0x424   :  { %v2310_v40 = vsel %vm1751_vm3, %v2309_v2, %v2305_v6 }
 0x425   :  { %v1741_v28 = vpop.permute.xlu1 %1740  ;;  %v2381_v21 = vsel %vm2330_vm9, %v2310_v40, %v2380_v33  ;;  %v1642_v41 = vpop.permute.xlu0 %1641  ;;  %v15958_v40 = vld [vmem:[#allocation15_spill] sm:$0xff] }
 0x426   :  { %v2318_v18 = vrot.slane %v1741_v28, %v11212_v12  ;;  %v2170_v20 = vrot.slane %v1642_v41, %v11224_v32  ;;  %v15961_v33 = vld [vmem:[#allocation23_spill] sm:$0xff] }
 0x428   :  { %v2319_v43 = vsel %vm1751_vm3, %v2318_v18, %v2314_v3  ;;  %v15959_v3 = vld [vmem:[#allocation16_spill] sm:$0xff]  ;;  %v15960_v18 = vld [vmem:[#allocation47_spill] sm:$0xff] }
 0x429   :  { %v1603_v57 = vpop.permute.xlu1 %1602  ;;  %v2382_v62 = vsel %vm2332_vm10, %v2319_v43, %v2381_v21  ;;  %v15962_v21 = vld [vmem:[#allocation49_spill] sm:$0xff] }
 0x42a   :  { %v2413_v16 = vsel %vm2391_vm11, %v2382_v62, inf  ;;  %v2111_v53 = vrot.slane %v1603_v57, %v11212_v12  ;;  %v15963_v57 = vld [vmem:[#allocation17_spill] sm:$0xff] }
 0x42b   :  { %2414 = vmin.xlane.f32.xlu0 %v2413_v16 }
 0x42c   :  { %v2112_v45 = vsel %vm1751_vm3, %v2111_v53, %v2107_v59  ;;  %v15971_v53 = vld [vmem:[#allocation55_spill] sm:$0xff] }
 0x42d   :  { %v1609_v50 = vpop.permute.xlu1 %1608  ;;  %v15973_v59 = vld [vmem:[#allocation43_spill] sm:$0xff] }
 0x42e   :  { %v2120_v35 = vrot.slane %v1609_v50, %v11212_v12  ;;  %v15965_v50 = vld [vmem:[#allocation18_spill] sm:$0xff] }
 0x430   :  { %v2121_v51 = vsel %vm1751_vm3, %v2120_v35, %v2116_v10 }
 0x431   :  { %v1615_v38 = vpop.permute.xlu1 %1614  ;;  %v2362_v14 = vsel %vm2320_vm4, %v2121_v51, %v2112_v45  ;;  %v15974_v51 = vld [vmem:[#allocation57_spill] sm:$0xff]  ;;  %v15977_v45 = vld [vmem:[#allocation59_spill] sm:$0xff] }
 0x432   :  { %v2129_v34 = vrot.slane %v1615_v38, %v11212_v12  ;;  %v15966_v38 = vld [vmem:[#allocation41_spill] sm:$0xff] }
 0x434   :  { %v2130_v4 = vsel %vm1751_vm3, %v2129_v34, %v2125_v52 }
 0x435   :  { %v1621_v19 = vpop.permute.xlu1 %1620  ;;  %v2363_v47 = vsel %vm2322_vm5, %v2130_v4, %v2362_v14  ;;  %v15979_v14 = vld [vmem:[#allocation45_spill] sm:$0xff] }
 0x436   :  { %v2138_v1 = vrot.slane %v1621_v19, %v11212_v12 }
 0x438   :  { %v2139_v31 = vsel %vm1751_vm3, %v2138_v1, %v2134_v60  ;;  %v15972_v1 = vld [vmem:[#allocation20_spill] sm:$0xff] }
 0x439   :  { %v1627_v26 = vpop.permute.xlu1 %1626  ;;  %v2364_v54 = vsel %vm2324_vm6, %v2139_v31, %v2363_v47  ;;  %v15978_v31 = vld [vmem:[#allocation22_spill] sm:$0xff]  ;;  %v15980_v47 = vld [vmem:[#allocation61_spill] sm:$0xff] }
 0x43a   :  { %v2147_v30 = vrot.slane %v1627_v26, %v11212_v12  ;;  %v15968_v26 = vld [vmem:[#allocation19_spill] sm:$0xff] }
 0x43c   :  { %v2148_v8 = vsel %vm1751_vm3, %v2147_v30, %v2143_v5 }
 0x43d   :  { %v1633_v7 = vpop.permute.xlu1 %1632  ;;  %v2365_v2 = vsel %vm2326_vm7, %v2148_v8, %v2364_v54 }
 0x43e   :  { %v2156_v36 = vrot.slane %v1633_v7, %v11212_v12  ;;  %v15970_v7 = vld [vmem:[#allocation42_spill] sm:$0xff] }
 0x440   :  { %v2157_v37 = vsel %vm1751_vm3, %v2156_v36, %v2152_v44  ;;  %v15975_v36 = vld [vmem:[#allocation21_spill] sm:$0xff] }
 0x441   :  { %v1639_v46 = vpop.permute.xlu1 %1638  ;;  %v2366_v0 = vsel %vm2328_vm8, %v2157_v37, %v2365_v2 }
 0x442   :  { %v2165_v61 = vrot.slane %v1639_v46, %v11212_v12  ;;  %v15976_v46 = vld [vmem:[#allocation44_spill] sm:$0xff] }
 0x444   :  { %v2166_v9 = vsel %vm1751_vm3, %v2165_v61, %v2161_v25 }
 0x445   :  { %v1645_v23 = vpop.permute.xlu1 %1644  ;;  %v2367_v13 = vsel %vm2330_vm9, %v2166_v9, %v2366_v0  ;;  %v15981_v9 = vld [vmem:[#allocation46_spill] sm:$0xff] }
 0x446   :  { %v2174_v6 = vrot.slane %v1645_v23, %v11212_v12 }
 0x448   :  { %v2175_v15 = vsel %vm1751_vm3, %v2174_v6, %v2170_v20  ;;  %v15982_v20 = vld [vmem:[#allocation63_spill] sm:$0xff]  ;;  %v15983_v6 = vld [vmem:[#allocation48_spill] sm:$0xff] }
 0x449   :  { %v2368_v56 = vsel %vm2332_vm10, %v2175_v15, %v2367_v13  ;;  %v15984_v15 = vld [vmem:[#allocation52_spill] sm:$0xff] }
 0x44a   :  { %v2407_v48 = vsel %vm2391_vm11, %v2368_v56, inf }
 0x44b   :  { %2408 = vmin.xlane.f32.xlu0 %v2407_v48  ;;  %v15985_v48 = vld [vmem:[#allocation50_spill] sm:$0xff] }
 0x452   :  { %v2400_v58 = vpop.xlane.xlu0 %2399 }
 0x453   :  { %v2491_v28 = vrot.slane %v2400_v58, %v15958_v40  ;;  %v2495_v55 = vrot.slane %v2400_v58, %v15959_v3  ;;  %v2499_v62 = vrot.slane %v2400_v58, %v15963_v57  ;;  %v2503_v27 = vrot.slane %v2400_v58, %v15965_v50 }
 0x454   :  { %v2507_v35 = vrot.slane %v2400_v58, %v15968_v26  ;;  %v2511_v52 = vrot.slane %v2400_v58, %v15972_v1  ;;  %v2515_v5 = vrot.slane %v2400_v58, %v15975_v36  ;;  %v2519_v61 = vrot.slane %v2400_v58, %v15978_v31 }
 0x455   :  { %vm2777_vm12 = vcmp.le.f32.partialorder %v15960_v18, %v2491_v28  ;;  %vm2779_vm13 = vcmp.le.f32.partialorder %v15962_v21, %v2495_v55  ;;  %vm2781_vm14 = vcmp.le.f32.partialorder %v15964_v29, %v2499_v62  ;;  %vm2776_vm15 = vcmp.le.f32.partialorder %v15966_v38, %v2491_v28  ;;  %v15986_v28 = vld [vmem:[#allocation67_spill] sm:$0xff] }
 0x456   :  { %v2912_v43 = vsel %vm2777_vm12, %v15961_v33, 16  ;;  %v2914_v16 = vsel %vm2779_vm13, %v15961_v33, 16  ;;  %v2916_v19 = vsel %vm2781_vm14, %v15961_v33, 16  ;;  %vm2783_vm0 = vcmp.le.f32.partialorder %v15967_v42, %v2503_v27  ;;  %v2394_v25 = vpop.xlane.xlu0 %2393 }
 0x457   :  { %3107 = vperm.xlu1 %9766, %v2912_v43   ;;  %v2911_v34 = vsel %vm2776_vm15, %v15969_v39, 16  ;;  %vm2778_vm1 = vcmp.le.f32.partialorder %v15970_v7, %v2495_v55  ;;  %v2918_v10 = vsel %vm2783_vm0, %v15961_v33, 16  ;;  %vm2785_vm12 = vcmp.le.f32.partialorder %v15971_v53, %v2507_v35  ;;  %v15987_v43 = vld [vmem:[#allocation65_spill] sm:$0xff] }
 0x458   :  { %v2913_v30 = vsel %vm2778_vm1, %v15969_v39, 16  ;;  %vm2780_vm13 = vcmp.le.f32.partialorder %v15973_v59, %v2499_v62  ;;  %v2920_v60 = vsel %vm2785_vm12, %v15961_v33, 16  ;;  %vm2787_vm14 = vcmp.le.f32.partialorder %v15974_v51, %v2511_v52  ;;  %v15988_v62 = vld [vmem:[#allocation69_spill] sm:$0xff] }
 0x459   :  { %v2915_v4 = vsel %vm2780_vm13, %v15969_v39, 16  ;;  %vm2782_vm15 = vcmp.le.f32.partialorder %v15976_v46, %v2503_v27  ;;  %v2922_v44 = vsel %vm2787_vm14, %v15961_v33, 16  ;;  %vm2789_vm0 = vcmp.le.f32.partialorder %v15977_v45, %v2515_v5  ;;  %v15989_v27 = vld [vmem:[#allocation54_spill] sm:$0xff] }
 0x45a   :  { %v2917_v41 = vsel %vm2782_vm15, %v15969_v39, 16  ;;  %vm2784_vm1 = vcmp.le.f32.partialorder %v15979_v14, %v2507_v35  ;;  %v2924_v8 = vsel %vm2789_vm0, %v15961_v33, 16  ;;  %vm2791_vm12 = vcmp.le.f32.partialorder %v15980_v47, %v2519_v61  ;;  %v15997_v14 = vld [vmem:[#allocation62_spill] sm:$0xff]  ;;  %v15998_v47 = vld [vmem:[#allocation25_spill] sm:$0xff] }
 0x45b   :  { %3113 = vperm.xlu1 %9766, %v2914_v16   ;;  %v2427_v37 = vrot.slane %v2394_v25, %v15958_v40  ;;  %v2919_v54 = vsel %vm2784_vm1, %v15969_v39, 16  ;;  %vm2786_vm13 = vcmp.le.f32.partialorder %v15981_v9, %v2511_v52  ;;  %v2926_v23 = vsel %vm2791_vm12, %v15961_v33, 16  ;;  %v15999_v9 = vld [vmem:[#allocation64_spill] sm:$0xff] }
 0x45c   :  { %v2921_v2 = vsel %vm2786_vm13, %v15969_v39, 16  ;;  %vm2788_vm15 = vcmp.le.f32.partialorder %v15983_v6, %v2515_v5  ;;  %v2431_v13 = vrot.slane %v2394_v25, %v15959_v3  ;;  %vm2790_vm1 = vcmp.le.f32.partialorder %v15985_v48, %v2519_v61  ;;  %v2403_v61 = vpop.xlane.xlu0 %2402  ;;  %v16001_v6 = vld [vmem:[#allocation66_spill] sm:$0xff]  ;;  %v16003_v48 = vld [vmem:[#allocation68_spill] sm:$0xff] }
 0x45d   :  { %vm2744_vm14 = vcmp.le.f32.partialorder %v15982_v20, %v2427_v37  ;;  %vm2745_vm0 = vcmp.le.f32.partialorder %v15984_v15, %v2427_v37  ;;  %v2923_v56 = vsel %vm2788_vm15, %v15969_v39, 16  ;;  %v2435_v55 = vrot.slane %v2394_v25, %v15963_v57  ;;  %v16002_v15 = vld [vmem:[#allocation27_spill] sm:$0xff] }
 0x45e   :  { %v2879_v0 = vsel %vm2744_vm14, %v15969_v39, 16  ;;  %v2880_v58 = vsel %vm2745_vm0, %v15961_v33, 16  ;;  %vm2747_vm12 = vcmp.le.f32.partialorder %v15986_v28, %v2431_v13  ;;  %v2925_v18 = vsel %vm2790_vm1, %v15969_v39, 16  ;;  %v16004_v28 = vld [vmem:[#allocation28_spill] sm:$0xff] }
 0x45f   :  { %3119 = vperm.xlu1 %9766, %v2916_v19   ;;  %vm2746_vm13 = vcmp.le.f32.partialorder %v15987_v43, %v2431_v13  ;;  %v2882_v21 = vsel %vm2747_vm12, %v15961_v33, 16  ;;  %vm2749_vm14 = vcmp.le.f32.partialorder %v15988_v62, %v2435_v55  ;;  %v2439_v16 = vrot.slane %v2394_v25, %v15965_v50  ;;  %v15990_v19 = vld [vmem:[#allocation71_spill] sm:$0xff]  ;;  %v16005_v43 = vld [vmem:[#allocation70_spill] sm:$0xff]  ;;  %v16006_v62 = vld [vmem:[#allocation29_spill] sm:$0xff] }
 0x460   :  { %v2881_v29 = vsel %vm2746_vm13, %v15969_v39, 16  ;;  %vm2748_vm15 = vcmp.le.f32.partialorder %v15989_v27, %v2435_v55  ;;  %v2884_v38 = vsel %vm2749_vm14, %v15961_v33, 16  ;;  %v2443_v42 = vrot.slane %v2394_v25, %v15968_v26  ;;  %v16007_v27 = vld [vmem:[#allocation72_spill] sm:$0xff] }
 0x461   :  { %3104 = vperm.xlu0 %9765, %v2911_v34   ;;  %vm2751_vm0 = vcmp.le.f32.partialorder %v15990_v19, %v2439_v16  ;;  %v2883_v35 = vsel %vm2748_vm15, %v15969_v39, 16  ;;  %v15991_v34 = vld [vmem:[#allocation56_spill] sm:$0xff]  ;;  %v2447_v53 = vrot.slane %v2394_v25, %v15972_v1  ;;  %v2451_v51 = vrot.slane %v2394_v25, %v15975_v36  ;;  %v16008_v19 = vld [vmem:[#allocation30_spill] sm:$0xff] }
 0x462   :  { %vm2750_vm1 = vcmp.le.f32.partialorder %v15991_v34, %v2439_v16  ;;  %v2886_v7 = vsel %vm2751_vm0, %v15961_v33, 16  ;;  %v2455_v45 = vrot.slane %v2394_v25, %v15978_v31  ;;  %v2523_v37 = vrot.slane %v2403_v61, %v15958_v40  ;;  %v16009_v34 = vld [vmem:[#allocation74_spill] sm:$0xff] }
 0x463   :  { %3125 = vperm.xlu1 %9766, %v2918_v10   ;;  %v15992_v10 = vld [vmem:[#allocation73_spill] sm:$0xff]  ;;  %v2885_v52 = vsel %vm2750_vm1, %v15969_v39, 16  ;;  %vm2756_vm1 = vcmp.le.f32.partialorder %v15997_v14, %v2451_v51  ;;  %v2527_v20 = vrot.slane %v2403_v61, %v15959_v3  ;;  %v2531_v13 = vrot.slane %v2403_v61, %v15963_v57 }
 0x464   :  { %vm2753_vm12 = vcmp.le.f32.partialorder %v15992_v10, %v2443_v42  ;;  %v2535_v55 = vrot.slane %v2403_v61, %v15965_v50  ;;  %v2539_v16 = vrot.slane %v2403_v61, %v15968_v26  ;;  %v16010_v10 = vld [vmem:[#allocation31_spill] sm:$0xff] }
 0x465   :  { %3110 = vperm.xlu0 %9765, %v2913_v30   ;;  %v15993_v30 = vld [vmem:[#allocation58_spill] sm:$0xff]  ;;  %v2888_v59 = vsel %vm2753_vm12, %v15961_v33, 16  ;;  %vm2759_vm12 = vcmp.le.f32.partialorder %v15998_v47, %v2455_v45 }
 0x466   :  { %vm2752_vm13 = vcmp.le.f32.partialorder %v15993_v30, %v2443_v42  ;;  %v2894_v25 = vsel %vm2759_vm12, %v15961_v33, 16  ;;  %vm2797_vm12 = vcmp.le.f32.partialorder %v16004_v28, %v2531_v13  ;;  %v2543_v42 = vrot.slane %v2403_v61, %v15972_v1  ;;  %v16011_v30 = vld [vmem:[#allocation76_spill] sm:$0xff]  ;;  %v16016_v47 = vld [vmem:[#allocation94_spill] sm:$0xff]  ;;  %v16022_v28 = vld [vmem:[#allocation35_spill] sm:$0xff] }
 0x467   :  { %3131 = vperm.xlu1 %9766, %v2920_v60   ;;  %v15994_v60 = vld [vmem:[#allocation75_spill] sm:$0xff]  ;;  %v2887_v5 = vsel %vm2752_vm13, %v15969_v39, 16  ;;  %vm2758_vm13 = vcmp.le.f32.partialorder %v15999_v9, %v2455_v45  ;;  %v16014_v45 = vld [vmem:[#allocation33_spill] sm:$0xff] }
 0x468   :  { %vm2755_vm14 = vcmp.le.f32.partialorder %v15994_v60, %v2447_v53  ;;  %v16012_v60 = vld [vmem:[#allocation32_spill] sm:$0xff]  ;;  %v16017_v9 = vld [vmem:[#allocation81_spill] sm:$0xff] }
 0x469   :  { %3116 = vperm.xlu0 %9765, %v2915_v4   ;;  %v15995_v4 = vld [vmem:[#allocation60_spill] sm:$0xff]  ;;  %v2890_v46 = vsel %vm2755_vm14, %v15961_v33, 16 }
 0x46a   :  { %vm2754_vm15 = vcmp.le.f32.partialorder %v15995_v4, %v2447_v53  ;;  %v2547_v53 = vrot.slane %v2403_v61, %v15975_v36 }
 0x46b   :  { %3137 = vperm.xlu1 %9766, %v2922_v44   ;;  %v15996_v44 = vld [vmem:[#allocation77_spill] sm:$0xff] }
 0x46c   :  { %vm2757_vm0 = vcmp.le.f32.partialorder %v15996_v44, %v2451_v51  ;;  %v2551_v51 = vrot.slane %v2403_v61, %v15978_v31 }
 0x46d   :  { %3122 = vperm.xlu0 %9765, %v2917_v41   ;;  %v2889_v41 = vsel %vm2754_vm15, %v15969_v39, 16  ;;  %vm2792_vm15 = vcmp.le.f32.partialorder %v16001_v6, %v2523_v37  ;;  %v16019_v6 = vld [vmem:[#allocation83_spill] sm:$0xff] }
 0x46f   :  { %3143 = vperm.xlu1 %9766, %v2924_v8   ;;  %v2892_v8 = vsel %vm2757_vm0, %v15961_v33, 16  ;;  %vm2795_vm0 = vcmp.le.f32.partialorder %v16002_v15, %v2527_v20  ;;  %v16020_v15 = vld [vmem:[#allocation34_spill] sm:$0xff] }
 0x471   :  { %3128 = vperm.xlu0 %9765, %v2919_v54   ;;  %v2891_v54 = vsel %vm2756_vm1, %v15969_v39, 16  ;;  %vm2794_vm1 = vcmp.le.f32.partialorder %v16003_v48, %v2527_v20  ;;  %v16021_v48 = vld [vmem:[#allocation84_spill] sm:$0xff] }
 0x473   :  { %3149 = vperm.xlu1 %9766, %v2926_v23   ;;  %v16000_v23 = vld [vmem:[#allocation26_spill] sm:$0xff] }
 0x474   :  { %vm2793_vm14 = vcmp.le.f32.partialorder %v16000_v23, %v2523_v37  ;;  %v16018_v23 = vld [vmem:[#allocation97_spill] sm:$0xff] }
 0x475   :  { %3134 = vperm.xlu0 %9765, %v2921_v2   ;;  %v2893_v2 = vsel %vm2758_vm13, %v15969_v39, 16  ;;  %vm2796_vm13 = vcmp.le.f32.partialorder %v16005_v43, %v2531_v13  ;;  %v16023_v43 = vld [vmem:[#allocation86_spill] sm:$0xff] }
 0x477   :  { %3008 = vperm.xlu1 %9766, %v2879_v0   ;;  %v2928_v0 = vsel %vm2793_vm14, %v15961_v33, 16  ;;  %vm2799_vm14 = vcmp.le.f32.partialorder %v16006_v62, %v2535_v55  ;;  %v16024_v62 = vld [vmem:[#allocation36_spill] sm:$0xff] }
 0x479   :  { %3140 = vperm.xlu0 %9765, %v2923_v56   ;;  %v2927_v56 = vsel %vm2792_vm15, %v15969_v39, 16  ;;  %vm2798_vm15 = vcmp.le.f32.partialorder %v16007_v27, %v2535_v55  ;;  %v16025_v27 = vld [vmem:[#allocation88_spill] sm:$0xff] }
 0x47b   :  { %3011 = vperm.xlu1 %9766, %v2880_v58   ;;  %v2930_v58 = vsel %vm2795_vm0, %v15961_v33, 16  ;;  %vm2801_vm0 = vcmp.le.f32.partialorder %v16008_v19, %v2539_v16  ;;  %v16026_v19 = vld [vmem:[#allocation37_spill] sm:$0xff] }
 0x47d   :  { %3146 = vperm.xlu0 %9765, %v2925_v18   ;;  %v2929_v18 = vsel %vm2794_vm1, %v15969_v39, 16  ;;  %vm2800_vm1 = vcmp.le.f32.partialorder %v16009_v34, %v2539_v16  ;;  %v16027_v34 = vld [vmem:[#allocation89_spill] sm:$0xff] }
 0x47f   :  { %3017 = vperm.xlu1 %9766, %v2882_v21   ;;  %v2932_v21 = vsel %vm2797_vm12, %v15961_v33, 16  ;;  %vm2803_vm12 = vcmp.le.f32.partialorder %v16010_v10, %v2543_v42 }
 0x481   :  { %3014 = vperm.xlu0 %9765, %v2881_v29   ;;  %v2931_v29 = vsel %vm2796_vm13, %v15969_v39, 16  ;;  %vm2802_vm13 = vcmp.le.f32.partialorder %v16011_v30, %v2543_v42 }
 0x482   :  { %v2937_v4 = vsel %vm2802_vm13, %v15969_v39, 16 }
 0x483   :  { %3023 = vperm.xlu1 %9766, %v2884_v38   ;;  %v2934_v38 = vsel %vm2799_vm14, %v15961_v33, 16  ;;  %vm2805_vm14 = vcmp.le.f32.partialorder %v16012_v60, %v2547_v53 }
 0x484   :  { %v2940_v44 = vsel %vm2805_vm14, %v15961_v33, 16 }
 0x485   :  { %3020 = vperm.xlu0 %9765, %v2883_v35   ;;  %v2933_v35 = vsel %vm2798_vm15, %v15969_v39, 16 }
 0x487   :  { %3029 = vperm.xlu1 %9766, %v2886_v7   ;;  %v2936_v7 = vsel %vm2801_vm0, %v15961_v33, 16  ;;  %vm2807_vm0 = vcmp.le.f32.partialorder %v16014_v45, %v2551_v51  ;;  %v16031_v45 = vld [vmem:[#allocation93_spill] sm:$0xff] }
 0x488   :  { %v2942_v61 = vsel %vm2807_vm0, %v15961_v33, 16 }
 0x489   :  { %3026 = vperm.xlu0 %9765, %v2885_v52   ;;  %v2935_v52 = vsel %vm2800_vm1, %v15969_v39, 16 }
 0x48b   :  { %3035 = vperm.xlu1 %9766, %v2888_v59   ;;  %v2938_v59 = vsel %vm2803_vm12, %v15961_v33, 16 }
 0x48d   :  { %3032 = vperm.xlu0 %9765, %v2887_v5   ;;  %v2397_v5 = vpop.xlane.xlu1 %2396 }
 0x48e   :  { %v2463_v37 = vrot.slane %v2397_v5, %v15959_v3  ;;  %v2467_v20 = vrot.slane %v2397_v5, %v15963_v57  ;;  %v2471_v13 = vrot.slane %v2397_v5, %v15965_v50  ;;  %v2475_v55 = vrot.slane %v2397_v5, %v15968_v26 }
 0x48f   :  { %3041 = vperm.xlu1 %9766, %v2890_v46   ;;  %v16013_v46 = vld [vmem:[#allocation78_spill] sm:$0xff]  ;;  %v2479_v16 = vrot.slane %v2397_v5, %v15972_v1  ;;  %v2483_v42 = vrot.slane %v2397_v5, %v15975_v36 }
 0x490   :  { %vm2804_vm15 = vcmp.le.f32.partialorder %v16013_v46, %v2547_v53  ;;  %vm2763_vm14 = vcmp.le.f32.partialorder %v16018_v23, %v2463_v37  ;;  %vm2765_vm0 = vcmp.le.f32.partialorder %v16020_v15, %v2467_v20  ;;  %v16028_v53 = vld [vmem:[#allocation38_spill] sm:$0xff] }
 0x491   :  { %3038 = vperm.xlu0 %9765, %v2889_v41   ;;  %v2459_v41 = vrot.slane %v2397_v5, %v15958_v40  ;;  %v2939_v14 = vsel %vm2804_vm15, %v15969_v39, 16  ;;  %vm2762_vm15 = vcmp.le.f32.partialorder %v16019_v6, %v2463_v37  ;;  %v16033_v37 = vld [vmem:[#allocation95_spill] sm:$0xff]  ;;  %v16035_v6 = vld [vmem:[#allocation98_spill] sm:$0xff] }
 0x493   :  { %3047 = vperm.xlu1 %9766, %v2892_v8   ;;  %v16015_v8 = vld [vmem:[#allocation79_spill] sm:$0xff]  ;;  %vm2761_vm12 = vcmp.le.f32.partialorder %v16016_v47, %v2459_v41  ;;  %vm2760_vm13 = vcmp.le.f32.partialorder %v16017_v9, %v2459_v41 }
 0x494   :  { %vm2806_vm1 = vcmp.le.f32.partialorder %v16015_v8, %v2551_v51 }
 0x495   :  { %3044 = vperm.xlu0 %9765, %v2891_v54   ;;  %v2941_v54 = vsel %vm2806_vm1, %v15969_v39, 16  ;;  %vm2764_vm1 = vcmp.le.f32.partialorder %v16021_v48, %v2467_v20 }
 0x497   :  { %3053 = vperm.xlu1 %9766, %v2894_v25   ;;  %v2896_v25 = vsel %vm2761_vm12, %v15961_v33, 16  ;;  %vm2767_vm12 = vcmp.le.f32.partialorder %v16022_v28, %v2471_v13  ;;  %v16037_v28 = vld [vmem:[#allocation99_spill] sm:$0xff] }
 0x499   :  { %3050 = vperm.xlu0 %9765, %v2893_v2   ;;  %v2895_v2 = vsel %vm2760_vm13, %v15969_v39, 16  ;;  %vm2766_vm13 = vcmp.le.f32.partialorder %v16023_v43, %v2471_v13  ;;  %v16036_v13 = vld [vmem:[#allocation109_spill] sm:$0xff]  ;;  %v16038_v43 = vld [vmem:[#allocation111_spill] sm:$0xff] }
 0x49b   :  { %3155 = vperm.xlu1 %9766, %v2928_v0   ;;  %v2898_v0 = vsel %vm2763_vm14, %v15961_v33, 16  ;;  %vm2769_vm14 = vcmp.le.f32.partialorder %v16024_v62, %v2475_v55 }
 0x49d   :  { %3152 = vperm.xlu0 %9765, %v2927_v56   ;;  %v2897_v56 = vsel %vm2762_vm15, %v15969_v39, 16  ;;  %vm2768_vm15 = vcmp.le.f32.partialorder %v16025_v27, %v2475_v55 }
 0x49f   :  { %3161 = vperm.xlu1 %9766, %v2930_v58   ;;  %v2900_v58 = vsel %vm2765_vm0, %v15961_v33, 16  ;;  %vm2771_vm0 = vcmp.le.f32.partialorder %v16026_v19, %v2479_v16  ;;  %v16040_v19 = vld [vmem:[#allocation113_spill] sm:$0xff] }
 0x4a0   :  { %v2906_v10 = vsel %vm2771_vm0, %v15961_v33, 16 }
 0x4a1   :  { %3158 = vperm.xlu0 %9765, %v2929_v18   ;;  %v2899_v18 = vsel %vm2764_vm1, %v15969_v39, 16  ;;  %vm2770_vm1 = vcmp.le.f32.partialorder %v16027_v34, %v2479_v16 }
 0x4a2   :  { %v2905_v30 = vsel %vm2770_vm1, %v15969_v39, 16 }
 0x4a3   :  { %3167 = vperm.xlu1 %9766, %v2932_v21   ;;  %v2902_v21 = vsel %vm2767_vm12, %v15961_v33, 16  ;;  %vm2773_vm12 = vcmp.le.f32.partialorder %v16028_v53, %v2483_v42 }
 0x4a4   :  { %v2908_v51 = vsel %vm2773_vm12, %v15961_v33, 16 }
 0x4a5   :  { %3164 = vperm.xlu0 %9765, %v2931_v29   ;;  %v2901_v29 = vsel %vm2766_vm13, %v15969_v39, 16 }
 0x4a7   :  { %3173 = vperm.xlu1 %9766, %v2934_v38   ;;  %v2904_v38 = vsel %vm2769_vm14, %v15961_v33, 16 }
 0x4a9   :  { %3170 = vperm.xlu0 %9765, %v2933_v35   ;;  %v2903_v35 = vsel %vm2768_vm15, %v15969_v39, 16 }
 0x4ab   :  { %3179 = vperm.xlu1 %9766, %v2936_v7   ;;  %v11803_v7 = vpop.xlane.xlu1 %2411 }
 0x4ac   :  { %v2619_v46 = vrot.slane %v11803_v7, %v15958_v40  ;;  %v2623_v8 = vrot.slane %v11803_v7, %v15959_v3  ;;  %v2627_v23 = vrot.slane %v11803_v7, %v15963_v57 }
 0x4ad   :  { %3176 = vperm.xlu0 %9765, %v2935_v52   ;;  %v2487_v52 = vrot.slane %v2397_v5, %v15978_v31 }
 0x4ae   :  { %vm2840_vm1 = vcmp.le.f32.partialorder %v16033_v37, %v2619_v46  ;;  %v16045_v37 = vld [vmem:[#allocation103_spill] sm:$0xff] }
 0x4af   :  { %3185 = vperm.xlu1 %9766, %v2938_v59   ;;  %v16029_v59 = vld [vmem:[#allocation91_spill] sm:$0xff]  ;;  %v11810_v60 = vpop.xlane.xlu1 %2405  ;;  %vm2774_vm15 = vcmp.le.f32.partialorder %v16031_v45, %v2487_v52 }
 0x4b0   :  { %vm2772_vm13 = vcmp.le.f32.partialorder %v16029_v59, %v2483_v42  ;;  %v2909_v47 = vsel %vm2774_vm15, %v15969_v39, 16  ;;  %vm2844_vm15 = vcmp.le.f32.partialorder %v16037_v28, %v2627_v23  ;;  %v2639_v42 = vrot.slane %v11803_v7, %v15972_v1 }
 0x4b1   :  { %3182 = vperm.xlu0 %9765, %v2937_v4   ;;  %v16030_v4 = vld [vmem:[#allocation39_spill] sm:$0xff]  ;;  %v2979_v16 = vsel %vm2844_vm15, %v15969_v39, 16  ;;  %v2643_v59 = vrot.slane %v11803_v7, %v15975_v36  ;;  %v2559_v28 = vrot.slane %v11810_v60, %v15959_v3 }
 0x4b2   :  { %vm2775_vm14 = vcmp.le.f32.partialorder %v16030_v4, %v2487_v52 }
 0x4b3   :  { %3191 = vperm.xlu1 %9766, %v2940_v44   ;;  %v2907_v44 = vsel %vm2772_vm13, %v15969_v39, 16  ;;  %v2910_v41 = vsel %vm2775_vm14, %v15961_v33, 16  ;;  %vm2842_vm13 = vcmp.le.f32.partialorder %v16035_v6, %v2623_v8  ;;  %vm2845_vm14 = vcmp.le.f32.partialorder %v16036_v13, %v2627_v23  ;;  %v16046_v23 = vld [vmem:[#allocation119_spill] sm:$0xff] }
 0x4b5   :  { %3188 = vperm.xlu0 %9765, %v2939_v14   ;;  %v16032_v14 = vld [vmem:[#allocation106_spill] sm:$0xff] }
 0x4b6   :  { %vm2841_vm0 = vcmp.le.f32.partialorder %v16032_v14, %v2619_v46  ;;  %v16043_v46 = vld [vmem:[#allocation102_spill] sm:$0xff]  ;;  %v2647_v14 = vrot.slane %v11803_v7, %v15978_v31 }
 0x4b7   :  { %3197 = vperm.xlu1 %9766, %v2942_v61   ;;  %v2976_v9 = vsel %vm2841_vm0, %v15961_v33, 16  ;;  %vm2850_vm15 = vcmp.le.f32.partialorder %v16043_v46, %v2639_v42 }
 0x4b8   :  { %v11824_v61 = vpop.xlane.xlu0 %2414 }
 0x4b9   :  { %3194 = vperm.xlu0 %9765, %v2941_v54  }
 0x4bb   :  { %3059 = vperm.xlu1 %9766, %v2896_v25   ;;  %v16034_v25 = vld [vmem:[#allocation40_spill] sm:$0xff] }
 0x4bc   :  { %vm2843_vm12 = vcmp.le.f32.partialorder %v16034_v25, %v2623_v8 }
 0x4bd   :  { %3056 = vperm.xlu0 %9765, %v2895_v2   ;;  %v2975_v2 = vsel %vm2840_vm1, %v15969_v39, 16  ;;  %v2978_v15 = vsel %vm2843_vm12, %v15961_v33, 16 }
 0x4bf   :  { %3065 = vperm.xlu1 %9766, %v2898_v0  }
 0x4c1   :  { %3062 = vperm.xlu0 %9765, %v2897_v56   ;;  %v2631_v56 = vrot.slane %v11803_v7, %v15965_v50 }
 0x4c3   :  { %3071 = vperm.xlu1 %9766, %v2900_v58   ;;  %v2977_v58 = vsel %vm2842_vm13, %v15969_v39, 16  ;;  %vm2847_vm0 = vcmp.le.f32.partialorder %v16038_v43, %v2631_v56 }
 0x4c5   :  { %3068 = vperm.xlu0 %9765, %v2899_v18   ;;  %v2980_v18 = vsel %vm2845_vm14, %v15961_v33, 16 }
 0x4c7   :  { %3077 = vperm.xlu1 %9766, %v2902_v21   ;;  %v2635_v21 = vrot.slane %v11803_v7, %v15968_v26 }
 0x4c9   :  { %3074 = vperm.xlu0 %9765, %v2901_v29   ;;  %v16039_v29 = vld [vmem:[#allocation100_spill] sm:$0xff]  ;;  %vm2849_vm12 = vcmp.le.f32.partialorder %v16040_v19, %v2635_v21  ;;  %v2563_v19 = vrot.slane %v11810_v60, %v15963_v57 }
 0x4ca   :  { %vm2846_vm1 = vcmp.le.f32.partialorder %v16039_v29, %v2631_v56  ;;  %v2984_v52 = vsel %vm2849_vm12, %v15961_v33, 16  ;;  %vm2855_vm12 = vcmp.le.f32.partialorder %v16046_v23, %v2647_v14 }
 0x4cb   :  { %3083 = vperm.xlu1 %9766, %v2904_v38   ;;  %v2982_v38 = vsel %vm2847_vm0, %v15961_v33, 16  ;;  %v2981_v34 = vsel %vm2846_vm1, %v15969_v39, 16  ;;  %vm2852_vm1 = vcmp.le.f32.partialorder %v16045_v37, %v2643_v59  ;;  %v2990_v56 = vsel %vm2855_vm12, %v15961_v33, 16  ;;  %v16054_v37 = vld [vmem:[#allocation127_spill] sm:$0xff] }
 0x4cc   :  { %v2987_v7 = vsel %vm2852_vm1, %v15969_v39, 16 }
 0x4cd   :  { %3080 = vperm.xlu0 %9765, %v2903_v35  }
 0x4cf   :  { %3089 = vperm.xlu1 %9766, %v2906_v10   ;;  %v16041_v10 = vld [vmem:[#allocation101_spill] sm:$0xff] }
 0x4d0   :  { %vm2848_vm13 = vcmp.le.f32.partialorder %v16041_v10, %v2635_v21  ;;  %v16049_v21 = vld [vmem:[#allocation107_spill] sm:$0xff]  ;;  %v16051_v10 = vld [vmem:[#allocation108_spill] sm:$0xff] }
 0x4d1   :  { %3086 = vperm.xlu0 %9765, %v2905_v30   ;;  %v16042_v30 = vld [vmem:[#allocation115_spill] sm:$0xff]  ;;  %v2983_v4 = vsel %vm2848_vm13, %v15969_v39, 16  ;;  %vm2810_vm1 = vcmp.le.f32.partialorder %v16051_v10, %v2559_v28  ;;  %v2579_v10 = vrot.slane %v11810_v60, %v15975_v36 }
 0x4d2   :  { %vm2851_vm14 = vcmp.le.f32.partialorder %v16042_v30, %v2639_v42 }
 0x4d3   :  { %3095 = vperm.xlu1 %9766, %v2908_v51   ;;  %v2986_v45 = vsel %vm2851_vm14, %v15961_v33, 16 }
 0x4d5   :  { %3092 = vperm.xlu0 %9765, %v2907_v44  }
 0x4d6   :  { %v11818_v5 = vpop.permute.xlu1 %3107 }
 0x4d7   :  { %3101 = vperm.xlu1 %9766, %v2910_v41   ;;  %v16044_v41 = vld [vmem:[#allocation117_spill] sm:$0xff] }
 0x4d8   :  { %v11834_v20 = vpop.xlane.xlu0 %2408  ;;  %vm2853_vm0 = vcmp.le.f32.partialorder %v16044_v41, %v2643_v59  ;;  %v16052_v59 = vld [vmem:[#allocation125_spill] sm:$0xff]  ;;  %v16053_v41 = vld [vmem:[#allocation110_spill] sm:$0xff] }
 0x4d9   :  { %3098 = vperm.xlu0 %9765, %v2909_v47   ;;  %v2985_v47 = vsel %vm2850_vm15, %v15969_v39, 16  ;;  %v2988_v25 = vsel %vm2853_vm0, %v15961_v33, 16  ;;  %vm2813_vm12 = vcmp.le.f32.partialorder %v16052_v59, %v2563_v19 }
 0x4da   :  { %v11828_v54 = vpop.permute.xlu1 %3113 }
 0x4db   :  { %3299 = vperm.xlu1 %9766, %v2976_v9  }
 0x4dd   :  { %3296 = vperm.xlu0 %9765, %v2975_v2   ;;  %v2555_v2 = vrot.slane %v11810_v60, %v15958_v40 }
 0x4de   :  { %v11838_v0 = vpop.permute.xlu1 %3119 }
 0x4df   :  { %3305 = vperm.xlu1 %9766, %v2978_v15   ;;  %v16047_v15 = vld [vmem:[#allocation104_spill] sm:$0xff]  ;;  %vm2808_vm15 = vcmp.le.f32.partialorder %v16049_v21, %v2555_v2 }
 0x4e0   :  { %v11844_v48 = vpop.permute.xlu0 %3104  ;;  %vm2854_vm13 = vcmp.le.f32.partialorder %v16047_v15, %v2647_v14 }
 0x4e1   :  { %3302 = vperm.xlu0 %9765, %v2977_v58   ;;  %v16048_v58 = vld [vmem:[#allocation121_spill] sm:$0xff]  ;;  %v2989_v43 = vsel %vm2854_vm13, %v15969_v39, 16  ;;  %vm2812_vm13 = vcmp.le.f32.partialorder %v16053_v41, %v2563_v19 }
 0x4e2   :  { %v11848_v55 = vpop.permute.xlu1 %3125  ;;  %vm2809_vm14 = vcmp.le.f32.partialorder %v16048_v58, %v2555_v2  ;;  %v2947_v2 = vsel %vm2812_vm13, %v15969_v39, 16  ;;  %v16056_v58 = vld [vmem:[#allocation129_spill] sm:$0xff] }
 0x4e3   :  { %3311 = vperm.xlu1 %9766, %v2980_v18   ;;  %v2944_v29 = vsel %vm2809_vm14, %v15961_v33, 16 }
 0x4e4   :  { %v11854_v62 = vpop.permute.xlu0 %3110 }
 0x4e5   :  { %3308 = vperm.xlu0 %9765, %v2979_v16  }
 0x4e6   :  { %v11858_v27 = vpop.permute.xlu1 %3131 }
 0x4e7   :  { %3317 = vperm.xlu1 %9766, %v2982_v38   ;;  %v16050_v38 = vld [vmem:[#allocation123_spill] sm:$0xff] }
 0x4e8   :  { %v11864_v35 = vpop.permute.xlu0 %3116  ;;  %vm2811_vm0 = vcmp.le.f32.partialorder %v16050_v38, %v2559_v28  ;;  %v2575_v28 = vrot.slane %v11810_v60, %v15972_v1 }
 0x4e9   :  { %3314 = vperm.xlu0 %9765, %v2981_v34   ;;  %v2943_v34 = vsel %vm2808_vm15, %v15969_v39, 16  ;;  %v2946_v30 = vsel %vm2811_vm0, %v15961_v33, 16 }
 0x4ea   :  { %v11868_v53 = vpop.permute.xlu1 %3137 }
 0x4eb   :  { %3323 = vperm.xlu1 %9766, %v2984_v52  }
 0x4ec   :  { %v11874_v51 = vpop.permute.xlu0 %3122 }
 0x4ed   :  { %3320 = vperm.xlu0 %9765, %v2983_v4   ;;  %v2567_v4 = vrot.slane %v11810_v60, %v15965_v50 }
 0x4ee   :  { %v11878_v44 = vpop.permute.xlu1 %3143 }
 0x4ef   :  { %3329 = vperm.xlu1 %9766, %v2986_v45   ;;  %v2945_v45 = vsel %vm2810_vm1, %v15969_v39, 16  ;;  %vm2815_vm14 = vcmp.le.f32.partialorder %v16054_v37, %v2567_v4  ;;  %v2583_v37 = vrot.slane %v11810_v60, %v15978_v31 }
 0x4f0   :  { %v11884_v8 = vpop.permute.xlu0 %3128 }
 0x4f1   :  { %3326 = vperm.xlu0 %9765, %v2985_v47   ;;  %v2948_v47 = vsel %vm2813_vm12, %v15961_v33, 16 }
 0x4f2   :  { %v11888_v9 = vpop.permute.xlu1 %3149 }
 0x4f3   :  { %3335 = vperm.xlu1 %9766, %v2988_v25   ;;  %v2571_v25 = vrot.slane %v11810_v60, %v15968_v26 }
 0x4f4   :  { %v11894_v6 = vpop.permute.xlu0 %3134 }
 0x4f5   :  { %3332 = vperm.xlu0 %9765, %v2987_v7   ;;  %v16055_v7 = vld [vmem:[#allocation112_spill] sm:$0xff]  ;;  %vm2817_vm0 = vcmp.le.f32.partialorder %v16056_v58, %v2571_v25 }
 0x4f6   :  { %v11898_v13 = vpop.permute.xlu1 %3008  ;;  %vm2814_vm15 = vcmp.le.f32.partialorder %v16055_v7, %v2567_v4  ;;  %v2952_v19 = vsel %vm2817_vm0, %v15961_v33, 16  ;;  %v16059_v4 = vld [vmem:[#allocation116_spill] sm:$0xff]  ;;  %v16061_v7 = vld [vmem:[#allocation118_spill] sm:$0xff] }
 0x4f7   :  { %3341 = vperm.xlu1 %9766, %v2990_v56   ;;  %v2950_v56 = vsel %vm2815_vm14, %v15961_v33, 16  ;;  %v2949_v21 = vsel %vm2814_vm15, %v15969_v39, 16  ;;  %vm2818_vm13 = vcmp.le.f32.partialorder %v16059_v4, %v2575_v28  ;;  %vm2820_vm15 = vcmp.le.f32.partialorder %v16061_v7, %v2579_v10 }
 0x4f8   :  { %v11904_v18 = vpop.permute.xlu0 %3140  ;;  %v2955_v60 = vsel %vm2820_vm15, %v15969_v39, 16  ;;  %v2655_v4 = vrot.slane %v11824_v61, %v15959_v3 }
 0x4f9   :  { %3338 = vperm.xlu0 %9765, %v2989_v43  }
 0x4fa   :  { %v11908_v16 = vpop.permute.xlu1 %3011 }
 0x4fb   :  { %3203 = vperm.xlu1 %9766, %v2944_v29   ;;  %v16057_v29 = vld [vmem:[#allocation114_spill] sm:$0xff] }
 0x4fc   :  { %v11914_v42 = vpop.permute.xlu0 %3146  ;;  %vm2816_vm1 = vcmp.le.f32.partialorder %v16057_v29, %v2571_v25 }
 0x4fd   :  { %3200 = vperm.xlu0 %9765, %v2943_v34   ;;  %v16058_v34 = vld [vmem:[#allocation131_spill] sm:$0xff]  ;;  %v2951_v59 = vsel %vm2816_vm1, %v15969_v39, 16 }
 0x4fe   :  { %v11918_v52 = vpop.permute.xlu1 %3017  ;;  %vm2819_vm12 = vcmp.le.f32.partialorder %v16058_v34, %v2575_v28  ;;  %v16062_v28 = vld [vmem:[#allocation135_spill] sm:$0xff] }
 0x4ff   :  { %3209 = vperm.xlu1 %9766, %v2946_v30   ;;  %v2954_v41 = vsel %vm2819_vm12, %v15961_v33, 16  ;;  %vm2823_vm0 = vcmp.le.f32.partialorder %v16062_v28, %v2583_v37  ;;  %v2659_v28 = vrot.slane %v11824_v61, %v15963_v57 }
 0x500   :  { %v11924_v46 = vpop.permute.xlu0 %3014 }
 0x501   :  { %3206 = vperm.xlu0 %9765, %v2945_v45  }
 0x502   :  { %v11928_v14 = vpop.permute.xlu1 %3023 }
 0x503   :  { %3215 = vperm.xlu1 %9766, %v2948_v47   ;;  %v16060_v47 = vld [vmem:[#allocation133_spill] sm:$0xff] }
 0x504   :  { %v11934_v23 = vpop.permute.xlu0 %3020  ;;  %vm2821_vm14 = vcmp.le.f32.partialorder %v16060_v47, %v2579_v10  ;;  %v2958_v10 = vsel %vm2823_vm0, %v15961_v33, 16 }
 0x505   :  { %3212 = vperm.xlu0 %9765, %v2947_v2   ;;  %v2953_v2 = vsel %vm2818_vm13, %v15969_v39, 16  ;;  %v2956_v58 = vsel %vm2821_vm14, %v15961_v33, 16 }
 0x506   :  { %v11938_v15 = vpop.permute.xlu1 %3029 }
 0x507   :  { %3221 = vperm.xlu1 %9766, %v2950_v56  }
 0x508   :  { %v11944_v43 = vpop.permute.xlu0 %3026 }
 0x509   :  { %3218 = vperm.xlu0 %9765, %v2949_v21   ;;  %v2651_v21 = vrot.slane %v11824_v61, %v15958_v40 }
 0x50a   :  { %v11948_v38 = vpop.permute.xlu1 %3035 }
 0x50b   :  { %3227 = vperm.xlu1 %9766, %v2952_v19   ;;  %v16063_v19 = vld [vmem:[#allocation120_spill] sm:$0xff] }
 0x50c   :  { %v11954_v30 = vpop.permute.xlu0 %3032  ;;  %vm2822_vm1 = vcmp.le.f32.partialorder %v16063_v19, %v2583_v37 }
 0x50d   :  { %3224 = vperm.xlu0 %9765, %v2951_v59   ;;  %v16064_v59 = vld [vmem:[#allocation137_spill] sm:$0xff]  ;;  %v2957_v47 = vsel %vm2822_vm1, %v15969_v39, 16 }
 0x50e   :  { %v11958_v45 = vpop.permute.xlu1 %3041  ;;  %vm2857_vm12 = vcmp.le.f32.partialorder %v16064_v59, %v2651_v21 }
 0x50f   :  { %3233 = vperm.xlu1 %9766, %v2954_v41   ;;  %v2992_v37 = vsel %vm2857_vm12, %v15961_v33, 16 }
 0x510   :  { %v11964_v25 = vpop.permute.xlu0 %3038 }
 0x511   :  { %3230 = vperm.xlu0 %9765, %v2953_v2   ;;  %v16065_v2 = vld [vmem:[#allocation122_spill] sm:$0xff] }
 0x512   :  { %v11968_v56 = vpop.permute.xlu1 %3047  ;;  %vm2856_vm13 = vcmp.le.f32.partialorder %v16065_v2, %v2651_v21  ;;  %v2663_v2 = vrot.slane %v11824_v61, %v15965_v50 }
 0x513   :  { %3239 = vperm.xlu1 %9766, %v2956_v58   ;;  %v16067_v58 = vld [vmem:[#allocation139_spill] sm:$0xff]  ;;  %v2991_v19 = vsel %vm2856_vm13, %v15969_v39, 16 }
 0x514   :  { %v11974_v29 = vpop.permute.xlu0 %3044  ;;  %vm2859_vm14 = vcmp.le.f32.partialorder %v16067_v58, %v2655_v4 }
 0x515   :  { %3236 = vperm.xlu0 %9765, %v2955_v60   ;;  %v2994_v21 = vsel %vm2859_vm14, %v15961_v33, 16 }
 0x516   :  { %v11978_v34 = vpop.permute.xlu1 %3053 }
 0x517   :  { %3245 = vperm.xlu1 %9766, %v2958_v10   ;;  %v16068_v10 = vld [vmem:[#allocation124_spill] sm:$0xff] }
 0x518   :  { %v11984_v41 = vpop.permute.xlu0 %3050  ;;  %vm2858_vm15 = vcmp.le.f32.partialorder %v16068_v10, %v2655_v4  ;;  %v16074_v10 = vld [vmem:[#allocation143_spill] sm:$0xff] }
 0x519   :  { %3242 = vperm.xlu0 %9765, %v2957_v47   ;;  %v16070_v47 = vld [vmem:[#allocation141_spill] sm:$0xff]  ;;  %v2993_v58 = vsel %vm2858_vm15, %v15969_v39, 16  ;;  %vm2863_vm12 = vcmp.le.f32.partialorder %v16074_v10, %v2663_v2 }
 0x51a   :  { %v11988_v7 = vpop.permute.xlu1 %3155  ;;  %vm2861_vm0 = vcmp.le.f32.partialorder %v16070_v47, %v2659_v28 }
 0x51b   :  { %16066 = vst [vmem:[#allocation82_spill] sm:$0xff] %v11988_v7  ;;  %3347 = vperm.xlu1 %9766, %v2992_v37   ;;  %v16072_v7 = vld [vmem:[#allocation126_spill] sm:$0xff]  ;;  %v2996_v4 = vsel %vm2861_vm0, %v15961_v33, 16 }
 0x51c   :  { %v11994_v60 = vpop.permute.xlu0 %3152  ;;  %vm2860_vm1 = vcmp.le.f32.partialorder %v16072_v7, %v2659_v28  ;;  %v2998_v7 = vsel %vm2863_vm12, %v15961_v33, 16  ;;  %v16078_v28 = vld [vmem:[#allocation146_spill] sm:$0xff] }
 0x51d   :  { %3344 = vperm.xlu0 %9765, %v2991_v19  }
 0x51e   :  { %v11998_v59 = vpop.permute.xlu1 %3161 }
 0x51f   :  { %16069 = vst [vmem:[#allocation105_spill] sm:$0xff] %v11998_v59  ;;  %3353 = vperm.xlu1 %9766, %v2994_v21   ;;  %v2667_v21 = vrot.slane %v11824_v61, %v15968_v26  ;;  %v2995_v59 = vsel %vm2860_vm1, %v15969_v39, 16 }
 0x520   :  { %v12004_v37 = vpop.permute.xlu0 %3158 }
 0x521   :  { %16071 = vst [vmem:[#allocation85_spill] sm:$0xff] %v12004_v37  ;;  %3350 = vperm.xlu0 %9765, %v2993_v58   ;;  %v16076_v37 = vld [vmem:[#allocation128_spill] sm:$0xff]  ;;  %vm2865_vm14 = vcmp.le.f32.partialorder %v16078_v28, %v2667_v21 }
 0x522   :  { %v12008_v19 = vpop.permute.xlu1 %3167  ;;  %vm2862_vm13 = vcmp.le.f32.partialorder %v16076_v37, %v2663_v2  ;;  %v3000_v2 = vsel %vm2865_vm14, %v15961_v33, 16  ;;  %v16082_v37 = vld [vmem:[#allocation149_spill] sm:$0xff] }
 0x523   :  { %16073 = vst [vmem:[#allocation87_spill] sm:$0xff] %v12008_v19  ;;  %3359 = vperm.xlu1 %9766, %v2996_v4   ;;  %v2671_v4 = vrot.slane %v11824_v61, %v15972_v1  ;;  %v2997_v19 = vsel %vm2862_vm13, %v15969_v39, 16 }
 0x524   :  { %v12014_v47 = vpop.permute.xlu0 %3164 }
 0x525   :  { %16075 = vst [vmem:[#allocation90_spill] sm:$0xff] %v12014_v47  ;;  %3356 = vperm.xlu0 %9765, %v2995_v59   ;;  %v16080_v47 = vld [vmem:[#allocation130_spill] sm:$0xff]  ;;  %vm2867_vm0 = vcmp.le.f32.partialorder %v16082_v37, %v2671_v4 }
 0x526   :  { %v12018_v58 = vpop.permute.xlu1 %3173  ;;  %vm2864_vm15 = vcmp.le.f32.partialorder %v16080_v47, %v2667_v21  ;;  %v3002_v21 = vsel %vm2867_vm0, %v15961_v33, 16  ;;  %v16086_v47 = vld [vmem:[#allocation152_spill] sm:$0xff] }
 0x527   :  { %16077 = vst [vmem:[#allocation92_spill] sm:$0xff] %v12018_v58  ;;  %3365 = vperm.xlu1 %9766, %v2998_v7   ;;  %v2675_v7 = vrot.slane %v11824_v61, %v15975_v36  ;;  %v2999_v58 = vsel %vm2864_vm15, %v15969_v39, 16 }
 0x528   :  { %v12024_v10 = vpop.permute.xlu0 %3170 }
 0x529   :  { %16079 = vst [vmem:[#allocation96_spill] sm:$0xff] %v12024_v10  ;;  %3362 = vperm.xlu0 %9765, %v2997_v19   ;;  %v16084_v10 = vld [vmem:[#allocation132_spill] sm:$0xff]  ;;  %vm2869_vm12 = vcmp.le.f32.partialorder %v16086_v47, %v2675_v7 }
 0x52a   :  { %v12028_v59 = vpop.permute.xlu1 %3179  ;;  %vm2866_vm1 = vcmp.le.f32.partialorder %v16084_v10, %v2671_v4  ;;  %v3004_v4 = vsel %vm2869_vm12, %v15961_v33, 16  ;;  %v16089_v10 = vld [vmem:[#allocation158_spill] sm:$0xff] }
 0x52b   :  { %16081 = vst [vmem:[#allocation145_spill] sm:$0xff] %v12028_v59  ;;  %3371 = vperm.xlu1 %9766, %v3000_v2   ;;  %v2587_v2 = vrot.slane %v11834_v20, %v15958_v40  ;;  %v3001_v59 = vsel %vm2866_vm1, %v15969_v39, 16 }
 0x52c   :  { %v12034_v28 = vpop.permute.xlu0 %3176 }
 0x52d   :  { %16083 = vst [vmem:[#allocation148_spill] sm:$0xff] %v12034_v28  ;;  %3368 = vperm.xlu0 %9765, %v2999_v58   ;;  %v16087_v28 = vld [vmem:[#allocation134_spill] sm:$0xff]  ;;  %vm2825_vm14 = vcmp.le.f32.partialorder %v16089_v10, %v2587_v2 }
 0x52e   :  { %v12038_v19 = vpop.permute.xlu1 %3185  ;;  %vm2868_vm13 = vcmp.le.f32.partialorder %v16087_v28, %v2675_v7  ;;  %v2960_v7 = vsel %vm2825_vm14, %v15961_v33, 16  ;;  %v16091_v28 = vld [vmem:[#allocation80_spill] sm:$0xff] }
 0x52f   :  { %16085 = vst [vmem:[#allocation151_spill] sm:$0xff] %v12038_v19  ;;  %3377 = vperm.xlu1 %9766, %v3002_v21   ;;  %v2591_v21 = vrot.slane %v11834_v20, %v15959_v3  ;;  %v3003_v40 = vsel %vm2868_vm13, %v15969_v39, 16  ;;  %v16090_v19 = vld [vmem:[#allocation138_spill] sm:$0xff] }
 0x530   :  { %v12044_v37 = vpop.permute.xlu0 %3182  ;;  %vm2824_vm15 = vcmp.le.f32.partialorder %v16090_v19, %v2587_v2  ;;  %v2599_v2 = vrot.slane %v11834_v20, %v15965_v50 }
 0x531   :  { %3374 = vperm.xlu0 %9765, %v3001_v59   ;;  %vm2827_vm0 = vcmp.le.f32.partialorder %v16091_v28, %v2591_v21  ;;  %v2959_v3 = vsel %vm2824_vm15, %v15969_v39, 16  ;;  %v16093_v28 = vld [vmem:[#allocation142_spill] sm:$0xff] }
 0x532   :  { %v12048_v58 = vpop.permute.xlu1 %3191  ;;  %v2962_v19 = vsel %vm2827_vm0, %v15961_v33, 16  ;;  %vm2831_vm14 = vcmp.le.f32.partialorder %v11289_v49, %v2599_v2  ;;  %v2607_v49 = vrot.slane %v11834_v20, %v15972_v1 }
 0x533   :  { %16088 = vst [vmem:[#allocation154_spill] sm:$0xff] %v12048_v58  ;;  %3383 = vperm.xlu1 %9766, %v3004_v4   ;;  %v2595_v4 = vrot.slane %v11834_v20, %v15963_v57  ;;  %v16092_v58 = vld [vmem:[#allocation140_spill] sm:$0xff] }
 0x534   :  { %v12054_v47 = vpop.permute.xlu0 %3188  ;;  %vm2826_vm1 = vcmp.le.f32.partialorder %v16092_v58, %v2591_v21 }
 0x535   :  { %3380 = vperm.xlu0 %9765, %v3003_v40   ;;  %vm2829_vm12 = vcmp.le.f32.partialorder %v11259_v11, %v2595_v4  ;;  %v2961_v57 = vsel %vm2826_vm1, %v15969_v39, 16  ;;  %vm2828_vm13 = vcmp.le.f32.partialorder %v16093_v28, %v2595_v4  ;;  %v2603_v11 = vrot.slane %v11834_v20, %v15968_v26 }
 0x536   :  { %v12058_v59 = vpop.permute.xlu1 %3197  ;;  %v2964_v58 = vsel %vm2829_vm12, %v15961_v33, 16  ;;  %v2963_v50 = vsel %vm2828_vm13, %v15969_v39, 16  ;;  %v2966_v4 = vsel %vm2831_vm14, %v15961_v33, 16  ;;  %vm2835_vm12 = vcmp.le.f32.partialorder %v11306_v17, %v2607_v49 }
 0x537   :  { %3251 = vperm.xlu1 %9766, %v2960_v7   ;;  %vm2833_vm0 = vcmp.le.f32.partialorder %v11302_v63, %v2603_v11  ;;  %v2611_v63 = vrot.slane %v11834_v20, %v15975_v36  ;;  %v2615_v17 = vrot.slane %v11834_v20, %v15978_v31  ;;  %v2679_v36 = vrot.slane %v11824_v61, %v15978_v31  ;;  %v16098_v31 = vld [vmem:[#allocation155_spill] sm:$0xff] }
 0x538   :  { %v12064_v10 = vpop.permute.xlu0 %3194  ;;  %v3538_v20 = vrot.slane %v11844_v48, %v11224_v32  ;;  %v3551_v61 = vrot.slane %v11828_v54, %v11212_v12 }
 0x539   :  { %3248 = vperm.xlu0 %9765, %v2959_v3   ;;  %vm2837_vm14 = vcmp.le.f32.partialorder %v11310_v22, %v2611_v63 }
 0x53a   :  { %v12068_v40 = vpop.permute.xlu1 %3059  ;;  %v2972_v22 = vsel %vm2837_vm14, %v15961_v33, 16 }
 0x53b   :  { %3257 = vperm.xlu1 %9766, %v2962_v19   ;;  %v16094_v19 = vld [vmem:[#allocation144_spill] sm:$0xff] }
 0x53c   :  { %v12074_v7 = vpop.permute.xlu0 %3056  ;;  %vm2830_vm15 = vcmp.le.f32.partialorder %v16094_v19, %v2599_v2  ;;  %v2968_v2 = vsel %vm2833_vm0, %v15961_v33, 16  ;;  %vm2839_vm0 = vcmp.le.f32.partialorder %v11323_v24, %v2615_v17  ;;  %v3556_v24 = vrot.slane %v11864_v35, %v11224_v32 }
 0x53d   :  { %3254 = vperm.xlu0 %9765, %v2961_v57   ;;  %v2965_v26 = vsel %vm2830_vm15, %v15969_v39, 16  ;;  %v2974_v54 = vsel %vm2839_vm0, %v15961_v33, 16  ;;  %v3569_v35 = vrot.slane %v11848_v55, %v11212_v12  ;;  %v3421_v55 = vrot.slane %v11944_v43, %v11224_v32 }
 0x53e   :  { %v12078_v3 = vpop.permute.xlu1 %3065  ;;  %v3425_v43 = vrot.slane %v11938_v15, %v11212_v12 }
 0x53f   :  { %3263 = vperm.xlu1 %9766, %v2964_v58   ;;  %v16095_v58 = vld [vmem:[#allocation147_spill] sm:$0xff] }
 0x540   :  { %v12084_v21 = vpop.permute.xlu0 %3062  ;;  %vm2832_vm1 = vcmp.le.f32.partialorder %v16095_v58, %v2603_v11  ;;  %v2970_v11 = vsel %vm2835_vm12, %v15961_v33, 16  ;;  %v3426_v15 = vsel %vm1751_vm3, %v3425_v43, %v3421_v55 }
 0x541   :  { %3260 = vperm.xlu0 %9765, %v2963_v50   ;;  %v2967_v1 = vsel %vm2832_vm1, %v15969_v39, 16  ;;  %vm2871_vm1 = vcmp.le.f32.partialorder %v16098_v31, %v2679_v36 }
 0x542   :  { %v12088_v57 = vpop.permute.xlu1 %3071  ;;  %v3006_v31 = vsel %vm2871_vm1, %v15961_v33, 16  ;;  %v3412_v33 = vrot.slane %v11934_v23, %v11224_v32  ;;  %v3565_v23 = vrot.slane %v11874_v51, %v11224_v32  ;;  %v3574_v51 = vrot.slane %v11884_v8, %v11224_v32 }
 0x543   :  { %3269 = vperm.xlu1 %9766, %v2966_v4   ;;  %v16096_v4 = vld [vmem:[#allocation150_spill] sm:$0xff]  ;;  %v3457_v8 = vrot.slane %v11984_v41, %v11224_v32 }
 0x544   :  { %v12094_v28 = vpop.permute.xlu0 %3068  ;;  %vm2834_vm13 = vcmp.le.f32.partialorder %v16096_v4, %v2607_v49  ;;  %v3547_v49 = vrot.slane %v11854_v62, %v11224_v32  ;;  %v16099_v62 = vld [vmem:[#allocation136_spill] sm:$0xff] }
 0x545   :  { %3266 = vperm.xlu0 %9765, %v2965_v26   ;;  %vm2870_vm12 = vcmp.le.f32.partialorder %v16099_v62, %v2679_v36  ;;  %v3560_v36 = vrot.slane %v11838_v0, %v11212_v12 }
 0x546   :  { %v12098_v50 = vpop.permute.xlu1 %3077  ;;  %v3552_v48 = vsel %vm1751_vm3, %v3551_v61, %v3547_v49  ;;  %v3578_v49 = vrot.slane %v11858_v27, %v11212_v12 }
 0x547   :  { %3275 = vperm.xlu1 %9766, %v2968_v2   ;;  %v2969_v2 = vsel %vm2834_vm13, %v15969_v39, 16  ;;  %v3561_v27 = vsel %vm1751_vm3, %v3560_v36, %v3556_v24  ;;  %v3452_v36 = vrot.slane %v11968_v56, %v11212_v12 }
 0x548   :  { %v12104_v19 = vpop.permute.xlu0 %3074 }
 0x549   :  { %3272 = vperm.xlu0 %9765, %v2967_v1   ;;  %v16097_v1 = vld [vmem:[#allocation153_spill] sm:$0xff] }
 0x54a   :  { %v12108_v26 = vpop.permute.xlu1 %3083  ;;  %vm2836_vm15 = vcmp.le.f32.partialorder %v16097_v1, %v2611_v63  ;;  %v16100_v1 = vld [vmem:[#allocation156_spill] sm:$0xff] }
 0x54b   :  { %3281 = vperm.xlu1 %9766, %v2970_v11   ;;  %v2971_v63 = vsel %vm2836_vm15, %v15969_v39, 16  ;;  %vm2838_vm13 = vcmp.le.f32.partialorder %v16100_v1, %v2615_v17  ;;  %v3005_v17 = vsel %vm2870_vm12, %v15969_v39, 16 }
 0x54c   :  { %v12116_v58 = vpop.permute.xlu0 %3080  ;;  %v2973_v0 = vsel %vm2838_vm13, %v15969_v39, 16  ;;  %v3416_v39 = vrot.slane %v11928_v14, %v11212_v12 }
 0x54d   :  { %3278 = vperm.xlu0 %9765, %v2969_v2   ;;  %v3542_v2 = vrot.slane %v11818_v5, %v11212_v12  ;;  %v3403_v5 = vrot.slane %v11924_v46, %v11224_v32  ;;  %v3398_v46 = vrot.slane %v11908_v16, %v11212_v12  ;;  %v3394_v16 = vrot.slane %v11898_v13, %v11224_v32 }
 0x54e   :  { %v12122_v4 = vpop.permute.xlu1 %3089  ;;  %v3417_v14 = vsel %vm1751_vm3, %v3416_v39, %v3412_v33  ;;  %v3448_v13 = vrot.slane %v11974_v29, %v11224_v32  ;;  %v3570_v33 = vsel %vm1751_vm3, %v3569_v35, %v3565_v23  ;;  %v3601_v35 = vrot.slane %v11914_v42, %v11224_v32 }
 0x54f   :  { %3287 = vperm.xlu1 %9766, %v2972_v22   ;;  %v3543_v62 = vsel %vm1751_vm3, %v3542_v2, %v3538_v20  ;;  %v3430_v2 = vrot.slane %v11954_v30, %v11224_v32  ;;  %v3434_v30 = vrot.slane %v11948_v38, %v11212_v12 }
 0x550   :  { %v12131_v11 = vpop.permute.xlu0 %3086  ;;  %v3981_v20 = vsel %vm2320_vm4, %v3552_v48, %v3543_v62  ;;  %v3439_v48 = vrot.slane %v11964_v25, %v11224_v32  ;;  %v3443_v25 = vrot.slane %v11958_v45, %v11212_v12  ;;  %v3453_v56 = vsel %vm1751_vm3, %v3452_v36, %v3448_v13 }
 0x551   :  { %3284 = vperm.xlu0 %9765, %v2971_v63   ;;  %v3407_v63 = vrot.slane %v11918_v52, %v11212_v12  ;;  %v3435_v29 = vsel %vm1751_vm3, %v3434_v30, %v3430_v2  ;;  %v3982_v39 = vsel %vm2322_vm5, %v3561_v27, %v3981_v20  ;;  %v3605_v20 = vrot.slane %v11888_v9, %v11212_v12  ;;  %v16102_v9 = vld [vmem:[#allocation82_spill] sm:$0xff] }
 0x552   :  { %v12141_v22 = vpop.permute.xlu1 %3095  ;;  %v3444_v41 = vsel %vm1751_vm3, %v3443_v25, %v3439_v48  ;;  %v3610_v27 = vrot.slane %v11994_v60, %v11224_v32  ;;  %v3475_v60 = vrot.slane %v12084_v21, %v11224_v32  ;;  %v16103_v25 = vld [vmem:[#allocation105_spill] sm:$0xff]  ;;  %v3479_v21 = vrot.slane %v12078_v3, %v11212_v12 }
 0x553   :  { %3293 = vperm.xlu1 %9766, %v2974_v54   ;;  %v3408_v52 = vsel %vm1751_vm3, %v3407_v63, %v3403_v5  ;;  %v3399_v54 = vsel %vm1751_vm3, %v3398_v46, %v3394_v16  ;;  %v3592_v5 = vrot.slane %v11904_v18, %v11224_v32  ;;  %v3596_v18 = vrot.slane %v11878_v44, %v11212_v12 }
 0x554   :  { %v12157_v61 = vpop.permute.xlu0 %3092  ;;  %v3967_v38 = vsel %vm2320_vm4, %v3408_v52, %v3399_v54  ;;  %v3579_v63 = vsel %vm1751_vm3, %v3578_v49, %v3574_v51  ;;  %v3983_v16 = vsel %vm2324_vm6, %v3570_v33, %v3982_v39  ;;  %v16101_v51 = vld [vmem:[#allocation85_spill] sm:$0xff]  ;;  %v12249_v13 = vsel %vm1751_vm3, %v3605_v20, %v3601_v35  ;;  %v16106_v35 = vld [vmem:[#allocation96_spill] sm:$0xff] }
 0x555   :  { %3290 = vperm.xlu0 %9765, %v2973_v0   ;;  %v3968_v45 = vsel %vm2322_vm5, %v3417_v14, %v3967_v38  ;;  %v3597_v44 = vsel %vm1751_vm3, %v3596_v18, %v3592_v5  ;;  %v3984_v52 = vsel %vm2326_vm7, %v3579_v63, %v3983_v16  ;;  %v3619_v14 = vrot.slane %v16101_v51, %v11224_v32 }
 0x556   :  { %v12174_v1 = vpop.permute.xlu1 %3101  ;;  %v3969_v0 = vsel %vm2324_vm6, %v3426_v15, %v3968_v45  ;;  %v3614_v54 = vrot.slane %v16102_v9, %v11212_v12  ;;  %v3466_v45 = vrot.slane %v12074_v7, %v11224_v32  ;;  %v3470_v7 = vrot.slane %v12068_v40, %v11212_v12 }
 0x557   :  { %3389 = vperm.xlu1 %9766, %v3006_v31   ;;  %v3583_v31 = vrot.slane %v11894_v6, %v11224_v32  ;;  %v3587_v6 = vrot.slane %v11868_v53, %v11212_v12  ;;  %v3970_v55 = vsel %vm2326_vm7, %v3435_v29, %v3969_v0  ;;  %v3484_v29 = vrot.slane %v12094_v28, %v11224_v32  ;;  %v16105_v28 = vld [vmem:[#allocation87_spill] sm:$0xff] }
 0x558   :  { %v12190_v24 = vpop.permute.xlu0 %3098  ;;  %v3971_v23 = vsel %vm2328_vm8, %v3444_v41, %v3970_v55  ;;  %v3615_v5 = vsel %vm1751_vm3, %v3614_v54, %v3610_v27  ;;  %v3493_v41 = vrot.slane %v12104_v19, %v11224_v32  ;;  %v3632_v33 = vrot.slane %v16105_v28, %v11212_v12  ;;  %v16108_v27 = vld [vmem:[#allocation92_spill] sm:$0xff] }
 0x559   :  { %3386 = vperm.xlu0 %9765, %v3005_v17   ;;  %v3461_v17 = vrot.slane %v11978_v34, %v11212_v12  ;;  %v3588_v53 = vsel %vm1751_vm3, %v3587_v6, %v3583_v31  ;;  %v3972_v49 = vsel %vm2330_vm9, %v3453_v56, %v3971_v23  ;;  %v16104_v31 = vld [vmem:[#allocation90_spill] sm:$0xff]  ;;  %v3488_v0 = vrot.slane %v12088_v57, %v11212_v12 }
 0x55a   :  { %v12204_v62 = vpop.permute.xlu1 %3299  ;;  %v3985_v48 = vsel %vm2328_vm8, %v3588_v53, %v3984_v52  ;;  %v3628_v38 = vrot.slane %v16104_v31, %v11224_v32  ;;  %v3502_v56 = vrot.slane %v12116_v58, %v11224_v32  ;;  %v3480_v3 = vsel %vm1751_vm3, %v3479_v21, %v3475_v60  ;;  %v16111_v21 = vld [vmem:[#allocation154_spill] sm:$0xff] }
 0x55b   :  { %v3462_v34 = vsel %vm1751_vm3, %v3461_v17, %v3457_v8  ;;  %v12246_v30 = vsel %vm2330_vm9, %v3597_v44, %v3985_v48  ;;  %v3623_v8 = vrot.slane %v16103_v25, %v11212_v12  ;;  %v3497_v19 = vrot.slane %v12098_v50, %v11212_v12  ;;  %v16107_v44 = vld [vmem:[#allocation148_spill] sm:$0xff] }
 0x55c   :  { %v12217_v46 = vpop.permute.xlu0 %3296  ;;  %v3973_v42 = vsel %vm2332_vm10, %v3462_v34, %v3972_v49  ;;  %v3511_v18 = vrot.slane %v12131_v11, %v11224_v32  ;;  %v3633_v55 = vsel %vm1751_vm3, %v3632_v33, %v3628_v38  ;;  %v3489_v57 = vsel %vm1751_vm3, %v3488_v0, %v3484_v29 }
 0x55d   :  { %v12264_v36 = vsel %vm2391_vm11, %v3973_v42, 2147483647  ;;  %v3624_v6 = vsel %vm1751_vm3, %v3623_v8, %v3619_v14  ;;  %v3506_v58 = vrot.slane %v12108_v26, %v11212_v12  ;;  %v3520_v40 = vrot.slane %v12157_v61, %v11224_v32  ;;  %v16109_v14 = vld [vmem:[#allocation145_spill] sm:$0xff] }
 0x55e   :  { %v12229_v2 = vpop.permute.xlu1 %3305  ;;  %v3471_v34 = vsel %vm1751_vm3, %v3470_v7, %v3466_v45  ;;  %v3498_v39 = vsel %vm1751_vm3, %v3497_v19, %v3493_v41  ;;  %v3515_v50 = vrot.slane %v12122_v4, %v11212_v12  ;;  %v3529_v11 = vrot.slane %v12190_v24, %v11224_v32 }
 0x55f   :  { %v3637_v23 = vrot.slane %v16106_v35, %v11224_v32  ;;  %v3974_v26 = vsel %vm2320_vm4, %v3480_v3, %v3471_v34  ;;  %v3507_v16 = vsel %vm1751_vm3, %v3506_v58, %v3502_v56  ;;  %v3524_v61 = vrot.slane %v12141_v22, %v11212_v12 }
 0x560   :  { %v12239_v43 = vpop.permute.xlu0 %3302  ;;  %v3646_v49 = vrot.slane %v16107_v44, %v11224_v32  ;;  %v3975_v4 = vsel %vm2322_vm5, %v3489_v57, %v3974_v26  ;;  %v3516_v52 = vsel %vm1751_vm3, %v3515_v50, %v3511_v18  ;;  %v3533_v24 = vrot.slane %v12174_v1, %v11212_v12 }
 0x561   :  { %v3641_v42 = vrot.slane %v16108_v27, %v11212_v12  ;;  %v3655_v48 = vrot.slane %v12044_v37, %v11224_v32  ;;  %v3976_v22 = vsel %vm2324_vm6, %v3498_v39, %v3975_v4  ;;  %v3525_v51 = vsel %vm1751_vm3, %v3524_v61, %v3520_v40  ;;  %v16110_v37 = vld [vmem:[#allocation151_spill] sm:$0xff] }
 0x562   :  { %v12255_v15 = vpop.permute.xlu1 %3311  ;;  %v3650_v9 = vrot.slane %v16109_v14, %v11212_v12  ;;  %v3664_v54 = vrot.slane %v12054_v47, %v11224_v32  ;;  %v3977_v1 = vsel %vm2326_vm7, %v3507_v16, %v3976_v22  ;;  %v3534_v60 = vsel %vm1751_vm3, %v3533_v24, %v3529_v11 }
 0x563   :  { %v3642_v8 = vsel %vm1751_vm3, %v3641_v42, %v3637_v23  ;;  %v3659_v31 = vrot.slane %v16110_v37, %v11212_v12  ;;  %v3673_v38 = vrot.slane %v12064_v10, %v11224_v32  ;;  %v3978_v29 = vsel %vm2328_vm8, %v3516_v52, %v3977_v1 }
 0x564   :  { %v12273_v17 = vpop.permute.xlu0 %3308  ;;  %v3988_v45 = vsel %vm2320_vm4, %v3624_v6, %v3615_v5  ;;  %v3651_v47 = vsel %vm1751_vm3, %v3650_v9, %v3646_v49  ;;  %v3668_v41 = vrot.slane %v16111_v21, %v11212_v12  ;;  %v3979_v28 = vsel %vm2330_vm9, %v3525_v51, %v3978_v29 }
 0x565   :  { %v3989_v0 = vsel %vm2322_vm5, %v3633_v55, %v3988_v45  ;;  %v3660_v56 = vsel %vm1751_vm3, %v3659_v31, %v3655_v48  ;;  %v3677_v10 = vrot.slane %v12058_v59, %v11212_v12  ;;  %v3980_v7 = vsel %vm2332_vm10, %v3534_v60, %v3979_v28 }
 0x566   :  { %v12289_v63 = vpop.permute.xlu1 %3317  ;;  %v3990_v5 = vsel %vm2324_vm6, %v3642_v8, %v3989_v0  ;;  %v3669_v6 = vsel %vm1751_vm3, %v3668_v41, %v3664_v54  ;;  %v3987_v19 = vsel %vm2332_vm10, %v12249_v13, %v12246_v30  ;;  %v4025_v59 = vshra.s32 %v12264_v36, 16 }
 0x567   :  { %v3991_v18 = vsel %vm2326_vm7, %v3651_v47, %v3990_v5  ;;  %v3678_v55 = vsel %vm1751_vm3, %v3677_v10, %v3673_v38  ;;  %v12363_v40 = vsel %vm2391_vm11, %v3980_v7, 2147483647  ;;  %v12367_v39 = vsel %vm2391_vm11, %v3987_v19, 2147483647 }
 0x568   :  { %v12303_v53 = vpop.permute.xlu0 %3314  ;;  %v3992_v57 = vsel %vm2328_vm8, %v3660_v56, %v3991_v18  ;;  %v4040_v13 = vshra.s32 %v12363_v40, 16  ;;  %v12375_v35 = vcvt.s32.f32 %v4025_v59  ;;  %v4055_v23 = vshra.s32 %v12367_v39, 16 }
 0x569   :  { %v3993_v34 = vsel %vm2330_vm9, %v3669_v6, %v3992_v57  ;;  %v3835_v14 = vrot.slane %v12239_v43, %v11224_v32  ;;  %v3844_v9 = vrot.slane %v12273_v17, %v11224_v32  ;;  %v3826_v1 = vrot.slane %v12217_v46, %v11224_v32 }
 0x56a   :  { %v12317_v20 = vpop.permute.xlu1 %3323  ;;  %v3994_v30 = vsel %vm2332_vm10, %v3678_v55, %v3993_v34  ;;  %v12384_v61 = vcvt.s32.f32 %v4040_v13  ;;  %v12386_v49 = vcvt.s32.f32 %v4055_v23  ;;  %v3839_v60 = vrot.slane %v12229_v2, %v11212_v12 }
 0x56b   :  { %v12379_v26 = vsel %vm2391_vm11, %v3994_v30, 2147483647  ;;  %v3853_v8 = vrot.slane %v12303_v53, %v11224_v32  ;;  %v3848_v37 = vrot.slane %v12255_v15, %v11212_v12  ;;  %v3830_v43 = vrot.slane %v12204_v62, %v11212_v12 }
 0x56c   :  { %v12331_v25 = vpop.permute.xlu0 %3320  ;;  %v4070_v4 = vshra.s32 %v12379_v26, 16  ;;  %v3840_v38 = vsel %vm1751_vm3, %v3839_v60, %v3835_v14  ;;  %v3857_v17 = vrot.slane %v12289_v63, %v11212_v12  ;;  %v3866_v62 = vrot.slane %v12317_v20, %v11212_v12 }
 0x56d   :  { %v3849_v46 = vsel %vm1751_vm3, %v3848_v37, %v3844_v9  ;;  %v3862_v2 = vrot.slane %v12331_v25, %v11224_v32  ;;  %v3831_v53 = vsel %vm1751_vm3, %v3830_v43, %v3826_v1 }
 0x56e   :  { %v12344_v33 = vpop.permute.xlu1 %3329  ;;  %v12391_v27 = vcvt.s32.f32 %v4070_v4  ;;  %v3858_v45 = vsel %vm1751_vm3, %v3857_v17, %v3853_v8  ;;  %v4009_v47 = vsel %vm2320_vm4, %v3840_v38, %v3831_v53 }
 0x56f   :  { %v4010_v63 = vsel %vm2322_vm5, %v3849_v46, %v4009_v47  ;;  %v3875_v41 = vrot.slane %v12344_v33, %v11212_v12  ;;  %v3867_v0 = vsel %vm1751_vm3, %v3866_v62, %v3862_v2 }
 0x570   :  { %v3327_v3 = vpop.permute.xlu0 %3326  ;;  %v4011_v28 = vsel %vm2324_vm6, %v3858_v45, %v4010_v63 }
 0x571   :  { %v3871_v15 = vrot.slane %v3327_v3, %v11224_v32  ;;  %v4012_v14 = vsel %vm2326_vm7, %v3867_v0, %v4011_v28 }
 0x572   :  { %v12359_v58 = vpop.permute.xlu1 %3335 }
 0x573   :  { %v3876_v7 = vsel %vm1751_vm3, %v3875_v41, %v3871_v15  ;;  %v3884_v13 = vrot.slane %v12359_v58, %v11212_v12 }
 0x574   :  { %v12369_v50 = vpop.permute.xlu0 %3332  ;;  %v4013_v60 = vsel %vm2328_vm8, %v3876_v7, %v4012_v14 }
 0x575   :  { %v3880_v33 = vrot.slane %v12369_v50, %v11224_v32 }
 0x576   :  { %v12373_v11 = vpop.permute.xlu1 %3341 }
 0x577   :  { %v3893_v50 = vrot.slane %v12373_v11, %v11212_v12 }
 0x578   :  { %v12381_v16 = vpop.permute.xlu0 %3338  ;;  %4028 = vmin.xlane.f32.xlu0 %v12375_v35 }
 0x579   :  { %v3889_v3 = vrot.slane %v12381_v16, %v11224_v32 }
 0x57a   :  { %v3204_v44 = vpop.permute.xlu1 %3203 }
 0x57b   :  { %4043 = vmin.xlane.f32.xlu1 %v12384_v61  ;;  %v3686_v57 = vrot.slane %v3204_v44, %v11212_v12  ;;  %v3894_v9 = vsel %vm1751_vm3, %v3893_v50, %v3889_v3 }
 0x57c   :  { %v3201_v52 = vpop.permute.xlu0 %3200  ;;  %4058 = vmin.xlane.f32.xlu0 %v12386_v49 }
 0x57d   :  { %v3682_v5 = vrot.slane %v3201_v52, %v11224_v32 }
 0x57e   :  { %v3210_v24 = vpop.permute.xlu1 %3209 }
 0x57f   :  { %v3695_v20 = vrot.slane %v3210_v24, %v11212_v12  ;;  %v3687_v52 = vsel %vm1751_vm3, %v3686_v57, %v3682_v5 }
 0x580   :  { %v3207_v42 = vpop.permute.xlu0 %3206  ;;  %4073 = vmin.xlane.f32.xlu0 %v12391_v27 }
 0x581   :  { %v3691_v25 = vrot.slane %v3207_v42, %v11224_v32 }
 0x582   :  { %v3216_v48 = vpop.permute.xlu1 %3215 }
 0x583   :  { %v3704_v19 = vrot.slane %v3216_v48, %v11212_v12  ;;  %v3696_v59 = vsel %vm1751_vm3, %v3695_v20, %v3691_v25  ;;  %v3885_v48 = vsel %vm1751_vm3, %v3884_v13, %v3880_v33 }
 0x584   :  { %v3213_v22 = vpop.permute.xlu0 %3212  ;;  %v3995_v58 = vsel %vm2320_vm4, %v3696_v59, %v3687_v52  ;;  %v4014_v43 = vsel %vm2330_vm9, %v3885_v48, %v4013_v60 }
 0x585   :  { %v3700_v56 = vrot.slane %v3213_v22, %v11224_v32  ;;  %v4015_v53 = vsel %vm2332_vm10, %v3894_v9, %v4014_v43 }
 0x586   :  { %v3222_v51 = vpop.permute.xlu1 %3221  ;;  %v12475_v63 = vsel %vm2391_vm11, %v4015_v53, 2147483647 }
 0x587   :  { %v3713_v34 = vrot.slane %v3222_v51, %v11212_v12  ;;  %v3705_v23 = vsel %vm1751_vm3, %v3704_v19, %v3700_v56  ;;  %v4115_v56 = vshra.s32 %v12475_v63, 16 }
 0x588   :  { %v3219_v54 = vpop.permute.xlu0 %3218 }
 0x589   :  { %v3709_v6 = vrot.slane %v3219_v54, %v11224_v32  ;;  %v3996_v54 = vsel %vm2322_vm5, %v3705_v23, %v3995_v58  ;;  %v12482_v5 = vcvt.s32.f32 %v4115_v56 }
 0x58a   :  { %v3228_v31 = vpop.permute.xlu1 %3227 }
 0x58b   :  { %v3722_v16 = vrot.slane %v3228_v31, %v11212_v12  ;;  %v3714_v44 = vsel %vm1751_vm3, %v3713_v34, %v3709_v6 }
 0x58c   :  { %v3225_v29 = vpop.permute.xlu0 %3224  ;;  %v3997_v8 = vsel %vm2324_vm6, %v3714_v44, %v3996_v54 }
 0x58d   :  { %v3718_v18 = vrot.slane %v3225_v29, %v11224_v32 }
 0x58e   :  { %v3234_v21 = vpop.permute.xlu1 %3233 }
 0x58f   :  { %v3731_v24 = vrot.slane %v3234_v21, %v11212_v12  ;;  %v3723_v22 = vsel %vm1751_vm3, %v3722_v16, %v3718_v18 }
 0x590   :  { %v3231_v10 = vpop.permute.xlu0 %3230  ;;  %v3998_v38 = vsel %vm2326_vm7, %v3723_v22, %v3997_v8 }
 0x591   :  { %v3727_v30 = vrot.slane %v3231_v10, %v11224_v32 }
 0x592   :  { %v3240_v55 = vpop.permute.xlu1 %3239 }
 0x593   :  { %v3740_v11 = vrot.slane %v3240_v55, %v11212_v12  ;;  %v3732_v1 = vsel %vm1751_vm3, %v3731_v24, %v3727_v30 }
 0x594   :  { %v3237_v4 = vpop.permute.xlu0 %3236  ;;  %v3999_v2 = vsel %vm2328_vm8, %v3732_v1, %v3998_v38 }
 0x595   :  { %v3736_v42 = vrot.slane %v3237_v4, %v11224_v32 }
 0x596   :  { %v3246_v51 = vpop.permute.xlu1 %3245 }
 0x597   :  { %v3741_v37 = vsel %vm1751_vm3, %v3740_v11, %v3736_v42  ;;  %v3749_v17 = vrot.slane %v3246_v51, %v11212_v12 }
 0x598   :  { %v3243_v31 = vpop.permute.xlu0 %3242  ;;  %v4000_v45 = vsel %vm2330_vm9, %v3741_v37, %v3999_v2 }
 0x599   :  { %v3745_v46 = vrot.slane %v3243_v31, %v11224_v32 }
 0x59a   :  { %v3348_v29 = vpop.permute.xlu1 %3347 }
 0x59b   :  { %v3750_v15 = vsel %vm1751_vm3, %v3749_v17, %v3745_v46  ;;  %v3902_v48 = vrot.slane %v3348_v29, %v11212_v12 }
 0x59c   :  { %v3345_v47 = vpop.permute.xlu0 %3344  ;;  %v4001_v62 = vsel %vm2332_vm10, %v3750_v15, %v4000_v45 }
 0x59d   :  { %v12472_v21 = vsel %vm2391_vm11, %v4001_v62, 2147483647  ;;  %v3898_v44 = vrot.slane %v3345_v47, %v11224_v32 }
 0x59e   :  { %v3354_v41 = vpop.permute.xlu1 %3353  ;;  %v4085_v25 = vshra.s32 %v12472_v21, 16 }
 0x59f   :  { %v3911_v22 = vrot.slane %v3354_v41, %v11212_v12  ;;  %v3903_v51 = vsel %vm1751_vm3, %v3902_v48, %v3898_v44 }
 0x5a0   :  { %v3351_v28 = vpop.permute.xlu0 %3350  ;;  %v12478_v0 = vcvt.s32.f32 %v4085_v25 }
 0x5a1   :  { %v3907_v42 = vrot.slane %v3351_v28, %v11224_v32 }
 0x5a2   :  { %4088 = vmin.xlane.f32.xlu1 %v12478_v0  ;;  %v3360_v10 = vpop.permute.xlu1 %3359 }
 0x5a3   :  { %v3912_v1 = vsel %vm1751_vm3, %v3911_v22, %v3907_v42  ;;  %v3920_v31 = vrot.slane %v3360_v10, %v11212_v12 }
 0x5a4   :  { %v3357_v7 = vpop.permute.xlu0 %3356  ;;  %v4016_v22 = vsel %vm2320_vm4, %v3912_v1, %v3903_v51 }
 0x5a5   :  { %v3916_v14 = vrot.slane %v3357_v7, %v11224_v32 }
 0x5a6   :  { %4118 = vmin.xlane.f32.xlu1 %v12482_v5  ;;  %v3366_v20 = vpop.permute.xlu1 %3365 }
 0x5a7   :  { %v3921_v15 = vsel %vm1751_vm3, %v3920_v31, %v3916_v14  ;;  %v3929_v47 = vrot.slane %v3366_v20, %v11212_v12 }
 0x5a8   :  { %v3363_v6 = vpop.permute.xlu0 %3362 }
 0x5a9   :  { %v3925_v43 = vrot.slane %v3363_v6, %v11224_v32 }
 0x5aa   :  { %v12485_v33 = vpop.permute.xlu1 %3371 }
 0x5ac   :  { %v12487_v3 = vpop.permute.xlu0 %3368 }
 0x5ad   :  { %v3934_v6 = vrot.slane %v12487_v3, %v11224_v32 }
 0x5ae   :  { %v12489_v19 = vpop.permute.xlu1 %3377 }
 0x5af   :  { %v3947_v42 = vrot.slane %v12489_v19, %v11212_v12 }
 0x5b0   :  { %v12491_v18 = vpop.permute.xlu0 %3374 }
 0x5b2   :  { %v12493_v55 = vpop.permute.xlu1 %3383 }
 0x5b4   :  { %v12495_v57 = vpop.permute.xlu0 %3380 }
 0x5b5   :  { %v3952_v3 = vrot.slane %v12495_v57, %v11224_v32  ;;  %v3956_v57 = vrot.slane %v12493_v55, %v11212_v12 }
 0x5b6   :  { %v3252_v59 = vpop.permute.xlu1 %3251 }
 0x5b7   :  { %v3758_v2 = vrot.slane %v3252_v59, %v11212_v12  ;;  %v3957_v51 = vsel %vm1751_vm3, %v3956_v57, %v3952_v3 }
 0x5b8   :  { %v3249_v34 = vpop.permute.xlu0 %3248 }
 0x5b9   :  { %v3754_v60 = vrot.slane %v3249_v34, %v11224_v32 }
 0x5ba   :  { %v3258_v30 = vpop.permute.xlu1 %3257 }
 0x5bb   :  { %v3767_v8 = vrot.slane %v3258_v30, %v11212_v12  ;;  %v3759_v28 = vsel %vm1751_vm3, %v3758_v2, %v3754_v60 }
 0x5bc   :  { %v3255_v13 = vpop.permute.xlu0 %3254 }
 0x5bd   :  { %v3763_v11 = vrot.slane %v3255_v13, %v11224_v32  ;;  %v3930_v13 = vsel %vm1751_vm3, %v3929_v47, %v3925_v43 }
 0x5be   :  { %v3264_v50 = vpop.permute.xlu1 %3263 }
 0x5bf   :  { %v3776_v38 = vrot.slane %v3264_v50, %v11212_v12  ;;  %v3768_v29 = vsel %vm1751_vm3, %v3767_v8, %v3763_v11  ;;  %v3943_v50 = vrot.slane %v12491_v18, %v11224_v32 }
 0x5c0   :  { %v3261_v23 = vpop.permute.xlu0 %3260  ;;  %v4002_v59 = vsel %vm2320_vm4, %v3768_v29, %v3759_v28  ;;  %v4054_v28 = vand.u32 65535, %v12367_v39 }
 0x5c1   :  { %v3772_v9 = vrot.slane %v3261_v23, %v11224_v32  ;;  %v3948_v19 = vsel %vm1751_vm3, %v3947_v42, %v3943_v50 }
 0x5c2   :  { %v3270_v16 = vpop.permute.xlu1 %3269 }
 0x5c3   :  { %v3785_v53 = vrot.slane %v3270_v16, %v11212_v12  ;;  %v3777_v62 = vsel %vm1751_vm3, %v3776_v38, %v3772_v9  ;;  %v4017_v9 = vsel %vm2322_vm5, %v3921_v15, %v4016_v22 }
 0x5c4   :  { %v3267_v4 = vpop.permute.xlu0 %3266  ;;  %v4003_v23 = vsel %vm2322_vm5, %v3777_v62, %v4002_v59  ;;  %v4018_v8 = vsel %vm2324_vm6, %v3930_v13, %v4017_v9  ;;  %v4056_v59 = vcvt.s32.f32 %v4054_v28 }
 0x5c5   :  { %v3781_v37 = vrot.slane %v3267_v4, %v11224_v32  ;;  %v3938_v4 = vrot.slane %v12485_v33, %v11212_v12 }
 0x5c6   :  { %v3276_v52 = vpop.permute.xlu1 %3275 }
 0x5c7   :  { %v3794_v41 = vrot.slane %v3276_v52, %v11212_v12  ;;  %v3786_v56 = vsel %vm1751_vm3, %v3785_v53, %v3781_v37  ;;  %v3939_v33 = vsel %vm1751_vm3, %v3938_v4, %v3934_v6 }
 0x5c8   :  { %v3273_v24 = vpop.permute.xlu0 %3272  ;;  %v4004_v52 = vsel %vm2324_vm6, %v3786_v56, %v4003_v23  ;;  %v4019_v55 = vsel %vm2326_vm7, %v3939_v33, %v4018_v8 }
 0x5c9   :  { %v3790_v17 = vrot.slane %v3273_v24, %v11224_v32 }
 0x5ca   :  { %v3282_v58 = vpop.permute.xlu1 %3281 }
 0x5cb   :  { %v3803_v10 = vrot.slane %v3282_v58, %v11212_v12  ;;  %v3795_v20 = vsel %vm1751_vm3, %v3794_v41, %v3790_v17  ;;  %v4020_v17 = vsel %vm2328_vm8, %v3948_v19, %v4019_v55  ;;  %v9976_v55 = vmov 0.0  }
 0x5cc   :  { %v3279_v54 = vpop.permute.xlu0 %3278  ;;  %v4005_v18 = vsel %vm2326_vm7, %v3795_v20, %v4004_v52  ;;  %v4021_v2 = vsel %vm2330_vm9, %v3957_v51, %v4020_v17  ;;  %v4069_v20 = vand.u32 65535, %v12379_v26 }
 0x5cd   :  { %v3799_v45 = vrot.slane %v3279_v54, %v11224_v32 }
 0x5ce   :  { %v3288_v46 = vpop.permute.xlu1 %3287  ;;  %v4071_v39 = vcvt.s32.f32 %v4069_v20  ;;  %v9788_v20 = vld [vmem:[%s15566_s3 + $0x10] sm:$0xff]  }
 0x5cf   :  { %v3812_v34 = vrot.slane %v3288_v46, %v11212_v12  ;;  %v3804_v16 = vsel %vm1751_vm3, %v3803_v10, %v3799_v45  ;;  %9505 = vmatprep.subr.bf16.mxu1 %v9788_v20 }
 0x5d0   :  { %v3285_v25 = vpop.permute.xlu0 %3284  ;;  %v4006_v11 = vsel %vm2328_vm8, %v3804_v16, %v4005_v18  ;;  %9506 = vmatpush3.bf16.msra.mxu1 %v9788_v20 }
 0x5d1   :  { %v3808_v7 = vrot.slane %v3285_v25, %v11224_v32 }
 0x5d2   :  { %v3294_v30 = vpop.permute.xlu1 %3293 }
 0x5d3   :  { %v3813_v44 = vsel %vm1751_vm3, %v3812_v34, %v3808_v7  ;;  %v3821_v48 = vrot.slane %v3294_v30, %v11212_v12  ;;  %v4084_v30 = vand.u32 65535, %v12472_v21 }
 0x5d4   :  { %v3291_v24 = vpop.permute.xlu0 %3290  ;;  %v4007_v54 = vsel %vm2330_vm9, %v3813_v44, %v4006_v11 }
 0x5d5   :  { %v3817_v58 = vrot.slane %v3291_v24, %v11224_v32  ;;  %v4086_v50 = vcvt.s32.f32 %v4084_v30 }
 0x5d6   :  { %v3390_v14 = vpop.permute.xlu1 %3389 }
 0x5d7   :  { %v3822_v60 = vsel %vm1751_vm3, %v3821_v48, %v3817_v58  ;;  %v3965_v31 = vrot.slane %v3390_v14, %v11212_v12  ;;  %v4024_v12 = vand.u32 65535, %v12264_v36 }
 0x5d8   :  { %v3387_v1 = vpop.permute.xlu0 %3386  ;;  %v4008_v37 = vsel %vm2332_vm10, %v3822_v60, %v4007_v54  ;;  %v16112_v60 = vld [vmem:[#allocation13_spill] sm:$0xff] }
 0x5d9   :  { %v3961_v43 = vrot.slane %v3387_v1, %v11224_v32  ;;  %v4098_v38 = vsel %vm2391_vm11, %v4008_v37, 2147483647  ;;  %v4039_v32 = vand.u32 65535, %v12363_v40  ;;  %v4026_v25 = vcvt.s32.f32 %v4024_v12 }
 0x5da   :  { %v4100_v46 = vshra.s32 %v4098_v38, 16  ;;  %v4099_v4 = vand.u32 65535, %v4098_v38 }
 0x5db   :  { %v3966_v29 = vsel %vm1751_vm3, %v3965_v31, %v3961_v43  ;;  %v4041_v7 = vcvt.s32.f32 %v4039_v32 }
 0x5dc   :  { %v4102_v53 = vcvt.s32.f32 %v4100_v46  ;;  %v4022_v45 = vsel %vm2332_vm10, %v3966_v29, %v4021_v2  ;;  %v4101_v3 = vcvt.s32.f32 %v4099_v4  ;;  %v12600_v4 = vld [vmem:[%s15566_s3] sm:$0xff]  }
 0x5dd   :  { %v4128_v15 = vsel %vm2391_vm11, %v4022_v45, 2147483647 }
 0x5de   :  { %4103 = vmin.xlane.f32.xlu0 %v4102_v53  ;;  %v4130_v47 = vshra.s32 %v4128_v15, 16  ;;  %v4129_v52 = vand.u32 65535, %v4128_v15 }
 0x5e0   :  { %v4132_v62 = vcvt.s32.f32 %v4130_v47  ;;  %v4131_v24 = vcvt.s32.f32 %v4129_v52 }
 0x5e2   :  { %4133 = vmin.xlane.f32.xlu0 %v4132_v62 }
 0x605   :  { %v4029_v41 = vpop.xlane.xlu0 %4028 }
 0x606   :  { %vm4030_vm4 = vcmp.eq.f32.partialorder %v12375_v35, %v4029_v41 }
 0x607   :  { %v4031_v56 = vsel %vm4030_vm4, %v4026_v25, inf }
 0x608   :  { %4032 = vmin.xlane.f32.xlu1 %v4031_v56  ;;  %v4044_v10 = vpop.xlane.xlu1 %4043 }
 0x609   :  { %v4059_v6 = vpop.xlane.xlu0 %4058  ;;  %vm4045_vm3 = vcmp.eq.f32.partialorder %v12384_v61, %v4044_v10  ;;  %v4114_v61 = vand.u32 65535, %v12475_v63  ;;  %v4050_v42 = vcvt.f32.s32 %v4044_v10 }
 0x60a   :  { %v4046_v34 = vsel %vm4045_vm3, %v4041_v7, inf  ;;  %vm4060_vm5 = vcmp.eq.f32.partialorder %v12386_v49, %v4059_v6  ;;  %v4065_v58 = vcvt.f32.s32 %v4059_v6 }
 0x60b   :  { %4047 = vmin.xlane.f32.xlu0 %v4046_v34  ;;  %v4061_v36 = vsel %vm4060_vm5, %v4056_v59, inf  ;;  %v4116_v23 = vcvt.s32.f32 %v4114_v61  ;;  %v4051_v57 = vshll.u32 %v4050_v42, 16 }
 0x60c   :  { %4062 = vmin.xlane.f32.xlu1 %v4061_v36  ;;  %v4066_v9 = vshll.u32 %v4065_v58, 16 }
 0x60d   :  { %v4074_v40 = vpop.xlane.xlu0 %4073 }
 0x60e   :  { %vm4075_vm6 = vcmp.eq.f32.partialorder %v12391_v27, %v4074_v40  ;;  %v4080_v19 = vcvt.f32.s32 %v4074_v40 }
 0x60f   :  { %v4076_v35 = vsel %vm4075_vm6, %v4071_v39, inf }
 0x610   :  { %4077 = vmin.xlane.f32.xlu0 %v4076_v35  ;;  %v4081_v37 = vshll.u32 %v4080_v19, 16 }
 0x62f   :  { %v4089_v13 = vpop.xlane.xlu1 %4088 }
 0x630   :  { %vm4090_vm7 = vcmp.eq.f32.partialorder %v12478_v0, %v4089_v13  ;;  %v4035_v0 = vcvt.f32.s32 %v4029_v41  ;;  %v4095_v15 = vcvt.f32.s32 %v4089_v13 }
 0x631   :  { %v4091_v26 = vsel %vm4090_vm7, %v4086_v50, inf }
 0x632   :  { %4092 = vmin.xlane.f32.xlu1 %v4091_v26  ;;  %v4036_v48 = vshll.u32 %v4035_v0, 16  ;;  %v4096_v12 = vshll.u32 %v4095_v15, 16 }
 0x633   :  { %v4119_v49 = vpop.xlane.xlu1 %4118 }
 0x634   :  { %vm4120_vm8 = vcmp.eq.f32.partialorder %v12482_v5, %v4119_v49  ;;  %v4125_v32 = vcvt.f32.s32 %v4119_v49 }
 0x635   :  { %v4121_v16 = vsel %vm4120_vm8, %v4116_v23, inf }
 0x636   :  { %4122 = vmin.xlane.f32.xlu1 %v4121_v16  ;;  %v4126_v10 = vshll.u32 %v4125_v32, 16  ;;  %v9789_v16 = vld [vmem:[%s15566_s3 + $0x18] sm:$0xff]  }
 0x637   :  { %9507 = vmatprep.subr.bf16.mxu1 %v9789_v16 }
 0x638   :  { %9508 = vmatpush3.bf16.msra.mxu1 %v9789_v16 }
 0x639   :  { %9517 = vmatprep.subr.bf16.mxu1 %v12600_v4 }
 0x66b   :  { %v4104_v27 = vpop.xlane.xlu0 %4103 }
 0x66c   :  { %vm4105_vm9 = vcmp.eq.f32.partialorder %v4102_v53, %v4104_v27  ;;  %v4110_v41 = vcvt.f32.s32 %v4104_v27  ;;  %v16113_v27 = vld [vmem:[#allocation14_spill] sm:$0xff] }
 0x66d   :  { %v4106_v21 = vsel %vm4105_vm9, %v4101_v3, inf  ;;  %vm4351_vm5 = vcmp.lt.s32.totalorder %v16113_v27, 2  ;;  %vm4302_vm6 = vcmp.lt.s32.totalorder %v16113_v27, 3  ;;  %vm4579_vm7 = vcmp.lt.s32.totalorder %v16113_v27, 1 }
 0x66e   :  { %4107 = vmin.xlane.f32.xlu0 %v4106_v21  ;;  %v4111_v7 = vshll.u32 %v4110_v41, 16  ;;  %vm4832_vm8 = vcmp.lt.s32.totalorder %v16113_v27, 7  ;;  %vm4979_vm9 = vcmp.lt.s32.totalorder %v16113_v27, 6 }
 0x66f   :  { %v4134_v44 = vpop.xlane.xlu0 %4133 }
 0x670   :  { %vm4135_vm10 = vcmp.eq.f32.partialorder %v4132_v62, %v4134_v44  ;;  %v4140_v6 = vcvt.f32.s32 %v4134_v44 }
 0x671   :  { %v4136_v63 = vsel %vm4135_vm10, %v4131_v24, inf  ;;  %vm5126_vm10 = vcmp.lt.s32.totalorder %v16113_v27, 5 }
 0x672   :  { %4137 = vmin.xlane.f32.xlu0 %v4136_v63  ;;  %v4141_v39 = vshll.u32 %v4140_v6, 16 }
 0x695   :  { %v4033_v18 = vpop.xlane.xlu1 %4032 }
 0x696   :  { %v4034_v5 = vcvt.f32.s32 %v4033_v18 }
 0x698   :  { %v4037_v22 = vadd.s32 %v4036_v48, %v4034_v5  ;;  %v4048_v33 = vpop.xlane.xlu0 %4047 }
 0x699   :  { %v4049_v11 = vcvt.f32.s32 %v4048_v33  ;;  %v4063_v14 = vpop.xlane.xlu1 %4062 }
 0x69a   :  { %v4064_v54 = vcvt.f32.s32 %v4063_v14  ;;  %vm4143_vm14 = vcmp.eq.s32.totalorder %v16112_v60, %v4037_v22 }
 0x69b   :  { %v4052_v8 = vadd.s32 %v4051_v57, %v4049_v11  ;;  %v9144_v31 = vsel %vm4143_vm14, 1.0, %v9976_v55 }
 0x69c   :  { %v4067_v51 = vadd.s32 %v4066_v9, %v4064_v54 }
 0x69d   :  { %vm4144_vm15 = vcmp.eq.s32.totalorder %v16112_v60, %v4052_v8  ;;  %v4078_v1 = vpop.xlane.xlu0 %4077 }
 0x69e   :  { %v9145_v43 = vsel %vm4144_vm15, 1.0, %v9976_v55  ;;  %v4079_v38 = vcvt.f32.s32 %v4078_v1  ;;  %vm4145_vm0 = vcmp.eq.s32.totalorder %v16112_v60, %v4067_v51 }
 0x69f   :  { %v4167_v17 = vpack.c.bf16 %v9145_v43, %v9144_v31  ;;  %v9146_v2 = vsel %vm4145_vm0, 1.0, %v9976_v55 }
 0x6a0   :  { %v4082_v46 = vadd.s32 %v4081_v37, %v4079_v38 }
 0x6a1   :  { %9497 = vmatprep.mubr.msk.bf16.mxu0 %vm2391_vm11, %v4167_v17 }
 0x6a2   :  { %vm4146_vm1 = vcmp.eq.s32.totalorder %v16112_v60, %v4082_v46 }
 0x6a3   :  { %v9147_v29 = vsel %vm4146_vm1, 1.0, %v9976_v55 }
 0x6a4   :  { %v4168_v53 = vpack.c.bf16 %v9147_v29, %v9146_v2 }
 0x6a6   :  { %9498 = vmatmul.mubr.msk.bf16.vlgmr.msra.gmra.mrb[8].mxu0 %vm2391_vm11, %v4168_v53 }
 0x6bf   :  { %v4093_v45 = vpop.xlane.xlu1 %4092 }
 0x6c0   :  { %v4094_v47 = vcvt.f32.s32 %v4093_v45 }
 0x6c2   :  { %v4097_v25 = vadd.s32 %v4096_v12, %v4094_v47 }
 0x6c3   :  { %v4123_v62 = vpop.xlane.xlu1 %4122 }
 0x6c4   :  { %v4124_v28 = vcvt.f32.s32 %v4123_v62  ;;  %vm4147_vm12 = vcmp.eq.s32.totalorder %v16112_v60, %v4097_v25 }
 0x6c5   :  { %v9148_v30 = vsel %vm4147_vm12, 1.0, %v9976_v55 }
 0x6c6   :  { %v4127_v34 = vadd.s32 %v4126_v10, %v4124_v28 }
 0x6c8   :  { %vm4149_vm4 = vcmp.eq.s32.totalorder %v16112_v60, %v4127_v34 }
 0x6c9   :  { %v9150_v26 = vsel %vm4149_vm4, 1.0, %v9976_v55  ;;  %vm6092_vm4 = vcmask 523264  }
 0x6fb   :  { %v4108_v56 = vpop.xlane.xlu0 %4107 }
 0x6fc   :  { %v4109_v59 = vcvt.f32.s32 %v4108_v56 }
 0x6fe   :  { %v4112_v36 = vadd.s32 %v4111_v7, %v4109_v59 }
 0x6ff   :  { %v4138_v40 = vpop.xlane.xlu0 %4137 }
 0x700   :  { %vm4148_vm13 = vcmp.eq.s32.totalorder %v16112_v60, %v4112_v36  ;;  %v4139_v35 = vcvt.f32.s32 %v4138_v40 }
 0x701   :  { %v9149_v13 = vsel %vm4148_vm13, 1.0, %v9976_v55 }
 0x702   :  { %v4169_v50 = vpack.c.bf16 %v9149_v13, %v9148_v30  ;;  %v4142_v61 = vadd.s32 %v4141_v39, %v4139_v35  ;;  %v49_v30 = vadd.s32 24, %v16113_v27  ;;  %v12755_v13 = vadd.s32 4294967294, %v16113_v27 }
 0x704   :  { %vm4150_vm3 = vcmp.eq.s32.totalorder %v16112_v60, %v4142_v61  ;;  %9501 = vmatprep.mubr.msk.bf16.mxu0 %vm2391_vm11, %v4169_v50  ;;  %16114 = vst [vmem:[#allocation157_spill] sm:$0xff] %v12755_v13  ;;  %v12758_v50 = vadd.s32 4294967293, %v16113_v27  ;;  %v12761_v61 = vadd.s32 4294967295, %v16113_v27  ;;  %vm4364_vm14 = vcmp.ge.s32.totalorder %v12755_v13, 0 }
 0x705   :  { %v9151_v49 = vsel %vm4150_vm3, 1.0, %v9976_v55  ;;  %v12772_v16 = vadd.s32 3, %v49_v30 }
 0x706   :  { %v4170_v23 = vpack.c.bf16 %v9151_v49, %v9150_v26  ;;  %16115 = vst [vmem:[#allocation159_spill] sm:$0xff] %v12758_v50  ;;  %16116 = vst [vmem:[#allocation160_spill] sm:$0xff] %v12761_v61  ;;  %v12763_v26 = vadd.s32 1, %v49_v30  ;;  %v12765_v49 = vadd.s32 2, %v49_v30  ;;  %vm4315_vm15 = vcmp.ge.s32.totalorder %v12758_v50, 0 }
 0x707   :  { %vm4592_vm0 = vcmp.ge.s32.totalorder %v12761_v61, 0  ;;  %vm5146_vm13 = vcmp.lt.s32.totalorder %v12772_v16, 32 }
 0x708   :  { %9502 = vmatmul.mubr.msk.bf16.gmra.mrb[12].mxu0 %vm2391_vm11, %v4170_v23  ;;  %16117 = vst [vmem:[#allocation15_spill] sm:$0xff] %v12765_v49  ;;  %vm4852_vm1 = vcmp.lt.s32.totalorder %v12763_v26, 32  ;;  %vm4999_vm12 = vcmp.lt.s32.totalorder %v12765_v49, 32 }
 0x779   :  { %v12604_v3 = vpop.f32.mrb[8].mxu0 }
 0x77a   :  { %v4296_v52 = vrot.slane %v12604_v3, 5  ;;  %v4345_v21 = vrot.slane %v12604_v3, 6  ;;  %v4573_v44 = vrot.slane %v12604_v3, 7  ;;  %v12613_v24 = vpop.f32.mrb[9].mxu0  ;;  %v4826_v63 = vrot.slane %v12604_v3, 1 }
 0x77b   :  { %v12617_v0 = vpop.f32.mrb[10].mxu0  ;;  %v4343_v42 = vrot.slane %v12613_v24, 6  ;;  %v4294_v18 = vrot.slane %v12613_v24, 5  ;;  %v4571_v48 = vrot.slane %v12613_v24, 7  ;;  %v15734_v58 = vrot.slane %v12613_v24, 1 }
 0x77c   :  { %v4297_v5 = vrot.slane %v12617_v0, 5  ;;  %v4346_v22 = vrot.slane %v12617_v0, 6  ;;  %v4574_v33 = vrot.slane %v12617_v0, 7  ;;  %v4827_v57 = vrot.slane %v12617_v0, 1  ;;  %v12627_v11 = vpop.f32.mrb[11].mxu0 }
 0x77d   :  { %v15735_v14 = vrot.slane %v12617_v0, 2  ;;  %v15733_v9 = vrot.slane %v12617_v0, 3  ;;  %v4344_v19 = vrot.slane %v12627_v11, 6  ;;  %v4295_v54 = vrot.slane %v12627_v11, 5 }
 0x77e   :  { %v12637_v60 = vsel %vm4351_vm5, %v4345_v21, %v4346_v22  ;;  %v12643_v8 = vsel %vm4302_vm6, %v4296_v52, %v4297_v5  ;;  %v4572_v51 = vrot.slane %v12627_v11, 7  ;;  %v12650_v1 = vsel %vm4579_vm7, %v4573_v44, %v4574_v33 }
 0x77f   :  { %v12654_v37 = vsel %vm4351_vm5, %v4344_v19, %v4345_v21  ;;  %v12660_v55 = vsel %vm4351_vm5, %v4343_v42, %v4344_v19  ;;  %v12664_v31 = vsel %vm4302_vm6, %v4295_v54, %v4296_v52  ;;  %v12670_v43 = vsel %vm4302_vm6, %v4294_v18, %v4295_v54 }
 0x780   :  { %v4385_v38 = vpack.c.bf16 %v12637_v60, %v12654_v37  ;;  %v12678_v46 = vsel %vm4579_vm7, %v4572_v51, %v4573_v44  ;;  %v12684_v2 = vsel %vm4579_vm7, %v4571_v48, %v4572_v51  ;;  %v4825_v15 = vrot.slane %v12627_v11, 1  ;;  %v16128_v60 = vld [vmem:[#allocation8_spill] sm:$0xff] }
 0x781   :  { %v12697_v47 = vsel %vm4832_vm8, %v4826_v63, %v4827_v57  ;;  %v15732_v62 = vrot.slane %v12613_v24, 2  ;;  %v4972_v12 = vrot.slane %v12627_v11, 2  ;;  %v4973_v32 = vrot.slane %v12604_v3, 2 }
 0x782   :  { %v12704_v41 = vsel %vm4832_vm8, %v4825_v15, %v4826_v63  ;;  %v12710_v25 = vsel %vm4832_vm8, %v15734_v58, %v4825_v15  ;;  %v15731_v28 = vrot.slane %v12613_v24, 3  ;;  %v5119_v56 = vrot.slane %v12627_v11, 3 }
 0x783   :  { %v12720_v7 = vsel %vm4979_vm9, %v4973_v32, %v15735_v14  ;;  %v12724_v6 = vsel %vm4979_vm9, %v4972_v12, %v4973_v32  ;;  %v12730_v59 = vsel %vm4979_vm9, %v15732_v62, %v4972_v12  ;;  %v5120_v34 = vrot.slane %v12604_v3, 3 }
 0x784   :  { %v12739_v36 = vsel %vm5126_vm10, %v15731_v28, %v5119_v56 }
 0x785   :  { %v12745_v40 = vsel %vm5126_vm10, %v5120_v34, %v15733_v9  ;;  %v12749_v39 = vsel %vm5126_vm10, %v5119_v56, %v5120_v34 }
 0x7db   :  { %v12767_v23 = vpop.f32.mrb[12].mxu0 }
 0x7dc   :  { %v12774_v52 = vpop.f32.mrb[13].mxu0  ;;  %v4349_v21 = vrot.slane %v12767_v23, 6  ;;  %v4300_v44 = vrot.slane %v12767_v23, 5  ;;  %v4577_v63 = vrot.slane %v12767_v23, 7 }
 0x7dd   :  { %v4828_v54 = vrot.slane %v12774_v52, 1  ;;  %v4975_v51 = vrot.slane %v12774_v52, 2  ;;  %v12783_v12 = vpop.f32.mrb[14].mxu0  ;;  %v4347_v32 = vrot.slane %v12774_v52, 6  ;;  %v4298_v35 = vrot.slane %v12774_v52, 5 }
 0x7de   :  { %v12786_v56 = vpop.f32.mrb[15].mxu0  ;;  %v4350_v34 = vrot.slane %v12783_v12, 6  ;;  %v4301_v30 = vrot.slane %v12783_v12, 5  ;;  %v4578_v20 = vrot.slane %v12783_v12, 7  ;;  %v4575_v29 = vrot.slane %v12774_v52, 7 }
 0x7df   :  { %v4348_v10 = vrot.slane %v12786_v56, 6  ;;  %v4355_v45 = vsel %vm4351_vm5, %v4346_v22, %v4347_v32  ;;  %v4299_v53 = vrot.slane %v12786_v56, 5 }
 0x7e0   :  { %v4359_v17 = vsel %vm4351_vm5, %v4350_v34, %v4343_v42  ;;  %v4380_v28 = vsel %vm4364_vm14, %v4355_v45, 0.0  ;;  %v4352_v62 = vsel %vm4351_vm5, %v4349_v21, %v4350_v34  ;;  %v4310_v22 = vsel %vm4302_vm6, %v4301_v30, %v4294_v18  ;;  %v9791_v18 = vld [vmem:[%s15566_s3 + $0x8] sm:$0xff]  }
 0x7e1   :  { %v4376_v9 = vsel %vm4364_vm14, %v4359_v17, 0.0  ;;  %v4354_v15 = vsel %vm4351_vm5, %v4347_v32, %v4348_v10  ;;  %v4353_v42 = vsel %vm4351_vm5, %v4348_v10, %v4349_v21  ;;  %v4327_v45 = vsel %vm4315_vm15, %v4310_v22, 0.0 }
 0x7e2   :  { %v4384_v58 = vpack.c.bf16 %v12660_v55, %v4376_v9  ;;  %v4386_v34 = vpack.c.bf16 %v4354_v15, %v4380_v28  ;;  %v4387_v19 = vpack.c.bf16 %v4352_v62, %v4353_v42  ;;  %v4335_v14 = vpack.c.bf16 %v12670_v43, %v4327_v45 }
 0x7e3   :  { %v12829_v17 = vsel %vm4302_vm6, %v4298_v35, %v4299_v53  ;;  %v4306_v10 = vsel %vm4302_vm6, %v4297_v5, %v4298_v35  ;;  %v12837_v9 = vsel %vm4302_vm6, %v4300_v44, %v4301_v30  ;;  %v12841_v55 = vsel %vm4302_vm6, %v4299_v53, %v4300_v44 }
 0x7e4   :  { %9509 = vmatprep.mubr.msk.bf16.mxu1 %vm156_vm2, %v4384_v58  ;;  %v12846_v43 = vsel %vm4315_vm15, %v4306_v10, 0.0  ;;  %v4587_v5 = vsel %vm4579_vm7, %v4578_v20, %v4571_v48  ;;  %v4576_v28 = vrot.slane %v12786_v56, 7  ;;  %v4583_v35 = vsel %vm4579_vm7, %v4574_v33, %v4575_v29 }
 0x7e5   :  { %9510 = vmatmul.mubr.msk.bf16.vlgmr.msra.gmra.mrb[8].mxu1 %vm156_vm2, %v4385_v38  ;;  %v12863_v53 = vsel %vm4592_vm0, %v4587_v5, 0.0  ;;  %v12871_v48 = vsel %vm4579_vm7, %v4577_v63, %v4578_v20  ;;  %v12883_v38 = vsel %vm4592_vm0, %v4583_v35, 0.0  ;;  %v4829_v15 = vrot.slane %v12786_v56, 1 }
 0x7e6   :  { %9518 = vmatpush3.bf16.msra.mxu1 %v12600_v4  ;;  %9513 = vmatprep.mubr.msk.bf16.mxu1 %vm156_vm2, %v4386_v34  ;;  %v12879_v37 = vsel %vm4579_vm7, %v4575_v29, %v4576_v28  ;;  %v12887_v33 = vsel %vm4579_vm7, %v4576_v28, %v4577_v63  ;;  %v9792_v4 = vld [vmem:[%s15566_s3 + $0x20] sm:$0xff]   ;;  %v4836_v63 = vsel %vm4832_vm8, %v4827_v57, %v4828_v54  ;;  %v4831_v32 = vrot.slane %v12783_v12, 1  ;;  %v16126_v29 = vld [vmem:[#allocation6_spill] sm:$0xff] }
 0x7e7   :  { %9519 = vmatprep.subr.bf16.mxu1 %v9791_v18  ;;  %v16118_v30 = vrot.slane %v12617_v0, 2  ;;  %v12916_v42 = vsel %vm4852_vm1, %v4836_v63, 0.0  ;;  %v4976_v57 = vrot.slane %v12786_v56, 2  ;;  %v4977_v34 = vrot.slane %v12767_v23, 2 }
 0x7e8   :  { %v16119_v5 = vrot.slane %v12767_v23, 1  ;;  %v12936_v35 = vsel %vm4832_vm8, %v4828_v54, %v4829_v15  ;;  %v5124_v44 = vrot.slane %v12767_v23, 3  ;;  %v4251_v62 = vsub.f32 %v16128_v60, %v12604_v3 }
 0x7e9   :  { %v4983_v22 = vsel %vm4979_vm9, %v16118_v30, %v4975_v51  ;;  %v12954_v54 = vsel %vm4979_vm9, %v4976_v57, %v4977_v34  ;;  %v4978_v30 = vrot.slane %v12783_v12, 2 }
 0x7ea   :  { %v12920_v45 = vsel %vm4999_vm12, %v4983_v22, 0.0  ;;  %9520 = vmatpush3.bf16.msra.mxu1 %v9791_v18  ;;  %v12930_v28 = vsel %vm4832_vm8, %v4829_v15, %v16119_v5  ;;  %v16120_v63 = vmov %v16119_v5  ;;  %v16121_v22 = vrot.slane %v12613_v24, 1 }
 0x7eb   :  { %v12942_v18 = vsel %vm4832_vm8, %v16120_v63, %v4831_v32  ;;  %9529 = vmatprep.subr.bf16.mxu1 %v9792_v4  ;;  %v12964_v63 = vsel %vm4979_vm9, %v4975_v51, %v4976_v57  ;;  %v5123_v57 = vrot.slane %v12786_v56, 3  ;;  %v12986_v21 = vsel %vm4979_vm9, %v4977_v34, %v4978_v30 }
 0x7ec   :  { %v4840_v5 = vsel %vm4832_vm8, %v4831_v32, %v16121_v22  ;;  %v16122_v32 = vrot.slane %v12774_v52, 3  ;;  %v16123_v22 = vrot.slane %v12617_v0, 3  ;;  %v4259_v50 = vmul.f32 %v4251_v62, %v4251_v62 }
 0x7ed   :  { %v12958_v15 = vsel %vm4852_vm1, %v4840_v5, 0.0  ;;  %9514 = vmatmul.mubr.msk.bf16.gmra.mrb[12].mxu1 %vm156_vm2, %v4387_v19  ;;  %v16124_v19 = vrot.slane %v12613_v24, 2  ;;  %v5125_v5 = vrot.slane %v12783_v12, 3  ;;  %v16132_v62 = vpack.c.bf16 %v12829_v17, %v12846_v43 }
 0x7ee   :  { %v5130_v10 = vsel %vm5126_vm10, %v16123_v22, %v16122_v32  ;;  %9521 = vmatprep.mubr.msk.bf16.mxu1 %vm156_vm2, %v4335_v14  ;;  %v16125_v14 = vrot.slane %v12774_v52, 3  ;;  %v13012_v22 = vsel %vm5126_vm10, %v5123_v57, %v5124_v44  ;;  %v16134_v17 = vpack.c.bf16 %v12684_v2, %v12863_v53  ;;  %v9796_v2 = vld [vmem:[%s15566_s3 + $0x40] sm:$0xff]  }
 0x7ef   :  { %v12980_v51 = vsel %vm5146_vm13, %v5130_v10, 0.0  ;;  %v4987_v32 = vsel %vm4979_vm9, %v4978_v30, %v16124_v19  ;;  %v4249_v30 = vsub.f32 %v16126_v29, %v12613_v24  ;;  %v13022_v58 = vsel %vm5126_vm10, %v5124_v44, %v5125_v5  ;;  %v9793_v44 = vld [vmem:[%s15566_s3 + $0x28] sm:$0xff]  }
 0x7f0   :  { %v12997_v10 = vsel %vm4999_vm12, %v4987_v32, 0.0  ;;  %v13003_v34 = vsel %vm5126_vm10, %v16125_v14, %v5123_v57  ;;  %v16127_v32 = vld [vmem:[#allocation7_spill] sm:$0xff]  ;;  %v16129_v29 = vrot.slane %v12613_v24, 3  ;;  %v16130_v57 = vld [vmem:[#allocation5_spill] sm:$0xff]  ;;  %v16139_v43 = vpack.c.bf16 %v12617_v0, %v12604_v3 }
 0x7f1   :  { %v4250_v20 = vsub.f32 %v16127_v32, %v12627_v11  ;;  %v4252_v61 = vsub.f32 %v16130_v57, %v12617_v0  ;;  %v4257_v60 = vmul.f32 %v4249_v30, %v4249_v30  ;;  %v16131_v57 = vpack.c.bf16 %v12643_v8, %v12664_v31  ;;  %v9799_v0 = vld [vmem:[%s15566_s3 + $0x58] sm:$0xff]  }
 0x7f2   :  { %v5134_v19 = vsel %vm5126_vm10, %v5125_v5, %v16129_v29  ;;  %v16133_v31 = vpack.c.bf16 %v12837_v9, %v12841_v55  ;;  %v16136_v9 = vpack.c.bf16 %v12879_v37, %v12883_v38  ;;  %v16137_v55 = vpack.c.bf16 %v12871_v48, %v12887_v33  ;;  %v9801_v38 = vld [vmem:[%s15566_s3 + $0x68] sm:$0xff]  }
 0x7f3   :  { %v13032_v32 = vsel %vm5146_vm13, %v5134_v19, 0.0  ;;  %v4258_v13 = vmul.f32 %v4250_v20, %v4250_v20  ;;  %v4260_v49 = vmul.f32 %v4252_v61, %v4252_v61  ;;  %v4265_v5 = vsel %vm156_vm2, %v4257_v60, 0.0  ;;  %v9794_v61 = vld [vmem:[%s15566_s3 + $0x30] sm:$0xff]  }
 0x7f4   :  { %v5162_v14 = vpack.c.bf16 %v13032_v32, %v13022_v58  ;;  %v4268_v20 = vsel %vm156_vm2, %v4259_v50, 0.0  ;;  %v9795_v50 = vld [vmem:[%s15566_s3 + $0x38] sm:$0xff]   ;;  %v16140_v53 = vpack.c.bf16 %v12786_v56, %v12774_v52  ;;  %v16142_v3 = vpack.c.bf16 %v12704_v41, %v12710_v25  ;;  %v9800_v41 = vld [vmem:[%s15566_s3 + $0x60] sm:$0xff]  }
 0x7f5   :  { %v4266_v29 = vsel %vm156_vm2, %v4258_v13, 0.0  ;;  %9522 = vmatmul.mubr.msk.bf16.vlgmr.msra.gmra.mrb[8].mxu1 %vm156_vm2, %v16131_v57  ;;  %v4270_v19 = vsel %vm156_vm2, %v4260_v49, 0.0  ;;  %v16135_v49 = vpack.c.bf16 %v12650_v1, %v12678_v46  ;;  %v16138_v1 = vpack.c.bf16 %v12627_v11, %v12613_v24  ;;  %v9797_v46 = vld [vmem:[%s15566_s3 + $0x48] sm:$0xff]   ;;  %v9798_v24 = vld [vmem:[%s15566_s3 + $0x50] sm:$0xff]   ;;  %s9984_s3 = smov 9  }
 0x7f6   :  { %v4267_v30 = vadd.f32 %v4266_v29, %v4265_v5  ;;  %9530 = vmatpush3.bf16.msra.mxu1 %v9792_v4  ;;  %9525 = vmatprep.mubr.msk.bf16.mxu1 %vm156_vm2, %v16132_v62  ;;  %v16141_v11 = vpack.c.bf16 %v12783_v12, %v12767_v23  ;;  %v16143_v48 = vpack.c.bf16 %v12916_v42, %v12697_v47 }
 0x7f7   :  { %9531 = vmatprep.subr.bf16.mxu1 %v9793_v44  ;;  %v16144_v37 = vpack.c.bf16 %v12930_v28, %v12936_v35  ;;  %v16145_v25 = vpack.c.bf16 %v12958_v15, %v12942_v18  ;;  %v16146_v47 = vpack.c.bf16 %v12724_v6, %v12730_v59  ;;  %v16147_v33 = vpack.c.bf16 %v12920_v45, %v12720_v7  ;;  %v16153_v45 = vld [vmem:[#allocation10_spill] sm:$0xff]  ;;  %v16154_v28 = vld [vmem:[#allocation9_spill] sm:$0xff]  ;;  %v16156_v18 = vld [vmem:[#allocation11_spill] sm:$0xff] }
 0x7f8   :  { %v4269_v13 = vadd.f32 %v4268_v20, %v4267_v30  ;;  %v16148_v4 = vpack.c.bf16 %v12954_v54, %v12964_v63  ;;  %v16149_v6 = vpack.c.bf16 %v12997_v10, %v12986_v21  ;;  %v16150_v59 = vpack.c.bf16 %v12749_v39, %v12739_v36  ;;  %v16155_v36 = vld [vmem:[#allocation12_spill] sm:$0xff] }
 0x7f9   :  { %v16151_v7 = vpack.c.bf16 %v12980_v51, %v12745_v40  ;;  %v16152_v42 = vpack.c.bf16 %v13012_v22, %v13003_v34  ;;  %v4253_v21 = vsub.f32 %v16153_v45, %v12774_v52  ;;  %v4255_v35 = vsub.f32 %v16154_v28, %v12767_v23 }
 0x7fa   :  { %v4271_v8 = vadd.f32 %v4270_v19, %v4269_v13  ;;  %9532 = vmatpush3.bf16.msra.mxu1 %v9793_v44  ;;  %v4254_v39 = vsub.f32 %v16155_v36, %v12786_v56  ;;  %v4256_v54 = vsub.f32 %v16156_v18, %v12783_v12  ;;  %v9222_v44 = vld [vmem:[%s15574_s11 + $0x1] ss:$0 sm:$0xff] }
 0x7fb   :  { %9541 = vmatprep.subr.bf16.mxu1 %v9794_v61  ;;  %v4261_v40 = vmul.f32 %v4253_v21, %v4253_v21  ;;  %v4263_v63 = vmul.f32 %v4255_v35, %v4255_v35 }
 0x7fc   :  { %v4262_v15 = vmul.f32 %v4254_v39, %v4254_v39  ;;  %v4264_v52 = vmul.f32 %v4256_v54, %v4256_v54 }
 0x7fd   :  { %9526 = vmatmul.mubr.msk.bf16.gmra.mrb[12].mxu1 %vm156_vm2, %v16133_v31  ;;  %v4272_v51 = vsel %vm156_vm2, %v4261_v40, 0.0  ;;  %v4276_v56 = vsel %vm156_vm2, %v4263_v63, 0.0 }
 0x7fe   :  { %9533 = vmatprep.mubr.msk.bf16.mxu1 %vm156_vm2, %v16134_v17  ;;  %v4273_v22 = vadd.f32 %v4272_v51, %v4271_v8  ;;  %v4274_v23 = vsel %vm156_vm2, %v4262_v15, 0.0  ;;  %v4278_v12 = vsel %vm156_vm2, %v4264_v52, 0.0 }
 0x800   :  { %v4275_v10 = vadd.f32 %v4274_v23, %v4273_v22 }
 0x802   :  { %v4277_v34 = vadd.f32 %v4276_v56, %v4275_v10 }
 0x804   :  { %v13171_v60 = vadd.f32 %v4278_v12, %v4277_v34 }
 0x805   :  { %9534 = vmatmul.mubr.msk.bf16.vlgmr.msra.gmra.mrb[8].mxu1 %vm156_vm2, %v16135_v49 }
 0x806   :  { %9542 = vmatpush3.bf16.msra.mxu1 %v9794_v61  ;;  %9537 = vmatprep.mubr.msk.bf16.mxu1 %vm156_vm2, %v16136_v9 }
 0x807   :  { %9543 = vmatprep.subr.bf16.mxu1 %v9795_v50 }
 0x80a   :  { %9544 = vmatpush3.bf16.msra.mxu1 %v9795_v50 }
 0x80b   :  { %9553 = vmatprep.subr.bf16.mxu1 %v9796_v2 }
 0x80d   :  { %9538 = vmatmul.mubr.msk.bf16.gmra.mrb[12].mxu1 %vm156_vm2, %v16137_v55 }
 0x80e   :  { %9545 = vmatprep.mubr.msk.bf16.mxu1 %vm156_vm2, %v16138_v1 }
 0x815   :  { %9546 = vmatmul.mubr.msk.bf16.vlgmr.msra.gmra.mrb[8].mxu1 %vm156_vm2, %v16139_v43 }
 0x816   :  { %9554 = vmatpush3.bf16.msra.mxu1 %v9796_v2  ;;  %9549 = vmatprep.mubr.msk.bf16.mxu1 %vm156_vm2, %v16140_v53 }
 0x817   :  { %9555 = vmatprep.subr.bf16.mxu1 %v9797_v46 }
 0x81a   :  { %9556 = vmatpush3.bf16.msra.mxu1 %v9797_v46 }
 0x81b   :  { %9565 = vmatprep.subr.bf16.mxu1 %v9798_v24 }
 0x81d   :  { %9550 = vmatmul.mubr.msk.bf16.gmra.mrb[12].mxu1 %vm156_vm2, %v16141_v11 }
 0x81e   :  { %9557 = vmatprep.mubr.msk.bf16.mxu1 %vm156_vm2, %v16142_v3 }
 0x825   :  { %9558 = vmatmul.mubr.msk.bf16.vlgmr.msra.gmra.mrb[8].mxu1 %vm156_vm2, %v16143_v48 }
 0x826   :  { %9566 = vmatpush3.bf16.msra.mxu1 %v9798_v24  ;;  %9561 = vmatprep.mubr.msk.bf16.mxu1 %vm156_vm2, %v16144_v37 }
 0x827   :  { %9567 = vmatprep.subr.bf16.mxu1 %v9799_v0 }
 0x82a   :  { %9568 = vmatpush3.bf16.msra.mxu1 %v9799_v0 }
 0x82b   :  { %9577 = vmatprep.subr.bf16.mxu1 %v9800_v41 }
 0x82d   :  { %9562 = vmatmul.mubr.msk.bf16.gmra.mrb[12].mxu1 %vm156_vm2, %v16145_v25 }
 0x82e   :  { %9569 = vmatprep.mubr.msk.bf16.mxu1 %vm156_vm2, %v16146_v47 }
 0x835   :  { %9570 = vmatmul.mubr.msk.bf16.vlgmr.msra.gmra.mrb[8].mxu1 %vm156_vm2, %v16147_v33 }
 0x836   :  { %9578 = vmatpush3.bf16.msra.mxu1 %v9800_v41  ;;  %9573 = vmatprep.mubr.msk.bf16.mxu1 %vm156_vm2, %v16148_v4 }
 0x837   :  { %9579 = vmatprep.subr.bf16.mxu1 %v9801_v38 }
 0x83a   :  { %9580 = vmatpush3.bf16.msra.mxu1 %v9801_v38 }
 0x83d   :  { %9574 = vmatmul.mubr.msk.bf16.gmra.mrb[12].mxu1 %vm156_vm2, %v16149_v6 }
 0x83e   :  { %9581 = vmatprep.mubr.msk.bf16.mxu1 %vm156_vm2, %v16150_v59 }
 0x845   :  { %9582 = vmatmul.mubr.msk.bf16.vlgmr.msra.gmra.mrb[8].mxu1 %vm156_vm2, %v16151_v7 }
 0x846   :  { %9585 = vmatprep.mubr.msk.bf16.mxu1 %vm156_vm2, %v16152_v42 }
 0x84d   :  { %9586 = vmatmul.mubr.msk.bf16.gmra.mrb[12].mxu1 %vm156_vm2, %v5162_v14 }
 0x918   :  { %v9583_v5 = vpop.f32.mrb[8].mxu1 }
 0x919   :  { %v13176_v29 = vadd.f32 %v9583_v5, %v9222_v44  ;;  %v5226_v58 = vpop.f32.mrb[9].mxu1 }
 0x91a   :  { %v13178_v14 = vadd.f32 %v9222_v44, %v5226_v58  ;;  %v9584_v32 = vpop.f32.mrb[10].mxu1 }
 0x91b   :  { %v13180_v57 = vadd.f32 %v9584_v32, %v9222_v44  ;;  %v5229_v30 = vpop.f32.mrb[11].mxu1  ;;  %v5286_v62 = vsel %vm156_vm2, %v13176_v29, 0.0  ;;  %v5315_v50 = vmul.f32 %v13176_v29, %v13176_v29 }
 0x91c   :  { %5287 = vadd.xlane.f32.xlu0 %v5286_v62  ;;  %v5280_v20 = vsel %vm156_vm2, %v13178_v14, 0.0  ;;  %v5313_v61 = vmul.f32 %v13178_v14, %v13178_v14  ;;  %v13189_v19 = vadd.f32 %v9222_v44, %v5229_v30 }
 0x91d   :  { %5281 = vadd.xlane.f32.xlu1 %v5280_v20  ;;  %v5316_v8 = vmul.f32 %v13180_v57, %v13180_v57  ;;  %v5289_v17 = vsel %vm156_vm2, %v13180_v57, 0.0  ;;  %v5327_v43 = vsel %vm156_vm2, %v5315_v50, 0.0 }
 0x91e   :  { %v5321_v13 = vsel %vm156_vm2, %v5313_v61, 0.0  ;;  %v5314_v1 = vmul.f32 %v13189_v19, %v13189_v19  ;;  %v5283_v24 = vsel %vm156_vm2, %v13189_v19, 0.0 }
 0x91f   :  { %v5330_v55 = vsel %vm156_vm2, %v5316_v8, 0.0 }
 0x920   :  { %5322 = vadd.xlane.f32.xlu0 %v5321_v13  ;;  %v9587_v31 = vpop.f32.mrb[12].mxu1  ;;  %v5324_v53 = vsel %vm156_vm2, %v5314_v1, 0.0  ;;  %v13244_v1 = vld [vmem:[%s15574_s11 + $0x2] ss:$0 sm:$0xff] }
 0x921   :  { %5290 = vadd.xlane.f32.xlu1 %v5289_v17  ;;  %v5242_v49 = vpop.f32.mrb[13].mxu1  ;;  %v13215_v41 = vadd.f32 %v9587_v31, %v9222_v44 }
 0x922   :  { %v9588_v9 = vpop.f32.mrb[14].mxu1  ;;  %v13212_v48 = vadd.f32 %v9222_v44, %v5242_v49 }
 0x923   :  { %v5245_v2 = vpop.f32.mrb[15].mxu1  ;;  %v13200_v46 = vadd.f32 %v9588_v9, %v9222_v44  ;;  %v5298_v33 = vsel %vm156_vm2, %v13215_v41, 0.0  ;;  %v5319_v4 = vmul.f32 %v13215_v41, %v13215_v41 }
 0x924   :  { %5331 = vadd.xlane.f32.xlu0 %v5330_v55  ;;  %v13208_v3 = vadd.f32 %v9222_v44, %v5245_v2  ;;  %v5292_v47 = vsel %vm156_vm2, %v13212_v48, 0.0  ;;  %v5317_v38 = vmul.f32 %v13212_v48, %v13212_v48 }
 0x925   :  { %5328 = vadd.xlane.f32.xlu1 %v5327_v43  ;;  %v5320_v11 = vmul.f32 %v13200_v46, %v13200_v46  ;;  %v5301_v0 = vsel %vm156_vm2, %v13200_v46, 0.0  ;;  %v5339_v7 = vsel %vm156_vm2, %v5319_v4, 0.0 }
 0x926   :  { %v5295_v25 = vsel %vm156_vm2, %v13208_v3, 0.0  ;;  %v5333_v6 = vsel %vm156_vm2, %v5317_v38, 0.0  ;;  %v5318_v59 = vmul.f32 %v13208_v3, %v13208_v3 }
 0x927   :  { %v5342_v37 = vsel %vm156_vm2, %v5320_v11, 0.0 }
 0x928   :  { %5325 = vadd.xlane.f32.xlu0 %v5324_v53  ;;  %v5336_v42 = vsel %vm156_vm2, %v5318_v59, 0.0 }
 0x929   :  { %5284 = vadd.xlane.f32.xlu1 %v5283_v24 }
 0x92c   :  { %5302 = vadd.xlane.f32.xlu0 %v5301_v0 }
 0x92d   :  { %5343 = vadd.xlane.f32.xlu1 %v5342_v37 }
 0x930   :  { %5296 = vadd.xlane.f32.xlu0 %v5295_v25 }
 0x931   :  { %5293 = vadd.xlane.f32.xlu1 %v5292_v47 }
 0x934   :  { %5299 = vadd.xlane.f32.xlu0 %v5298_v33 }
 0x935   :  { %5334 = vadd.xlane.f32.xlu1 %v5333_v6 }
 0x938   :  { %5340 = vadd.xlane.f32.xlu0 %v5339_v7 }
 0x939   :  { %5337 = vadd.xlane.f32.xlu1 %v5336_v42 }
 0x9a9   :  { %v5288_v45 = vpop.xlane.xlu0 %5287 }
 0x9aa   :  { %v5282_v21 = vpop.xlane.xlu1 %5281  ;;  %v5307_v54 = vmul.f32 0.03125, %v5288_v45 }
 0x9ab   :  { %v5305_v28 = vmul.f32 0.03125, %v5282_v21 }
 0x9ac   :  { %v5355_v10 = vmul.f32 %v5307_v54, %v5307_v54  ;;  %v5371_v37 = vsub.f32 %v13176_v29, %v5307_v54 }
 0x9ad   :  { %v5353_v35 = vmul.f32 %v5305_v28, %v5305_v28  ;;  %v5323_v36 = vpop.xlane.xlu0 %5322  ;;  %v5369_v49 = vsub.f32 %v13178_v14, %v5305_v28  ;;  %v13254_v14 = vld [vmem:[%s15574_s11 + $0x3] ss:$0 sm:$0xff] }
 0x9ae   :  { %v5345_v39 = vmul.f32 0.03125, %v5323_v36  ;;  %v5291_v18 = vpop.xlane.xlu1 %5290 }
 0x9af   :  { %v5308_v40 = vmul.f32 0.03125, %v5291_v18 }
 0x9b0   :  { %v5361_v15 = vsub.f32 %v5345_v39, %v5353_v35  ;;  %v13276_v35 = vld [vmem:[%s15567_s4 + $0x3] ss:$0 sm:$0xff] }
 0x9b1   :  { %v5356_v63 = vmul.f32 %v5308_v40, %v5308_v40  ;;  %v5332_v51 = vpop.xlane.xlu0 %5331  ;;  %v5372_v38 = vsub.f32 %v13180_v57, %v5308_v40 }
 0x9b2   :  { %v5377_v22 = vadd.f32 1e-06, %v5361_v15  ;;  %v5348_v52 = vmul.f32 0.03125, %v5332_v51  ;;  %v5329_v23 = vpop.xlane.xlu1 %5328 }
 0x9b3   :  { %v5347_v56 = vmul.f32 0.03125, %v5329_v23 }
 0x9b4   :  { %9819 = vrsqrt.f32 %v5377_v22  ;;  %v5364_v34 = vsub.f32 %v5348_v52, %v5356_v63 }
 0x9b5   :  { %v5363_v12 = vsub.f32 %v5347_v56, %v5355_v10  ;;  %v5326_v44 = vpop.xlane.xlu0 %5325 }
 0x9b6   :  { %v5380_v5 = vadd.f32 1e-06, %v5364_v34  ;;  %v5285_v58 = vpop.xlane.xlu1 %5284  ;;  %v5346_v62 = vmul.f32 0.03125, %v5326_v44 }
 0x9b7   :  { %v5379_v32 = vadd.f32 1e-06, %v5363_v12  ;;  %v13232_v30 = vmul.f32 0.03125, %v5285_v58 }
 0x9b8   :  { %9821 = vrsqrt.f32 %v5380_v5 }
 0x9b9   :  { %9823 = vrsqrt.f32 %v5379_v32  ;;  %v5354_v20 = vmul.f32 %v13232_v30, %v13232_v30  ;;  %v5303_v61 = vpop.xlane.xlu0 %5302  ;;  %v5370_v33 = vsub.f32 %v13189_v19, %v13232_v30 }
 0x9ba   :  { %v13236_v13 = vmul.f32 0.03125, %v5303_v61  ;;  %v5344_v8 = vpop.xlane.xlu1 %5343 }
 0x9bb   :  { %v5362_v31 = vsub.f32 %v5346_v62, %v5354_v20  ;;  %v5352_v17 = vmul.f32 0.03125, %v5344_v8 }
 0x9bc   :  { %v5360_v50 = vmul.f32 %v13236_v13, %v13236_v13  ;;  %v5376_v4 = vsub.f32 %v13200_v46, %v13236_v13 }
 0x9bd   :  { %v5378_v9 = vadd.f32 1e-06, %v5362_v31  ;;  %v5297_v2 = vpop.xlane.xlu0 %5296 }
 0x9be   :  { %v9820_v55 = vpop.eup %9819  ;;  %v5368_v43 = vsub.f32 %v5352_v17, %v5360_v50  ;;  %v13246_v53 = vmul.f32 0.03125, %v5297_v2  ;;  %v5294_v24 = vpop.xlane.xlu1 %5293 }
 0x9bf   :  { %v5393_v11 = vmul.f32 %v9820_v55, %v5369_v49  ;;  %9825 = vrsqrt.f32 %v5378_v9  ;;  %v13248_v0 = vmul.f32 0.03125, %v5294_v24 }
 0x9c0   :  { %v5384_v25 = vadd.f32 1e-06, %v5368_v43  ;;  %v5358_v29 = vmul.f32 %v13246_v53, %v13246_v53  ;;  %v5374_v7 = vsub.f32 %v13208_v3, %v13246_v53 }
 0x9c1   :  { %v5405_v47 = vmul.f32 %v13244_v1, %v5393_v11  ;;  %v5300_v6 = vpop.xlane.xlu0 %5299  ;;  %v5357_v46 = vmul.f32 %v13248_v0, %v13248_v0  ;;  %v5373_v39 = vsub.f32 %v13212_v48, %v13248_v0  ;;  %v13315_v11 = vld [vmem:[%s15567_s4 + $0x4] ss:$0 sm:$0xff] }
 0x9c2   :  { %v9822_v59 = vpop.eup %9821  ;;  %9827 = vrsqrt.f32 %v5384_v25  ;;  %v13266_v42 = vmul.f32 0.03125, %v5300_v6  ;;  %v5335_v45 = vpop.xlane.xlu1 %5334 }
 0x9c3   :  { %v9824_v21 = vpop.eup %9823  ;;  %v13269_v57 = vadd.f32 %v13254_v14, %v5405_v47  ;;  %v5396_v19 = vmul.f32 %v9822_v59, %v5372_v38  ;;  %v5349_v28 = vmul.f32 0.03125, %v5335_v45  ;;  %v13322_v38 = vld [vmem:[%s15567_s4 + $0x5] ss:$0 sm:$0xff]  ;;  %v13333_v45 = vld [vmem:[%s15567_s4 + $0x6] ss:$0 sm:$0xff] }
 0x9c4   :  { %v5395_v36 = vmul.f32 %v9824_v21, %v5371_v37  ;;  %v5359_v18 = vmul.f32 %v13266_v42, %v13266_v42  ;;  %v5375_v54 = vsub.f32 %v13215_v41, %v13266_v42 }
 0x9c5   :  { %v5408_v40 = vmul.f32 %v13244_v1, %v5396_v19  ;;  %v5365_v15 = vsub.f32 %v5349_v28, %v5357_v46  ;;  %v5341_v63 = vpop.xlane.xlu0 %5340  ;;  %v5425_v51 = vrot.slane %v13269_v57, 5  ;;  %v5470_v22 = vrot.slane %v13269_v57, 6 }
 0x9c6   :  { %v5407_v52 = vmul.f32 %v13244_v1, %v5395_v36  ;;  %v5351_v23 = vmul.f32 0.03125, %v5341_v63  ;;  %v5338_v10 = vpop.xlane.xlu1 %5337  ;;  %v5515_v56 = vrot.slane %v13269_v57, 7  ;;  %v13291_v34 = vmul.f32 %v13276_v35, %v13269_v57 }
 0x9c7   :  { %v13294_v12 = vadd.f32 %v13254_v14, %v5408_v40  ;;  %v5381_v44 = vadd.f32 1e-06, %v5365_v15  ;;  %v5350_v5 = vmul.f32 0.03125, %v5338_v10  ;;  %v5581_v58 = vrot.slane %v13269_v57, 1 }
 0x9c8   :  { %v13298_v32 = vadd.f32 %v13254_v14, %v5407_v52  ;;  %v5367_v30 = vsub.f32 %v5351_v23, %v5359_v18 }
 0x9c9   :  { %v9826_v61 = vpop.eup %9825  ;;  %9829 = vrsqrt.f32 %v5381_v44  ;;  %v5366_v13 = vsub.f32 %v5350_v5, %v5358_v29  ;;  %v5584_v8 = vrot.slane %v13294_v12, 1  ;;  %v5629_v31 = vrot.slane %v13294_v12, 2 }
 0x9ca   :  { %v5394_v17 = vmul.f32 %v9826_v61, %v5370_v33  ;;  %v5383_v50 = vadd.f32 1e-06, %v5367_v30  ;;  %v5427_v49 = vrot.slane %v13298_v32, 5  ;;  %v5472_v9 = vrot.slane %v13298_v32, 6 }
 0x9cb   :  { %v5382_v2 = vadd.f32 1e-06, %v5366_v13  ;;  %v5517_v55 = vrot.slane %v13298_v32, 7  ;;  %v13309_v43 = vmul.f32 %v13276_v35, %v13298_v32  ;;  %v5583_v24 = vrot.slane %v13298_v32, 1  ;;  %v13369_v13 = vld [vmem:[%s15567_s4] ss:$0 sm:$0xff] }
 0x9cc   :  { %v9828_v37 = vpop.eup %9827  ;;  %v5406_v25 = vmul.f32 %v13244_v1, %v5394_v17  ;;  %9831 = vrsqrt.f32 %v5383_v50  ;;  %v5628_v47 = vrot.slane %v13298_v32, 2  ;;  %v5673_v33 = vrot.slane %v13298_v32, 3  ;;  %v13378_v50 = vld [vmem:[%s15567_s4 + $0x1] ss:$0 sm:$0xff] }
 0x9cd   :  { %v5400_v6 = vmul.f32 %v9828_v37, %v5376_v4  ;;  %9833 = vrsqrt.f32 %v5382_v2  ;;  %v5593_v59 = vsel %vm4832_vm8, %v5583_v24, %v5584_v8  ;;  %v5674_v29 = vrot.slane %v13294_v12, 3  ;;  %v13387_v37 = vld [vmem:[%s15567_s4 + $0x2] ss:$0 sm:$0xff] }
 0x9ce   :  { %v13336_v21 = vadd.f32 %v13254_v14, %v5406_v25  ;;  %v5612_v19 = vmul.f32 %v13315_v11, %v5593_v59  ;;  %v5638_v4 = vsel %vm4979_vm9, %v5628_v47, %v5629_v31  ;;  %v5428_v46 = vrot.slane %v13294_v12, 5 }
 0x9cf   :  { %v5412_v28 = vmul.f32 %v13244_v1, %v5400_v6  ;;  %v5657_v36 = vmul.f32 %v13322_v38, %v5638_v4  ;;  %v5683_v18 = vsel %vm5126_vm10, %v5673_v33, %v5674_v29  ;;  %v5473_v40 = vrot.slane %v13294_v12, 6 }
 0x9d0   :  { %v5426_v15 = vrot.slane %v13336_v21, 5  ;;  %v5471_v63 = vrot.slane %v13336_v21, 6  ;;  %v5516_v52 = vrot.slane %v13336_v21, 7  ;;  %v13355_v23 = vmul.f32 %v13333_v45, %v5683_v18 }
 0x9d1   :  { %v13358_v10 = vadd.f32 %v13254_v14, %v5412_v28  ;;  %v5566_v44 = vmul.f32 %v13276_v35, %v13336_v21  ;;  %v5582_v5 = vrot.slane %v13336_v21, 1  ;;  %v5627_v30 = vrot.slane %v13336_v21, 2 }
 0x9d2   :  { %v5438_v61 = vsel %vm4302_vm6, %v5426_v15, %v5427_v49  ;;  %v5483_v17 = vsel %vm4351_vm5, %v5471_v63, %v5472_v9  ;;  %v5528_v2 = vsel %vm4579_vm7, %v5516_v52, %v5517_v55  ;;  %v5439_v25 = vsel %vm4302_vm6, %v5425_v51, %v5426_v15 }
 0x9d3   :  { %v9830_v6 = vpop.eup %9829  ;;  %v5456_v59 = vmul.f32 %v13369_v13, %v5438_v61  ;;  %v5501_v4 = vmul.f32 %v13378_v50, %v5483_v17  ;;  %v5546_v28 = vmul.f32 %v13387_v37, %v5528_v2  ;;  %v5455_v18 = vmul.f32 %v13369_v13, %v5439_v25 }
 0x9d4   :  { %v5397_v20 = vmul.f32 %v9830_v6, %v5373_v39  ;;  %v5484_v62 = vsel %vm4351_vm5, %v5470_v22, %v5471_v63  ;;  %v5529_v15 = vsel %vm4579_vm7, %v5515_v56, %v5516_v52  ;;  %v5594_v61 = vsel %vm4832_vm8, %v5582_v5, %v5583_v24 }
 0x9d5   :  { %v5509_v17 = vadd.f32 %v5501_v4, %v5456_v59  ;;  %v5500_v2 = vmul.f32 %v13378_v50, %v5484_v62  ;;  %v5545_v48 = vmul.f32 %v13387_v37, %v5529_v15  ;;  %v5611_v0 = vmul.f32 %v13315_v11, %v5594_v61 }
 0x9d6   :  { %v9832_v39 = vpop.eup %9831  ;;  %v5409_v63 = vmul.f32 %v13244_v1, %v5397_v20  ;;  %v5639_v52 = vsel %vm4979_vm9, %v5627_v30, %v5628_v47  ;;  %v5672_v25 = vrot.slane %v13336_v21, 3  ;;  %v5437_v24 = vsel %vm4302_vm6, %v5427_v49, %v5428_v46 }
 0x9d7   :  { %v9834_v62 = vpop.eup %9833  ;;  %v5399_v6 = vmul.f32 %v9832_v39, %v5375_v54  ;;  %v5554_v59 = vadd.f32 %v5546_v28, %v5509_v17  ;;  %v5508_v4 = vadd.f32 %v5500_v2, %v5455_v18  ;;  %v5656_v20 = vmul.f32 %v13322_v38, %v5639_v52 }
 0x9d8   :  { %v13430_v15 = vadd.f32 %v13254_v14, %v5409_v63  ;;  %v5398_v47 = vmul.f32 %v9834_v62, %v5374_v7  ;;  %v5684_v49 = vsel %vm5126_vm10, %v5672_v25, %v5673_v33  ;;  %v5457_v61 = vmul.f32 %v13369_v13, %v5437_v24 }
 0x9d9   :  { %v5411_v41 = vmul.f32 %v13244_v1, %v5399_v6  ;;  %v5575_v42 = vadd.f32 %v13309_v43, %v5554_v59  ;;  %v5553_v54 = vadd.f32 %v5545_v48, %v5508_v4  ;;  %v5701_v28 = vmul.f32 %v13333_v45, %v5684_v49 }
 0x9da   :  { %v5410_v18 = vmul.f32 %v13244_v1, %v5398_v47  ;;  %v5482_v3 = vsel %vm4351_vm5, %v5472_v9, %v5473_v40  ;;  %v5518_v53 = vrot.slane %v13294_v12, 7  ;;  %v5568_v7 = vmul.f32 %v13276_v35, %v13294_v12 }
 0x9db   :  { %v13454_v33 = vadd.f32 %v13254_v14, %v5411_v41  ;;  %v5620_v43 = vadd.f32 %v5612_v19, %v5575_v42  ;;  %v5574_v17 = vadd.f32 %v5566_v44, %v5553_v54  ;;  %v5502_v2 = vmul.f32 %v13378_v50, %v5482_v3  ;;  %v13470_v44 = vld [vmem:[%s15574_s11 + $0x6] ss:$0 sm:$0xff] }
 0x9dc   :  { %v13458_v1 = vadd.f32 %v13254_v14, %v5410_v18  ;;  %v5527_v9 = vsel %vm4579_vm7, %v5517_v55, %v5518_v53  ;;  %v5585_v48 = vrot.slane %v13430_v15, 1  ;;  %v5630_v39 = vrot.slane %v13430_v15, 2 }
 0x9dd   :  { %v5665_v63 = vadd.f32 %v5657_v36, %v5620_v43  ;;  %v5619_v52 = vadd.f32 %v5611_v0, %v5574_v17  ;;  %v5510_v24 = vadd.f32 %v5502_v2, %v5457_v61  ;;  %v5547_v19 = vmul.f32 %v13387_v37, %v5527_v9 }
 0x9de   :  { %v5592_v14 = vsel %vm4832_vm8, %v5584_v8, %v5585_v48  ;;  %v5637_v55 = vsel %vm4979_vm9, %v5629_v31, %v5630_v39  ;;  %v5675_v36 = vrot.slane %v13430_v15, 3  ;;  %v5429_v0 = vrot.slane %v13430_v15, 5 }
 0x9df   :  { %v5710_v62 = vadd.f32 %v13355_v23, %v5665_v63  ;;  %v5664_v6 = vadd.f32 %v5656_v20, %v5619_v52  ;;  %v5555_v59 = vadd.f32 %v5547_v19, %v5510_v24  ;;  %v5600_v4 = vsel %vm4852_vm1, %v5592_v14, 0.0 }
 0x9e0   :  { %v5613_v47 = vmul.f32 %v13315_v11, %v5600_v4  ;;  %v5645_v8 = vsel %vm4999_vm12, %v5637_v55, 0.0  ;;  %v5682_v31 = vsel %vm5126_vm10, %v5674_v29, %v5675_v36  ;;  %v5436_v23 = vsel %vm4302_vm6, %v5428_v46, %v5429_v0 }
 0x9e1   :  { %v13499_v20 = vadd.f32 %v13470_v44, %v5710_v62  ;;  %v5709_v61 = vadd.f32 %v5701_v28, %v5664_v6  ;;  %v5576_v41 = vadd.f32 %v5568_v7, %v5555_v59  ;;  %v5658_v42 = vmul.f32 %v13322_v38, %v5645_v8 }
 0x9e2   :  { %v5690_v54 = vsel %vm5146_vm13, %v5682_v31, 0.0  ;;  %v5445_v29 = vsel %vm4315_vm15, %v5436_v23, 0.0  ;;  %v5474_v3 = vrot.slane %v13430_v15, 6  ;;  %v5519_v43 = vrot.slane %v13430_v15, 7 }
 0x9e3   :  { %v5737_v46 = vsel %vm156_vm2, %v13499_v20, 0.0  ;;  %v13511_v17 = vadd.f32 %v13470_v44, %v5709_v61  ;;  %v5765_v28 = vmul.f32 %v13499_v20, %v13499_v20  ;;  %v5621_v7 = vadd.f32 %v5613_v47, %v5576_v41 }
 0x9e4   :  { %5738 = vadd.xlane.f32.xlu1 %v5737_v46  ;;  %v5703_v2 = vmul.f32 %v13333_v45, %v5690_v54  ;;  %v5458_v9 = vmul.f32 %v13369_v13, %v5445_v29  ;;  %v5481_v63 = vsel %vm4351_vm5, %v5473_v40, %v5474_v3  ;;  %v5526_v52 = vsel %vm4579_vm7, %v5518_v53, %v5519_v43 }
 0x9e5   :  { %v5734_v24 = vsel %vm156_vm2, %v13511_v17, 0.0  ;;  %v5777_v19 = vsel %vm156_vm2, %v5765_v28, 0.0  ;;  %v5666_v14 = vadd.f32 %v5658_v42, %v5621_v7  ;;  %v5764_v55 = vmul.f32 %v13511_v17, %v13511_v17 }
 0x9e6   :  { %5735 = vadd.xlane.f32.xlu0 %v5734_v24  ;;  %v5490_v6 = vsel %vm4364_vm14, %v5481_v63, 0.0  ;;  %v5535_v40 = vsel %vm4592_vm0, %v5526_v52, 0.0  ;;  %v5569_v4 = vmul.f32 %v13276_v35, %v13430_v15  ;;  %v5586_v53 = vrot.slane %v13458_v1, 1 }
 0x9e7   :  { %v5711_v47 = vadd.f32 %v5703_v2, %v5666_v14  ;;  %v5774_v8 = vsel %vm156_vm2, %v5764_v55, 0.0  ;;  %v5503_v31 = vmul.f32 %v13378_v50, %v5490_v6  ;;  %v5548_v23 = vmul.f32 %v13387_v37, %v5535_v40 }
 0x9e8   :  { %5778 = vadd.xlane.f32.xlu1 %v5777_v19  ;;  %v5591_v61 = vsel %vm4832_vm8, %v5585_v48, %v5586_v53  ;;  %v5631_v41 = vrot.slane %v13458_v1, 2  ;;  %v5676_v42 = vrot.slane %v13458_v1, 3  ;;  %v5432_v54 = vrot.slane %v13358_v10, 5 }
 0x9e9   :  { %v13548_v29 = vadd.f32 %v13470_v44, %v5711_v47  ;;  %v5511_v46 = vadd.f32 %v5503_v31, %v5458_v9  ;;  %v5614_v28 = vmul.f32 %v13315_v11, %v5591_v61  ;;  %v5477_v7 = vrot.slane %v13358_v10, 6 }
 0x9ea   :  { %v5636_v2 = vsel %vm4979_vm9, %v5630_v39, %v5631_v41  ;;  %v5681_v48 = vsel %vm5126_vm10, %v5675_v36, %v5676_v42  ;;  %v5440_v63 = vsel %vm4302_vm6, %v5432_v54, %v5425_v51  ;;  %v5522_v9 = vrot.slane %v13358_v10, 7 }
 0x9eb   :  { %v5740_v52 = vsel %vm156_vm2, %v13548_v29, 0.0  ;;  %v5556_v24 = vadd.f32 %v5548_v23, %v5511_v46  ;;  %v5659_v39 = vmul.f32 %v13322_v38, %v5636_v2  ;;  %v5704_v19 = vmul.f32 %v13333_v45, %v5681_v48 }
 0x9ec   :  { %5741 = vadd.xlane.f32.xlu0 %v5740_v52  ;;  %v5766_v36 = vmul.f32 %v13548_v29, %v13548_v29  ;;  %v5441_v14 = vsel %vm4315_vm15, %v5440_v63, 0.0  ;;  %v5485_v51 = vsel %vm4351_vm5, %v5477_v7, %v5470_v22  ;;  %v5530_v55 = vsel %vm4579_vm7, %v5522_v9, %v5515_v56 }
 0x9ed   :  { %v5577_v6 = vadd.f32 %v5569_v4, %v5556_v24  ;;  %v5454_v40 = vmul.f32 %v13369_v13, %v5441_v14  ;;  %v5486_v47 = vsel %vm4364_vm14, %v5485_v51, 0.0  ;;  %v5531_v31 = vsel %vm4592_vm0, %v5530_v55, 0.0 }
 0x9ee   :  { %v5780_v23 = vsel %vm156_vm2, %v5766_v36, 0.0  ;;  %v5499_v22 = vmul.f32 %v13378_v50, %v5486_v47  ;;  %v5544_v61 = vmul.f32 %v13387_v37, %v5531_v31  ;;  %v5595_v56 = vsel %vm4832_vm8, %v5581_v58, %v5582_v5 }
 0x9ef   :  { %v5622_v4 = vadd.f32 %v5614_v28, %v5577_v6  ;;  %v5610_v46 = vmul.f32 %v13315_v11, %v5595_v56  ;;  %v16161_v2 = vrot.slane %v13269_v57, 2  ;;  %v16162_v63 = vrot.slane %v13269_v57, 3 }
 0x9f0   :  { %5775 = vadd.xlane.f32.xlu0 %v5774_v8  ;;  %v5507_v24 = vadd.f32 %v5499_v22, %v5454_v40  ;;  %v5430_v36 = vrot.slane %v13458_v1, 5  ;;  %v5475_v51 = vrot.slane %v13458_v1, 6  ;;  %v5570_v55 = vmul.f32 %v13276_v35, %v13458_v1 }
 0x9f1   :  { %v5640_v48 = vsel %vm4979_vm9, %v16161_v2, %v5627_v30  ;;  %v5685_v52 = vsel %vm5126_vm10, %v16162_v63, %v5672_v25  ;;  %v5667_v14 = vadd.f32 %v5659_v39, %v5622_v4  ;;  %v5520_v30 = vrot.slane %v13458_v1, 7 }
 0x9f2   :  { %v5655_v5 = vmul.f32 %v13322_v38, %v5640_v48  ;;  %v5700_v28 = vmul.f32 %v13333_v45, %v5685_v52  ;;  %v5552_v6 = vadd.f32 %v5544_v61, %v5507_v24  ;;  %v5435_v25 = vsel %vm4302_vm6, %v5429_v0, %v5430_v36 }
 0x9f3   :  { %v5587_v8 = vrot.slane %v13454_v33, 1  ;;  %v5632_v40 = vrot.slane %v13454_v33, 2  ;;  %v5712_v47 = vadd.f32 %v5704_v19, %v5667_v14  ;;  %v5459_v39 = vmul.f32 %v13369_v13, %v5435_v25 }
 0x9f4   :  { %v5480_v31 = vsel %vm4351_vm5, %v5474_v3, %v5475_v51  ;;  %v5525_v22 = vsel %vm4579_vm7, %v5519_v43, %v5520_v30  ;;  %5781 = vadd.xlane.f32.xlu0 %v5780_v23  ;;  %v5573_v0 = vadd.f32 %v13291_v34, %v5552_v6  ;;  %v5677_v34 = vrot.slane %v13454_v33, 3 }
 0x9f5   :  { %v5504_v61 = vmul.f32 %v13378_v50, %v5480_v31  ;;  %v5549_v19 = vmul.f32 %v13387_v37, %v5525_v22  ;;  %v5590_v56 = vsel %vm4832_vm8, %v5586_v53, %v5587_v8  ;;  %v13644_v3 = vadd.f32 %v13470_v44, %v5712_v47 }
 0x9f6   :  { %v5615_v4 = vmul.f32 %v13315_v11, %v5590_v56  ;;  %v5635_v43 = vsel %vm4979_vm9, %v5631_v41, %v5632_v40  ;;  %v5618_v23 = vadd.f32 %v5610_v46, %v5573_v0  ;;  %v5431_v63 = vrot.slane %v13454_v33, 5 }
 0x9f7   :  { %v5512_v2 = vadd.f32 %v5504_v61, %v5459_v39  ;;  %v5660_v48 = vmul.f32 %v13322_v38, %v5635_v43  ;;  %v5743_v53 = vsel %vm156_vm2, %v13644_v3, 0.0  ;;  %v5680_v52 = vsel %vm5126_vm10, %v5676_v42, %v5677_v34 }
 0x9f8   :  { %v5476_v41 = vrot.slane %v13454_v33, 6  ;;  %v5521_v24 = vrot.slane %v13454_v33, 7  ;;  %5744 = vadd.xlane.f32.xlu1 %v5743_v53  ;;  %v5663_v46 = vadd.f32 %v5655_v5, %v5618_v23  ;;  %v5705_v6 = vmul.f32 %v13333_v45, %v5680_v52 }
 0x9f9   :  { %v5557_v14 = vadd.f32 %v5549_v19, %v5512_v2  ;;  %v5433_v25 = vsel %vm4302_vm6, %v5431_v63, %v5432_v54  ;;  %v5572_v39 = vmul.f32 %v13276_v35, %v13358_v10  ;;  %v5588_v61 = vrot.slane %v13358_v10, 1 }
 0x9fa   :  { %v5461_v47 = vmul.f32 %v13369_v13, %v5433_v25  ;;  %v5478_v42 = vsel %vm4351_vm5, %v5476_v41, %v5477_v7  ;;  %v5523_v5 = vsel %vm4579_vm7, %v5521_v24, %v5522_v9  ;;  %v5708_v31 = vadd.f32 %v5700_v28, %v5663_v46 }
 0x9fb   :  { %v5578_v22 = vadd.f32 %v5570_v55, %v5557_v14  ;;  %v5506_v0 = vmul.f32 %v13378_v50, %v5478_v42  ;;  %v5551_v54 = vmul.f32 %v13387_v37, %v5523_v5  ;;  %v5633_v19 = vrot.slane %v13358_v10, 2 }
 0x9fc   :  { %v5678_v7 = vrot.slane %v13358_v10, 3  ;;  %v5434_v56 = vsel %vm4302_vm6, %v5430_v36, %v5431_v63  ;;  %v13688_v9 = vadd.f32 %v13470_v44, %v5708_v31  ;;  %v5596_v55 = vsel %vm4832_vm8, %v5588_v61, %v5581_v58 }
 0x9fd   :  { %v5623_v43 = vadd.f32 %v5615_v4, %v5578_v22  ;;  %v5514_v23 = vadd.f32 %v5506_v0, %v5461_v47  ;;  %v5460_v28 = vmul.f32 %v13369_v13, %v5434_v56  ;;  %v16163_v2 = vrot.slane %v13269_v57, 2 }
 0x9fe   :  { %v16164_v52 = vrot.slane %v13269_v57, 3  ;;  %v5479_v4 = vsel %vm4351_vm5, %v5475_v51, %v5476_v41  ;;  %v5731_v13 = vsel %vm156_vm2, %v13688_v9, 0.0  ;;  %v5763_v58 = vmul.f32 %v13688_v9, %v13688_v9 }
 0x9ff   :  { %v5641_v53 = vsel %vm4979_vm9, %v5633_v19, %v16163_v2  ;;  %v5668_v63 = vadd.f32 %v5660_v48, %v5623_v43  ;;  %v5559_v46 = vadd.f32 %v5551_v54, %v5514_v23  ;;  %5732 = vadd.xlane.f32.xlu1 %v5731_v13  ;;  %v5604_v14 = vsel %vm4852_vm1, %v5596_v55, 0.0 }
 0xa00   :  { %v5686_v36 = vsel %vm5126_vm10, %v5678_v7, %v16164_v52  ;;  %v5649_v25 = vsel %vm4999_vm12, %v5641_v53, 0.0  ;;  %v5505_v47 = vmul.f32 %v13378_v50, %v5479_v4  ;;  %v5617_v51 = vmul.f32 %v13315_v11, %v5604_v14  ;;  %v9803_v14 = vld [vmem:[%s15568_s5 + $0x8] sm:$0xff]  }
 0xa01   :  { %v5713_v42 = vadd.f32 %v5705_v6, %v5668_v63  ;;  %v5580_v5 = vadd.f32 %v5572_v39, %v5559_v46  ;;  %v5694_v48 = vsel %vm5146_vm13, %v5686_v36, 0.0  ;;  %v5771_v41 = vsel %vm156_vm2, %v5763_v58, 0.0  ;;  %v9802_v46 = vld [vmem:[%s15568_s5] sm:$0xff]  }
 0xa02   :  { %v5513_v31 = vadd.f32 %v5505_v47, %v5460_v28  ;;  %v5524_v22 = vsel %vm4579_vm7, %v5520_v30, %v5521_v24  ;;  %v5662_v50 = vmul.f32 %v13322_v38, %v5649_v25  ;;  %v5707_v39 = vmul.f32 %v13333_v45, %v5694_v48  ;;  %9589 = vmatprep.subr.bf16.mxu0 %v9802_v46 }
 0xa03   :  { %v13723_v0 = vadd.f32 %v13470_v44, %v5713_v42  ;;  %v5625_v54 = vadd.f32 %v5617_v51, %v5580_v5  ;;  %v5550_v6 = vmul.f32 %v13387_v37, %v5524_v22  ;;  %5772 = vadd.xlane.f32.xlu1 %v5771_v41  ;;  %v5589_v56 = vsel %vm4832_vm8, %v5587_v8, %v5588_v61 }
 0xa04   :  { %v5571_v23 = vmul.f32 %v13276_v35, %v13454_v33  ;;  %v5634_v37 = vsel %vm4979_vm9, %v5632_v40, %v5633_v19  ;;  %v5616_v2 = vmul.f32 %v13315_v11, %v5589_v56  ;;  %v5679_v8 = vsel %vm5126_vm10, %v5677_v34, %v5678_v7  ;;  %9590 = vmatpush3.bf16.msra.mxu0 %v9802_v46 }
 0xa05   :  { %v5746_v43 = vsel %vm156_vm2, %v13723_v0, 0.0  ;;  %v5670_v30 = vadd.f32 %v5662_v50, %v5625_v54  ;;  %v5558_v24 = vadd.f32 %v5550_v6, %v5513_v31  ;;  %v5661_v35 = vmul.f32 %v13322_v38, %v5634_v37  ;;  %9591 = vmatprep.subr.bf16.mxu0 %v9803_v14 }
 0xa06   :  { %5747 = vadd.xlane.f32.xlu0 %v5746_v43  ;;  %v5706_v40 = vmul.f32 %v13333_v45, %v5679_v8  ;;  %v5768_v11 = vmul.f32 %v13723_v0, %v13723_v0  ;;  %v5767_v45 = vmul.f32 %v13644_v3, %v13644_v3 }
 0xa07   :  { %v5715_v28 = vadd.f32 %v5707_v39, %v5670_v30  ;;  %v5579_v55 = vadd.f32 %v5571_v23, %v5558_v24 }
 0xa08   :  { %v5786_v34 = vsel %vm156_vm2, %v5768_v11, 0.0  ;;  %v5783_v63 = vsel %vm156_vm2, %v5767_v45, 0.0  ;;  %9592 = vmatpush3.bf16.msra.mxu0 %v9803_v14 }
 0xa09   :  { %v13746_v61 = vadd.f32 %v13470_v44, %v5715_v28  ;;  %v5624_v53 = vadd.f32 %v5616_v2, %v5579_v55 }
 0xa0b   :  { %v5752_v52 = vsel %vm156_vm2, %v13746_v61, 0.0  ;;  %v5669_v36 = vadd.f32 %v5661_v35, %v5624_v53  ;;  %v5770_v7 = vmul.f32 %v13746_v61, %v13746_v61 }
 0xa0c   :  { %5753 = vadd.xlane.f32.xlu0 %v5752_v52 }
 0xa0d   :  { %v5714_v19 = vadd.f32 %v5706_v40, %v5669_v36  ;;  %v5792_v13 = vsel %vm156_vm2, %v5770_v7, 0.0 }
 0xa0f   :  { %v13755_v4 = vadd.f32 %v13470_v44, %v5714_v19 }
 0xa10   :  { %5787 = vadd.xlane.f32.xlu0 %v5786_v34 }
 0xa11   :  { %v5749_v38 = vsel %vm156_vm2, %v13755_v4, 0.0  ;;  %v5769_v44 = vmul.f32 %v13755_v4, %v13755_v4 }
 0xa12   :  { %5750 = vadd.xlane.f32.xlu1 %v5749_v38 }
 0xa13   :  { %v5789_v58 = vsel %vm156_vm2, %v5769_v44, 0.0 }
 0xa14   :  { %5793 = vadd.xlane.f32.xlu0 %v5792_v13 }
 0xa16   :  { %5784 = vadd.xlane.f32.xlu1 %v5783_v63 }
 0xa1a   :  { %5790 = vadd.xlane.f32.xlu1 %v5789_v58 }
 0xa71   :  { %v5739_v42 = vpop.xlane.xlu1 %5738 }
 0xa72   :  { %v5757_v48 = vmul.f32 0.03125, %v5739_v42 }
 0xa73   :  { %v5736_v25 = vpop.xlane.xlu0 %5735 }
 0xa74   :  { %v5756_v22 = vmul.f32 0.03125, %v5736_v25  ;;  %v5805_v6 = vmul.f32 %v5757_v48, %v5757_v48  ;;  %v5821_v44 = vsub.f32 %v13499_v20, %v5757_v48 }
 0xa75   :  { %v5779_v51 = vpop.xlane.xlu1 %5778 }
 0xa76   :  { %v5797_v54 = vmul.f32 0.03125, %v5779_v51  ;;  %v5804_v30 = vmul.f32 %v5756_v22, %v5756_v22  ;;  %v5820_v58 = vsub.f32 %v13511_v17, %v5756_v22 }
 0xa78   :  { %v5813_v24 = vsub.f32 %v5797_v54, %v5805_v6 }
 0xa79   :  { %v5742_v47 = vpop.xlane.xlu0 %5741 }
 0xa7a   :  { %v5758_v31 = vmul.f32 0.03125, %v5742_v47  ;;  %v5829_v28 = vadd.f32 1e-06, %v5813_v24 }
 0xa7c   :  { %v5806_v56 = vmul.f32 %v5758_v31, %v5758_v31  ;;  %9835 = vrsqrt.f32 %v5829_v28  ;;  %v5822_v63 = vsub.f32 %v13548_v29, %v5758_v31 }
 0xa7d   :  { %v5776_v5 = vpop.xlane.xlu0 %5775 }
 0xa7e   :  { %v5796_v39 = vmul.f32 0.03125, %v5776_v5 }
 0xa80   :  { %v5812_v37 = vsub.f32 %v5796_v39, %v5804_v30 }
 0xa81   :  { %v5782_v41 = vpop.xlane.xlu0 %5781 }
 0xa82   :  { %v5798_v50 = vmul.f32 0.03125, %v5782_v41  ;;  %v5828_v8 = vadd.f32 1e-06, %v5812_v37  ;;  %v9234_v37 = vld [vmem:[%s15574_s11 + $0x8] ss:$0 sm:$0xff] }
 0xa84   :  { %v5814_v23 = vsub.f32 %v5798_v50, %v5806_v56  ;;  %v9233_v50 = vld [vmem:[%s15574_s11 + $0x7] ss:$0 sm:$0xff] }
 0xa85   :  { %v5745_v43 = vpop.xlane.xlu1 %5744 }
 0xa86   :  { %v5830_v55 = vadd.f32 1e-06, %v5814_v23  ;;  %v9836_v7 = vpop.eup %9835  ;;  %v5759_v51 = vmul.f32 0.03125, %v5745_v43 }
 0xa87   :  { %v5845_v5 = vmul.f32 %v9836_v7, %v5821_v44 }
 0xa88   :  { %9837 = vrsqrt.f32 %v5830_v55  ;;  %v5807_v30 = vmul.f32 %v5759_v51, %v5759_v51 }
 0xa89   :  { %9839 = vrsqrt.f32 %v5828_v8  ;;  %v5857_v56 = vmul.f32 %v9233_v50, %v5845_v5 }
 0xa8c   :  { %v5733_v2 = vpop.xlane.xlu1 %5732 }
 0xa8d   :  { %v5755_v53 = vmul.f32 0.03125, %v5733_v2 }
 0xa8f   :  { %v5803_v52 = vmul.f32 %v5755_v53, %v5755_v53  ;;  %v5819_v29 = vsub.f32 %v13688_v9, %v5755_v53 }
 0xa90   :  { %v5773_v35 = vpop.xlane.xlu1 %5772 }
 0xa91   :  { %v5795_v36 = vmul.f32 0.03125, %v5773_v35 }
 0xa92   :  { %v9838_v45 = vpop.eup %9837 }
 0xa93   :  { %v5748_v40 = vpop.xlane.xlu0 %5747  ;;  %v5811_v11 = vsub.f32 %v5795_v36, %v5803_v52  ;;  %v9840_v13 = vpop.eup %9839  ;;  %v5846_v14 = vmul.f32 %v9838_v45, %v5822_v63  ;;  %v5869_v52 = vadd.f32 %v9234_v37, %v5857_v56 }
 0xa94   :  { %v5760_v38 = vmul.f32 0.03125, %v5748_v40  ;;  %v5844_v54 = vmul.f32 %v9840_v13, %v5820_v58 }
 0xa95   :  { %v5827_v19 = vadd.f32 1e-06, %v5811_v11  ;;  %v5858_v48 = vmul.f32 %v9233_v50, %v5846_v14 }
 0xa96   :  { %v5808_v25 = vmul.f32 %v5760_v38, %v5760_v38  ;;  %v5856_v43 = vmul.f32 %v9233_v50, %v5844_v54 }
 0xa97   :  { %9841 = vrsqrt.f32 %v5827_v19  ;;  %v5870_v8 = vadd.f32 %v9234_v37, %v5858_v48 }
 0xa98   :  { %v5868_v11 = vadd.f32 %v9234_v37, %v5856_v43 }
 0xa99   :  { %v5754_v34 = vpop.xlane.xlu0 %5753  ;;  %v5876_v63 = vpack.c.bf16 %v5870_v8, %v5869_v52 }
 0xa9a   :  { %v5762_v47 = vmul.f32 0.03125, %v5754_v34 }
 0xa9c   :  { %v5810_v17 = vmul.f32 %v5762_v47, %v5762_v47  ;;  %v5826_v5 = vsub.f32 %v13746_v61, %v5762_v47  ;;  %v9804_v61 = vld [vmem:[%s15570_s7] sm:$0xff]   ;;  %v9806_v47 = vld [vmem:[%s15570_s7 + $0x10] sm:$0xff]  }
 0xa9d   :  { %v5788_v46 = vpop.xlane.xlu0 %5787  ;;  %9601 = vmatprep.subr.bf16.mxu0 %v9804_v61 }
 0xa9e   :  { %v5800_v42 = vmul.f32 0.03125, %v5788_v46  ;;  %v5824_v46 = vsub.f32 %v13723_v0, %v5760_v38 }
 0xa9f   :  { %v5751_v41 = vpop.xlane.xlu1 %5750 }
 0xaa0   :  { %v5816_v6 = vsub.f32 %v5800_v42, %v5808_v25  ;;  %v5761_v28 = vmul.f32 0.03125, %v5751_v41  ;;  %v5823_v42 = vsub.f32 %v13644_v3, %v5759_v51 }
 0xaa1   :  { %v5794_v31 = vpop.xlane.xlu0 %5793  ;;  %v9842_v20 = vpop.eup %9841 }
 0xaa2   :  { %v5832_v22 = vadd.f32 1e-06, %v5816_v6  ;;  %v5802_v39 = vmul.f32 0.03125, %v5794_v31  ;;  %v5843_v23 = vmul.f32 %v9842_v20, %v5819_v29  ;;  %v5809_v19 = vmul.f32 %v5761_v28, %v5761_v28 }
 0xaa3   :  { %v5785_v24 = vpop.xlane.xlu1 %5784  ;;  %v5825_v31 = vsub.f32 %v13755_v4, %v5761_v28  ;;  %v9805_v4 = vld [vmem:[%s15570_s7 + $0x8] sm:$0xff]  }
 0xaa4   :  { %9843 = vrsqrt.f32 %v5832_v22  ;;  %v5799_v55 = vmul.f32 0.03125, %v5785_v24  ;;  %v5818_v2 = vsub.f32 %v5802_v39, %v5810_v17  ;;  %v5855_v9 = vmul.f32 %v9233_v50, %v5843_v23  ;;  %v9235_v24 = vld [vmem:[%s15569_s6] ss:$0 sm:$0xff] }
 0xaa6   :  { %v5815_v53 = vsub.f32 %v5799_v55, %v5807_v30  ;;  %v5834_v35 = vadd.f32 1e-06, %v5818_v2  ;;  %v5867_v40 = vadd.f32 %v9234_v37, %v5855_v9 }
 0xaa7   :  { %v5791_v36 = vpop.xlane.xlu1 %5790 }
 0xaa8   :  { %v5831_v34 = vadd.f32 1e-06, %v5815_v53  ;;  %9845 = vrsqrt.f32 %v5834_v35  ;;  %v5801_v7 = vmul.f32 0.03125, %v5791_v36  ;;  %v5875_v45 = vpack.c.bf16 %v5868_v11, %v5867_v40 }
 0xaaa   :  { %9847 = vrsqrt.f32 %v5831_v34  ;;  %v5817_v13 = vsub.f32 %v5801_v7, %v5809_v19  ;;  %9593 = vmatprep.mubr.msk.bf16.mxu0 %vm156_vm2, %v5875_v45 }
 0xaab   :  { %9594 = vmatmul.mubr.msk.bf16.vlgmr.msra.gmra.mrb[16].mxu0 %vm156_vm2, %v5876_v63 }
 0xaac   :  { %v5833_v44 = vadd.f32 1e-06, %v5817_v13  ;;  %9602 = vmatpush3.bf16.msra.mxu0 %v9804_v61 }
 0xaad   :  { %9603 = vmatprep.subr.bf16.mxu0 %v9805_v4 }
 0xaae   :  { %v9844_v58 = vpop.eup %9843  ;;  %9849 = vrsqrt.f32 %v5833_v44 }
 0xaaf   :  { %v5848_v14 = vmul.f32 %v9844_v58, %v5824_v46 }
 0xab0   :  { %9604 = vmatpush3.bf16.msra.mxu0 %v9805_v4 }
 0xab1   :  { %v5860_v6 = vmul.f32 %v9233_v50, %v5848_v14  ;;  %9605 = vmatprep.subr.bf16.mxu0 %v9806_v47 }
 0xab2   :  { %v9846_v25 = vpop.eup %9845 }
 0xab3   :  { %v5850_v29 = vmul.f32 %v9846_v25, %v5826_v5  ;;  %v5872_v22 = vadd.f32 %v9234_v37, %v5860_v6 }
 0xab4   :  { %v9848_v41 = vpop.eup %9847  ;;  %9606 = vmatpush3.bf16.msra.mxu0 %v9806_v47 }
 0xab5   :  { %v5847_v54 = vmul.f32 %v9848_v41, %v5823_v42  ;;  %v5862_v56 = vmul.f32 %v9233_v50, %v5850_v29 }
 0xab7   :  { %v5859_v20 = vmul.f32 %v9233_v50, %v5847_v54  ;;  %v5874_v3 = vadd.f32 %v9234_v37, %v5862_v56 }
 0xab8   :  { %v9850_v48 = vpop.eup %9849 }
 0xab9   :  { %v5871_v17 = vadd.f32 %v9234_v37, %v5859_v20  ;;  %v5849_v39 = vmul.f32 %v9850_v48, %v5825_v31 }
 0xabb   :  { %v5877_v30 = vpack.c.bf16 %v5872_v22, %v5871_v17  ;;  %v5861_v0 = vmul.f32 %v9233_v50, %v5849_v39  ;;  %v9807_v50 = vld [vmem:[%s15570_s7 + $0x18] sm:$0xff]  }
 0xabc   :  { %9607 = vmatprep.subr.bf16.mxu0 %v9807_v50 }
 0xabd   :  { %9597 = vmatprep.mubr.msk.bf16.mxu0 %vm156_vm2, %v5877_v30  ;;  %v5873_v38 = vadd.f32 %v9234_v37, %v5861_v0  ;;  %9608 = vmatpush3.bf16.msra.mxu0 %v9807_v50 }
 0xabf   :  { %v5878_v51 = vpack.c.bf16 %v5874_v3, %v5873_v38 }
 0xac1   :  { %9598 = vmatmul.mubr.msk.bf16.gmra.mrb[20].mxu0 %vm156_vm2, %v5878_v51 }
 0xb7e   :  { %v9595_v23 = vpop.f32.mrb[16].mxu0 }
 0xb7f   :  { %v5957_v43 = vadd.f32 %v9595_v23, %v9235_v24  ;;  %v5948_v37 = vpop.f32.mrb[17].mxu0 }
 0xb80   :  { %v13808_v28 = vadd.f32 %v9235_v24, %v5948_v37  ;;  %v9596_v55 = vpop.f32.mrb[18].mxu0 }
 0xb81   :  { %v5981_v2 = vmul.f32 %v5957_v43, %v5957_v43  ;;  %v5960_v9 = vadd.f32 %v9596_v55, %v9235_v24  ;;  %v5951_v8 = vpop.f32.mrb[19].mxu0 }
 0xb82   :  { %v5979_v53 = vmul.f32 %v13808_v28, %v13808_v28  ;;  %v5952_v35 = vadd.f32 %v9235_v24, %v5951_v8 }
 0xb83   :  { %v5989_v52 = vmul.f32 %v5981_v2, %v5957_v43  ;;  %v5982_v36 = vmul.f32 %v5960_v9, %v5960_v9 }
 0xb84   :  { %v5987_v40 = vmul.f32 %v5979_v53, %v13808_v28  ;;  %v5980_v11 = vmul.f32 %v5952_v35, %v5952_v35 }
 0xb85   :  { %v5997_v19 = vmul.f32 0.044715, %v5989_v52  ;;  %v5990_v34 = vmul.f32 %v5982_v36, %v5960_v9 }
 0xb86   :  { %v5995_v7 = vmul.f32 0.044715, %v5987_v40  ;;  %v5988_v45 = vmul.f32 %v5980_v11, %v5952_v35 }
 0xb87   :  { %v6005_v13 = vadd.f32 %v5997_v19, %v5957_v43  ;;  %v5998_v63 = vmul.f32 0.044715, %v5990_v34 }
 0xb88   :  { %v6003_v44 = vadd.f32 %v5995_v7, %v13808_v28  ;;  %v5996_v58 = vmul.f32 0.044715, %v5988_v45 }
 0xb89   :  { %v6013_v46 = vmul.f32 0.7978846, %v6005_v13  ;;  %v6006_v14 = vadd.f32 %v5998_v63, %v5960_v9 }
 0xb8a   :  { %v6011_v25 = vmul.f32 0.7978846, %v6003_v44  ;;  %v6004_v42 = vadd.f32 %v5996_v58, %v5952_v35 }
 0xb8b   :  { %9851 = vtanh.f32 %v6013_v46  ;;  %v6014_v5 = vmul.f32 0.7978846, %v6006_v14 }
 0xb8c   :  { %9853 = vtanh.f32 %v6011_v25  ;;  %v6012_v41 = vmul.f32 0.7978846, %v6004_v42 }
 0xb8d   :  { %9855 = vtanh.f32 %v6014_v5 }
 0xb8e   :  { %9857 = vtanh.f32 %v6012_v41 }
 0xb94   :  { %v9599_v54 = vpop.f32.mrb[20].mxu0 }
 0xb95   :  { %v13814_v6 = vadd.f32 %v9599_v54, %v9235_v24  ;;  %v5964_v29 = vpop.f32.mrb[21].mxu0  ;;  %v9852_v31 = vpop.eup %9851 }
 0xb96   :  { %v13816_v20 = vadd.f32 %v9235_v24, %v5964_v29  ;;  %v9600_v48 = vpop.f32.mrb[22].mxu0  ;;  %v9854_v17 = vpop.eup %9853  ;;  %v6029_v22 = vadd.f32 1.0, %v9852_v31 }
 0xb97   :  { %v5985_v39 = vmul.f32 %v13814_v6, %v13814_v6  ;;  %v5976_v56 = vadd.f32 %v9600_v48, %v9235_v24  ;;  %v5967_v30 = vpop.f32.mrb[23].mxu0  ;;  %v9856_v0 = vpop.eup %9855  ;;  %v6027_v38 = vadd.f32 1.0, %v9854_v17 }
 0xb98   :  { %v5983_v3 = vmul.f32 %v13816_v20, %v13816_v20  ;;  %v5968_v51 = vadd.f32 %v9235_v24, %v5967_v30  ;;  %v9858_v61 = vpop.eup %9857  ;;  %v6037_v4 = vmul.f32 0.5, %v6029_v22  ;;  %v6030_v47 = vadd.f32 1.0, %v9856_v0 }
 0xb99   :  { %v5993_v50 = vmul.f32 %v5985_v39, %v13814_v6  ;;  %v5986_v23 = vmul.f32 %v5976_v56, %v5976_v56  ;;  %v6035_v37 = vmul.f32 0.5, %v6027_v38  ;;  %v6028_v55 = vadd.f32 1.0, %v9858_v61 }
 0xb9a   :  { %v5991_v2 = vmul.f32 %v5983_v3, %v13816_v20  ;;  %v5984_v8 = vmul.f32 %v5968_v51, %v5968_v51  ;;  %v6038_v53 = vmul.f32 0.5, %v6030_v47  ;;  %v6045_v34 = vmul.f32 %v6037_v4, %v5957_v43 }
 0xb9b   :  { %v6001_v52 = vmul.f32 0.044715, %v5993_v50  ;;  %v5994_v36 = vmul.f32 %v5986_v23, %v5976_v56  ;;  %v6036_v40 = vmul.f32 0.5, %v6028_v55  ;;  %v6043_v13 = vmul.f32 %v6035_v37, %v13808_v28  ;;  %v13836_v37 = vld [vmem:[%s15574_s11 + $0x9] ss:$0 sm:$0xff] }
 0xb9c   :  { %v5999_v11 = vmul.f32 0.044715, %v5991_v2  ;;  %v5992_v19 = vmul.f32 %v5984_v8, %v5968_v51  ;;  %v6046_v7 = vmul.f32 %v6038_v53, %v5960_v9 }
 0xb9d   :  { %v6009_v24 = vadd.f32 %v6001_v52, %v13814_v6  ;;  %v6002_v45 = vmul.f32 0.044715, %v5994_v36  ;;  %v6044_v63 = vmul.f32 %v6036_v40, %v5952_v35 }
 0xb9e   :  { %v6007_v44 = vadd.f32 %v5999_v11, %v13816_v20  ;;  %v6000_v58 = vmul.f32 0.044715, %v5992_v19  ;;  %v6052_v46 = vpack.c.bf16 %v6046_v7, %v6045_v34 }
 0xb9f   :  { %v6017_v14 = vmul.f32 0.7978846, %v6009_v24  ;;  %v6010_v25 = vadd.f32 %v6002_v45, %v5976_v56  ;;  %v6051_v41 = vpack.c.bf16 %v6044_v63, %v6043_v13  ;;  %v13863_v45 = vld [vmem:[%s15567_s4 + $0xb] ss:$0 sm:$0xff] }
 0xba0   :  { %v6015_v42 = vmul.f32 0.7978846, %v6007_v44  ;;  %v6008_v5 = vadd.f32 %v6000_v58, %v5968_v51 }
 0xba1   :  { %9859 = vtanh.f32 %v6017_v14  ;;  %v6018_v54 = vmul.f32 0.7978846, %v6010_v25  ;;  %9609 = vmatprep.mubr.msk.bf16.mxu0 %vm6092_vm4, %v6051_v41 }
 0xba2   :  { %9861 = vtanh.f32 %v6015_v42  ;;  %v6016_v43 = vmul.f32 0.7978846, %v6008_v5  ;;  %9610 = vmatmul.mubr.msk.bf16.vlgmr.msra.gmra.mrb[24].mxu0 %vm6092_vm4, %v6052_v46  ;;  %v13885_v42 = vld [vmem:[%s15567_s4 + $0x9] ss:$0 sm:$0xff] }
 0xba3   :  { %9863 = vtanh.f32 %v6018_v54 }
 0xba4   :  { %9865 = vtanh.f32 %v6016_v43  ;;  %v13897_v43 = vld [vmem:[%s15567_s4 + $0xc] ss:$0 sm:$0xff] }
 0xbab   :  { %v9860_v28 = vpop.eup %9859 }
 0xbac   :  { %v9862_v9 = vpop.eup %9861  ;;  %v6033_v35 = vadd.f32 1.0, %v9860_v28 }
 0xbad   :  { %v9864_v29 = vpop.eup %9863  ;;  %v6031_v31 = vadd.f32 1.0, %v9862_v9 }
 0xbae   :  { %v9866_v48 = vpop.eup %9865  ;;  %v6041_v17 = vmul.f32 0.5, %v6033_v35  ;;  %v6034_v22 = vadd.f32 1.0, %v9864_v29 }
 0xbaf   :  { %v6039_v39 = vmul.f32 0.5, %v6031_v31  ;;  %v6032_v30 = vadd.f32 1.0, %v9866_v48 }
 0xbb0   :  { %v6042_v0 = vmul.f32 0.5, %v6034_v22  ;;  %v6049_v3 = vmul.f32 %v6041_v17, %v13814_v6  ;;  %v13841_v6 = vld [vmem:[%s15574_s11 + $0xa] ss:$0 sm:$0xff] }
 0xbb1   :  { %v6040_v38 = vmul.f32 0.5, %v6032_v30  ;;  %v6047_v4 = vmul.f32 %v6039_v39, %v13816_v20  ;;  %v13913_v17 = vld [vmem:[%s15567_s4 + $0xa] ss:$0 sm:$0xff] }
 0xbb2   :  { %v6050_v61 = vmul.f32 %v6042_v0, %v5976_v56 }
 0xbb3   :  { %v6048_v47 = vmul.f32 %v6040_v38, %v5968_v51 }
 0xbb4   :  { %v6054_v50 = vpack.c.bf16 %v6050_v61, %v6049_v3 }
 0xbb5   :  { %v6053_v23 = vpack.c.bf16 %v6048_v47, %v6047_v4 }
 0xbb7   :  { %9613 = vmatprep.mubr.msk.bf16.mxu0 %vm6092_vm4, %v6053_v23 }
 0xbb8   :  { %9614 = vmatmul.mubr.msk.bf16.gmra.mrb[28].mxu0 %vm6092_vm4, %v6054_v50 }
 0xc75   :  { %v9611_v55 = vpop.f32.mrb[24].mxu0 }
 0xc76   :  { %v6148_v20 = vadd.f32 %v9611_v55, %v13836_v37  ;;  %v6139_v56 = vpop.f32.mrb[25].mxu0  ;;  %v13940_v55 = vld [vmem:[%s15567_s4 + $0xd] ss:$0 sm:$0xff] }
 0xc77   :  { %v6140_v51 = vadd.f32 %v13836_v37, %v6139_v56  ;;  %v9612_v2 = vpop.f32.mrb[26].mxu0 }
 0xc78   :  { %v6177_v8 = vmul.f32 %v13841_v6, %v6148_v20  ;;  %v6151_v53 = vadd.f32 %v9612_v2, %v13836_v37  ;;  %v6142_v52 = vpop.f32.mrb[27].mxu0 }
 0xc79   :  { %v6175_v36 = vmul.f32 %v13841_v6, %v6140_v51  ;;  %v6143_v40 = vadd.f32 %v13836_v37, %v6142_v52 }
 0xc7a   :  { %v13850_v11 = vadd.f32 %v6177_v8, %v13298_v32  ;;  %v6178_v19 = vmul.f32 %v13841_v6, %v6151_v53 }
 0xc7b   :  { %v6176_v34 = vmul.f32 %v13841_v6, %v6143_v40  ;;  %v13855_v7 = vadd.f32 %v6175_v36, %v13269_v57  ;;  %v13874_v57 = vld [vmem:[%s15567_s4 + $0x8] ss:$0 sm:$0xff] }
 0xc7c   :  { %v13858_v24 = vadd.f32 %v6178_v19, %v13294_v12  ;;  %v6193_v32 = vrot.slane %v13850_v11, 5  ;;  %v6239_v63 = vrot.slane %v13850_v11, 6  ;;  %v6284_v44 = vrot.slane %v13850_v11, 7 }
 0xc7d   :  { %v13866_v13 = vadd.f32 %v6176_v34, %v13336_v21  ;;  %v6350_v12 = vrot.slane %v13850_v11, 1  ;;  %v6334_v41 = vmul.f32 %v13863_v45, %v13850_v11  ;;  %v6395_v28 = vrot.slane %v13850_v11, 2 }
 0xc7e   :  { %v6351_v58 = vrot.slane %v13858_v24, 1  ;;  %v6396_v46 = vrot.slane %v13858_v24, 2  ;;  %v6441_v21 = vrot.slane %v13858_v24, 3  ;;  %v6440_v9 = vrot.slane %v13850_v11, 3 }
 0xc7f   :  { %v6192_v14 = vrot.slane %v13866_v13, 5  ;;  %v6238_v25 = vrot.slane %v13866_v13, 6  ;;  %v6283_v5 = vrot.slane %v13866_v13, 7  ;;  %v6191_v35 = vrot.slane %v13855_v7, 5 }
 0xc80   :  { %v6360_v54 = vsel %vm4832_vm8, %v6350_v12, %v6351_v58  ;;  %v6237_v22 = vrot.slane %v13855_v7, 6  ;;  %v6405_v0 = vsel %vm4979_vm9, %v6395_v28, %v6396_v46  ;;  %v6450_v38 = vsel %vm5126_vm10, %v6440_v9, %v6441_v21 }
 0xc81   :  { %v6204_v29 = vsel %vm4302_vm6, %v6192_v14, %v6193_v32  ;;  %v6250_v31 = vsel %vm4351_vm5, %v6238_v25, %v6239_v63  ;;  %v6295_v48 = vsel %vm4579_vm7, %v6283_v5, %v6284_v44  ;;  %v6379_v3 = vmul.f32 %v13897_v43, %v6360_v54 }
 0xc82   :  { %v6223_v39 = vmul.f32 %v13874_v57, %v6204_v29  ;;  %v6268_v30 = vmul.f32 %v13885_v42, %v6250_v31  ;;  %v6205_v61 = vsel %vm4302_vm6, %v6191_v35, %v6192_v14  ;;  %v6251_v4 = vsel %vm4351_vm5, %v6237_v22, %v6238_v25  ;;  %v13962_v29 = vld [vmem:[%s15567_s4 + $0xe] ss:$0 sm:$0xff] }
 0xc83   :  { %v6282_v47 = vrot.slane %v13855_v7, 7  ;;  %v6313_v23 = vmul.f32 %v13913_v17, %v6295_v48  ;;  %v6222_v20 = vmul.f32 %v13874_v57, %v6205_v61  ;;  %v6267_v56 = vmul.f32 %v13885_v42, %v6251_v4 }
 0xc84   :  { %v6276_v50 = vadd.f32 %v6268_v30, %v6223_v39  ;;  %v6349_v2 = vrot.slane %v13866_v13, 1  ;;  %v6394_v8 = vrot.slane %v13866_v13, 2  ;;  %v6439_v53 = vrot.slane %v13866_v13, 3 }
 0xc85   :  { %v6296_v51 = vsel %vm4579_vm7, %v6282_v47, %v6283_v5  ;;  %v6275_v36 = vadd.f32 %v6267_v56, %v6222_v20  ;;  %v6194_v19 = vrot.slane %v13858_v24, 5  ;;  %v6424_v34 = vmul.f32 %v13940_v55, %v6405_v0 }
 0xc86   :  { %v6321_v52 = vadd.f32 %v6313_v23, %v6276_v50  ;;  %v6312_v40 = vmul.f32 %v13913_v17, %v6296_v51  ;;  %v6333_v14 = vmul.f32 %v13863_v45, %v13866_v13  ;;  %v6361_v25 = vsel %vm4832_vm8, %v6349_v2, %v6350_v12 }
 0xc87   :  { %v6240_v5 = vrot.slane %v13858_v24, 6  ;;  %v6406_v48 = vsel %vm4979_vm9, %v6394_v8, %v6395_v28  ;;  %v6451_v39 = vsel %vm5126_vm10, %v6439_v53, %v6440_v9  ;;  %v6378_v12 = vmul.f32 %v13897_v43, %v6361_v25 }
 0xc88   :  { %v6342_v54 = vadd.f32 %v6334_v41, %v6321_v52  ;;  %v6320_v31 = vadd.f32 %v6312_v40, %v6275_v36  ;;  %v6203_v41 = vsel %vm4302_vm6, %v6193_v32, %v6194_v19  ;;  %v6285_v0 = vrot.slane %v13858_v24, 7 }
 0xc89   :  { %v6249_v30 = vsel %vm4351_vm5, %v6239_v63, %v6240_v5  ;;  %v6224_v50 = vmul.f32 %v13874_v57, %v6203_v41  ;;  %v6469_v56 = vmul.f32 %v13962_v29, %v6450_v38  ;;  %v6423_v32 = vmul.f32 %v13940_v55, %v6406_v48 }
 0xc8a   :  { %v6387_v61 = vadd.f32 %v6379_v3, %v6342_v54  ;;  %v6341_v4 = vadd.f32 %v6333_v14, %v6320_v31  ;;  %v6269_v9 = vmul.f32 %v13885_v42, %v6249_v30  ;;  %v6294_v63 = vsel %vm4579_vm7, %v6284_v44, %v6285_v0  ;;  %v13999_v54 = vld [vmem:[%s15574_s11 + $0xb] ss:$0 sm:$0xff] }
 0xc8b   :  { %v9615_v28 = vpop.f32.mrb[28].mxu0  ;;  %v6468_v31 = vmul.f32 %v13962_v29, %v6451_v39  ;;  %v6314_v44 = vmul.f32 %v13913_v17, %v6294_v63  ;;  %v6438_v59 = vrot.slane %v13855_v7, 3 }
 0xc8c   :  { %v6164_v23 = vadd.f32 %v9615_v28, %v13836_v37  ;;  %v6155_v20 = vpop.f32.mrb[29].mxu0  ;;  %v6432_v52 = vadd.f32 %v6424_v34, %v6387_v61  ;;  %v6386_v36 = vadd.f32 %v6378_v12, %v6341_v4  ;;  %v6277_v40 = vadd.f32 %v6269_v9, %v6224_v50 }
 0xc8d   :  { %v6156_v3 = vadd.f32 %v13836_v37, %v6155_v20  ;;  %v9616_v51 = vpop.f32.mrb[30].mxu0  ;;  %v6335_v61 = vmul.f32 %v13863_v45, %v13858_v24  ;;  %v6348_v4 = vrot.slane %v13855_v7, 1 }
 0xc8e   :  { %v6181_v14 = vmul.f32 %v13841_v6, %v6164_v23  ;;  %v6167_v25 = vadd.f32 %v9616_v51, %v13836_v37  ;;  %v6158_v38 = vpop.f32.mrb[31].mxu0  ;;  %v6477_v12 = vadd.f32 %v6469_v56, %v6432_v52  ;;  %v6431_v41 = vadd.f32 %v6423_v32, %v6386_v36 }
 0xc8f   :  { %v6179_v48 = vmul.f32 %v13841_v6, %v6156_v3  ;;  %v6159_v34 = vadd.f32 %v13836_v37, %v6158_v38  ;;  %v6322_v28 = vadd.f32 %v6314_v44, %v6277_v40  ;;  %v14024_v56 = vmul.f32 %v13863_v45, %v13855_v7 }
 0xc90   :  { %v6182_v30 = vmul.f32 %v13841_v6, %v6167_v25  ;;  %v14014_v9 = vadd.f32 %v13999_v54, %v6477_v12  ;;  %v6476_v23 = vadd.f32 %v6468_v31, %v6431_v41  ;;  %v14017_v37 = vadd.f32 %v6181_v14, %v13454_v33 }
 0xc91   :  { %v14010_v50 = vadd.f32 %v6179_v48, %v13430_v15  ;;  %v6180_v39 = vmul.f32 %v13841_v6, %v6159_v34  ;;  %v6362_v15 = vsel %vm4832_vm8, %v6348_v4, %v6349_v2  ;;  %v6393_v12 = vrot.slane %v13855_v7, 2 }
 0xc92   :  { %v14020_v20 = vadd.f32 %v6182_v30, %v13358_v10  ;;  %v6504_v6 = vsel %vm156_vm2, %v14014_v9, 0.0  ;;  %v14033_v32 = vadd.f32 %v13999_v54, %v6476_v23  ;;  %v6532_v33 = vmul.f32 %v14014_v9, %v14014_v9 }
 0xc93   :  { %v6343_v10 = vadd.f32 %v6335_v61, %v6322_v28  ;;  %6505 = vadd.xlane.f32.xlu1 %v6504_v6  ;;  %v6352_v63 = vrot.slane %v14010_v50, 1  ;;  %v6397_v3 = vrot.slane %v14010_v50, 2  ;;  %v6442_v51 = vrot.slane %v14010_v50, 3 }
 0xc94   :  { %v6195_v52 = vrot.slane %v14010_v50, 5  ;;  %v14042_v2 = vadd.f32 %v6180_v39, %v13458_v1  ;;  %v6501_v36 = vsel %vm156_vm2, %v14033_v32, 0.0  ;;  %v6241_v40 = vrot.slane %v14010_v50, 6 }
 0xc95   :  { %v14048_v14 = vmul.f32 %v13897_v43, %v6362_v15  ;;  %6502 = vadd.xlane.f32.xlu0 %v6501_v36  ;;  %v6359_v25 = vsel %vm4832_vm8, %v6351_v58, %v6352_v63  ;;  %v6404_v1 = vsel %vm4979_vm9, %v6396_v46, %v6397_v3  ;;  %v6449_v38 = vsel %vm5126_vm10, %v6441_v21, %v6442_v51 }
 0xc96   :  { %v6202_v31 = vsel %vm4302_vm6, %v6194_v19, %v6195_v52  ;;  %v6544_v44 = vsel %vm156_vm2, %v6532_v33, 0.0  ;;  %v6367_v58 = vsel %vm4852_vm1, %v6359_v25, 0.0  ;;  %v6412_v46 = vsel %vm4999_vm12, %v6404_v1, 0.0 }
 0xc97   :  { %v6531_v48 = vmul.f32 %v14033_v32, %v14033_v32  ;;  %6545 = vadd.xlane.f32.xlu1 %v6544_v44  ;;  %v6380_v21 = vmul.f32 %v13897_v43, %v6367_v58  ;;  %v6457_v34 = vsel %vm5146_vm13, %v6449_v38, 0.0  ;;  %v6211_v19 = vsel %vm4315_vm15, %v6202_v31, 0.0 }
 0xc98   :  { %v6425_v41 = vmul.f32 %v13940_v55, %v6412_v46  ;;  %v6225_v30 = vmul.f32 %v13874_v57, %v6211_v19  ;;  %v6248_v28 = vsel %vm4351_vm5, %v6240_v5, %v6241_v40  ;;  %v6286_v61 = vrot.slane %v14010_v50, 7 }
 0xc99   :  { %v6388_v39 = vadd.f32 %v6380_v21, %v6343_v10  ;;  %v6257_v23 = vsel %vm4364_vm14, %v6248_v28, 0.0  ;;  %v6353_v15 = vrot.slane %v14042_v2, 1  ;;  %v6398_v6 = vrot.slane %v14042_v2, 2 }
 0xc9a   :  { %v6541_v33 = vsel %vm156_vm2, %v6531_v48, 0.0  ;;  %v6270_v36 = vmul.f32 %v13885_v42, %v6257_v23  ;;  %v6293_v25 = vsel %vm4579_vm7, %v6285_v0, %v6286_v61  ;;  %v6198_v5 = vrot.slane %v14020_v20, 5 }
 0xc9b   :  { %v6433_v1 = vadd.f32 %v6425_v41, %v6388_v39  ;;  %v6470_v10 = vmul.f32 %v13962_v29, %v6457_v34  ;;  %v6302_v38 = vsel %vm4592_vm0, %v6293_v25, 0.0  ;;  %v6358_v31 = vsel %vm4832_vm8, %v6352_v63, %v6353_v15 }
 0xc9c   :  { %v6278_v44 = vadd.f32 %v6270_v36, %v6225_v30  ;;  %v6315_v58 = vmul.f32 %v13913_v17, %v6302_v38  ;;  %v6403_v0 = vsel %vm4979_vm9, %v6397_v3, %v6398_v6  ;;  %v6443_v46 = vrot.slane %v14042_v2, 3 }
 0xc9d   :  { %v6478_v48 = vadd.f32 %v6470_v10, %v6433_v1  ;;  %v6336_v21 = vmul.f32 %v13863_v45, %v14010_v50  ;;  %v6206_v63 = vsel %vm4302_vm6, %v6198_v5, %v6191_v35  ;;  %v6244_v34 = vrot.slane %v14020_v20, 6 }
 0xc9e   :  { %v6323_v19 = vadd.f32 %v6315_v58, %v6278_v44  ;;  %v6381_v41 = vmul.f32 %v13897_v43, %v6358_v31  ;;  %v6207_v3 = vsel %vm4315_vm15, %v6206_v63, 0.0  ;;  %v6289_v30 = vrot.slane %v14020_v20, 7 }
 0xc9f   :  { %v14128_v28 = vadd.f32 %v13999_v54, %v6478_v48  ;;  %v6426_v39 = vmul.f32 %v13940_v55, %v6403_v0  ;;  %v6221_v23 = vmul.f32 %v13874_v57, %v6207_v3  ;;  %v6252_v35 = vsel %vm4351_vm5, %v6244_v34, %v6237_v22 }
 0xca0   :  { %v6344_v36 = vadd.f32 %v6336_v21, %v6323_v19  ;;  %v6448_v18 = vsel %vm5126_vm10, %v6442_v51, %v6443_v46  ;;  %v6253_v25 = vsel %vm4364_vm14, %v6252_v35, 0.0  ;;  %v6297_v1 = vsel %vm4579_vm7, %v6289_v30, %v6282_v47 }
 0xca1   :  { %v6507_v10 = vsel %vm156_vm2, %v14128_v28, 0.0  ;;  %v6266_v22 = vmul.f32 %v13885_v42, %v6253_v25  ;;  %v6298_v38 = vsel %vm4592_vm0, %v6297_v1, 0.0  ;;  %v6407_v62 = vsel %vm4979_vm9, %v6393_v12, %v6394_v8 }
 0xca2   :  { %6508 = vadd.xlane.f32.xlu0 %v6507_v10  ;;  %v6389_v51 = vadd.f32 %v6381_v41, %v6344_v36  ;;  %v6533_v47 = vmul.f32 %v14128_v28, %v14128_v28  ;;  %v6311_v31 = vmul.f32 %v13913_v17, %v6298_v38  ;;  %v6196_v44 = vrot.slane %v14042_v2, 5 }
 0xca3   :  { %v6274_v58 = vadd.f32 %v6266_v22, %v6221_v23  ;;  %v6242_v0 = vrot.slane %v14042_v2, 6  ;;  %v6287_v48 = vrot.slane %v14042_v2, 7  ;;  %v6471_v63 = vmul.f32 %v13962_v29, %v6448_v18 }
 0xca4   :  { %v6434_v21 = vadd.f32 %v6426_v39, %v6389_v51  ;;  %v6422_v8 = vmul.f32 %v13940_v55, %v6407_v62  ;;  %v6201_v19 = vsel %vm4302_vm6, %v6195_v52, %v6196_v44  ;;  %v6452_v3 = vsel %vm5126_vm10, %v6438_v59, %v6439_v53 }
 0xca5   :  { %v6319_v41 = vadd.f32 %v6311_v31, %v6274_v58  ;;  %v6226_v39 = vmul.f32 %v13874_v57, %v6201_v19  ;;  %v6247_v23 = vsel %vm4351_vm5, %v6241_v40, %v6242_v0  ;;  %v6292_v36 = vsel %vm4579_vm7, %v6286_v61, %v6287_v48 }
 0xca6   :  { %6542 = vadd.xlane.f32.xlu0 %v6541_v33  ;;  %v6479_v35 = vadd.f32 %v6471_v63, %v6434_v21  ;;  %v6271_v52 = vmul.f32 %v13885_v42, %v6247_v23  ;;  %v6354_v53 = vrot.slane %v14017_v37, 1  ;;  %v6547_v18 = vsel %vm156_vm2, %v6533_v47, 0.0 }
 0xca7   :  { %v6340_v25 = vadd.f32 %v14024_v56, %v6319_v41  ;;  %v6316_v1 = vmul.f32 %v13913_v17, %v6292_v36  ;;  %v6337_v40 = vmul.f32 %v13863_v45, %v14042_v2  ;;  %v6399_v22 = vrot.slane %v14017_v37, 2 }
 0xca8   :  { %v14201_v33 = vadd.f32 %v13999_v54, %v6479_v35  ;;  %v6279_v10 = vadd.f32 %v6271_v52, %v6226_v39  ;;  %v6357_v61 = vsel %vm4832_vm8, %v6353_v15, %v6354_v53  ;;  %v6467_v38 = vmul.f32 %v13962_v29, %v6452_v3 }
 0xca9   :  { %v6385_v56 = vadd.f32 %v14048_v14, %v6340_v25  ;;  %v6444_v62 = vrot.slane %v14017_v37, 3  ;;  %v6197_v51 = vrot.slane %v14017_v37, 5  ;;  %v6382_v58 = vmul.f32 %v13897_v43, %v6357_v61 }
 0xcaa   :  { %v6510_v47 = vsel %vm156_vm2, %v14201_v33, 0.0  ;;  %6548 = vadd.xlane.f32.xlu0 %v6547_v18  ;;  %v6324_v31 = vadd.f32 %v6316_v1, %v6279_v10  ;;  %v6402_v14 = vsel %vm4979_vm9, %v6398_v6, %v6399_v22  ;;  %v6243_v63 = vrot.slane %v14017_v37, 6 }
 0xcab   :  { %6511 = vadd.xlane.f32.xlu1 %v6510_v47  ;;  %v6430_v15 = vadd.f32 %v6422_v8, %v6385_v56  ;;  %v6199_v21 = vsel %vm4302_vm6, %v6197_v51, %v6198_v5  ;;  %v6288_v19 = vrot.slane %v14017_v37, 7  ;;  %v6447_v3 = vsel %vm5126_vm10, %v6443_v46, %v6444_v62 }
 0xcac   :  { %v6345_v41 = vadd.f32 %v6337_v40, %v6324_v31  ;;  %v6228_v6 = vmul.f32 %v13874_v57, %v6199_v21  ;;  %v6355_v8 = vrot.slane %v14020_v20, 1  ;;  %v6245_v5 = vsel %vm4351_vm5, %v6243_v63, %v6244_v34 }
 0xcad   :  { %v6475_v39 = vadd.f32 %v6467_v38, %v6430_v15  ;;  %v6290_v23 = vsel %vm4579_vm7, %v6288_v19, %v6289_v30  ;;  %v6400_v35 = vrot.slane %v14020_v20, 2  ;;  %v6427_v46 = vmul.f32 %v13940_v55, %v6402_v14 }
 0xcae   :  { %v6390_v52 = vadd.f32 %v6382_v58, %v6345_v41  ;;  %v6273_v36 = vmul.f32 %v13885_v42, %v6245_v5  ;;  %v6363_v18 = vsel %vm4832_vm8, %v6355_v8, %v6348_v4  ;;  %v6472_v34 = vmul.f32 %v13962_v29, %v6447_v3 }
 0xcaf   :  { %v14253_v25 = vadd.f32 %v13999_v54, %v6475_v39  ;;  %v6408_v30 = vsel %vm4979_vm9, %v6400_v35, %v6393_v12  ;;  %v6445_v1 = vrot.slane %v14020_v20, 3  ;;  %v6318_v61 = vmul.f32 %v13913_v17, %v6290_v23 }
 0xcb0   :  { %v6435_v40 = vadd.f32 %v6427_v46, %v6390_v52  ;;  %v6281_v10 = vadd.f32 %v6273_v36, %v6228_v6  ;;  %v6371_v56 = vsel %vm4852_vm1, %v6363_v18, 0.0  ;;  %v6339_v47 = vmul.f32 %v13863_v45, %v14020_v20 }
 0xcb1   :  { %v6498_v4 = vsel %vm156_vm2, %v14253_v25, 0.0  ;;  %v6530_v38 = vmul.f32 %v14253_v25, %v14253_v25  ;;  %v6416_v12 = vsel %vm4999_vm12, %v6408_v30, 0.0  ;;  %v6453_v26 = vsel %vm5126_vm10, %v6445_v1, %v6438_v59 }
 0xcb2   :  { %6499 = vadd.xlane.f32.xlu1 %v6498_v4  ;;  %v6480_v31 = vadd.f32 %v6472_v34, %v6435_v40  ;;  %v6326_v58 = vadd.f32 %v6318_v61, %v6281_v10  ;;  %v6200_v14 = vsel %vm4302_vm6, %v6196_v44, %v6197_v51  ;;  %v6384_v15 = vmul.f32 %v13897_v43, %v6371_v56  ;;  %v9808_v56 = vld [vmem:[%s15568_s5 + $0x10] sm:$0xff]   ;;  %v9809_v4 = vld [vmem:[%s15568_s5 + $0x18] sm:$0xff]  }
 0xcb3   :  { %v6227_v21 = vmul.f32 %v13874_v57, %v6200_v14  ;;  %v6246_v49 = vsel %vm4351_vm5, %v6242_v0, %v6243_v63  ;;  %v6291_v44 = vsel %vm4579_vm7, %v6287_v48, %v6288_v19  ;;  %v6538_v51 = vsel %vm156_vm2, %v6530_v38, 0.0  ;;  %9617 = vmatprep.subr.bf16.mxu0 %v9808_v56 }
 0xcb4   :  { %v14287_v41 = vadd.f32 %v13999_v54, %v6480_v31  ;;  %v6347_v3 = vadd.f32 %v6339_v47, %v6326_v58  ;;  %v6272_v59 = vmul.f32 %v13885_v42, %v6246_v49  ;;  %v6429_v57 = vmul.f32 %v13940_v55, %v6416_v12  ;;  %9618 = vmatpush3.bf16.msra.mxu0 %v9808_v56 }
 0xcb5   :  { %v6461_v6 = vsel %vm5146_vm13, %v6453_v26, 0.0  ;;  %v6317_v42 = vmul.f32 %v13913_v17, %v6291_v44  ;;  %v6356_v48 = vsel %vm4832_vm8, %v6354_v53, %v6355_v8  ;;  %v6338_v16 = vmul.f32 %v13863_v45, %v14017_v37  ;;  %9619 = vmatprep.subr.bf16.mxu0 %v9809_v4 }
 0xcb6   :  { %v6513_v0 = vsel %vm156_vm2, %v14287_v41, 0.0  ;;  %6539 = vadd.xlane.f32.xlu1 %v6538_v51  ;;  %v6392_v63 = vadd.f32 %v6384_v15, %v6347_v3  ;;  %v6280_v39 = vadd.f32 %v6272_v59, %v6227_v21  ;;  %v6474_v5 = vmul.f32 %v13962_v29, %v6461_v6 }
 0xcb7   :  { %6514 = vadd.xlane.f32.xlu0 %v6513_v0  ;;  %v6401_v52 = vsel %vm4979_vm9, %v6399_v22, %v6400_v35  ;;  %v6383_v36 = vmul.f32 %v13897_v43, %v6356_v48  ;;  %v6446_v53 = vsel %vm5126_vm10, %v6444_v62, %v6445_v1  ;;  %v6535_v43 = vmul.f32 %v14287_v41, %v14287_v41 }
 0xcb8   :  { %v6437_v19 = vadd.f32 %v6429_v57, %v6392_v63  ;;  %v6325_v23 = vadd.f32 %v6317_v42, %v6280_v39  ;;  %v6428_v45 = vmul.f32 %v13940_v55, %v6401_v52  ;;  %v6473_v22 = vmul.f32 %v13962_v29, %v6446_v53  ;;  %9620 = vmatpush3.bf16.msra.mxu0 %v9809_v4 }
 0xcb9   :  { %v6553_v62 = vsel %vm156_vm2, %v6535_v43, 0.0  ;;  %v6534_v29 = vmul.f32 %v14201_v33, %v14201_v33 }
 0xcba   :  { %v6482_v46 = vadd.f32 %v6474_v5, %v6437_v19  ;;  %v6346_v17 = vadd.f32 %v6338_v16, %v6325_v23 }
 0xcbb   :  { %v6550_v10 = vsel %vm156_vm2, %v6534_v29, 0.0 }
 0xcbc   :  { %v14318_v8 = vadd.f32 %v13999_v54, %v6482_v46  ;;  %v6391_v18 = vadd.f32 %v6383_v36, %v6346_v17 }
 0xcbe   :  { %v6519_v34 = vsel %vm156_vm2, %v14318_v8, 0.0  ;;  %v6436_v30 = vadd.f32 %v6428_v45, %v6391_v18  ;;  %v6537_v1 = vmul.f32 %v14318_v8, %v14318_v8 }
 0xcbf   :  { %6520 = vadd.xlane.f32.xlu0 %v6519_v34 }
 0xcc0   :  { %v6481_v35 = vadd.f32 %v6473_v22, %v6436_v30  ;;  %v6559_v40 = vsel %vm156_vm2, %v6537_v1, 0.0 }
 0xcc2   :  { %v14327_v27 = vadd.f32 %v13999_v54, %v6481_v35 }
 0xcc3   :  { %6554 = vadd.xlane.f32.xlu0 %v6553_v62 }
 0xcc4   :  { %v6516_v55 = vsel %vm156_vm2, %v14327_v27, 0.0  ;;  %v6536_v54 = vmul.f32 %v14327_v27, %v14327_v27 }
 0xcc5   :  { %6517 = vadd.xlane.f32.xlu1 %v6516_v55 }
 0xcc6   :  { %v6556_v61 = vsel %vm156_vm2, %v6536_v54, 0.0 }
 0xcc7   :  { %6560 = vadd.xlane.f32.xlu0 %v6559_v40 }
 0xcc9   :  { %6551 = vadd.xlane.f32.xlu1 %v6550_v10 }
 0xccd   :  { %6557 = vadd.xlane.f32.xlu1 %v6556_v61 }
 0xd20   :  { %v6506_v47 = vpop.xlane.xlu1 %6505 }
 0xd21   :  { %v6524_v26 = vmul.f32 0.03125, %v6506_v47 }
 0xd22   :  { %v6503_v38 = vpop.xlane.xlu0 %6502 }
 0xd23   :  { %v6523_v15 = vmul.f32 0.03125, %v6503_v38  ;;  %v6572_v59 = vmul.f32 %v6524_v26, %v6524_v26  ;;  %v6588_v35 = vsub.f32 %v14014_v9, %v6524_v26  ;;  %v9267_v38 = vld [vmem:[%s15574_s11 + $0xc] ss:$0 sm:$0xff] }
 0xd24   :  { %v6546_v58 = vpop.xlane.xlu1 %6545 }
 0xd25   :  { %v6564_v21 = vmul.f32 0.03125, %v6546_v58  ;;  %v6571_v6 = vmul.f32 %v6523_v15, %v6523_v15  ;;  %v6587_v62 = vsub.f32 %v14033_v32, %v6523_v15 }
 0xd27   :  { %v6580_v0 = vsub.f32 %v6564_v21, %v6572_v59  ;;  %v9268_v59 = vld [vmem:[%s15574_s11 + $0xd] ss:$0 sm:$0xff] }
 0xd29   :  { %v6596_v42 = vadd.f32 1e-06, %v6580_v0 }
 0xd2b   :  { %9867 = vrsqrt.f32 %v6596_v42 }
 0xd2f   :  { %v6509_v12 = vpop.xlane.xlu0 %6508 }
 0xd30   :  { %v6525_v14 = vmul.f32 0.03125, %v6509_v12 }
 0xd32   :  { %v6573_v57 = vmul.f32 %v6525_v14, %v6525_v14  ;;  %v6589_v43 = vsub.f32 %v14128_v28, %v6525_v14 }
 0xd33   :  { %v6543_v31 = vpop.xlane.xlu0 %6542 }
 0xd34   :  { %v6563_v44 = vmul.f32 0.03125, %v6543_v31 }
 0xd35   :  { %v9868_v45 = vpop.eup %9867 }
 0xd36   :  { %v6579_v39 = vsub.f32 %v6563_v44, %v6571_v6  ;;  %v6612_v54 = vmul.f32 %v9868_v45, %v6588_v35 }
 0xd37   :  { %v6549_v49 = vpop.xlane.xlu0 %6548 }
 0xd38   :  { %v6565_v3 = vmul.f32 0.03125, %v6549_v49  ;;  %v6512_v51 = vpop.xlane.xlu1 %6511  ;;  %v6595_v23 = vadd.f32 1e-06, %v6579_v39  ;;  %v6624_v14 = vmul.f32 %v9267_v38, %v6612_v54 }
 0xd39   :  { %v6526_v61 = vmul.f32 0.03125, %v6512_v51 }
 0xd3a   :  { %v6581_v63 = vsub.f32 %v6565_v3, %v6573_v57  ;;  %v6636_v39 = vadd.f32 %v9268_v59, %v6624_v14 }
 0xd3b   :  { %v6574_v15 = vmul.f32 %v6526_v61, %v6526_v61 }
 0xd3c   :  { %v6597_v19 = vadd.f32 1e-06, %v6581_v63 }
 0xd3e   :  { %9869 = vrsqrt.f32 %v6597_v19 }
 0xd3f   :  { %v6500_v48 = vpop.xlane.xlu1 %6499  ;;  %9871 = vrsqrt.f32 %v6595_v23 }
 0xd40   :  { %v6522_v5 = vmul.f32 0.03125, %v6500_v48 }
 0xd42   :  { %v6570_v52 = vmul.f32 %v6522_v5, %v6522_v5  ;;  %v6586_v28 = vsub.f32 %v14253_v25, %v6522_v5 }
 0xd43   :  { %v6540_v16 = vpop.xlane.xlu1 %6539 }
 0xd44   :  { %v6562_v46 = vmul.f32 0.03125, %v6540_v16  ;;  %v6515_v17 = vpop.xlane.xlu0 %6514 }
 0xd45   :  { %v6527_v34 = vmul.f32 0.03125, %v6515_v17 }
 0xd46   :  { %v6578_v36 = vsub.f32 %v6562_v46, %v6570_v52 }
 0xd47   :  { %v6575_v29 = vmul.f32 %v6527_v34, %v6527_v34 }
 0xd48   :  { %v6594_v53 = vadd.f32 1e-06, %v6578_v36  ;;  %v9870_v30 = vpop.eup %9869 }
 0xd49   :  { %v9872_v22 = vpop.eup %9871  ;;  %v6613_v55 = vmul.f32 %v9870_v30, %v6589_v43 }
 0xd4a   :  { %9873 = vrsqrt.f32 %v6594_v53  ;;  %v6611_v4 = vmul.f32 %v9872_v22, %v6587_v62  ;;  %v6590_v22 = vsub.f32 %v14201_v33, %v6526_v61 }
 0xd4b   :  { %v6625_v31 = vmul.f32 %v9267_v38, %v6613_v55 }
 0xd4c   :  { %v6521_v18 = vpop.xlane.xlu0 %6520  ;;  %v6623_v3 = vmul.f32 %v9267_v38, %v6611_v4 }
 0xd4d   :  { %v6529_v40 = vmul.f32 0.03125, %v6521_v18  ;;  %v6637_v25 = vadd.f32 %v9268_v59, %v6625_v31  ;;  %v6591_v18 = vsub.f32 %v14287_v41, %v6527_v34 }
 0xd4e   :  { %v6635_v19 = vadd.f32 %v9268_v59, %v6623_v3 }
 0xd4f   :  { %v6577_v32 = vmul.f32 %v6529_v40, %v6529_v40  ;;  %v6643_v17 = vpack.c.bf16 %v6637_v25, %v6636_v39  ;;  %v6593_v43 = vsub.f32 %v14318_v8, %v6529_v40  ;;  %v9810_v8 = vld [vmem:[%s15570_s7 + $0x20] sm:$0xff]   ;;  %v9812_v40 = vld [vmem:[%s15570_s7 + $0x30] sm:$0xff]  }
 0xd50   :  { %v6555_v1 = vpop.xlane.xlu0 %6554  ;;  %9629 = vmatprep.subr.bf16.mxu0 %v9810_v8 }
 0xd51   :  { %v6567_v10 = vmul.f32 0.03125, %v6555_v1 }
 0xd52   :  { %v6518_v56 = vpop.xlane.xlu1 %6517 }
 0xd53   :  { %v6583_v47 = vsub.f32 %v6567_v10, %v6575_v29  ;;  %v6528_v44 = vmul.f32 0.03125, %v6518_v56 }
 0xd54   :  { %v9874_v12 = vpop.eup %9873  ;;  %v6561_v9 = vpop.xlane.xlu0 %6560 }
 0xd55   :  { %v6599_v58 = vadd.f32 1e-06, %v6583_v47  ;;  %v6569_v26 = vmul.f32 0.03125, %v6561_v9  ;;  %v6610_v49 = vmul.f32 %v9874_v12, %v6586_v28  ;;  %v6576_v5 = vmul.f32 %v6528_v44, %v6528_v44  ;;  %v9274_v9 = vld [vmem:[%s15569_s6 + $0x1] ss:$0 sm:$0xff] }
 0xd56   :  { %v6552_v21 = vpop.xlane.xlu1 %6551  ;;  %v6592_v29 = vsub.f32 %v14327_v27, %v6528_v44  ;;  %v9811_v27 = vld [vmem:[%s15570_s7 + $0x28] sm:$0xff]  }
 0xd57   :  { %9875 = vrsqrt.f32 %v6599_v58  ;;  %v6566_v51 = vmul.f32 0.03125, %v6552_v21  ;;  %v6585_v57 = vsub.f32 %v6569_v26, %v6577_v32  ;;  %v6622_v6 = vmul.f32 %v9267_v38, %v6610_v49 }
 0xd59   :  { %v6582_v0 = vsub.f32 %v6566_v51, %v6574_v15  ;;  %v6601_v63 = vadd.f32 1e-06, %v6585_v57  ;;  %v6634_v48 = vadd.f32 %v9268_v59, %v6622_v6 }
 0xd5a   :  { %v6558_v42 = vpop.xlane.xlu1 %6557 }
 0xd5b   :  { %v6598_v23 = vadd.f32 1e-06, %v6582_v0  ;;  %9877 = vrsqrt.f32 %v6601_v63  ;;  %v6568_v16 = vmul.f32 0.03125, %v6558_v42  ;;  %v6642_v52 = vpack.c.bf16 %v6635_v19, %v6634_v48 }
 0xd5d   :  { %9879 = vrsqrt.f32 %v6598_v23  ;;  %v6584_v46 = vsub.f32 %v6568_v16, %v6576_v5  ;;  %9621 = vmatprep.mubr.msk.bf16.mxu0 %vm156_vm2, %v6642_v52 }
 0xd5e   :  { %9622 = vmatmul.mubr.msk.bf16.vlgmr.msra.gmra.mrb[32].mxu0 %vm156_vm2, %v6643_v17 }
 0xd5f   :  { %v6600_v36 = vadd.f32 1e-06, %v6584_v46  ;;  %9630 = vmatpush3.bf16.msra.mxu0 %v9810_v8 }
 0xd60   :  { %9631 = vmatprep.subr.bf16.mxu0 %v9811_v27 }
 0xd61   :  { %v9876_v53 = vpop.eup %9875  ;;  %9881 = vrsqrt.f32 %v6600_v36 }
 0xd62   :  { %v6615_v45 = vmul.f32 %v9876_v53, %v6591_v18 }
 0xd63   :  { %9632 = vmatpush3.bf16.msra.mxu0 %v9811_v27 }
 0xd64   :  { %v6627_v1 = vmul.f32 %v9267_v38, %v6615_v45  ;;  %9633 = vmatprep.subr.bf16.mxu0 %v9812_v40 }
 0xd65   :  { %v9878_v30 = vpop.eup %9877 }
 0xd66   :  { %v6617_v55 = vmul.f32 %v9878_v30, %v6593_v43  ;;  %v6639_v4 = vadd.f32 %v9268_v59, %v6627_v1 }
 0xd67   :  { %v9880_v35 = vpop.eup %9879  ;;  %9634 = vmatpush3.bf16.msra.mxu0 %v9812_v40 }
 0xd68   :  { %v6614_v62 = vmul.f32 %v9880_v35, %v6590_v22  ;;  %v6629_v12 = vmul.f32 %v9267_v38, %v6617_v55 }
 0xd6a   :  { %v6626_v10 = vmul.f32 %v9267_v38, %v6614_v62  ;;  %v6641_v33 = vadd.f32 %v9268_v59, %v6629_v12 }
 0xd6b   :  { %v9882_v54 = vpop.eup %9881 }
 0xd6c   :  { %v6638_v56 = vadd.f32 %v9268_v59, %v6626_v10  ;;  %v6616_v47 = vmul.f32 %v9882_v54, %v6592_v29 }
 0xd6e   :  { %v6644_v28 = vpack.c.bf16 %v6639_v4, %v6638_v56  ;;  %v6628_v41 = vmul.f32 %v9267_v38, %v6616_v47  ;;  %v9813_v38 = vld [vmem:[%s15570_s7 + $0x38] sm:$0xff]  }
 0xd6f   :  { %9635 = vmatprep.subr.bf16.mxu0 %v9813_v38 }
 0xd70   :  { %9625 = vmatprep.mubr.msk.bf16.mxu0 %vm156_vm2, %v6644_v28  ;;  %v6640_v34 = vadd.f32 %v9268_v59, %v6628_v41  ;;  %9636 = vmatpush3.bf16.msra.mxu0 %v9813_v38 }
 0xd72   :  { %v6645_v61 = vpack.c.bf16 %v6641_v33, %v6640_v34 }
 0xd74   :  { %9626 = vmatmul.mubr.msk.bf16.gmra.mrb[36].mxu0 %vm156_vm2, %v6645_v61 }
 0xe31   :  { %v9623_v31 = vpop.f32.mrb[32].mxu0 }
 0xe32   :  { %v6726_v32 = vadd.f32 %v9623_v31, %v9274_v9  ;;  %v6717_v58 = vpop.f32.mrb[33].mxu0 }
 0xe33   :  { %v14380_v26 = vadd.f32 %v9274_v9, %v6717_v58  ;;  %v9624_v14 = vpop.f32.mrb[34].mxu0 }
 0xe34   :  { %v6750_v15 = vmul.f32 %v6726_v32, %v6726_v32  ;;  %v6729_v21 = vadd.f32 %v9624_v14, %v9274_v9  ;;  %v6720_v49 = vpop.f32.mrb[35].mxu0 }
 0xe35   :  { %v6748_v3 = vmul.f32 %v14380_v26, %v14380_v26  ;;  %v6721_v59 = vadd.f32 %v9274_v9, %v6720_v49 }
 0xe36   :  { %v6758_v44 = vmul.f32 %v6750_v15, %v6726_v32  ;;  %v6751_v51 = vmul.f32 %v6729_v21, %v6729_v21 }
 0xe37   :  { %v6756_v57 = vmul.f32 %v6748_v3, %v14380_v26  ;;  %v6749_v6 = vmul.f32 %v6721_v59, %v6721_v59 }
 0xe38   :  { %v6766_v25 = vmul.f32 0.044715, %v6758_v44  ;;  %v6759_v0 = vmul.f32 %v6751_v51, %v6729_v21 }
 0xe39   :  { %v6764_v63 = vmul.f32 0.044715, %v6756_v57  ;;  %v6757_v39 = vmul.f32 %v6749_v6, %v6721_v59 }
 0xe3a   :  { %v6774_v42 = vadd.f32 %v6766_v25, %v6726_v32  ;;  %v6767_v48 = vmul.f32 0.044715, %v6759_v0 }
 0xe3b   :  { %v6772_v19 = vadd.f32 %v6764_v63, %v14380_v26  ;;  %v6765_v5 = vmul.f32 0.044715, %v6757_v39 }
 0xe3c   :  { %v6782_v23 = vmul.f32 0.7978846, %v6774_v42  ;;  %v6775_v16 = vadd.f32 %v6767_v48, %v6729_v21 }
 0xe3d   :  { %v6780_v52 = vmul.f32 0.7978846, %v6772_v19  ;;  %v6773_v46 = vadd.f32 %v6765_v5, %v6721_v59 }
 0xe3e   :  { %9883 = vtanh.f32 %v6782_v23  ;;  %v6783_v17 = vmul.f32 0.7978846, %v6775_v16 }
 0xe3f   :  { %9885 = vtanh.f32 %v6780_v52  ;;  %v6781_v36 = vmul.f32 0.7978846, %v6773_v46 }
 0xe40   :  { %9887 = vtanh.f32 %v6783_v17 }
 0xe41   :  { %9889 = vtanh.f32 %v6781_v36 }
 0xe47   :  { %v9627_v53 = vpop.f32.mrb[36].mxu0 }
 0xe48   :  { %v14386_v18 = vadd.f32 %v9627_v53, %v9274_v9  ;;  %v6733_v45 = vpop.f32.mrb[37].mxu0  ;;  %v9884_v30 = vpop.eup %9883 }
 0xe49   :  { %v6734_v22 = vadd.f32 %v9274_v9, %v6733_v45  ;;  %v9628_v43 = vpop.f32.mrb[38].mxu0  ;;  %v9886_v35 = vpop.eup %9885  ;;  %v6798_v62 = vadd.f32 1.0, %v9884_v30 }
 0xe4a   :  { %v6754_v1 = vmul.f32 %v14386_v18, %v14386_v18  ;;  %v6745_v55 = vadd.f32 %v9628_v43, %v9274_v9  ;;  %v6736_v29 = vpop.f32.mrb[39].mxu0  ;;  %v9888_v10 = vpop.eup %9887  ;;  %v6796_v54 = vadd.f32 1.0, %v9886_v35 }
 0xe4b   :  { %v6752_v56 = vmul.f32 %v6734_v22, %v6734_v22  ;;  %v6737_v4 = vadd.f32 %v9274_v9, %v6736_v29  ;;  %v9890_v47 = vpop.eup %9889  ;;  %v6806_v12 = vmul.f32 0.5, %v6798_v62  ;;  %v6799_v28 = vadd.f32 1.0, %v9888_v10 }
 0xe4c   :  { %v6762_v41 = vmul.f32 %v6754_v1, %v14386_v18  ;;  %v6755_v34 = vmul.f32 %v6745_v55, %v6745_v55  ;;  %v6804_v33 = vmul.f32 0.5, %v6796_v54  ;;  %v6797_v61 = vadd.f32 1.0, %v9890_v47  ;;  %v9289_v54 = vld [vmem:[%s15574_s11 + $0xe] ss:$0 sm:$0xff]  ;;  %v9298_v47 = vld [vmem:[%s15574_s11 + $0xf] ss:$0 sm:$0xff] }
 0xe4d   :  { %v6760_v8 = vmul.f32 %v6752_v56, %v6734_v22  ;;  %v6753_v27 = vmul.f32 %v6737_v4, %v6737_v4  ;;  %v6807_v40 = vmul.f32 0.5, %v6799_v28  ;;  %v6814_v49 = vmul.f32 %v6806_v12, %v6726_v32 }
 0xe4e   :  { %v6770_v38 = vmul.f32 0.044715, %v6762_v41  ;;  %v6763_v31 = vmul.f32 %v6755_v34, %v6745_v55  ;;  %v6805_v58 = vmul.f32 0.5, %v6797_v61  ;;  %v6812_v51 = vmul.f32 %v6804_v33, %v14380_v26 }
 0xe4f   :  { %v6768_v14 = vmul.f32 0.044715, %v6760_v8  ;;  %v6761_v15 = vmul.f32 %v6753_v27, %v6737_v4  ;;  %v6815_v3 = vmul.f32 %v6807_v40, %v6729_v21 }
 0xe50   :  { %v6778_v9 = vadd.f32 %v6770_v38, %v14386_v18  ;;  %v6771_v44 = vmul.f32 0.044715, %v6763_v31  ;;  %v6813_v57 = vmul.f32 %v6805_v58, %v6721_v59 }
 0xe51   :  { %v6776_v6 = vadd.f32 %v6768_v14, %v6734_v22  ;;  %v6769_v25 = vmul.f32 0.044715, %v6761_v15  ;;  %v6821_v0 = vpack.c.bf16 %v6815_v3, %v6814_v49 }
 0xe52   :  { %v6786_v63 = vmul.f32 0.7978846, %v6778_v9  ;;  %v6779_v39 = vadd.f32 %v6771_v44, %v6745_v55  ;;  %v6820_v19 = vpack.c.bf16 %v6813_v57, %v6812_v51 }
 0xe53   :  { %v6784_v42 = vmul.f32 0.7978846, %v6776_v6  ;;  %v6777_v48 = vadd.f32 %v6769_v25, %v6737_v4 }
 0xe54   :  { %9891 = vtanh.f32 %v6786_v63  ;;  %v6787_v5 = vmul.f32 0.7978846, %v6779_v39  ;;  %9637 = vmatprep.mubr.msk.bf16.mxu0 %vm6092_vm4, %v6820_v19 }
 0xe55   :  { %9893 = vtanh.f32 %v6784_v42  ;;  %v6785_v23 = vmul.f32 0.7978846, %v6777_v48  ;;  %9638 = vmatmul.mubr.msk.bf16.vlgmr.msra.gmra.mrb[40].mxu0 %vm6092_vm4, %v6821_v0 }
 0xe56   :  { %9895 = vtanh.f32 %v6787_v5 }
 0xe57   :  { %9897 = vtanh.f32 %v6785_v23 }
 0xe5e   :  { %v9892_v32 = vpop.eup %9891 }
 0xe5f   :  { %v9894_v26 = vpop.eup %9893  ;;  %v6802_v21 = vadd.f32 1.0, %v9892_v32 }
 0xe60   :  { %v9896_v59 = vpop.eup %9895  ;;  %v6800_v16 = vadd.f32 1.0, %v9894_v26 }
 0xe61   :  { %v9898_v52 = vpop.eup %9897  ;;  %v6810_v46 = vmul.f32 0.5, %v6802_v21  ;;  %v6803_v17 = vadd.f32 1.0, %v9896_v59 }
 0xe62   :  { %v6808_v36 = vmul.f32 0.5, %v6800_v16  ;;  %v6801_v53 = vadd.f32 1.0, %v9898_v52 }
 0xe63   :  { %v6811_v45 = vmul.f32 0.5, %v6803_v17  ;;  %v6818_v43 = vmul.f32 %v6810_v46, %v14386_v18 }
 0xe64   :  { %v6809_v30 = vmul.f32 0.5, %v6801_v53  ;;  %v6816_v62 = vmul.f32 %v6808_v36, %v6734_v22 }
 0xe65   :  { %v6819_v35 = vmul.f32 %v6811_v45, %v6745_v55 }
 0xe66   :  { %v6817_v1 = vmul.f32 %v6809_v30, %v6737_v4 }
 0xe67   :  { %v6823_v29 = vpack.c.bf16 %v6819_v35, %v6818_v43  ;;  %v9814_v35 = vld [vmem:[%s15571_s8] sm:$0xff]  }
 0xe68   :  { %v6822_v10 = vpack.c.bf16 %v6817_v1, %v6816_v62  ;;  %9645 = vmatprep.subr.bf16.mxu0 %v9814_v35  ;;  %v9815_v62 = vld [vmem:[%s15571_s8 + $0x8] sm:$0xff]  }
 0xe69   :  { %9646 = vmatpush3.bf16.msra.mxu0 %v9814_v35 }
 0xe6a   :  { %9641 = vmatprep.mubr.msk.bf16.mxu0 %vm6092_vm4, %v6822_v10  ;;  %9647 = vmatprep.subr.bf16.mxu0 %v9815_v62 }
 0xe6b   :  { %9642 = vmatmul.mubr.msk.bf16.gmra.mrb[44].mxu0 %vm6092_vm4, %v6823_v29 }
 0xe6d   :  { %9648 = vmatpush3.bf16.msra.mxu0 %v9815_v62 }
 0xf28   :  { %v9639_v56 = vpop.f32.mrb[40].mxu0 }
 0xf29   :  { %v6917_v12 = vadd.f32 %v9639_v56, %v9289_v54  ;;  %v6908_v18 = vpop.f32.mrb[41].mxu0 }
 0xf2a   :  { %v6909_v55 = vadd.f32 %v9289_v54, %v6908_v18  ;;  %v9640_v22 = vpop.f32.mrb[42].mxu0 }
 0xf2b   :  { %v6946_v4 = vmul.f32 %v9298_v47, %v6917_v12  ;;  %v6920_v28 = vadd.f32 %v9640_v22, %v9289_v54  ;;  %v6911_v41 = vpop.f32.mrb[43].mxu0 }
 0xf2c   :  { %v6944_v34 = vmul.f32 %v9298_v47, %v6909_v55  ;;  %v6912_v33 = vadd.f32 %v9289_v54, %v6911_v41 }
 0xf2d   :  { %v14405_v61 = vadd.f32 %v6946_v4, %v13850_v11  ;;  %v6947_v8 = vmul.f32 %v9298_v47, %v6920_v28 }
 0xf2e   :  { %v6945_v27 = vmul.f32 %v9298_v47, %v6912_v33  ;;  %v14408_v40 = vadd.f32 %v6944_v34, %v13855_v7 }
 0xf2f   :  { %v14411_v38 = vadd.f32 %v6947_v8, %v13858_v24  ;;  %v6968_v31 = vsel %vm156_vm2, %v14405_v61, 0.0  ;;  %v6996_v7 = vmul.f32 %v14405_v61, %v14405_v61 }
 0xf30   :  { %6969 = vadd.xlane.f32.xlu1 %v6968_v31  ;;  %v14416_v58 = vadd.f32 %v6945_v27, %v13866_v13  ;;  %v6962_v11 = vsel %vm156_vm2, %v14408_v40, 0.0  ;;  %v6994_v49 = vmul.f32 %v14408_v40, %v14408_v40 }
 0xf31   :  { %v6971_v14 = vsel %vm156_vm2, %v14411_v38, 0.0  ;;  %v6997_v15 = vmul.f32 %v14411_v38, %v14411_v38  ;;  %v7008_v13 = vsel %vm156_vm2, %v6996_v7, 0.0 }
 0xf32   :  { %6972 = vadd.xlane.f32.xlu0 %v6971_v14  ;;  %v6965_v24 = vsel %vm156_vm2, %v14416_v58, 0.0  ;;  %v6995_v9 = vmul.f32 %v14416_v58, %v14416_v58  ;;  %v7002_v44 = vsel %vm156_vm2, %v6994_v49, 0.0 }
 0xf33   :  { %v7011_v3 = vsel %vm156_vm2, %v6997_v15, 0.0 }
 0xf34   :  { %6963 = vadd.xlane.f32.xlu1 %v6962_v11  ;;  %v7005_v57 = vsel %vm156_vm2, %v6995_v9, 0.0 }
 0xf36   :  { %6966 = vadd.xlane.f32.xlu0 %v6965_v24 }
 0xf38   :  { %7009 = vadd.xlane.f32.xlu1 %v7008_v13 }
 0xf3a   :  { %7012 = vadd.xlane.f32.xlu0 %v7011_v3 }
 0xf3c   :  { %7003 = vadd.xlane.f32.xlu1 %v7002_v44 }
 0xf3e   :  { %v9643_v51 = vpop.f32.mrb[44].mxu0  ;;  %7006 = vadd.xlane.f32.xlu0 %v7005_v57 }
 0xf3f   :  { %v6933_v6 = vadd.f32 %v9643_v51, %v9289_v54  ;;  %v6924_v25 = vpop.f32.mrb[45].mxu0 }
 0xf40   :  { %v6925_v0 = vadd.f32 %v9289_v54, %v6924_v25  ;;  %v9644_v63 = vpop.f32.mrb[46].mxu0 }
 0xf41   :  { %v6950_v39 = vmul.f32 %v9298_v47, %v6933_v6  ;;  %v6936_v42 = vadd.f32 %v9644_v63, %v9289_v54  ;;  %v6927_v48 = vpop.f32.mrb[47].mxu0 }
 0xf42   :  { %v6948_v19 = vmul.f32 %v9298_v47, %v6925_v0  ;;  %v6928_v5 = vadd.f32 %v9289_v54, %v6927_v48 }
 0xf43   :  { %v14437_v23 = vadd.f32 %v6950_v39, %v14017_v37  ;;  %v6951_v32 = vmul.f32 %v9298_v47, %v6936_v42 }
 0xf44   :  { %v6949_v26 = vmul.f32 %v9298_v47, %v6928_v5  ;;  %v14440_v21 = vadd.f32 %v6948_v19, %v14010_v50 }
 0xf45   :  { %v14443_v59 = vadd.f32 %v6951_v32, %v14020_v20  ;;  %v6980_v16 = vsel %vm156_vm2, %v14437_v23, 0.0  ;;  %v7000_v36 = vmul.f32 %v14437_v23, %v14437_v23 }
 0xf46   :  { %6981 = vadd.xlane.f32.xlu1 %v6980_v16  ;;  %v14448_v52 = vadd.f32 %v6949_v26, %v14042_v2  ;;  %v6974_v37 = vsel %vm156_vm2, %v14440_v21, 0.0  ;;  %v6998_v50 = vmul.f32 %v14440_v21, %v14440_v21 }
 0xf47   :  { %v6983_v46 = vsel %vm156_vm2, %v14443_v59, 0.0  ;;  %v7001_v45 = vmul.f32 %v14443_v59, %v14443_v59  ;;  %v7020_v30 = vsel %vm156_vm2, %v7000_v36, 0.0 }
 0xf48   :  { %6984 = vadd.xlane.f32.xlu0 %v6983_v46  ;;  %v6977_v20 = vsel %vm156_vm2, %v14448_v52, 0.0  ;;  %v6999_v17 = vmul.f32 %v14448_v52, %v14448_v52  ;;  %v7014_v2 = vsel %vm156_vm2, %v6998_v50, 0.0 }
 0xf49   :  { %v7023_v43 = vsel %vm156_vm2, %v7001_v45, 0.0 }
 0xf4a   :  { %6975 = vadd.xlane.f32.xlu1 %v6974_v37  ;;  %v7017_v53 = vsel %vm156_vm2, %v6999_v17, 0.0 }
 0xf4c   :  { %6978 = vadd.xlane.f32.xlu0 %v6977_v20  ;;  %v9299_v20 = vld [vmem:[%s15574_s11 + $0x4] ss:$0 sm:$0xff] }
 0xf4e   :  { %7015 = vadd.xlane.f32.xlu1 %v7014_v2 }
 0xf50   :  { %7018 = vadd.xlane.f32.xlu0 %v7017_v53 }
 0xf52   :  { %7021 = vadd.xlane.f32.xlu1 %v7020_v30 }
 0xf54   :  { %7024 = vadd.xlane.f32.xlu0 %v7023_v43 }
 0xfbd   :  { %v6970_v1 = vpop.xlane.xlu1 %6969 }
 0xfbe   :  { %v6988_v54 = vmul.f32 0.03125, %v6970_v1 }
 0xfbf   :  { %v6973_v29 = vpop.xlane.xlu0 %6972 }
 0xfc0   :  { %v6989_v47 = vmul.f32 0.03125, %v6973_v29  ;;  %v7036_v18 = vmul.f32 %v6988_v54, %v6988_v54  ;;  %v7052_v42 = vsub.f32 %v14405_v61, %v6988_v54 }
 0xfc1   :  { %v6964_v10 = vpop.xlane.xlu1 %6963 }
 0xfc2   :  { %v6986_v55 = vmul.f32 0.03125, %v6964_v10  ;;  %v7037_v28 = vmul.f32 %v6989_v47, %v6989_v47  ;;  %v7053_v0 = vsub.f32 %v14411_v38, %v6989_v47 }
 0xfc3   :  { %v6967_v56 = vpop.xlane.xlu0 %6966 }
 0xfc4   :  { %v6987_v41 = vmul.f32 0.03125, %v6967_v56  ;;  %v7034_v27 = vmul.f32 %v6986_v55, %v6986_v55  ;;  %v7050_v19 = vsub.f32 %v14408_v40, %v6986_v55 }
 0xfc5   :  { %v7010_v12 = vpop.xlane.xlu1 %7009 }
 0xfc6   :  { %v7028_v22 = vmul.f32 0.03125, %v7010_v12  ;;  %v7035_v24 = vmul.f32 %v6987_v41, %v6987_v41  ;;  %v7051_v50 = vsub.f32 %v14416_v58, %v6987_v41  ;;  %v9300_v58 = vld [vmem:[%s15574_s11 + $0x5] ss:$0 sm:$0xff] }
 0xfc7   :  { %v7013_v4 = vpop.xlane.xlu0 %7012 }
 0xfc8   :  { %v7044_v34 = vsub.f32 %v7028_v22, %v7036_v18  ;;  %v7029_v33 = vmul.f32 0.03125, %v7013_v4 }
 0xfc9   :  { %v7004_v8 = vpop.xlane.xlu1 %7003 }
 0xfca   :  { %v7060_v31 = vadd.f32 1e-06, %v7044_v34  ;;  %v7045_v14 = vsub.f32 %v7029_v33, %v7037_v28  ;;  %v7026_v11 = vmul.f32 0.03125, %v7004_v8 }
 0xfcb   :  { %v7007_v7 = vpop.xlane.xlu0 %7006 }
 0xfcc   :  { %v7061_v15 = vadd.f32 1e-06, %v7045_v14  ;;  %v7042_v13 = vsub.f32 %v7026_v11, %v7034_v27  ;;  %v7027_v49 = vmul.f32 0.03125, %v7007_v7  ;;  %9899 = vrsqrt.f32 %v7060_v31 }
 0xfce   :  { %9901 = vrsqrt.f32 %v7061_v15  ;;  %v7058_v3 = vadd.f32 1e-06, %v7042_v13  ;;  %v7043_v9 = vsub.f32 %v7027_v49, %v7035_v24 }
 0xfd0   :  { %9903 = vrsqrt.f32 %v7058_v3  ;;  %v7059_v44 = vadd.f32 1e-06, %v7043_v9 }
 0xfd2   :  { %9905 = vrsqrt.f32 %v7059_v44 }
 0xfd3   :  { %v6982_v51 = vpop.xlane.xlu1 %6981 }
 0xfd4   :  { %v6992_v16 = vmul.f32 0.03125, %v6982_v51 }
 0xfd5   :  { %v6985_v57 = vpop.xlane.xlu0 %6984 }
 0xfd6   :  { %v9900_v25 = vpop.eup %9899  ;;  %v6993_v53 = vmul.f32 0.03125, %v6985_v57  ;;  %v7040_v1 = vmul.f32 %v6992_v16, %v6992_v16  ;;  %v7056_v9 = vsub.f32 %v14437_v23, %v6992_v16  ;;  %v9301_v23 = vld [vmem:[%s15572_s9] ss:$0 sm:$0xff]  ;;  %s9983_s9 = smov 119  }
 0xfd7   :  { %v6976_v6 = vpop.xlane.xlu1 %6975  ;;  %v7076_v26 = vmul.f32 %v9900_v25, %v7052_v42 }
 0xfd8   :  { %v6990_v63 = vmul.f32 0.03125, %v6976_v6  ;;  %v9902_v39 = vpop.eup %9901  ;;  %v7041_v55 = vmul.f32 %v6993_v53, %v6993_v53  ;;  %v7057_v6 = vsub.f32 %v14443_v59, %v6993_v53 }
 0xfd9   :  { %v6979_v48 = vpop.xlane.xlu0 %6978  ;;  %v7077_v5 = vmul.f32 %v9902_v39, %v7053_v0  ;;  %v7088_v62 = vmul.f32 %v9299_v20, %v7076_v26 }
 0xfda   :  { %v9904_v32 = vpop.eup %9903  ;;  %v6991_v46 = vmul.f32 0.03125, %v6979_v48  ;;  %v7038_v38 = vmul.f32 %v6990_v63, %v6990_v63  ;;  %v7054_v24 = vsub.f32 %v14440_v21, %v6990_v63 }
 0xfdb   :  { %v7016_v37 = vpop.xlane.xlu1 %7015  ;;  %v7074_v2 = vmul.f32 %v9904_v32, %v7050_v19  ;;  %v7089_v61 = vmul.f32 %v9299_v20, %v7077_v5  ;;  %v7100_v8 = vadd.f32 %v9300_v58, %v7088_v62 }
 0xfdc   :  { %v7030_v17 = vmul.f32 0.03125, %v7016_v37  ;;  %v9906_v36 = vpop.eup %9905  ;;  %v7039_v40 = vmul.f32 %v6991_v46, %v6991_v46  ;;  %v7055_v13 = vsub.f32 %v14448_v52, %v6991_v46 }
 0xfdd   :  { %v7019_v45 = vpop.xlane.xlu0 %7018  ;;  %v7075_v35 = vmul.f32 %v9906_v36, %v7051_v50  ;;  %v7086_v10 = vmul.f32 %v9299_v20, %v7074_v2  ;;  %v7101_v18 = vadd.f32 %v9300_v58, %v7089_v61 }
 0xfde   :  { %v7046_v30 = vsub.f32 %v7030_v17, %v7038_v38  ;;  %v7031_v43 = vmul.f32 0.03125, %v7019_v45 }
 0xfdf   :  { %v7022_v29 = vpop.xlane.xlu1 %7021  ;;  %v7087_v12 = vmul.f32 %v9299_v20, %v7075_v35  ;;  %v7098_v34 = vadd.f32 %v9300_v58, %v7086_v10  ;;  %v7107_v7 = vpack.c.bf16 %v7101_v18, %v7100_v8 }
 0xfe0   :  { %v7062_v54 = vadd.f32 1e-06, %v7046_v30  ;;  %v7047_v56 = vsub.f32 %v7031_v43, %v7039_v40  ;;  %v7032_v47 = vmul.f32 0.03125, %v7022_v29 }
 0xfe1   :  { %v7025_v22 = vpop.xlane.xlu0 %7024  ;;  %v7099_v33 = vadd.f32 %v9300_v58, %v7087_v12 }
 0xfe2   :  { %9907 = vrsqrt.f32 %v7062_v54  ;;  %v7063_v4 = vadd.f32 1e-06, %v7047_v56  ;;  %v7048_v28 = vsub.f32 %v7032_v47, %v7040_v1  ;;  %v7033_v41 = vmul.f32 0.03125, %v7025_v22 }
 0xfe3   :  { %v7106_v14 = vpack.c.bf16 %v7099_v33, %v7098_v34  ;;  %v9977_v33 = vmov 2102212464  }
 0xfe4   :  { %9909 = vrsqrt.f32 %v7063_v4  ;;  %v7064_v27 = vadd.f32 1e-06, %v7048_v28  ;;  %v7049_v31 = vsub.f32 %v7033_v41, %v7041_v55 }
 0xfe5   :  { %9649 = vmatprep.mubr.msk.bf16.mxu0 %vm156_vm2, %v7106_v14  ;;  %v9978_v14 = vmov 2131351028  }
 0xfe6   :  { %9911 = vrsqrt.f32 %v7064_v27  ;;  %v7065_v11 = vadd.f32 1e-06, %v7049_v31  ;;  %9650 = vmatmul.mubr.msk.bf16.vlgmr.msra.gmra.mrb[48].mxu0 %vm156_vm2, %v7107_v7  ;;  %v9979_v7 = vmov 920167782  }
 0xfe8   :  { %9913 = vrsqrt.f32 %v7065_v11 }
 0xfec   :  { %v9908_v15 = vpop.eup %9907 }
 0xfed   :  { %v7078_v49 = vmul.f32 %v9908_v15, %v7054_v24  ;;  %v9980_v15 = vmov 1326507024  }
 0xfee   :  { %v9910_v3 = vpop.eup %9909 }
 0xfef   :  { %v7079_v44 = vmul.f32 %v9910_v3, %v7055_v13  ;;  %v7090_v51 = vmul.f32 %v9299_v20, %v7078_v49 }
 0xff0   :  { %v9912_v57 = vpop.eup %9911 }
 0xff1   :  { %v7091_v25 = vmul.f32 %v9299_v20, %v7079_v44  ;;  %v7080_v0 = vmul.f32 %v9912_v57, %v7056_v9  ;;  %v7102_v42 = vadd.f32 %v9300_v58, %v7090_v51  ;;  %v9981_v44 = vmov 2475754826  }
 0xff2   :  { %v9914_v39 = vpop.eup %9913 }
 0xff3   :  { %v7103_v48 = vadd.f32 %v9300_v58, %v7091_v25  ;;  %v7081_v19 = vmul.f32 %v9914_v39, %v7057_v6  ;;  %v7092_v5 = vmul.f32 %v9299_v20, %v7080_v0 }
 0xff5   :  { %v7108_v21 = vpack.c.bf16 %v7103_v48, %v7102_v42  ;;  %v7093_v63 = vmul.f32 %v9299_v20, %v7081_v19  ;;  %v7104_v52 = vadd.f32 %v9300_v58, %v7092_v5  ;;  %v9982_v5 = vmov 683565275  }
 0xff7   :  { %9653 = vmatprep.mubr.msk.bf16.mxu0 %vm156_vm2, %v7108_v21  ;;  %v7105_v32 = vadd.f32 %v9300_v58, %v7093_v63 }
 0xff9   :  { %v7109_v26 = vpack.c.bf16 %v7105_v32, %v7104_v52 }
 0xffb   :  { %9654 = vmatmul.mubr.msk.bf16.gmra.mrb[52].mxu0 %vm156_vm2, %v7109_v26 }
0x10b9   :  { %v9651_v59 = vpop.f32.mrb[48].mxu0 }
0x10ba   :  { %v14495_v16 = vadd.f32 %v9651_v59, %v9301_v23  ;;  %v7179_v46 = vpop.f32.mrb[49].mxu0 }
0x10bb   :  { %v14497_v37 = vadd.f32 %v9301_v23, %v7179_v46  ;;  %v9652_v50 = vpop.f32.mrb[50].mxu0 }
0x10bc   :  { %v7443_v20 = vand.u32 2139095040, %v14495_v16  ;;  %v7182_v38 = vpop.f32.mrb[51].mxu0  ;;  %v14504_v45 = vadd.f32 %v9652_v50, %v9301_v23  ;;  %v7440_v18 = vand.u32 2147483647, %v14495_v16 }
0x10bd   :  { %v7237_v17 = vand.u32 2139095040, %v14497_v37  ;;  %v14501_v2 = vadd.f32 %v9301_v23, %v7182_v38  ;;  %v7234_v54 = vand.u32 2147483647, %v14497_v37 }
0x10be   :  { %v7444_v53 = vshrl.u32 %v7443_v20, 23  ;;  %v7546_v1 = vand.u32 2139095040, %v14504_v45 }
0x10bf   :  { %v7238_v36 = vshrl.u32 %v7237_v17, 23  ;;  %v7340_v61 = vand.u32 2139095040, %v14501_v2  ;;  %v14513_v22 = vand.u32 8388607, %v7234_v54  ;;  %v7337_v4 = vand.u32 2147483647, %v14501_v2 }
0x10c0   :  { %v9316_v62 = vadd.s32 4294967169, %v7444_v53  ;;  %v7547_v47 = vshrl.u32 %v7546_v1, 23 }
0x10c1   :  { %v9308_v40 = vadd.s32 4294967169, %v7238_v36  ;;  %v7341_v30 = vshrl.u32 %v7340_v61, 23  ;;  %v14543_v59 = vand.u32 8388607, %v7337_v4  ;;  %v7242_v38 = vor.u32 8388608, %v14513_v22 }
0x10c2   :  { %v7450_v56 = vadd.s32 1, %v9316_v62  ;;  %v9320_v41 = vadd.s32 4294967169, %v7547_v47  ;;  %v14552_v36 = vand.u32 8388607, %v7440_v18 }
0x10c3   :  { %v7244_v43 = vadd.s32 1, %v9308_v40  ;;  %v9312_v35 = vadd.s32 4294967169, %v7341_v30 }
0x10c4   :  { %vm7451_vm5 = vcmp.gt.s32.totalorder %v7450_v56, 0  ;;  %v7553_v46 = vadd.s32 1, %v9320_v41 }
0x10c5   :  { %vm7245_vm2 = vcmp.gt.s32.totalorder %v7244_v43, 0  ;;  %v7347_v29 = vadd.s32 1, %v9312_v35 }
0x10c6   :  { %v7246_v10 = vsel %vm7245_vm2, %v7244_v43, 0  ;;  %vm7554_vm9 = vcmp.gt.s32.totalorder %v7553_v46, 0  ;;  %vm7236_vm2 = vcmp.lt.s32.totalorder %v14497_v37, 0 }
0x10c7   :  { %v7248_v58 = vand.u32 31, %v7246_v10  ;;  %vm7348_vm3 = vcmp.gt.s32.totalorder %v7347_v29, 0  ;;  %v14516_v28 = vshrl.u32 %v7246_v10, 5 }
0x10c8   :  { %v14509_v55 = vsel %vm7348_vm3, %v7347_v29, 0 }
0x10c9   :  { %v7249_v12 = vsub.s32 32, %v7248_v58  ;;  %v7257_v11 = vshll.u32 %v9978_v14, %v7248_v58  ;;  %v14525_v49 = vand.u32 31, %v14509_v55  ;;  %v7260_v39 = vshll.u32 %v9977_v33, %v7248_v58 }
0x10ca   :  { %v7263_v42 = vshll.u32 %v9979_v7, %v7248_v58  ;;  %v7251_v21 = vshll.u32 %v9982_v5, %v7248_v58  ;;  %v7254_v63 = vshll.u32 %v9981_v44, %v7248_v58  ;;  %vm7269_vm6 = vcmp.lt.s32.totalorder %v14516_v28, 4 }
0x10cb   :  { %v7258_v8 = vshrl.u32 %v9977_v33, %v7249_v12  ;;  %v7261_v24 = vshrl.u32 %v9979_v7, %v7249_v12  ;;  %v7264_v13 = vshrl.u32 %v9980_v15, %v7249_v12  ;;  %v7252_v51 = vshrl.u32 %v9981_v44, %v7249_v12 }
0x10cc   :  { %v7255_v57 = vshrl.u32 %v9978_v14, %v7249_v12  ;;  %v7352_v61 = vsub.s32 32, %v14525_v49  ;;  %v7250_v40 = vshrl.u32 %v9982_v5, %v7249_v12  ;;  %vm7266_vm7 = vcmp.lt.s32.totalorder %v14516_v28, 1 }
0x10cd   :  { %v7259_v0 = vor.u32 %v7258_v8, %v7257_v11  ;;  %v7262_v32 = vor.u32 %v7261_v24, %v7260_v39  ;;  %v7265_v26 = vor.u32 %v7264_v13, %v7263_v42  ;;  %v7253_v50 = vor.u32 %v7252_v51, %v7251_v21 }
0x10ce   :  { %v9655_v34 = vpop.f32.mrb[52].mxu0  ;;  %v7256_v20 = vor.u32 %v7255_v57, %v7254_v63  ;;  %vm7268_vm8 = vcmp.lt.s32.totalorder %v14516_v28, 3  ;;  %vm7267_vm10 = vcmp.lt.s32.totalorder %v14516_v28, 2  ;;  %v7355_v11 = vshrl.u32 %v9981_v44, %v7352_v61 }
0x10cf   :  { %v14519_v27 = vadd.f32 %v9655_v34, %v9301_v23  ;;  %v7195_v31 = vpop.f32.mrb[53].mxu0  ;;  %v7271_v17 = vsel %vm7269_vm6, %v7259_v0, 2102212464  ;;  %v7275_v43 = vsel %vm7269_vm6, %v7262_v32, 920167782  ;;  %v7270_v1 = vsel %vm7266_vm7, %v7250_v40, %v7253_v50 }
0x10d0   :  { %v14527_v3 = vadd.f32 %v9301_v23, %v7195_v31  ;;  %v9656_v9 = vpop.f32.mrb[54].mxu0  ;;  %v7279_v35 = vsel %vm7269_vm6, %v7265_v26, 1326507024  ;;  %v7272_v29 = vsel %vm7268_vm8, %v7256_v20, %v7271_v17  ;;  %v7278_v58 = vsel %vm7266_vm7, %v7256_v20, %v7259_v0 }
0x10d1   :  { %v14531_v6 = vadd.f32 %v9656_v9, %v9301_v23  ;;  %v7198_v25 = vpop.f32.mrb[55].mxu0  ;;  %v7855_v48 = vand.u32 2139095040, %v14519_v27  ;;  %v7274_v22 = vsel %vm7266_vm7, %v7253_v50, %v7256_v20  ;;  %v7276_v41 = vsel %vm7268_vm8, %v7259_v0, %v7275_v43 }
0x10d2   :  { %v14536_v19 = vadd.f32 %v9301_v23, %v7198_v25  ;;  %v7649_v52 = vand.u32 2139095040, %v14527_v3  ;;  %v14547_v23 = vsel %vm7451_vm5, %v7450_v56, 0  ;;  %v7280_v56 = vsel %vm7268_vm8, %v7262_v32, %v7279_v35 }
0x10d3   :  { %v7856_v53 = vshrl.u32 %v7855_v48, 23  ;;  %v14559_v62 = vand.u32 31, %v14547_v23  ;;  %v7958_v10 = vand.u32 2139095040, %v14531_v6  ;;  %v7273_v8 = vsel %vm7267_vm10, %v7270_v1, %v7272_v29 }
0x10d4   :  { %v7650_v30 = vshrl.u32 %v7649_v52, 23  ;;  %v7752_v12 = vand.u32 2139095040, %v14536_v19  ;;  %v7282_v31 = vshll.u32 %v7242_v38, 8  ;;  %v14567_v24 = vsel %vm7554_vm9, %v7553_v46, 0 }
0x10d5   :  { %v9332_v47 = vadd.s32 4294967169, %v7856_v53  ;;  %v7281_v13 = vsel %vm7267_vm10, %v7278_v58, %v7280_v56  ;;  %v7345_v9 = vor.u32 8388608, %v14543_v59  ;;  %v7448_v51 = vor.u32 8388608, %v14552_v36 }
0x10d6   :  { %v9324_v34 = vadd.s32 4294967169, %v7650_v30  ;;  %v14574_v57 = vsub.s32 32, %v14559_v62  ;;  %v7350_v25 = vshrl.u32 %v14509_v55, 5  ;;  %v7277_v0 = vsel %vm7267_vm10, %v7274_v22, %v7276_v41 }
0x10d7   :  { %v7354_v39 = vshll.u32 %v9982_v5, %v14525_v49  ;;  %v14581_v42 = vadd.s32 1, %v9332_v47  ;;  %v7959_v48 = vshrl.u32 %v7958_v10, 23  ;;  %v7753_v21 = vshrl.u32 %v7752_v12, 23 }
0x10d8   :  { %v7289_v63 = vmul.u32 %v7282_v31, %v7273_v8  ;;  %v7656_v52 = vadd.s32 1, %v9324_v34  ;;  %v14583_v32 = vmul.u32.u64.low %v7282_v31, %v7281_v13  ;;  %v14584_v26 = vmul.u32.u64.high %v7282_v31, %v7281_v13, %v14583_v32 }
0x10d9   :  { %v7356_v59 = vor.u32 %v7355_v11, %v7354_v39  ;;  %v14586_v46 = vmul.u32.u64.low %v7282_v31, %v7277_v0  ;;  %v14587_v50 = vmul.u32.u64.high %v7282_v31, %v7277_v0, %v14586_v46  ;;  %v7357_v55 = vshll.u32 %v9981_v44, %v14525_v49 }
0x10da   :  { %v7358_v28 = vshrl.u32 %v9978_v14, %v7352_v61  ;;  %v7360_v20 = vshll.u32 %v9978_v14, %v14525_v49  ;;  %v7361_v38 = vshrl.u32 %v9977_v33, %v7352_v61  ;;  %v7363_v17 = vshll.u32 %v9977_v33, %v14525_v49 }
0x10db   :  { %v7364_v53 = vshrl.u32 %v9979_v7, %v7352_v61  ;;  %v9328_v40 = vadd.s32 4294967169, %v7753_v21  ;;  %v7366_v43 = vshll.u32 %v9979_v7, %v14525_v49  ;;  %v7367_v35 = vshrl.u32 %v9980_v15, %v7352_v61 }
0x10dc   :  { %v7359_v30 = vor.u32 %v7358_v28, %v7357_v55  ;;  %vm7291_vm14 = vc.u32 %v14584_v26, %v14586_v46  ;;  %v7353_v1 = vshrl.u32 %v9982_v5, %v7352_v61  ;;  %v7362_v29 = vor.u32 %v7361_v38, %v7360_v20 }
0x10dd   :  { %v7365_v10 = vor.u32 %v7364_v53, %v7363_v17  ;;  %v7292_v58 = vadd.s32 1, %v14587_v50  ;;  %v7368_v56 = vor.u32 %v7367_v35, %v7366_v43  ;;  %vm7369_vm15 = vcmp.lt.s32.totalorder %v7350_v25, 1 }
0x10de   :  { %vm7370_vm0 = vcmp.lt.s32.totalorder %v7350_v25, 2  ;;  %vm7371_vm1 = vcmp.lt.s32.totalorder %v7350_v25, 3  ;;  %vm7372_vm12 = vcmp.lt.s32.totalorder %v7350_v25, 4  ;;  %v7377_v47 = vsel %vm7369_vm15, %v7356_v59, %v7359_v30 }
0x10df   :  { %v7381_v12 = vsel %vm7369_vm15, %v7359_v30, %v7362_v29  ;;  %v7293_v49 = vsel %vm7291_vm14, %v7292_v58, %v14587_v50  ;;  %v7374_v22 = vsel %vm7372_vm12, %v7362_v29, 2102212464  ;;  %v7378_v41 = vsel %vm7372_vm12, %v7365_v10, 920167782 }
0x10e0   :  { %v7382_v34 = vsel %vm7372_vm12, %v7368_v56, 1326507024  ;;  %v7294_v8 = vadd.s32 %v7293_v49, %v7289_v63  ;;  %v7373_v31 = vsel %vm7369_vm15, %v7353_v1, %v7356_v59  ;;  %v7379_v11 = vsel %vm7371_vm1, %v7362_v29, %v7378_v41 }
0x10e1   :  { %v7383_v61 = vsel %vm7371_vm1, %v7365_v10, %v7382_v34  ;;  %v7375_v13 = vsel %vm7371_vm1, %v7359_v30, %v7374_v22  ;;  %v7380_v0 = vsel %vm7370_vm0, %v7377_v47, %v7379_v11  ;;  %v7385_v21 = vshll.u32 %v7345_v9, 8 }
0x10e2   :  { %v7384_v39 = vsel %vm7370_vm0, %v7381_v12, %v7383_v61  ;;  %v14610_v32 = vshrl.u32 %v14547_v23, 5  ;;  %v14613_v55 = vand.u32 31, %v14567_v24  ;;  %vm7657_vm13 = vcmp.gt.s32.totalorder %v7656_v52, 0 }
0x10e3   :  { %v7295_v50 = vadd.s32 536870912, %v7294_v8  ;;  %v14615_v28 = vmul.u32.u64.low %v7385_v21, %v7384_v39  ;;  %v14616_v20 = vmul.u32.u64.high %v7385_v21, %v7384_v39, %v14615_v28  ;;  %vm7863_vm4 = vcmp.gt.s32.totalorder %v14581_v42, 0 }
0x10e4   :  { %v14618_v63 = vmul.u32.u64.low %v7385_v21, %v7380_v0  ;;  %v14619_v59 = vmul.u32.u64.high %v7385_v21, %v7380_v0, %v14618_v63  ;;  %v9336_v38 = vadd.s32 4294967169, %v7959_v48  ;;  %v7376_v9 = vsel %vm7370_vm0, %v7373_v31, %v7375_v13 }
0x10e5   :  { %v7296_v17 = vshrl.u32 %v7295_v50, 30  ;;  %v14624_v23 = vsel %vm7657_vm13, %v7656_v52, 0  ;;  %v14626_v53 = vadd.s32 1, %v9328_v40  ;;  %v7457_v30 = vshll.u32 %v9982_v5, %v14559_v62 }
0x10e6   :  { %v7458_v43 = vshrl.u32 %v9981_v44, %v14574_v57  ;;  %v7461_v1 = vshrl.u32 %v9978_v14, %v14574_v57  ;;  %v7464_v25 = vshrl.u32 %v9977_v33, %v14574_v57  ;;  %v7467_v48 = vshrl.u32 %v9979_v7, %v14574_v57 }
0x10e7   :  { %v7297_v35 = vshll.u32 %v7296_v17, 30  ;;  %v7392_v52 = vmul.u32 %v7385_v21, %v7376_v9  ;;  %vm7394_vm3 = vc.u32 %v14616_v20, %v14618_v63  ;;  %v7395_v40 = vadd.s32 1, %v14619_v59 }
0x10e8   :  { %v7466_v29 = vshll.u32 %v9977_v33, %v14559_v62  ;;  %v7320_v58 = vsub.s32 4, %v7296_v17  ;;  %v7460_v56 = vshll.u32 %v9981_v44, %v14559_v62  ;;  %v7463_v47 = vshll.u32 %v9978_v14, %v14559_v62 }
0x10e9   :  { %v14644_v10 = vsub.s32 %v7294_v8, %v7297_v35  ;;  %v7396_v12 = vsel %vm7394_vm3, %v7395_v40, %v14619_v59  ;;  %v7469_v22 = vshll.u32 %v9979_v7, %v14559_v62  ;;  %v7470_v41 = vshrl.u32 %v9980_v15, %v14574_v57 }
0x10ea   :  { %v7468_v49 = vor.u32 %v7467_v48, %v7466_v29  ;;  %vm14657_vm5 = vcmp.le.f32.partialorder %v7234_v54, 0.7853982  ;;  %v7397_v31 = vadd.s32 %v7396_v12, %v7392_v52  ;;  %v7462_v11 = vor.u32 %v7461_v1, %v7460_v56 }
0x10eb   :  { %v7300_v8 = vsub.s32 0, %v14644_v10  ;;  %v7465_v61 = vor.u32 %v7464_v25, %v7463_v47  ;;  %v14663_v13 = vshrl.u32 %v14567_v24, 5  ;;  %v14666_v0 = vsub.s32 32, %v14613_v55 }
0x10ec   :  { %v7459_v62 = vor.u32 %v7458_v43, %v7457_v30  ;;  %v7471_v39 = vor.u32 %v7470_v41, %v7469_v22  ;;  %v14668_v21 = vadd.s32 1, %v9336_v38  ;;  %v7398_v50 = vadd.s32 536870912, %v7397_v31 }
0x10ed   :  { %v9309_v54 = vmin.u32 %v7300_v8, %v14644_v10  ;;  %vm7475_vm6 = vcmp.lt.s32.totalorder %v14610_v32, 4  ;;  %v14675_v28 = vsel %vm7863_vm4, %v14581_v42, 0  ;;  %v14678_v24 = vand.u32 31, %v14624_v23 }
0x10ee   :  { %vm7472_vm7 = vcmp.lt.s32.totalorder %v14610_v32, 1  ;;  %v7481_v59 = vsel %vm7475_vm6, %v7468_v49, 920167782  ;;  %vm7760_vm8 = vcmp.gt.s32.totalorder %v14626_v53, 0  ;;  %v7321_v9 = vsel %vm7236_vm2, %v7320_v58, %v7296_v17 }
0x10ef   :  { %v7302_v38 = vclz %v9309_v54  ;;  %vm7474_vm9 = vcmp.lt.s32.totalorder %v14610_v32, 3  ;;  %v7484_v42 = vsel %vm7472_vm7, %v7462_v11, %v7465_v61  ;;  %vm7339_vm10 = vcmp.lt.s32.totalorder %v14501_v2, 0 }
0x10f0   :  { %v7399_v30 = vshrl.u32 %v7398_v50, 30  ;;  %v7480_v43 = vsel %vm7472_vm7, %v7459_v62, %v7462_v11  ;;  %v7482_v35 = vsel %vm7474_vm9, %v7465_v61, %v7481_v59  ;;  %v7485_v1 = vsel %vm7475_vm6, %v7471_v39, 1326507024 }
0x10f1   :  { %v9310_v25 = vadd.s32 4294967294, %v7302_v38  ;;  %vm7473_vm14 = vcmp.lt.s32.totalorder %v14610_v32, 2  ;;  %v7486_v17 = vsel %vm7474_vm9, %v7468_v49, %v7485_v1  ;;  %v7488_v48 = vshll.u32 %v7448_v51, 8 }
0x10f2   :  { %v7400_v52 = vshll.u32 %v7399_v30, 30  ;;  %v7456_v40 = vshrl.u32 %v9982_v5, %v14574_v57  ;;  %v7477_v29 = vsel %vm7475_vm6, %v7465_v61, 2102212464  ;;  %v7487_v58 = vsel %vm7473_vm14, %v7484_v42, %v7486_v17 }
0x10f3   :  { %vm9311_vm15 = vcmp.lt.s32.totalorder %v9310_v25, 0  ;;  %vm14709_vm0 = vcmp.le.f32.partialorder %v7337_v4, 0.7853982  ;;  %v7483_v36 = vsel %vm7473_vm14, %v7480_v43, %v7482_v35  ;;  %v7290_v57 = vadd.s32 %v14586_v46, %v14584_v26 }
0x10f4   :  { %v14715_v51 = vmul.u32.u64.low %v7488_v48, %v7487_v58  ;;  %v14716_v47 = vmul.u32.u64.high %v7488_v48, %v7487_v58, %v14715_v51  ;;  %v7305_v12 = vsel %vm9311_vm15, 0, %v9310_v25  ;;  %v14722_v49 = vsel %vm14657_vm5, 0, %v7321_v9 }
0x10f5   :  { %v14724_v22 = vsub.s32 %v7397_v31, %v7400_v52  ;;  %v7306_v4 = vsub.s32 32, %v7305_v12  ;;  %v7310_v41 = vsub.s32 4294967266, %v7305_v12  ;;  %v7423_v8 = vsub.s32 4, %v7399_v30 }
0x10f6   :  { %v7476_v61 = vsel %vm7472_vm7, %v7456_v40, %v7459_v62  ;;  %v7478_v54 = vsel %vm7474_vm9, %v7462_v11, %v7477_v29  ;;  %v14731_v50 = vmul.u32.u64.low %v7488_v48, %v7483_v36  ;;  %v14732_v26 = vmul.u32.u64.high %v7488_v48, %v7483_v36, %v14731_v50 }
0x10f7   :  { %v7403_v39 = vsub.s32 0, %v14724_v22  ;;  %v7307_v46 = vshll.u32 %v14644_v10, %v7305_v12  ;;  %v7308_v59 = vshrl.u32 %v7290_v57, %v7306_v4  ;;  %v7311_v31 = vadd.s32 127, %v7310_v41 }
0x10f8   :  { %v8191_v38 = vadd.s32 3, %v14722_v49  ;;  %v14738_v9 = vand.u32 31, %v14675_v28  ;;  %v14741_v62 = vshrl.u32 %v14624_v23, 5  ;;  %v7543_v11 = vand.u32 2147483647, %v14504_v45 }
0x10f9   :  { %v9313_v42 = vmin.u32 %v7403_v39, %v14724_v22  ;;  %v7309_v43 = vor.u32 %v7308_v59, %v7307_v46  ;;  %v7312_v35 = vshll.u32 %v7311_v31, 23  ;;  %v7424_v1 = vsel %vm7339_vm10, %v7423_v8, %v7399_v30 }
0x10fa   :  { %v7479_v10 = vsel %vm7473_vm14, %v7476_v61, %v7478_v54  ;;  %v14750_v25 = vsub.s32 32, %v14678_v24  ;;  %v14755_v23 = vsel %vm7760_vm8, %v14626_v53, 0  ;;  %vm7497_vm1 = vc.u32 %v14716_v47, %v14731_v50 }
0x10fb   :  { %v7405_v17 = vclz %v9313_v42  ;;  %v7313_v52 = vor.u32 4788187, %v7312_v35  ;;  %v14759_v40 = vand.u32 3, %v8191_v38  ;;  %v7393_v30 = vadd.s32 %v14618_v63, %v14616_v20 }
0x10fc   :  { %v7498_v32 = vadd.s32 1, %v14732_v26  ;;  %v14766_v58 = vsel %vm14709_vm0, 0, %v7424_v1  ;;  %v7495_v36 = vmul.u32 %v7488_v48, %v7479_v10  ;;  %v14770_v53 = vand.u32 8388607, %v7543_v11 }
0x10fd   :  { %v9314_v29 = vadd.s32 4294967294, %v7405_v17  ;;  %v7314_v51 = vand.u32 2147483647, %v7313_v52  ;;  %v7316_v57 = vcvt.s32.f32 %v7309_v43  ;;  %v7561_v4 = vshrl.u32 %v9981_v44, %v14666_v0 }
0x10fe   :  { %v7499_v12 = vsel %vm7497_vm1, %v7498_v32, %v14732_v26  ;;  %v7560_v63 = vshll.u32 %v9982_v5, %v14613_v55  ;;  %v7563_v41 = vshll.u32 %v9981_v44, %v14613_v55  ;;  %v7564_v61 = vshrl.u32 %v9978_v14, %v14666_v0 }
0x10ff   :  { %vm9315_vm12 = vcmp.lt.s32.totalorder %v9314_v29, 0  ;;  %v7500_v20 = vadd.s32 %v7499_v12, %v7495_v36  ;;  %v7317_v48 = vmul.f32 %v7316_v57, %v7314_v51  ;;  %v7566_v39 = vshll.u32 %v9978_v14, %v14613_v55 }
0x1100   :  { %v7408_v8 = vsel %vm9315_vm12, 0, %v9314_v29  ;;  %v7567_v59 = vshrl.u32 %v9977_v33, %v14666_v0  ;;  %v7562_v42 = vor.u32 %v7561_v4, %v7560_v63  ;;  %v7570_v43 = vshrl.u32 %v9979_v7, %v14666_v0 }
0x1101   :  { %v7409_v54 = vsub.s32 32, %v7408_v8  ;;  %v7413_v26 = vsub.s32 4294967266, %v7408_v8  ;;  %v7501_v46 = vadd.s32 536870912, %v7500_v20  ;;  %v7318_v31 = vxor.u32 2147483648, %v7317_v48 }
0x1102   :  { %v7410_v38 = vshll.u32 %v14724_v22, %v7408_v8  ;;  %v7573_v17 = vshrl.u32 %v9980_v15, %v14666_v0  ;;  %v7565_v32 = vor.u32 %v7564_v61, %v7563_v41  ;;  %v7569_v29 = vshll.u32 %v9977_v33, %v14613_v55 }
0x1103   :  { %v7411_v35 = vshrl.u32 %v7393_v30, %v7409_v54  ;;  %v7414_v1 = vadd.s32 127, %v7413_v26  ;;  %v7502_v10 = vshrl.u32 %v7501_v46, 30  ;;  %v7319_v52 = vsel %vm7236_vm2, %v7318_v31, %v7317_v48 }
0x1104   :  { %v7572_v22 = vshll.u32 %v9979_v7, %v14613_v55  ;;  %v7322_v36 = vsel %vm14657_vm5, %v14497_v37, %v7319_v52  ;;  %v8295_v12 = vadd.s32 3, %v14766_v58  ;;  %v7568_v4 = vor.u32 %v7567_v59, %v7566_v39 }
0x1105   :  { %v7412_v30 = vor.u32 %v7411_v35, %v7410_v38  ;;  %v7415_v51 = vshll.u32 %v7414_v1, 23  ;;  %v7503_v57 = vshll.u32 %v7502_v10, 30  ;;  %9915 = vcosq.f32 %v7322_v36 }
0x1106   :  { %v7571_v63 = vor.u32 %v7570_v43, %v7569_v29  ;;  %9917 = vsinq.f32 %v7322_v36  ;;  %vm7442_vm13 = vcmp.lt.s32.totalorder %v14495_v16, 0  ;;  %v7574_v8 = vor.u32 %v7573_v17, %v7572_v22 }
0x1107   :  { %v7416_v41 = vor.u32 4788187, %v7415_v51  ;;  %v14801_v48 = vsub.s32 %v7500_v20, %v7503_v57  ;;  %v7551_v55 = vor.u32 8388608, %v14770_v53  ;;  %vm7575_vm4 = vcmp.lt.s32.totalorder %v14663_v13, 1 }
0x1108   :  { %vm7576_vm2 = vcmp.lt.s32.totalorder %v14663_v13, 2  ;;  %vm7578_vm3 = vcmp.lt.s32.totalorder %v14663_v13, 4  ;;  %v7419_v61 = vcvt.s32.f32 %v7412_v30  ;;  %v7583_v54 = vsel %vm7575_vm4, %v7562_v42, %v7565_v32 }
0x1109   :  { %v7417_v34 = vand.u32 2147483647, %v7416_v41  ;;  %v7506_v39 = vsub.s32 0, %v14801_v48  ;;  %vm8197_vm5 = vcmp.eq.s32.totalorder %v14759_v40, 2  ;;  %vm14813_vm6 = vcmp.le.f32.partialorder %v7440_v18, 0.7853982 }
0x110a   :  { %vm7577_vm7 = vcmp.lt.s32.totalorder %v14663_v13, 3  ;;  %v7580_v53 = vsel %vm7578_vm3, %v7568_v4, 2102212464  ;;  %v7584_v26 = vsel %vm7578_vm3, %v7571_v63, 920167782  ;;  %v7587_v46 = vsel %vm7575_vm4, %v7565_v32, %v7568_v4 }
0x110b   :  { %vm8194_vm8 = vcmp.eq.s32.totalorder %v14759_v40, 0  ;;  %v7420_v59 = vmul.f32 %v7419_v61, %v7417_v34  ;;  %v9317_v31 = vmin.u32 %v7506_v39, %v14801_v48  ;;  %v7585_v38 = vsel %vm7577_vm7, %v7568_v4, %v7584_v26 }
0x110c   :  { %v7588_v43 = vsel %vm7578_vm3, %v7574_v8, 1326507024  ;;  %vm8193_vm9 = vcmp.lt.s32.totalorder %v14759_v40, 2  ;;  %v7526_v18 = vsub.s32 4, %v7502_v10  ;;  %v7559_v35 = vshrl.u32 %v9982_v5, %v14666_v0 }
0x110d   :  { %v7586_v1 = vsel %vm7576_vm2, %v7583_v54, %v7585_v38  ;;  %v7589_v17 = vsel %vm7577_vm7, %v7571_v63, %v7588_v43  ;;  %vm7326_vm14 = vweird.f32 %v14497_v37  ;;  %v7421_v52 = vxor.u32 2147483648, %v7420_v59 }
0x110e   :  { %v7508_v29 = vclz %v9317_v31  ;;  %v7590_v22 = vsel %vm7576_vm2, %v7587_v46, %v7589_v17  ;;  %v7591_v36 = vshll.u32 %v7551_v55, 8  ;;  %v14834_v30 = vand.u32 3, %v8295_v12 }
0x110f   :  { %v7496_v51 = vadd.s32 %v14731_v50, %v14716_v47  ;;  %v7579_v0 = vsel %vm7575_vm4, %v7559_v35, %v7562_v42  ;;  %v7581_v57 = vsel %vm7577_vm7, %v7565_v32, %v7580_v53  ;;  %v7422_v4 = vsel %vm7339_vm10, %v7421_v52, %v7420_v59  ;;  %v14847_v34 = vpop.eup %9915 }
0x1110   :  { %v9318_v63 = vadd.s32 4294967294, %v7508_v29  ;;  %v14844_v41 = vmul.u32.u64.low %v7591_v36, %v7590_v22  ;;  %v14845_v8 = vmul.u32.u64.high %v7591_v36, %v7590_v22, %v14844_v41  ;;  %v7425_v12 = vsel %vm14709_vm0, %v14501_v2, %v7422_v4  ;;  %v14858_v32 = vpop.eup %9917 }
0x1111   :  { %v7527_v47 = vsel %vm7442_vm13, %v7526_v18, %v7502_v10  ;;  %v14854_v50 = vmul.u32.u64.low %v7591_v36, %v7586_v1  ;;  %v14855_v42 = vmul.u32.u64.high %v7591_v36, %v7586_v1, %v14854_v50  ;;  %v15748_v55 = vxor.u32 2147483648, %v14847_v34 }
0x1112   :  { %9919 = vcosq.f32 %v7425_v12  ;;  %vm9319_vm10 = vcmp.lt.s32.totalorder %v9318_v63, 0  ;;  %v7582_v61 = vsel %vm7576_vm2, %v7579_v0, %v7581_v57  ;;  %v15749_v39 = vxor.u32 2147483648, %v14858_v32 }
0x1113   :  { %9921 = vsinq.f32 %v7425_v12  ;;  %v7511_v56 = vsel %vm9319_vm10, 0, %v9318_v63  ;;  %v7646_v54 = vand.u32 2147483647, %v14527_v3  ;;  %v8199_v10 = vsel %vm8197_vm5, %v15748_v55, %v14858_v32 }
0x1114   :  { %v7512_v53 = vsub.s32 32, %v7511_v56  ;;  %v7516_v26 = vsub.s32 4294967266, %v7511_v56  ;;  %v14872_v46 = vsel %vm14813_vm6, 0, %v7527_v47  ;;  %v8196_v13 = vsel %vm8194_vm8, %v14847_v34, %v15749_v39 }
0x1115   :  { %v7598_v59 = vmul.u32 %v7591_v36, %v7582_v61  ;;  %vm7600_vm15 = vc.u32 %v14845_v8, %v14854_v50  ;;  %v7601_v31 = vadd.s32 1, %v14855_v42  ;;  %v8200_v38 = vsel %vm8193_vm9, %v8196_v13, %v8199_v10 }
0x1116   :  { %v7513_v43 = vshll.u32 %v14801_v48, %v7511_v56  ;;  %v7514_v18 = vshrl.u32 %v7496_v51, %v7512_v53  ;;  %v7517_v35 = vadd.s32 127, %v7516_v26  ;;  %v14886_v1 = vshrl.u32 %v14755_v23, 5 }
0x1117   :  { %v8201_v17 = vsel %vm7326_vm14, nan, %v8200_v38  ;;  %v7602_v52 = vsel %vm7600_vm15, %v7601_v31, %v14855_v42  ;;  %v14893_v29 = vand.u32 8388607, %v7646_v54  ;;  %v14896_v22 = vand.u32 31, %v14755_v23 }
0x1118   :  { %8938 = vrot.lane.b32.xlu1 %v8201_v17, %s9983_s9  ;;  %v7515_v40 = vor.u32 %v7514_v18, %v7513_v43  ;;  %v7518_v48 = vshll.u32 %v7517_v35, 23  ;;  %v7603_v36 = vadd.s32 %v7602_v52, %v7598_v59  ;;  %vm7429_vm0 = vweird.f32 %v14501_v2 }
0x1119   :  { %vm8297_vm1 = vcmp.lt.s32.totalorder %v14834_v30, 2  ;;  %vm8298_vm12 = vcmp.eq.s32.totalorder %v14834_v30, 0  ;;  %vm8301_vm4 = vcmp.eq.s32.totalorder %v14834_v30, 2  ;;  %v8399_v51 = vadd.s32 3, %v14872_v46 }
0x111a   :  { %v7519_v0 = vor.u32 4788187, %v7518_v48  ;;  %v7604_v57 = vadd.s32 536870912, %v7603_v36  ;;  %v7662_v23 = vshrl.u32 %v9982_v5, %v14750_v25  ;;  %v7664_v4 = vshrl.u32 %v9981_v44, %v14750_v25 }
0x111b   :  { %v7654_v63 = vor.u32 8388608, %v14893_v29  ;;  %v7663_v41 = vshll.u32 %v9982_v5, %v14678_v24  ;;  %v7667_v12 = vshrl.u32 %v9978_v14, %v14750_v25  ;;  %v7673_v47 = vshrl.u32 %v9979_v7, %v14750_v25 }
0x111c   :  { %v14915_v42 = vpop.eup %9919  ;;  %v7520_v61 = vand.u32 2147483647, %v7519_v0  ;;  %v7522_v56 = vcvt.s32.f32 %v7515_v40  ;;  %vm7545_vm2 = vcmp.lt.s32.totalorder %v14504_v45, 0  ;;  %v7605_v10 = vshrl.u32 %v7604_v57, 30 }
0x111d   :  { %v7670_v53 = vshrl.u32 %v9977_v33, %v14750_v25  ;;  %v14920_v26 = vpop.eup %9921  ;;  %v15744_v13 = vxor.u32 2147483648, %v14915_v42  ;;  %v7666_v59 = vshll.u32 %v9981_v44, %v14678_v24  ;;  %v7669_v31 = vshll.u32 %v9978_v14, %v14678_v24 }
0x111e   :  { %v7672_v38 = vshll.u32 %v9977_v33, %v14678_v24  ;;  %v15745_v43 = vxor.u32 2147483648, %v14920_v26  ;;  %v7523_v18 = vmul.f32 %v7522_v56, %v7520_v61  ;;  %v7606_v35 = vshll.u32 %v7605_v10, 30 }
0x111f   :  { %v7665_v17 = vor.u32 %v7664_v4, %v7663_v41  ;;  %v8303_v52 = vsel %vm8301_vm4, %v15744_v13, %v14920_v26  ;;  %vm14937_vm3 = vcmp.le.f32.partialorder %v7543_v11, 0.7853982  ;;  %v7668_v40 = vor.u32 %v7667_v12, %v7666_v59 }
0x1120   :  { %v7674_v48 = vor.u32 %v7673_v47, %v7672_v38  ;;  %v7676_v0 = vshrl.u32 %v9980_v15, %v14750_v25  ;;  %v8300_v57 = vsel %vm8298_vm12, %v14915_v42, %v15745_v43  ;;  %v7524_v4 = vxor.u32 2147483648, %v7523_v18 }
0x1121   :  { %v14948_v41 = vsub.s32 %v7603_v36, %v7606_v35  ;;  %v7671_v61 = vor.u32 %v7670_v53, %v7669_v31  ;;  %v8304_v11 = vsel %vm8297_vm1, %v8300_v57, %v8303_v52  ;;  %v7629_v56 = vsub.s32 4, %v7605_v10 }
0x1122   :  { %v7675_v12 = vshll.u32 %v9979_v7, %v14678_v24  ;;  %vm7678_vm5 = vcmp.lt.s32.totalorder %v14741_v62, 1  ;;  %v8305_v25 = vsel %vm7429_vm0, nan, %v8304_v11  ;;  %v7525_v47 = vsel %vm7442_vm13, %v7524_v4, %v7523_v18 }
0x1123   :  { %v7609_v59 = vsub.s32 0, %v14948_v41  ;;  %vm7681_vm7 = vcmp.lt.s32.totalorder %v14741_v62, 4  ;;  %8940 = vrot.lane.b32.xlu0 %v8305_v25, %s9983_s9  ;;  %v7528_v30 = vsel %vm14813_vm6, %v14495_v16, %v7525_v47  ;;  %vm7680_vm8 = vcmp.lt.s32.totalorder %v14741_v62, 3 }
0x1124   :  { %v7677_v36 = vor.u32 %v7676_v0, %v7675_v12  ;;  %v7687_v24 = vsel %vm7681_vm7, %v7674_v48, 920167782  ;;  %9923 = vcosq.f32 %v7528_v30  ;;  %v7683_v31 = vsel %vm7681_vm7, %v7671_v61, 2102212464 }
0x1125   :  { %v9321_v53 = vmin.u32 %v7609_v59, %v14948_v41  ;;  %v7686_v38 = vsel %vm7678_vm5, %v7665_v17, %v7668_v40  ;;  %9925 = vsinq.f32 %v7528_v30  ;;  %v8400_v18 = vand.u32 3, %v8399_v51 }
0x1126   :  { %v7630_v20 = vsel %vm7545_vm2, %v7629_v56, %v7605_v10  ;;  %v7688_v35 = vsel %vm7680_vm8, %v7671_v61, %v7687_v24  ;;  %vm7679_vm13 = vcmp.lt.s32.totalorder %v14741_v62, 2  ;;  %v7682_v0 = vsel %vm7678_vm5, %v7662_v23, %v7665_v17 }
0x1127   :  { %v7611_v52 = vclz %v9321_v53  ;;  %v7690_v57 = vsel %vm7678_vm5, %v7668_v40, %v7671_v61  ;;  %v7684_v4 = vsel %vm7680_vm8, %v7668_v40, %v7683_v31  ;;  %v7689_v11 = vsel %vm7679_vm13, %v7686_v38, %v7688_v35 }
0x1128   :  { %v7691_v51 = vsel %vm7681_vm7, %v7677_v36, 1326507024  ;;  %v7694_v10 = vshll.u32 %v7654_v63, 8  ;;  %v14987_v56 = vsub.s32 32, %v14896_v22  ;;  %v14991_v25 = vsel %vm14937_vm3, 0, %v7630_v20 }
0x1129   :  { %v9322_v12 = vadd.s32 4294967294, %v7611_v52  ;;  %v7692_v23 = vsel %vm7680_vm8, %v7674_v48, %v7691_v51  ;;  %v7749_v40 = vand.u32 2147483647, %v14536_v19  ;;  %v7685_v63 = vsel %vm7679_vm13, %v7682_v0, %v7684_v4 }
0x112a   :  { %v7693_v17 = vsel %vm7679_vm13, %v7690_v57, %v7692_v23  ;;  %v14995_v61 = vmul.u32.u64.low %v7694_v10, %v7689_v11  ;;  %v14996_v47 = vmul.u32.u64.high %v7694_v10, %v7689_v11, %v14995_v61  ;;  %vm7532_vm9 = vweird.f32 %v14495_v16 }
0x112b   :  { %vm9323_vm6 = vcmp.lt.s32.totalorder %v9322_v12, 0  ;;  %v15000_v59 = vmul.u32.u64.low %v7694_v10, %v7693_v17  ;;  %v15001_v30 = vmul.u32.u64.high %v7694_v10, %v7693_v17, %v15000_v59  ;;  %vm8401_vm10 = vcmp.lt.s32.totalorder %v8400_v18, 2 }
0x112c   :  { %vm8402_vm15 = vcmp.eq.s32.totalorder %v8400_v18, 0  ;;  %vm8405_vm1 = vcmp.eq.s32.totalorder %v8400_v18, 2  ;;  %v7614_v36 = vsel %vm9323_vm6, 0, %v9322_v12  ;;  %v7599_v62 = vadd.s32 %v14854_v50, %v14845_v8 }
0x112d   :  { %v7615_v48 = vsub.s32 32, %v7614_v36  ;;  %v7619_v24 = vsub.s32 4294967266, %v7614_v36  ;;  %v15007_v53 = vadd.s32 3, %v14991_v25  ;;  %v7701_v31 = vmul.u32 %v7694_v10, %v7685_v63 }
0x112e   :  { %v7704_v38 = vadd.s32 1, %v14996_v47  ;;  %v7756_v20 = vand.u32 8388607, %v7749_v40  ;;  %v7766_v35 = vshll.u32 %v9982_v5, %v14896_v22  ;;  %v15014_v52 = vpop.eup %9923  ;;  %v7616_v0 = vshll.u32 %v14948_v41, %v7614_v36 }
0x112f   :  { %v7617_v57 = vshrl.u32 %v7599_v62, %v7615_v48  ;;  %v7620_v8 = vadd.s32 127, %v7619_v24  ;;  %vm7703_vm12 = vc.u32 %v15001_v30, %v14995_v61  ;;  %v15019_v50 = vpop.eup %9925  ;;  %v15746_v4 = vxor.u32 2147483648, %v15014_v52 }
0x1130   :  { %v7705_v11 = vsel %vm7703_vm12, %v7704_v38, %v14996_v47  ;;  %v7767_v51 = vshrl.u32 %v9981_v44, %v14987_v56  ;;  %v7769_v10 = vshll.u32 %v9981_v44, %v14896_v22  ;;  %v15747_v12 = vxor.u32 2147483648, %v15019_v50 }
0x1131   :  { %v7618_v41 = vor.u32 %v7617_v57, %v7616_v0  ;;  %v7621_v23 = vshll.u32 %v7620_v8, 23  ;;  %v7706_v17 = vadd.s32 %v7705_v11, %v7701_v31  ;;  %v8407_v63 = vsel %vm8405_vm1, %v15746_v4, %v15019_v50 }
0x1132   :  { %v7770_v59 = vshrl.u32 %v9978_v14, %v14987_v56  ;;  %v7772_v47 = vshll.u32 %v9978_v14, %v14896_v22  ;;  %v7773_v36 = vshrl.u32 %v9977_v33, %v14987_v56  ;;  %v8404_v62 = vsel %vm8402_vm15, %v15014_v52, %v15747_v12 }
0x1133   :  { %v7622_v48 = vor.u32 4788187, %v7621_v23  ;;  %v7707_v24 = vadd.s32 536870912, %v7706_v17  ;;  %v7775_v31 = vshll.u32 %v9977_v33, %v14896_v22  ;;  %v8408_v38 = vsel %vm8401_vm10, %v8404_v62, %v8407_v63 }
0x1134   :  { %v7625_v0 = vcvt.s32.f32 %v7618_v41  ;;  %v7776_v57 = vshrl.u32 %v9979_v7, %v14987_v56  ;;  %v7778_v8 = vshll.u32 %v9979_v7, %v14896_v22  ;;  %v8409_v11 = vsel %vm7532_vm9, nan, %v8408_v38 }
0x1135   :  { %v7623_v13 = vand.u32 2147483647, %v7622_v48  ;;  %v7708_v43 = vshrl.u32 %v7707_v24, 30  ;;  %v7779_v23 = vshrl.u32 %v9980_v15, %v14987_v56  ;;  %8942 = vrot.lane.b32.xlu1 %v8409_v11, %s9983_s9  ;;  %vm7648_vm4 = vcmp.lt.s32.totalorder %v14527_v3, 0 }
0x1136   :  { %v7768_v18 = vor.u32 %v7767_v51, %v7766_v35  ;;  %v7771_v41 = vor.u32 %v7770_v59, %v7769_v10  ;;  %v7774_v63 = vor.u32 %v7773_v36, %v7772_v47  ;;  %v7777_v62 = vor.u32 %v7776_v57, %v7775_v31 }
0x1137   :  { %v7626_v4 = vmul.f32 %v7625_v0, %v7623_v13  ;;  %v7709_v12 = vshll.u32 %v7708_v43, 30  ;;  %v7765_v22 = vshrl.u32 %v9982_v5, %v14987_v56  ;;  %v7780_v55 = vor.u32 %v7779_v23, %v7778_v8 }
0x1138   :  { %v7757_v38 = vor.u32 8388608, %v7756_v20  ;;  %vm7781_vm5 = vcmp.lt.s32.totalorder %v14886_v1, 1  ;;  %vm7782_vm7 = vcmp.lt.s32.totalorder %v14886_v1, 2  ;;  %vm7783_vm8 = vcmp.lt.s32.totalorder %v14886_v1, 3 }
0x1139   :  { %v7627_v48 = vxor.u32 2147483648, %v7626_v4  ;;  %v15060_v24 = vsub.s32 %v7706_v17, %v7709_v12  ;;  %v7732_v35 = vsub.s32 4, %v7708_v43  ;;  %vm7784_vm13 = vcmp.lt.s32.totalorder %v14886_v1, 4 }
0x113a   :  { %v7786_v51 = vsel %vm7784_vm13, %v7774_v63, 2102212464  ;;  %v7789_v13 = vsel %vm7781_vm5, %v7768_v18, %v7771_v41  ;;  %v7790_v10 = vsel %vm7784_vm13, %v7777_v62, 920167782  ;;  %v7794_v59 = vsel %vm7784_vm13, %v7780_v55, 1326507024 }
0x113b   :  { %v7628_v56 = vsel %vm7545_vm2, %v7627_v48, %v7626_v4  ;;  %v7712_v20 = vsub.s32 0, %v15060_v24  ;;  %v7785_v47 = vsel %vm7781_vm5, %v7765_v22, %v7768_v18  ;;  %v7793_v36 = vsel %vm7781_vm5, %v7771_v41, %v7774_v63 }
0x113c   :  { %v7631_v31 = vsel %vm14937_vm3, %v14504_v45, %v7628_v56  ;;  %v7791_v12 = vsel %vm7783_vm8, %v7774_v63, %v7790_v10  ;;  %v7795_v17 = vsel %vm7783_vm8, %v7777_v62, %v7794_v59  ;;  %v7797_v0 = vshll.u32 %v7757_v38, 8 }
0x113d   :  { %9927 = vcosq.f32 %v7631_v31  ;;  %v9325_v55 = vmin.u32 %v7712_v20, %v15060_v24  ;;  %v7787_v4 = vsel %vm7783_vm8, %v7771_v41, %v7786_v51  ;;  %v7792_v57 = vsel %vm7782_vm7, %v7789_v13, %v7791_v12 }
0x113e   :  { %9929 = vsinq.f32 %v7631_v31  ;;  %v7796_v29 = vsel %vm7782_vm7, %v7793_v36, %v7795_v17  ;;  %v15080_v8 = vmul.u32.u64.low %v7797_v0, %v7792_v57  ;;  %v15081_v11 = vmul.u32.u64.high %v7797_v0, %v7792_v57, %v15080_v8 }
0x113f   :  { %vm7966_vm2 = vcmp.gt.s32.totalorder %v14668_v21, 0  ;;  %v8504_v23 = vand.u32 3, %v15007_v53  ;;  %v7714_v18 = vclz %v9325_v55  ;;  %v7733_v63 = vsel %vm7648_vm4, %v7732_v35, %v7708_v43 }
0x1140   :  { %v15089_v41 = vsub.s32 32, %v14738_v9  ;;  %v15091_v62 = vmul.u32.u64.low %v7797_v0, %v7796_v29  ;;  %v15092_v22 = vmul.u32.u64.high %v7797_v0, %v7796_v29, %v15091_v62  ;;  %v15095_v38 = vshrl.u32 %v14675_v28, 5 }
0x1141   :  { %vm15099_vm3 = vcmp.le.f32.partialorder %v7646_v54, 0.7853982  ;;  %v9326_v53 = vadd.s32 4294967294, %v7714_v18  ;;  %v7788_v51 = vsel %vm7782_vm7, %v7785_v47, %v7787_v4  ;;  %v15106_v43 = vsel %vm7966_vm2, %v14668_v21, 0 }
0x1142   :  { %v15110_v35 = vsel %vm15099_vm3, 0, %v7733_v63  ;;  %v7807_v28 = vadd.s32 1, %v15081_v11  ;;  %v15750_v13 = vand.u32 2147483647, %v14519_v27  ;;  %vm8505_vm6 = vcmp.lt.s32.totalorder %v8504_v23, 2 }
0x1143   :  { %vm8506_vm10 = vcmp.eq.s32.totalorder %v8504_v23, 0  ;;  %vm8509_vm15 = vcmp.eq.s32.totalorder %v8504_v23, 2  ;;  %v7702_v54 = vadd.s32 %v14995_v61, %v15001_v30  ;;  %vm9327_vm1 = vcmp.lt.s32.totalorder %v9326_v53, 0 }
0x1144   :  { %vm7635_vm12 = vweird.f32 %v14504_v45  ;;  %v7717_v1 = vsel %vm9327_vm1, 0, %v9326_v53  ;;  %v7804_v21 = vmul.u32 %v7797_v0, %v7788_v51  ;;  %vm7806_vm5 = vc.u32 %v15092_v22, %v15080_v8 }
0x1145   :  { %v7870_v10 = vshrl.u32 %v9981_v44, %v15089_v41  ;;  %v7718_v59 = vsub.s32 32, %v7717_v1  ;;  %v7722_v56 = vsub.s32 4294967266, %v7717_v1  ;;  %v8607_v20 = vadd.s32 3, %v15110_v35 }
0x1146   :  { %v7808_v47 = vsel %vm7806_vm5, %v7807_v28, %v15081_v11  ;;  %v7859_v61 = vand.u32 8388607, %v15750_v13  ;;  %v7869_v30 = vshll.u32 %v9982_v5, %v14738_v9  ;;  %v7872_v31 = vshll.u32 %v9981_v44, %v14738_v9 }
0x1147   :  { %v7809_v36 = vadd.s32 %v7808_v47, %v7804_v21  ;;  %v15129_v12 = vpop.eup %9927  ;;  %v7719_v17 = vshll.u32 %v15060_v24, %v7717_v1  ;;  %v7720_v0 = vshrl.u32 %v7702_v54, %v7718_v59  ;;  %v7723_v55 = vadd.s32 127, %v7722_v56 }
0x1148   :  { %v7873_v4 = vshrl.u32 %v9978_v14, %v15089_v41  ;;  %v15134_v57 = vpop.eup %9929  ;;  %v15751_v29 = vxor.u32 2147483648, %v15129_v12  ;;  %v7871_v18 = vor.u32 %v7870_v10, %v7869_v30  ;;  %v7879_v63 = vshrl.u32 %v9979_v7, %v15089_v41 }
0x1149   :  { %v7810_v11 = vadd.s32 536870912, %v7809_v36  ;;  %v7639_v62 = vxor.u32 2147483648, %v15134_v57  ;;  %v7721_v53 = vor.u32 %v7720_v0, %v7719_v17  ;;  %v7724_v51 = vshll.u32 %v7723_v55, 23 }
0x114a   :  { %v7876_v24 = vshrl.u32 %v9977_v33, %v15089_v41  ;;  %v8511_v28 = vsel %vm8509_vm15, %v15751_v29, %v15134_v57  ;;  %v7878_v1 = vshll.u32 %v9977_v33, %v14738_v9  ;;  %v7882_v21 = vshrl.u32 %v9980_v15, %v15089_v41 }
0x114b   :  { %v15146_v54 = vshrl.u32 %v7810_v11, 30  ;;  %v8508_v10 = vsel %vm8506_vm10, %v15129_v12, %v7639_v62  ;;  %v7725_v59 = vor.u32 4788187, %v7724_v51  ;;  %v7874_v56 = vor.u32 %v7873_v4, %v7872_v31 }
0x114c   :  { %v7875_v47 = vshll.u32 %v9978_v14, %v14738_v9  ;;  %v8512_v30 = vsel %vm8505_vm6, %v8508_v10, %v8511_v28  ;;  %v7880_v0 = vor.u32 %v7879_v63, %v7878_v1  ;;  %v7881_v55 = vshll.u32 %v9979_v7, %v14738_v9 }
0x114d   :  { %v7812_v17 = vshll.u32 %v15146_v54, 30  ;;  %v8513_v11 = vsel %vm7635_vm12, nan, %v8512_v30  ;;  %v7726_v39 = vand.u32 2147483647, %v7725_v59  ;;  %v7728_v13 = vcvt.s32.f32 %v7721_v53 }
0x114e   :  { %v7877_v29 = vor.u32 %v7876_v24, %v7875_v47  ;;  %8944 = vrot.lane.b32.xlu1 %v8513_v11, %s9983_s9  ;;  %v7883_v4 = vor.u32 %v7882_v21, %v7881_v55  ;;  %v15168_v23 = vand.u32 31, %v15106_v43  ;;  %v7860_v28 = vor.u32 8388608, %v7859_v61 }
0x114f   :  { %v15165_v31 = vsub.s32 %v7809_v36, %v7812_v17  ;;  %v7729_v51 = vmul.f32 %v7728_v13, %v7726_v39  ;;  %vm7887_vm7 = vcmp.lt.s32.totalorder %v15095_v38, 4  ;;  %vm7884_vm8 = vcmp.lt.s32.totalorder %v15095_v38, 1 }
0x1150   :  { %vm7886_vm13 = vcmp.lt.s32.totalorder %v15095_v38, 3  ;;  %v7893_v63 = vsel %vm7887_vm7, %v7880_v0, 920167782  ;;  %v15174_v24 = vand.u32 3, %v8607_v20  ;;  %v7892_v36 = vsel %vm7884_vm8, %v7871_v18, %v7874_v56 }
0x1151   :  { %v7815_v9 = vsub.s32 0, %v15165_v31  ;;  %v7730_v53 = vxor.u32 2147483648, %v7729_v51  ;;  %v7894_v1 = vsel %vm7886_vm13, %v7877_v29, %v7893_v63  ;;  %v7889_v13 = vsel %vm7887_vm7, %v7877_v29, 2102212464 }
0x1152   :  { %v7896_v61 = vsel %vm7884_vm8, %v7874_v56, %v7877_v29  ;;  %v7897_v21 = vsel %vm7887_vm7, %v7883_v4, 1326507024  ;;  %v7868_v20 = vshrl.u32 %v9982_v5, %v15089_v41  ;;  %vm7885_vm2 = vcmp.lt.s32.totalorder %v15095_v38, 2 }
0x1153   :  { %v9329_v39 = vmin.u32 %v7815_v9, %v15165_v31  ;;  %v7731_v10 = vsel %vm7648_vm4, %v7730_v53, %v7729_v51  ;;  %v7898_v59 = vsel %vm7886_vm13, %v7880_v0, %v7897_v21  ;;  %v7895_v29 = vsel %vm7885_vm2, %v7892_v36, %v7894_v1 }
0x1154   :  { %v7734_v47 = vsel %vm15099_vm3, %v14527_v3, %v7731_v10  ;;  %v7900_v17 = vshll.u32 %v7860_v28, 8  ;;  %v7888_v55 = vsel %vm7884_vm8, %v7868_v20, %v7871_v18  ;;  %v7890_v41 = vsel %vm7886_vm13, %v7874_v56, %v7889_v13 }
0x1155   :  { %v7817_v30 = vclz %v9329_v39  ;;  %9931 = vcosq.f32 %v7734_v47  ;;  %v7899_v11 = vsel %vm7885_vm2, %v7896_v61, %v7898_v59  ;;  %v7835_v51 = vsub.s32 4, %v15146_v54 }
0x1156   :  { %9933 = vsinq.f32 %v7734_v47  ;;  %v15201_v4 = vmul.u32.u64.low %v7900_v17, %v7899_v11  ;;  %v15202_v48 = vmul.u32.u64.high %v7900_v17, %v7899_v11, %v15201_v4  ;;  %v15210_v28 = vsub.s32 32, %v15168_v23 }
0x1157   :  { %v9330_v0 = vadd.s32 4294967294, %v7817_v30  ;;  %v15205_v9 = vmul.u32.u64.low %v7900_v17, %v7895_v29  ;;  %v15206_v63 = vmul.u32.u64.high %v7900_v17, %v7895_v29, %v15205_v9  ;;  %v7891_v18 = vsel %vm7885_vm2, %v7888_v55, %v7890_v41 }
0x1158   :  { %v15215_v56 = vshrl.u32 %v15106_v43, 5  ;;  %vm7751_vm3 = vcmp.lt.s32.totalorder %v14536_v19, 0  ;;  %v7955_v36 = vand.u32 2147483647, %v14531_v6  ;;  %vm8610_vm6 = vcmp.eq.s32.totalorder %v15174_v24, 0 }
0x1159   :  { %vm9331_vm4 = vcmp.lt.s32.totalorder %v9330_v0, 0  ;;  %vm8613_vm10 = vcmp.eq.s32.totalorder %v15174_v24, 2  ;;  %v7805_v1 = vadd.s32 %v15080_v8, %v15092_v22  ;;  %vm8609_vm15 = vcmp.lt.s32.totalorder %v15174_v24, 2 }
0x115a   :  { %v7820_v53 = vsel %vm9331_vm4, 0, %v9330_v0  ;;  %v7836_v38 = vsel %vm7751_vm3, %v7835_v51, %v15146_v54  ;;  %v7907_v43 = vmul.u32 %v7900_v17, %v7891_v18  ;;  %vm7909_vm1 = vc.u32 %v15202_v48, %v15205_v9 }
0x115b   :  { %v7821_v39 = vsub.s32 32, %v7820_v53  ;;  %v7825_v13 = vsub.s32 4294967266, %v7820_v53  ;;  %v7910_v61 = vadd.s32 1, %v15206_v63  ;;  %vm7738_vm5 = vweird.f32 %v14527_v3 }
0x115c   :  { %vm15233_vm7 = vcmp.le.f32.partialorder %v7749_v40, 0.7853982  ;;  %v7822_v22 = vshll.u32 %v15165_v31, %v7820_v53  ;;  %v7973_v54 = vshrl.u32 %v9981_v44, %v15210_v28  ;;  %v7962_v59 = vand.u32 8388607, %v7955_v36 }
0x115d   :  { %v7823_v21 = vshrl.u32 %v7805_v1, %v7821_v39  ;;  %v7826_v10 = vadd.s32 127, %v7825_v13  ;;  %v7911_v20 = vsel %vm7909_vm1, %v7910_v61, %v15206_v63  ;;  %v7972_v47 = vshll.u32 %v9982_v5, %v15168_v23 }
0x115e   :  { %v7982_v40 = vshrl.u32 %v9979_v7, %v15210_v28  ;;  %v7912_v17 = vadd.s32 %v7911_v20, %v7907_v43  ;;  %v7975_v31 = vshll.u32 %v9981_v44, %v15168_v23  ;;  %v7976_v41 = vshrl.u32 %v9978_v14, %v15210_v28 }
0x115f   :  { %v7824_v30 = vor.u32 %v7823_v21, %v7822_v22  ;;  %v7827_v29 = vshll.u32 %v7826_v10, 23  ;;  %v15249_v55 = vpop.eup %9931  ;;  %v7979_v11 = vshrl.u32 %v9977_v33, %v15210_v28  ;;  %v7981_v0 = vshll.u32 %v9977_v33, %v15168_v23 }
0x1160   :  { %v7985_v4 = vshrl.u32 %v9980_v15, %v15210_v28  ;;  %v15259_v51 = vpop.eup %9933  ;;  %v7745_v63 = vxor.u32 2147483648, %v15249_v55  ;;  %v7913_v44 = vadd.s32 536870912, %v7912_v17  ;;  %v7974_v53 = vor.u32 %v7973_v54, %v7972_v47 }
0x1161   :  { %v7828_v18 = vor.u32 4788187, %v7827_v29  ;;  %v7742_v1 = vxor.u32 2147483648, %v15259_v51  ;;  %v7978_v39 = vshll.u32 %v9978_v14, %v15168_v23  ;;  %v7983_v13 = vor.u32 %v7982_v40, %v7981_v0 }
0x1162   :  { %v7984_v43 = vshll.u32 %v9979_v7, %v15168_v23  ;;  %v8615_v33 = vsel %vm8613_vm10, %v7745_v63, %v15259_v51  ;;  %v7831_v61 = vcvt.s32.f32 %v7824_v30  ;;  %v15272_v22 = vshrl.u32 %v7913_v44, 30 }
0x1163   :  { %v7829_v15 = vand.u32 2147483647, %v7828_v18  ;;  %v8612_v14 = vsel %vm8610_vm6, %v15249_v55, %v7742_v1  ;;  %v7977_v21 = vor.u32 %v7976_v41, %v7975_v31  ;;  %v7980_v10 = vor.u32 %v7979_v11, %v7978_v39 }
0x1164   :  { %v7986_v54 = vor.u32 %v7985_v4, %v7984_v43  ;;  %v8616_v7 = vsel %vm8609_vm15, %v8612_v14, %v8615_v33  ;;  %v7915_v20 = vshll.u32 %v15272_v22, 30  ;;  %vm7990_vm8 = vcmp.lt.s32.totalorder %v15215_v56, 4 }
0x1165   :  { %v7832_v23 = vmul.f32 %v7831_v61, %v7829_v15  ;;  %v8617_v47 = vsel %vm7738_vm5, nan, %v8616_v7  ;;  %v15287_v40 = vsel %vm15233_vm7, 0, %v7836_v38  ;;  %v7963_v30 = vor.u32 8388608, %v7962_v59 }
0x1166   :  { %v7996_v29 = vsel %vm7990_vm8, %v7983_v13, 920167782  ;;  %8946 = vrot.lane.b32.xlu0 %v8617_v47, %s9983_s9  ;;  %v7916_v31 = vsub.s32 %v7912_v17, %v7915_v20  ;;  %vm7987_vm13 = vcmp.lt.s32.totalorder %v15215_v56, 1  ;;  %vm7989_vm2 = vcmp.lt.s32.totalorder %v15215_v56, 3 }
0x1167   :  { %v7833_v24 = vxor.u32 2147483648, %v7832_v23  ;;  %v7995_v41 = vsel %vm7987_vm13, %v7974_v53, %v7977_v21  ;;  %v7997_v11 = vsel %vm7989_vm2, %v7980_v10, %v7996_v29  ;;  %v7999_v38 = vsel %vm7987_vm13, %v7977_v21, %v7980_v10 }
0x1168   :  { %v8000_v59 = vsel %vm7990_vm8, %v7986_v54, 1326507024  ;;  %v7918_v17 = vsub.s32 0, %v7916_v31  ;;  %v7971_v4 = vshrl.u32 %v9982_v5, %v15210_v28  ;;  %vm7988_vm4 = vcmp.lt.s32.totalorder %v15215_v56, 2 }
0x1169   :  { %v7834_v0 = vsel %vm7751_vm3, %v7833_v24, %v7832_v23  ;;  %v7992_v44 = vsel %vm7990_vm8, %v7980_v10, 2102212464  ;;  %v8001_v39 = vsel %vm7989_vm2, %v7983_v13, %v8000_v59  ;;  %v8003_v43 = vshll.u32 %v7963_v30, 8 }
0x116a   :  { %v7837_v18 = vsel %vm15233_vm7, %v14536_v19, %v7834_v0  ;;  %v9333_v33 = vmin.u32 %v7918_v17, %v7916_v31  ;;  %v7998_v15 = vsel %vm7988_vm4, %v7995_v41, %v7997_v11  ;;  %v8002_v5 = vsel %vm7988_vm4, %v7999_v38, %v8001_v39 }
0x116b   :  { %9935 = vcosq.f32 %v7837_v18  ;;  %v15318_v28 = vmul.u32.u64.low %v8003_v43, %v8002_v5  ;;  %v15319_v61 = vmul.u32.u64.high %v8003_v43, %v8002_v5, %v15318_v28  ;;  %v7991_v14 = vsel %vm7987_vm13, %v7971_v4, %v7974_v53 }
0x116c   :  { %9937 = vsinq.f32 %v7837_v18  ;;  %v7920_v8 = vclz %v9333_v33  ;;  %v7993_v13 = vsel %vm7989_vm2, %v7977_v21, %v7992_v44  ;;  %v8711_v10 = vadd.s32 3, %v15287_v40 }
0x116d   :  { %v15326_v54 = vmul.u32.u64.low %v8003_v43, %v7998_v15  ;;  %v15327_v7 = vmul.u32.u64.high %v8003_v43, %v7998_v15, %v15326_v54  ;;  %v7994_v20 = vsel %vm7988_vm4, %v7991_v14, %v7993_v13  ;;  %v7908_v21 = vadd.s32 %v15205_v9, %v15202_v48 }
0x116e   :  { %v9334_v23 = vadd.s32 4294967294, %v7920_v8  ;;  %v8712_v47 = vand.u32 3, %v8711_v10  ;;  %v8010_v41 = vmul.u32 %v8003_v43, %v7994_v20  ;;  %v7636_v44 = vand.u32 3, %v14991_v25 }
0x116f   :  { %vm8012_vm6 = vc.u32 %v15319_v61, %v15326_v54  ;;  %v8013_v53 = vadd.s32 1, %v15327_v7  ;;  %vm7841_vm7 = vweird.f32 %v14536_v19  ;;  %v7739_v25 = vand.u32 3, %v15110_v35 }
0x1170   :  { %vm9335_vm3 = vcmp.lt.s32.totalorder %v9334_v23, 0  ;;  %vm8717_vm10 = vcmp.eq.s32.totalorder %v8712_v47, 2  ;;  %vm8713_vm15 = vcmp.lt.s32.totalorder %v8712_v47, 2  ;;  %vm8714_vm1 = vcmp.eq.s32.totalorder %v8712_v47, 0 }
0x1171   :  { %v7923_v30 = vsel %vm9335_vm3, 0, %v9334_v23  ;;  %v8014_v11 = vsel %vm8012_vm6, %v8013_v53, %v15327_v7  ;;  %vm7638_vm8 = vcmp.eq.s32.totalorder %v7636_v44, 0  ;;  %vm7854_vm13 = vcmp.lt.s32.totalorder %v14519_v27, 0 }
0x1172   :  { %v7924_v29 = vsub.s32 32, %v7923_v30  ;;  %v7928_v24 = vsub.s32 4294967266, %v7923_v30  ;;  %v7925_v56 = vshll.u32 %v7916_v31, %v7923_v30  ;;  %v8015_v17 = vadd.s32 %v8014_v11, %v8010_v41 }
0x1173   :  { %v7938_v31 = vsub.s32 4, %v15272_v22  ;;  %v7640_v23 = vsel %vm7638_vm8, %v15129_v12, %v7639_v62  ;;  %vm7641_vm2 = vcmp.eq.s32.totalorder %v7636_v44, 2  ;;  %vm7637_vm4 = vcmp.lt.s32.totalorder %v7636_v44, 2 }
0x1174   :  { %v7926_v59 = vshrl.u32 %v7908_v21, %v7924_v29  ;;  %v7929_v0 = vadd.s32 127, %v7928_v24  ;;  %v8016_v9 = vadd.s32 536870912, %v8015_v17  ;;  %v16177_v30 = vxor.u32 2147483648, %v15129_v12 }
0x1175   :  { %v15338_v38 = vpop.eup %9935  ;;  %v7939_v35 = vsel %vm7854_vm13, %v7938_v31, %v15272_v22  ;;  %vm7740_vm3 = vcmp.lt.s32.totalorder %v7739_v25, 2  ;;  %vm7741_vm6 = vcmp.eq.s32.totalorder %v7739_v25, 0  ;;  %v7842_v12 = vand.u32 3, %v15287_v40 }
0x1176   :  { %v9938_v4 = vpop.eup %9937  ;;  %v7848_v18 = vxor.u32 2147483648, %v15338_v38  ;;  %v7927_v33 = vor.u32 %v7926_v59, %v7925_v56  ;;  %v7930_v48 = vshll.u32 %v7929_v0, 23  ;;  %v15344_v28 = vshrl.u32 %v8016_v9, 30 }
0x1177   :  { %v7845_v39 = vxor.u32 2147483648, %v9938_v4  ;;  %v7643_v53 = vsel %vm7641_vm2, %v16177_v30, %v15134_v57  ;;  %v7743_v22 = vsel %vm7741_vm6, %v15249_v55, %v7742_v1  ;;  %v16178_v57 = vand.u32 2147483647, %v14519_v27 }
0x1178   :  { %v8719_v43 = vsel %vm8717_vm10, %v7848_v18, %v9938_v4  ;;  %v7931_v5 = vor.u32 4788187, %v7930_v48  ;;  %v7934_v14 = vcvt.s32.f32 %v7927_v33  ;;  %v8018_v7 = vshll.u32 %v15344_v28, 30 }
0x1179   :  { %v8716_v15 = vsel %vm8714_vm1, %v15338_v38, %v7845_v39  ;;  %v7644_v24 = vsel %vm7637_vm4, %v7640_v23, %v7643_v53  ;;  %vm7744_vm10 = vcmp.eq.s32.totalorder %v7739_v25, 2  ;;  %vm7847_vm1 = vcmp.eq.s32.totalorder %v7842_v12, 2 }
0x117a   :  { %v8720_v8 = vsel %vm8713_vm15, %v8716_v15, %v8719_v43  ;;  %v7932_v10 = vand.u32 2147483647, %v7931_v5  ;;  %v8019_v47 = vsub.s32 %v8015_v17, %v8018_v7  ;;  %v15364_v62 = vsel %vm7635_vm12, nan, %v7644_v24 }
0x117b   :  { %v8721_v13 = vsel %vm7841_vm7, nan, %v8720_v8  ;;  %v7746_v41 = vsel %vm7744_vm10, %v7745_v63, %v15259_v51  ;;  %vm7853_vm15 = vcmp.le.f32.partialorder %v16178_v57, 0.7853982  ;;  %vm7844_vm12 = vcmp.eq.s32.totalorder %v7842_v12, 0 }
0x117c   :  { %8948 = vrot.lane.b32.xlu1 %v8721_v13, %s9983_s9  ;;  %v7935_v20 = vmul.f32 %v7934_v14, %v7932_v10  ;;  %v8021_v29 = vsub.s32 0, %v8019_v47  ;;  %v15377_v59 = vsel %vm7740_vm3, %v7743_v22, %v7746_v41  ;;  %v15380_v17 = vsel %vm7853_vm15, 0, %v7939_v35 }
0x117d   :  { %v7846_v55 = vsel %vm7844_vm12, %v15338_v38, %v7845_v39  ;;  %vm7843_vm8 = vcmp.lt.s32.totalorder %v7842_v12, 2  ;;  %v7849_v63 = vsel %vm7847_vm1, %v7848_v18, %v9938_v4  ;;  %v8815_v40 = vadd.s32 3, %v15380_v17 }
0x117e   :  { %v7936_v21 = vxor.u32 2147483648, %v7935_v20  ;;  %v9337_v56 = vmin.u32 %v8021_v29, %v8019_v47  ;;  %v15384_v44 = vsel %vm7843_vm8, %v7846_v55, %v7849_v63  ;;  %v8011_v48 = vadd.s32 %v15326_v54, %v15319_v61 }
0x117f   :  { %v7212_v15 = vmul.f32 1.442695, %v14501_v2  ;;  %v8816_v5 = vand.u32 3, %v8815_v40  ;;  %v7327_v38 = vand.u32 3, %v14722_v49  ;;  %v7210_v4 = vmul.f32 1.442695, %v14497_v37 }
0x1180   :  { %v7937_v11 = vsel %vm7854_vm13, %v7936_v21, %v7935_v20  ;;  %v8023_v1 = vclz %v9337_v56  ;;  %v16179_v7 = vxor.u32 2147483648, %v14858_v32  ;;  %v7533_v20 = vand.u32 3, %v14872_v46 }
0x1181   :  { %v7940_v0 = vsel %vm7853_vm15, %v14519_v27, %v7937_v11  ;;  %vm8817_vm2 = vcmp.lt.s32.totalorder %v8816_v5, 2  ;;  %vm8818_vm4 = vcmp.eq.s32.totalorder %v8816_v5, 0  ;;  %vm8821_vm3 = vcmp.eq.s32.totalorder %v8816_v5, 2 }
0x1182   :  { %9939 = vcosq.f32 %v7940_v0  ;;  %v9338_v51 = vadd.s32 4294967294, %v8023_v1  ;;  %vm7329_vm6 = vcmp.eq.s32.totalorder %v7327_v38, 0  ;;  %vm7332_vm10 = vcmp.eq.s32.totalorder %v7327_v38, 2 }
0x1183   :  { %9941 = vsinq.f32 %v7940_v0  ;;  %v7331_v23 = vsel %vm7329_vm6, %v14847_v34, %v16179_v7  ;;  %v16180_v53 = vxor.u32 2147483648, %v14847_v34  ;;  %vm7944_vm15 = vweird.f32 %v14519_v27 }
0x1184   :  { %vm9339_vm13 = vcmp.lt.s32.totalorder %v9338_v51, 0  ;;  %9943 = vpow2.f32 %v7212_v15  ;;  %v8041_v41 = vsub.s32 4, %v15344_v28  ;;  %vm7328_vm12 = vcmp.lt.s32.totalorder %v7327_v38, 2 }
0x1185   :  { %v8026_v33 = vsel %vm9339_vm13, 0, %v9338_v51  ;;  %9945 = vpow2.f32 %v7210_v4  ;;  %v7334_v21 = vsel %vm7332_vm10, %v16180_v53, %v14858_v32  ;;  %vm7535_vm1 = vcmp.eq.s32.totalorder %v7533_v20, 0 }
0x1186   :  { %v8027_v9 = vsub.s32 32, %v8026_v33  ;;  %v8031_v43 = vsub.s32 4294967266, %v8026_v33  ;;  %v8028_v39 = vshll.u32 %v8019_v47, %v8026_v33  ;;  %v7335_v46 = vsel %vm7328_vm12, %v7331_v23, %v7334_v21 }
0x1187   :  { %vm7538_vm8 = vcmp.eq.s32.totalorder %v7533_v20, 2  ;;  %v16181_v34 = vxor.u32 2147483648, %v15019_v50  ;;  %v16182_v57 = vxor.u32 2147483648, %v15014_v52  ;;  %vm7956_vm13 = vcmp.le.f32.partialorder %v7955_v36, 0.7853982 }
0x1188   :  { %v8029_v31 = vshrl.u32 %v8011_v48, %v8027_v9  ;;  %v8032_v8 = vadd.s32 127, %v8031_v43  ;;  %v7336_v55 = vsel %vm7326_vm14, nan, %v7335_v46  ;;  %v7945_v9 = vand.u32 3, %v15380_v17 }
0x1189   :  { %v7537_v32 = vsel %vm7535_vm1, %v15014_v52, %v16181_v34  ;;  %v7540_v11 = vsel %vm7538_vm8, %v16182_v57, %v15019_v50  ;;  %v7748_v5 = vsel %vm7738_vm5, nan, %v15377_v59  ;;  %v16183_v7 = vxor.u32 2147483648, %v14920_v26 }
0x118a   :  { %v8030_v14 = vor.u32 %v8029_v31, %v8028_v39  ;;  %v8033_v25 = vshll.u32 %v8032_v8, 23  ;;  %v8939_v33 = vpop.permute.xlu1 %8938  ;;  %vm7947_vm14 = vcmp.eq.s32.totalorder %v7945_v9, 0  ;;  %v7430_v31 = vand.u32 3, %v14766_v58 }
0x118b   :  { %vm8047_vm8 = vweird.f32 %v14531_v6  ;;  %v7851_v53 = vsel %vm7841_vm7, nan, %v15384_v44 }
0x118c   :  { %v15391_v18 = vpop.eup %9939  ;;  %v8034_v49 = vor.u32 4788187, %v8033_v25  ;;  %v8037_v30 = vcvt.s32.f32 %v8030_v14  ;;  %vm7432_vm6 = vcmp.eq.s32.totalorder %v7430_v31, 0  ;;  %vm7435_vm12 = vcmp.eq.s32.totalorder %v7430_v31, 2 }
0x118d   :  { %v15393_v13 = vpop.eup %9941  ;;  %v7951_v61 = vxor.u32 2147483648, %v15391_v18  ;;  %v7434_v58 = vsel %vm7432_vm6, %v14915_v42, %v16183_v7 }
0x118e   :  { %v7948_v54 = vxor.u32 2147483648, %v15393_v13  ;;  %v8035_v47 = vand.u32 2147483647, %v8034_v49  ;;  %v15421_v56 = vpop.eup %9943 }
0x118f   :  { %v8823_v10 = vsel %vm8821_vm3, %v7951_v61, %v15393_v13  ;;  %v15428_v50 = vpop.eup %9945  ;;  %v7227_v40 = vmin.f32 %v15421_v56, 100.0  ;;  %vm7946_vm3 = vcmp.lt.s32.totalorder %v7945_v9, 2 }
0x1190   :  { %v8820_v35 = vsel %vm8818_vm4, %v15391_v18, %v7948_v54  ;;  %v8038_v22 = vmul.f32 %v8037_v30, %v8035_v47  ;;  %vm7534_vm4 = vcmp.lt.s32.totalorder %v7533_v20, 2  ;;  %v7226_v37 = vmin.f32 %v15428_v50, 100.0 }
0x1191   :  { %v8824_v29 = vsel %vm8817_vm2, %v8820_v35, %v8823_v10  ;;  %vm7957_vm2 = vcmp.lt.s32.totalorder %v14531_v6, 0  ;;  %v7541_v52 = vsel %vm7534_vm4, %v7537_v32, %v7540_v11  ;;  %v7949_v8 = vsel %vm7947_vm14, %v15391_v18, %v7948_v54  ;;  %v9816_v35 = vld [vmem:[%s15573_s10] sm:$0xff]  }
0x1192   :  { %v8825_v24 = vsel %vm7944_vm15, nan, %v8824_v29  ;;  %v8039_v12 = vxor.u32 2147483648, %v8038_v22  ;;  %v8042_v1 = vsel %vm7957_vm2, %v8041_v41, %v15344_v28  ;;  %v7542_v28 = vsel %vm7532_vm9, nan, %v7541_v52  ;;  %9657 = vmatprep.subr.bf16.mxu0 %v9816_v35 }
0x1193   :  { %8950 = vrot.lane.b32.xlu0 %v8825_v24, %s9983_s9  ;;  %v8044_v63 = vsel %vm7956_vm13, 0, %v8042_v1  ;;  %v8962_v15 = vmul.f32 %v8939_v33, %v7226_v37  ;;  %vm7950_vm9 = vcmp.eq.s32.totalorder %v7945_v9, 2  ;;  %9658 = vmatpush3.bf16.msra.mxu0 %v9816_v35  ;;  %v7214_v47 = vmul.f32 1.442695, %v14495_v16 }
0x1194   :  { %v8040_v0 = vsel %vm7957_vm2, %v8039_v12, %v8038_v22  ;;  %v8919_v43 = vadd.s32 3, %v8044_v63  ;;  %v7952_v17 = vsel %vm7950_vm9, %v7951_v61, %v15393_v13  ;;  %v16184_v13 = vxor.u32 2147483648, %v14915_v42  ;;  %v9817_v16 = vld [vmem:[%s15573_s10 + $0x8] ss:$0 sps:$4 sm:$0x11]  }
0x1195   :  { %v8043_v51 = vsel %vm7956_vm13, %v14531_v6, %v8040_v0  ;;  %v8941_v36 = vpop.permute.xlu0 %8940  ;;  %v7953_v59 = vsel %vm7946_vm3, %v7949_v8, %v7952_v17  ;;  %vm7431_vm13 = vcmp.lt.s32.totalorder %v7430_v31, 2  ;;  %v7216_v30 = vmul.f32 1.442695, %v14504_v45 }
0x1196   :  { %9947 = vcosq.f32 %v8043_v51  ;;  %v8963_v48 = vmul.f32 %v8941_v36, %v7227_v40  ;;  %v8920_v39 = vand.u32 3, %v8919_v43  ;;  %v7437_v61 = vsel %vm7435_vm12, %v16184_v13, %v14920_v26 }
0x1197   :  { %8066 = vrot.lane.b32.xlu0 %v7336_v55, %s9983_s9  ;;  %9949 = vsinq.f32 %v8043_v51  ;;  %v7954_v54 = vsel %vm7944_vm15, nan, %v7953_v59  ;;  %v7438_v42 = vsel %vm7431_vm13, %v7434_v58, %v7437_v61  ;;  %v8048_v29 = vand.u32 3, %v8044_v63 }
0x1198   :  { %v9772_v38 = vpack.i.bf16 %v8963_v48, %v8962_v15  ;;  %vm8925_vm5 = vcmp.eq.s32.totalorder %v8920_v39, 2  ;;  %vm8922_vm10 = vcmp.eq.s32.totalorder %v8920_v39, 0  ;;  %vm8921_vm1 = vcmp.lt.s32.totalorder %v8920_v39, 2 }
0x1199   :  { %v7439_v26 = vsel %vm7429_vm0, nan, %v7438_v42  ;;  %9951 = vpow2.f32 %v7214_v47  ;;  %vm9040_vm0 = vcmask 1040384   ;;  %vm8050_vm7 = vcmp.eq.s32.totalorder %v8048_v29, 0 }
0x119a   :  { %9953 = vpow2.f32 %v7216_v30  ;;  %9719 = vmatprep.subr.msk.bf16.mxu0 %vm9040_vm0, %v9817_v16  ;;  %vm8053_vm15 = vcmp.eq.s32.totalorder %v8048_v29, 2  ;;  %vm8049_vm2 = vcmp.lt.s32.totalorder %v8048_v29, 2  ;;  %v7218_v0 = vmul.f32 1.442695, %v14527_v3 }
0x119b   :  { %8070 = vrot.lane.b32.xlu0 %v7542_v28, %s9983_s9  ;;  %v7220_v1 = vmul.f32 1.442695, %v14536_v19  ;;  %v7222_v15 = vmul.f32 1.442695, %v14519_v27  ;;  %v7224_v3 = vmul.f32 1.442695, %v14531_v6 }
0x119c   :  { %9955 = vpow2.f32 %v7218_v0  ;;  %vm9002_vm4 = vcmask 72704   ;;  %vm9027_vm14 = vcmask 146432  }
0x119d   :  { %9957 = vpow2.f32 %v7220_v1 }
0x119e   :  { %9959 = vpow2.f32 %v7222_v15 }
0x119f   :  { %8074 = vrot.lane.b32.xlu0 %v7748_v5, %s9983_s9  ;;  %9961 = vpow2.f32 %v7224_v3 }
0x11a0   :  { %v9948_v4 = vpop.eup %9947 }
0x11a1   :  { %v9950_v14 = vpop.eup %9949  ;;  %v8054_v25 = vxor.u32 2147483648, %v9948_v4 }
0x11a2   :  { %v8051_v49 = vxor.u32 2147483648, %v9950_v14 }
0x11a3   :  { %9773 = vrot.lane.b32.xlu0 %v9772_v38, %s9984_s3  ;;  %v8927_v10 = vsel %vm8925_vm5, %v8054_v25, %v9950_v14  ;;  %v15475_v2 = vpop.eup %9951  ;;  %v8055_v34 = vsel %vm8053_vm15, %v8054_v25, %v9950_v14 }
0x11a4   :  { %v8924_v18 = vsel %vm8922_vm10, %v9948_v4, %v8051_v49  ;;  %v15480_v45 = vpop.eup %9953  ;;  %v7228_v24 = vmin.f32 %v15475_v2, 100.0  ;;  %v8052_v12 = vsel %vm8050_vm7, %v9948_v4, %v8051_v49 }
0x11a5   :  { %v8928_v23 = vsel %vm8921_vm1, %v8924_v18, %v8927_v10  ;;  %v7229_v44 = vmin.f32 %v15480_v45, 100.0  ;;  %v8056_v57 = vsel %vm8049_vm2, %v8052_v12, %v8055_v34 }
0x11a6   :  { %v8929_v20 = vsel %vm8047_vm8, nan, %v8928_v23  ;;  %v8057_v11 = vsel %vm8047_vm8, nan, %v8056_v57  ;;  %v9956_v55 = vpop.eup %9955 }
0x11a7   :  { %8078 = vrot.lane.b32.xlu0 %v7954_v54, %s9983_s9  ;;  %8952 = vrot.lane.b32.xlu1 %v8929_v20, %s9983_s9  ;;  %v8943_v21 = vpop.permute.xlu1 %8942  ;;  %v9958_v51 = vpop.eup %9957  ;;  %v7230_v36 = vmin.f32 %v9956_v55, 100.0 }
0x11a8   :  { %v8964_v41 = vmul.f32 %v8943_v21, %v7228_v24  ;;  %v7231_v63 = vmin.f32 %v9958_v51, 100.0  ;;  %v9960_v31 = vpop.eup %9959 }
0x11a9   :  { %v9962_v8 = vpop.eup %9961  ;;  %v7232_v4 = vmin.f32 %v9960_v31, 100.0 }
0x11aa   :  { %v7233_v14 = vmin.f32 %v9962_v8, 100.0 }
0x11ab   :  { %8068 = vrot.lane.b32.xlu1 %v7439_v26, %s9983_s9 }
0x11af   :  { %8072 = vrot.lane.b32.xlu1 %v15364_v62, %s9983_s9  ;;  %v9042_v62 = vsel %vm9040_vm0, %v9817_v16, 0 }
0x11b0   :  { %9660 = vmatpush3.bf16.msra.mxu0 %v9042_v62 }
0x11b3   :  { %8076 = vrot.lane.b32.xlu1 %v7851_v53, %s9983_s9 }
0x11c0   :  { %v8945_v22 = vpop.permute.xlu1 %8944 }
0x11c1   :  { %v8965_v46 = vmul.f32 %v8945_v22, %v7229_v44 }
0x11c3   :  { %v9767_v32 = vpack.i.bf16 %v8965_v46, %v8964_v41 }
0x11c5   :  { %9768 = vrot.lane.b32.xlu1 %v9767_v32, %s9984_s3 }
0x11c9   :  { %8080 = vrot.lane.b32.xlu1 %v8057_v11, %s9983_s9 }
0x11d8   :  { %v8947_v52 = vpop.permute.xlu0 %8946 }
0x11d9   :  { %v8966_v33 = vmul.f32 %v8947_v52, %v7230_v36 }
0x11ee   :  { %v8949_v28 = vpop.permute.xlu1 %8948 }
0x11ef   :  { %v8967_v48 = vmul.f32 %v8949_v28, %v7231_v63 }
0x11f1   :  { %v9777_v9 = vpack.i.bf16 %v8967_v48, %v8966_v33 }
0x11f3   :  { %9778 = vrot.lane.b32.xlu0 %v9777_v9, %s9984_s3 }
0x1205   :  { %v8951_v43 = vpop.permute.xlu0 %8950 }
0x1206   :  { %v8968_v59 = vmul.f32 %v8951_v43, %v7232_v4 }
0x1209   :  { %v8067_v5 = vpop.permute.xlu0 %8066 }
0x120a   :  { %v8090_v6 = vmul.f32 %v8067_v5, %v7226_v37 }
0x120d   :  { %v8071_v19 = vpop.permute.xlu0 %8070 }
0x120e   :  { %v8092_v50 = vmul.f32 %v8071_v19, %v7228_v24 }
0x1211   :  { %v8075_v38 = vpop.permute.xlu0 %8074 }
0x1212   :  { %4280 = vadd.xlane.f32.xlu0 %v13171_v60  ;;  %v8094_v39 = vmul.f32 %v8075_v38, %v7230_v36 }
0x1215   :  { %v9774_v17 = vpop.permute.xlu0 %9773 }
0x1216   :  { %v9775_v10 = vunpack.i.l.bf16 %v9774_v17  ;;  %v9776_v7 = vunpack.i.h.bf16 %v9774_v17 }
0x1218   :  { %v9003_v18 = vsel %vm9002_vm4, %v8090_v6, %v9775_v10 }
0x1219   :  { %v8953_v25 = vpop.permute.xlu1 %8952  ;;  %v8079_v47 = vpop.permute.xlu0 %8078 }
0x121a   :  { %v8969_v49 = vmul.f32 %v8953_v25, %v7233_v14 }
0x121c   :  { %v9782_v27 = vpack.i.bf16 %v8969_v49, %v8968_v59 }
0x121d   :  { %v8069_v58 = vpop.permute.xlu1 %8068 }
0x121e   :  { %v8091_v60 = vmul.f32 %v8069_v58, %v7227_v40  ;;  %9783 = vrot.lane.b32.xlu1 %v9782_v27, %s9984_s3 }
0x1220   :  { %v9004_v13 = vsel %vm9002_vm4, %v8091_v60, %v9776_v7 }
0x1221   :  { %v9011_v61 = vpack.c.bf16 %v9004_v13, %v9003_v18  ;;  %v8073_v54 = vpop.permute.xlu1 %8072 }
0x1222   :  { %v8093_v56 = vmul.f32 %v8073_v54, %v7229_v44  ;;  %v8096_v44 = vmul.f32 %v8079_v47, %v7232_v4 }
0x1223   :  { %9661 = vmatprep.mubr.msk.bf16.mxu0 %vm9027_vm14, %v9011_v61 }
0x1225   :  { %v8077_v23 = vpop.permute.xlu1 %8076 }
0x1226   :  { %v8095_v53 = vmul.f32 %v8077_v23, %v7231_v63 }
0x1237   :  { %v9769_v20 = vpop.permute.xlu1 %9768 }
0x1238   :  { %v9771_v40 = vunpack.i.h.bf16 %v9769_v20  ;;  %v9770_v37 = vunpack.i.l.bf16 %v9769_v20 }
0x123a   :  { %v9006_v35 = vsel %vm9002_vm4, %v8093_v56, %v9771_v40  ;;  %v9005_v42 = vsel %vm9002_vm4, %v8092_v50, %v9770_v37 }
0x123b   :  { %v9012_v26 = vpack.c.bf16 %v9006_v35, %v9005_v42  ;;  %v8081_v62 = vpop.permute.xlu1 %8080 }
0x123c   :  { %v8097_v22 = vmul.f32 %v8081_v62, %v7233_v14 }
0x123d   :  { %9662 = vmatmul.mubr.msk.bf16.vlgmr.msra.gmra.mrb[56].mxu0 %vm9027_vm14, %v9012_v26 }
0x1265   :  { %v9779_v30 = vpop.permute.xlu0 %9778 }
0x1266   :  { %v9781_v21 = vunpack.i.h.bf16 %v9779_v30  ;;  %v9780_v16 = vunpack.i.l.bf16 %v9779_v30 }
0x1268   :  { %v9007_v2 = vsel %vm9002_vm4, %v8094_v39, %v9780_v16  ;;  %v9008_v29 = vsel %vm9002_vm4, %v8095_v53, %v9781_v21 }
0x1269   :  { %v9013_v45 = vpack.c.bf16 %v9008_v29, %v9007_v2 }
0x126b   :  { %9665 = vmatprep.mubr.msk.bf16.mxu0 %vm9027_vm14, %v9013_v45 }
0x1290   :  { %v9784_v24 = vpop.permute.xlu1 %9783 }
0x1291   :  { %v9786_v41 = vunpack.i.h.bf16 %v9784_v24  ;;  %v9785_v46 = vunpack.i.l.bf16 %v9784_v24 }
0x1293   :  { %v9010_v12 = vsel %vm9002_vm4, %v8097_v22, %v9786_v41  ;;  %v9009_v34 = vsel %vm9002_vm4, %v8096_v44, %v9785_v46 }
0x1294   :  { %v9014_v32 = vpack.c.bf16 %v9010_v12, %v9009_v34 }
0x1296   :  { %9666 = vmatmul.mubr.msk.bf16.gmra.mrb[60].mxu0 %vm9027_vm14, %v9014_v32 }
0x129f   :  { %v4281_v57 = vpop.xlane.xlu0 %4280 }
0x12a0   :  { %v4282_v11 = vrot.slane %v4281_v57, 4 }
0x12a2   :  { %v4283_v0 = vadd.f32 %v4282_v11, %v4281_v57 }
0x12a4   :  { %v4284_v1 = vrot.slane %v4283_v0, 2 }
0x12a6   :  { %v4285_v55 = vadd.f32 %v4284_v1, %v4283_v0 }
0x12a8   :  { %v4286_v51 = vrot.slane %v4285_v55, 1 }
0x12aa   :  { %v4287_v52 = vadd.f32 %v4286_v51, %v4285_v55 }
0x12ac   :  { %9720 = vpush %v4287_v52 }
0x12dd   :  { %s9721_s10 = spop %9720 }
0x12de   :  { %s4291_s21 = smul.f32 0.00048828125, %s9721_s10 }
0x12e0   :  { %4293 = sst [smem:[#allocation2]] %s4291_s21 }
0x12e1   :  { %9972 = shalt.err (!%p9969_p2)
}
0x12e2   :  { %s9985_s6 = smov [#allocation2]  }
0x12e3   :  { %9126 = dma.smem_to_hbm %s9985_s6, 16, %s15576_s13, [#allocation3]  }
0x1310   :  { %v9663_v36 = vpop.f32.mrb[56].mxu0 }
0x1311   :  { %9111 = vst.msk [vmem:[%s15575_s12 + $0x10] sm:$0xff] %vm2391_vm11, %v9663_v36  ;;  %v9078_v63 = vpop.f32.mrb[57].mxu0 }
0x1312   :  { %9109 = vst.msk [vmem:[%s15575_s12] sm:$0xff] %vm2391_vm11, %v9078_v63  ;;  %v9664_v28 = vpop.f32.mrb[58].mxu0 }
0x1313   :  { %9112 = vst.msk [vmem:[%s15575_s12 + $0x18] sm:$0xff] %vm2391_vm11, %v9664_v28  ;;  %v9081_v33 = vpop.f32.mrb[59].mxu0 }
0x1314   :  { %9110 = vst.msk [vmem:[%s15575_s12 + $0x8] sm:$0xff] %vm2391_vm11, %v9081_v33 }
0x1369   :  { %v9667_v48 = vpop.f32.mrb[60].mxu0 }
0x136a   :  { %9115 = vst.msk [vmem:[%s15575_s12 + $0x30] sm:$0xff] %vm2391_vm11, %v9667_v48  ;;  %v9094_v9 = vpop.f32.mrb[61].mxu0 }
0x136b   :  { %9113 = vst.msk [vmem:[%s15575_s12 + $0x20] sm:$0xff] %vm2391_vm11, %v9094_v9  ;;  %v9668_v43 = vpop.f32.mrb[62].mxu0 }
0x136c   :  { %9116 = vst.msk [vmem:[%s15575_s12 + $0x38] sm:$0xff] %vm2391_vm11, %v9668_v43  ;;  %v9097_v15 = vpop.f32.mrb[63].mxu0 }
0x136d   :  { %9114 = vst.msk [vmem:[%s15575_s12 + $0x28] sm:$0xff] %vm2391_vm11, %v9097_v15 }
0x136e   :  { %9973 = dma.done.wait [#allocation3], 16  }
0x136f   :  { %9974 = vsyncadd [#allocation3], 4294967280 }
0x1370   :  { %9132 = sfence }
0x1371   :  { %9133 = vsyncpa [#allocation3], 1 }

</bundles_post_ra>
